<compile_context>
chip_gen: v7x
topology: tpu7x:2x2x1
jax: 0.10.0
libtpu: 0.0.40
codegen_flags: <defaults>
</compile_context>

<pallas_src>
import math
from functools import partial

import jax
import jax.numpy as jnp
from jax import lax
from jax.experimental import pallas as pl
from jax.experimental.pallas import tpu as pltpu

LANE = 128  # TPU lane width; vocab-sized dims are padded to this for dense stores


def _round_up(x, m):
    return (x + m - 1) // m * m


# --------------------------- fused forward kernel ---------------------------

def _transformer_kernel(*refs, treedef, n_params, seq, n_heads, d_feature):
    """Whole Transformer forward for ONE batch element (one grid step).

    refs = (ids (1,2S,1), pe_row (1,D), *flat_prepared_params, out (S,voc_pad)).
    All weights + activations are VMEM resident.
    """
    ids_ref, pe_ref = refs[0], refs[1]
    p = jax.tree_util.tree_unflatten(treedef, refs[2:2 + n_params])
    out_ref = refs[2 + n_params]

    S, H, df = seq, n_heads, d_feature
    scale = 1.0 / math.sqrt(df)

    def linear(x, w_ref, b_ref):
        # weights pre-transposed to (Din, Dout): no runtime w.T anywhere
        return (jnp.dot(x, w_ref[...], preferred_element_type=jnp.float32)
                + b_ref[...])

    def layer_norm(y, g_ref, b_ref):          # nn.LayerNorm(eps=1e-5), affine
        mean = jnp.mean(y, axis=-1, keepdims=True)
        var = jnp.mean(jnp.square(y - mean), axis=-1, keepdims=True)
        return (y - mean) * lax.rsqrt(var + 1e-5) * g_ref[...] + b_ref[...]

    def mha(q_in, kv_in, mp):
        # Per-head Q/K/V via free leading-dim slices of (H, D, df) weight
        # refs: no width-df lane slices of activations, and cross-attention
        # never computes the unused K/V(q_in) or Q(kv_in) projections.
        q = [jnp.dot(q_in, mp['wq'][h], preferred_element_type=jnp.float32)
             + mp['bq'][h] for h in range(H)]
        k = [jnp.dot(kv_in, mp['wk'][h], preferred_element_type=jnp.float32)
             + mp['bk'][h] for h in range(H)]
        v = [jnp.dot(kv_in, mp['wv'][h], preferred_element_type=jnp.float32)
             + mp['bv'][h] for h in range(H)]
        # reference quirk: scores = K @ Q^T (not Q @ K^T)
        s = [lax.dot_general(k[h], q[h], (((1,), (1,)), ((), ())),
                             preferred_element_type=jnp.float32) * scale
             for h in range(H)]
        # ONE softmax for all heads: stack the (S,S) tiles along sublanes.
        s_all = jnp.concatenate(s, axis=0)                        # (H*S, S)
        e = jnp.exp(s_all - jnp.max(s_all, axis=-1, keepdims=True))
        # exact reciprocal keeps the numeric cross-check tight; the saving of
        # the approx EUP path is immeasurable at this size.
        probs = e * pl.reciprocal(jnp.sum(e, axis=-1, keepdims=True),
                                  approx=False)
        o = [jnp.dot(probs[h * S:(h + 1) * S, :], v[h],
                     preferred_element_type=jnp.float32) for h in range(H)]
        # head-concat + W_0 fused into a single (S, H*df) x (H*df, D) matmul
        o_cat = jnp.concatenate(o, axis=1)
        return (jnp.dot(o_cat, mp['w0'][...],
                        preferred_element_type=jnp.float32) + mp['b0'][...])

    def ffn(x, lp):
        h = linear(x, lp['ff1_w'], lp['ff1_b'])
        h = jnp.where(h >= 0, h, 0.1 * h)              # LeakyReLU(0.1)
        return linear(h, lp['ff2_w'], lp['ff2_b'])

    # TODO(synk): dropout layers are eval-mode identities and the optional
    # encoder/decoder masks (None in the reference default path) are omitted.

    # ---- embedding: BOTH token streams in ONE one-hot matmul ---------------
    emb = p['emb'][...]                               # (voc_pad, D)
    voc_pad = emb.shape[0]
    ids = ids_ref[0]                                  # (2S, 1) int32
    onehot = jnp.where(
        ids == lax.broadcasted_iota(jnp.int32, (2 * S, voc_pad), 1), 1.0, 0.0)
    # reference quirk: PositionEncoding adds the single row pe[seq_len]
    x_both = (jnp.dot(onehot, emb, preferred_element_type=jnp.float32)
              + pe_ref[...])
    x = x_both[:S, :]        # encoder stream
    y = x_both[S:, :]        # decoder stream

    # ---- encoder stack -----------------------------------------------------
    for lp in p['encoders']:
        x = x + layer_norm(mha(x, x, lp['mha']), lp['ln1_g'], lp['ln1_b'])
        x = x + layer_norm(ffn(x, lp), lp['ln2_g'], lp['ln2_b'])
    enc_out = x

    # ---- decoder stack (self & cross attention share weights: ref quirk) ---
    for lp in p['decoders']:
        y = y + layer_norm(mha(y, y, lp['mha']), lp['ln1_g'], lp['ln1_b'])
        y = y + layer_norm(mha(y, enc_out, lp['mha']), lp['ln2_g'], lp['ln2_b'])
        ff = ffn(y, lp)
        y = ff + layer_norm(ff, lp['ln3_g'], lp['ln3_b'])  # quirk: ff + LN(ff)

    # ---- final vocab projection: lane-dense (S, 128) store -----------------
    out_ref[...] = linear(y, p['fc_w'], p['fc_b'])


# -------------------------- host-side param re-layout -----------------------

def prepare_params(params):
    """One-time weight re-layout (done once, NOT per forward call):
    per-head attention weights as (H, D, df) leading-dim blocks, per-head
    biases as (H, 1, df); every other linear transposed to (Din, Dout);
    biases / LN params flattened to (1, D) rows; embedding and final fc
    padded to 128 lanes so the kernel's only store is unmasked."""
    voc, d_model = params['emb'].shape

    def prep_mha(p):
        return dict(
            wq=jnp.transpose(p['wq'], (0, 2, 1)),     # (H, D, df)
            wk=jnp.transpose(p['wk'], (0, 2, 1)),
            wv=jnp.transpose(p['wv'], (0, 2, 1)),
            bq=p['bq'][:, None, :],                   # (H, 1, df)
            bk=p['bk'][:, None, :],
            bv=p['bv'][:, None, :],
            w0=p['w0'].T,                             # (H*df, D)
            b0=p['b0'].reshape(1, -1))

    def prep_layer(p, is_decoder):
        d = dict(mha=prep_mha(p['mha']),
                 ff1_w=p['ff1_w'].T, ff1_b=p['ff1_b'].reshape(1, -1),
                 ff2_w=p['ff2_w'].T, ff2_b=p['ff2_b'].reshape(1, -1),
                 ln1_g=p['ln1_g'].reshape(1, -1), ln1_b=p['ln1_b'].reshape(1, -1),
                 ln2_g=p['ln2_g'].reshape(1, -1), ln2_b=p['ln2_b'].reshape(1, -1))
        if is_decoder:
            d.update(ln3_g=p['ln3_g'].reshape(1, -1),
                     ln3_b=p['ln3_b'].reshape(1, -1))
        return d

    voc_pad = _round_up(voc, LANE)
    emb_pad = jnp.zeros((voc_pad, d_model), jnp.float32).at[:voc].set(
        params['emb'])
    fc_w_pad = jnp.zeros((d_model, voc_pad), jnp.float32).at[:, :voc].set(
        params['fc_w'].T)
    fc_b_pad = jnp.zeros((1, voc_pad), jnp.float32).at[:, :voc].set(
        params['fc_b'].reshape(1, -1))

    return dict(
        emb=emb_pad, pe=params['pe'],
        encoders=[prep_layer(p, False) for p in params['encoders']],
        decoders=[prep_layer(p, True) for p in params['decoders']],
        fc_w=fc_w_pad, fc_b=fc_b_pad)


def fused_transformer_forward(prep, ids_enc, ids_dec, *, n_heads, d_feature,
                              voc_size):
    assert ids_enc.shape == ids_dec.shape   # reference cross-attn requires it
    B, S = ids_enc.shape
    d_model = prep['emb'].shape[-1]
    voc_pad = prep['fc_w'].shape[-1]

    # reference quirk: pe[seq_len] — pass only that single row to the kernel.
    pe_row = prep['pe'][S:S + 1, :]                       # (1, D)
    # NOTE: token ids must be < voc_size; ids in the 128-lane padding region
    # would silently map to a zero embedding (the torch gather would fail).
    ids_all = jnp.concatenate([ids_enc, ids_dec], axis=1)
    ids_all = ids_all.reshape(B, 2 * S, 1).astype(jnp.int32)

    kparams = {k: v for k, v in prep.items() if k != 'pe'}
    flat, treedef = jax.tree_util.tree_flatten(kparams)

    kernel = partial(_transformer_kernel, treedef=treedef, n_params=len(flat),
                     seq=S, n_heads=n_heads, d_feature=d_feature)

    def bcast_spec(a):   # full-array block, identical for every grid step
        return pl.BlockSpec(a.shape, lambda b, _n=a.ndim: (0,) * _n)

    logits_pad = pl.pallas_call(
        kernel,
        grid=(B,),                            # one batch element per grid step
        in_specs=[pl.BlockSpec((1, 2 * S, 1), lambda b: (b, 0, 0)),
                  pl.BlockSpec((1, d_model), lambda b: (0, 0))]
                 + [bcast_spec(a) for a in flat],
        out_specs=pl.BlockSpec((S, voc_pad), lambda b: (b, 0)),
        out_shape=jax.ShapeDtypeStruct((B * S, voc_pad), jnp.float32),
        # Batches are independent: "parallel" lets v7x spread the grid steps
        # over its 2 TensorCores.  Footprint ~3 MiB << 32 MiB scoped default
        # (and << v7x's 64 MiB physical VMEM), so no vmem_limit_bytes needed.
        compiler_params=pltpu.CompilerParams(
            dimension_semantics=("parallel",)),
    )(ids_all, pe_row, *flat)
    return logits_pad[:, :voc_size].reshape(B, S, voc_size)


# ------------------------- pure-JAX reference (check) ------------------------

def reference_forward(params, ids_enc, ids_dec):
    """Straightforward JAX mirror of the PyTorch module (eval mode)."""
    def linear(x, w, b):
        return x @ w.T + b

    def layer_norm(y, g, b):
        mean = jnp.mean(y, axis=-1, keepdims=True)
        var = jnp.mean(jnp.square(y - mean), axis=-1, keepdims=True)
        return (y - mean) * lax.rsqrt(var + 1e-5) * g + b

    def sdp(Q, K, V):
        d_k = K.shape[-1]
        s = jnp.einsum('bkd,bqd->bkq', K, Q) / math.sqrt(d_k)
        a = jax.nn.softmax(s, axis=-1)
        return jnp.einsum('bkq,bqd->bkd', a, V)

    def mha(p, queries, keys, values):
        outs = []
        for h in range(p['wq'].shape[0]):
            Q = linear(queries, p['wq'][h], p['bq'][h])
            K = linear(keys, p['wk'][h], p['bk'][h])
            V = linear(values, p['wv'][h], p['bv'][h])
            outs.append(sdp(Q, K, V))
        return linear(jnp.concatenate(outs, axis=-1), p['w0'], p['b0'])

    def ffn(p, x):
        h = linear(x, p['ff1_w'], p['ff1_b'])
        h = jnp.where(h >= 0, h, 0.1 * h)
        return linear(h, p['ff2_w'], p['ff2_b'])

    emb, pe = params['emb'], params['pe']
    x = emb[ids_enc] + pe[ids_enc.shape[1]]          # quirk: single pe row
    for p in params['encoders']:
        x = x + layer_norm(mha(p['mha'], x, x, x), p['ln1_g'], p['ln1_b'])
        x = x + layer_norm(ffn(p, x), p['ln2_g'], p['ln2_b'])
    enc_out = x

    y = emb[ids_dec] + pe[ids_dec.shape[1]]
    for p in params['decoders']:
        y = y + layer_norm(mha(p['mha'], y, y, y), p['ln1_g'], p['ln1_b'])
        y = y + layer_norm(mha(p['mha'], y, enc_out, enc_out),
                           p['ln2_g'], p['ln2_b'])
        ff = ffn(p, y)
        y = ff + layer_norm(ff, p['ln3_g'], p['ln3_b'])
    return linear(y, params['fc_w'], params['fc_b'])


# ---------------------------- parameter creation ----------------------------

class KeyGen:
    def __init__(self, key):
        self.key = key

    def __call__(self):
        self.key, sub = jax.random.split(self.key)
        return sub


def _uniform(kg, shape, bound):
    return jax.random.uniform(kg(), shape, jnp.float32, -bound, bound)


def init_mha(kg, n_heads, d_model, d_feature):
    bi = 1.0 / math.sqrt(d_model)
    bo = 1.0 / math.sqrt(n_heads * d_feature)
    return dict(
        wq=_uniform(kg, (n_heads, d_feature, d_model), bi),
        bq=_uniform(kg, (n_heads, d_feature), bi),
        wk=_uniform(kg, (n_heads, d_feature, d_model), bi),
        bk=_uniform(kg, (n_heads, d_feature), bi),
        wv=_uniform(kg, (n_heads, d_feature, d_model), bi),
        bv=_uniform(kg, (n_heads, d_feature), bi),
        w0=_uniform(kg, (d_model, n_heads * d_feature), bo),
        b0=_uniform(kg, (d_model,), bo),
    )


def init_layer(kg, d_model, d_feature, d_ff, n_heads, is_decoder):
    b1 = 1.0 / math.sqrt(d_model)
    b2 = 1.0 / math.sqrt(d_ff)
    p = dict(
        mha=init_mha(kg, n_heads, d_model, d_feature),
        ff1_w=_uniform(kg, (d_ff, d_model), b1),
        ff1_b=_uniform(kg, (d_ff,), b1),
        ff2_w=_uniform(kg, (d_model, d_ff), b2),
        ff2_b=_uniform(kg, (d_model,), b2),
        ln1_g=jnp.ones((d_model,), jnp.float32),
        ln1_b=jnp.zeros((d_model,), jnp.float32),
        ln2_g=jnp.ones((d_model,), jnp.float32),
        ln2_b=jnp.zeros((d_model,), jnp.float32),
    )
    if is_decoder:
        p['ln3_g'] = jnp.ones((d_model,), jnp.float32)
        p['ln3_b'] = jnp.zeros((d_model,), jnp.float32)
    return p


def make_pe(max_length, d_model):
    pos = jnp.arange(max_length, dtype=jnp.float32)[:, None]
    idx = jnp.arange(0, d_model, 2, dtype=jnp.float32)[None, :]
    w = 1.0 / jnp.power(10000.0, idx / d_model)
    pe = jnp.zeros((max_length, d_model), jnp.float32)
    pe = pe.at[:, 0::2].set(jnp.sin(w * pos))
    pe = pe.at[:, 1::2].set(jnp.cos(w * pos))
    return pe


def init_params(kg, voc_size, d_model, d_feature, d_ff, n_heads, n_layers,
                max_length):
    bm = 1.0 / math.sqrt(d_model)
    return dict(
        emb=jax.random.normal(kg(), (voc_size, d_model), jnp.float32),
        pe=make_pe(max_length, d_model),
        encoders=[init_layer(kg, d_model, d_feature, d_ff, n_heads, False)
                  for _ in range(n_layers)],
        decoders=[init_layer(kg, d_model, d_feature, d_ff, n_heads, True)
                  for _ in range(n_layers)],
        fc_w=_uniform(kg, (voc_size, d_model), bm),
        fc_b=_uniform(kg, (voc_size,), bm),
    )


# ----------------------------------- main -----------------------------------

if __name__ == "__main__":
    voc_size = 50
    d_model, d_feature, d_ff = 32, 8, 64
    n_heads, n_layers, max_length = 4, 2, 20
    B, S = 2, 8   # encoder/decoder seq lengths must match (reference requires it)

    root = jax.random.PRNGKey(0)
    kp, ke, kd = jax.random.split(root, 3)
    kg = KeyGen(kp)
    params = init_params(kg, voc_size, d_model, d_feature, d_ff, n_heads,
                         n_layers, max_length)

    input_encoder = jax.random.randint(ke, (B, S), 0, voc_size, dtype=jnp.int32)
    input_decoder = jax.random.randint(kd, (B, S), 0, voc_size, dtype=jnp.int32)
    assert S < max_length                               # pe[seq_len] row exists
    assert int(input_encoder.max()) < voc_size          # valid token ids
    assert int(input_decoder.max()) < voc_size

    # one-time weight re-layout (no per-call host transposes)
    prep = prepare_params(params)

    fwd = jax.jit(partial(fused_transformer_forward, n_heads=n_heads,
                          d_feature=d_feature, voc_size=voc_size))
    out = jax.block_until_ready(fwd(prep, input_encoder, input_decoder))
    assert out.shape == (B, S, voc_size) and out.dtype == jnp.float32

    # cross-check against a pure-JAX mirror of the same math at full f32
    # matmul precision; residual gap is only MXU f32 multi-pass differences
    # between Mosaic and XLA.
    with jax.default_matmul_precision('float32'):
        ref = jax.jit(reference_forward)(params, input_encoder, input_decoder)
    ref = jax.block_until_ready(ref)
    max_err = float(jnp.max(jnp.abs(out - ref)))
    assert jnp.allclose(out, ref, rtol=1e-3, atol=1e-3), max_err

    print("KERNEL_OK")
</pallas_src>

<mosaic_0001>
module attributes {stable_mosaic.version = 11 : i64} {
  func.func @_transformer_kernel(%arg0: i32, %arg1: memref<1x16x1xi32, #tpu.memory_space<vmem>>, %arg2: memref<1x32xf32, #tpu.memory_space<vmem>>, %arg3: memref<1x64xf32, #tpu.memory_space<vmem>>, %arg4: memref<32x64xf32, #tpu.memory_space<vmem>>, %arg5: memref<1x32xf32, #tpu.memory_space<vmem>>, %arg6: memref<64x32xf32, #tpu.memory_space<vmem>>, %arg7: memref<1x32xf32, #tpu.memory_space<vmem>>, %arg8: memref<1x32xf32, #tpu.memory_space<vmem>>, %arg9: memref<1x32xf32, #tpu.memory_space<vmem>>, %arg10: memref<1x32xf32, #tpu.memory_space<vmem>>, %arg11: memref<1x32xf32, #tpu.memory_space<vmem>>, %arg12: memref<1x32xf32, #tpu.memory_space<vmem>>, %arg13: memref<1x32xf32, #tpu.memory_space<vmem>>, %arg14: memref<4x1x8xf32, #tpu.memory_space<vmem>>, %arg15: memref<4x1x8xf32, #tpu.memory_space<vmem>>, %arg16: memref<4x1x8xf32, #tpu.memory_space<vmem>>, %arg17: memref<32x32xf32, #tpu.memory_space<vmem>>, %arg18: memref<4x32x8xf32, #tpu.memory_space<vmem>>, %arg19: memref<4x32x8xf32, #tpu.memory_space<vmem>>, %arg20: memref<4x32x8xf32, #tpu.memory_space<vmem>>, %arg21: memref<1x64xf32, #tpu.memory_space<vmem>>, %arg22: memref<32x64xf32, #tpu.memory_space<vmem>>, %arg23: memref<1x32xf32, #tpu.memory_space<vmem>>, %arg24: memref<64x32xf32, #tpu.memory_space<vmem>>, %arg25: memref<1x32xf32, #tpu.memory_space<vmem>>, %arg26: memref<1x32xf32, #tpu.memory_space<vmem>>, %arg27: memref<1x32xf32, #tpu.memory_space<vmem>>, %arg28: memref<1x32xf32, #tpu.memory_space<vmem>>, %arg29: memref<1x32xf32, #tpu.memory_space<vmem>>, %arg30: memref<1x32xf32, #tpu.memory_space<vmem>>, %arg31: memref<1x32xf32, #tpu.memory_space<vmem>>, %arg32: memref<4x1x8xf32, #tpu.memory_space<vmem>>, %arg33: memref<4x1x8xf32, #tpu.memory_space<vmem>>, %arg34: memref<4x1x8xf32, #tpu.memory_space<vmem>>, %arg35: memref<32x32xf32, #tpu.memory_space<vmem>>, %arg36: memref<4x32x8xf32, #tpu.memory_space<vmem>>, %arg37: memref<4x32x8xf32, #tpu.memory_space<vmem>>, %arg38: memref<4x32x8xf32, #tpu.memory_space<vmem>>, %arg39: memref<128x32xf32, #tpu.memory_space<vmem>>, %arg40: memref<1x64xf32, #tpu.memory_space<vmem>>, %arg41: memref<32x64xf32, #tpu.memory_space<vmem>>, %arg42: memref<1x32xf32, #tpu.memory_space<vmem>>, %arg43: memref<64x32xf32, #tpu.memory_space<vmem>>, %arg44: memref<1x32xf32, #tpu.memory_space<vmem>>, %arg45: memref<1x32xf32, #tpu.memory_space<vmem>>, %arg46: memref<1x32xf32, #tpu.memory_space<vmem>>, %arg47: memref<1x32xf32, #tpu.memory_space<vmem>>, %arg48: memref<1x32xf32, #tpu.memory_space<vmem>>, %arg49: memref<4x1x8xf32, #tpu.memory_space<vmem>>, %arg50: memref<4x1x8xf32, #tpu.memory_space<vmem>>, %arg51: memref<4x1x8xf32, #tpu.memory_space<vmem>>, %arg52: memref<32x32xf32, #tpu.memory_space<vmem>>, %arg53: memref<4x32x8xf32, #tpu.memory_space<vmem>>, %arg54: memref<4x32x8xf32, #tpu.memory_space<vmem>>, %arg55: memref<4x32x8xf32, #tpu.memory_space<vmem>>, %arg56: memref<1x64xf32, #tpu.memory_space<vmem>>, %arg57: memref<32x64xf32, #tpu.memory_space<vmem>>, %arg58: memref<1x32xf32, #tpu.memory_space<vmem>>, %arg59: memref<64x32xf32, #tpu.memory_space<vmem>>, %arg60: memref<1x32xf32, #tpu.memory_space<vmem>>, %arg61: memref<1x32xf32, #tpu.memory_space<vmem>>, %arg62: memref<1x32xf32, #tpu.memory_space<vmem>>, %arg63: memref<1x32xf32, #tpu.memory_space<vmem>>, %arg64: memref<1x32xf32, #tpu.memory_space<vmem>>, %arg65: memref<4x1x8xf32, #tpu.memory_space<vmem>>, %arg66: memref<4x1x8xf32, #tpu.memory_space<vmem>>, %arg67: memref<4x1x8xf32, #tpu.memory_space<vmem>>, %arg68: memref<32x32xf32, #tpu.memory_space<vmem>>, %arg69: memref<4x32x8xf32, #tpu.memory_space<vmem>>, %arg70: memref<4x32x8xf32, #tpu.memory_space<vmem>>, %arg71: memref<4x32x8xf32, #tpu.memory_space<vmem>>, %arg72: memref<1x128xf32, #tpu.memory_space<vmem>>, %arg73: memref<32x128xf32, #tpu.memory_space<vmem>>, %arg74: memref<8x128xf32, #tpu.memory_space<vmem>>) attributes {dimension_semantics = [#tpu.dimension_semantics<parallel>], iteration_bounds = array<i64: 2>, scalar_prefetch = 0 : i64, scratch_operands = 0 : i64, tpu.core_type = #tpu.core_type<tc>, window_params = [{transform_indices = @transform_0, window_bounds = array<i64: 1, 16, 1>}, {pipeline_mode = #tpu.pipeline_mode<synchronous>, transform_indices = @transform_1, window_bounds = array<i64: 1, 32>}, {pipeline_mode = #tpu.pipeline_mode<synchronous>, transform_indices = @transform_2, window_bounds = array<i64: 1, 64>}, {pipeline_mode = #tpu.pipeline_mode<synchronous>, transform_indices = @transform_3, window_bounds = array<i64: 32, 64>}, {pipeline_mode = #tpu.pipeline_mode<synchronous>, transform_indices = @transform_4, window_bounds = array<i64: 1, 32>}, {pipeline_mode = #tpu.pipeline_mode<synchronous>, transform_indices = @transform_5, window_bounds = array<i64: 64, 32>}, {pipeline_mode = #tpu.pipeline_mode<synchronous>, transform_indices = @transform_6, window_bounds = array<i64: 1, 32>}, {pipeline_mode = #tpu.pipeline_mode<synchronous>, transform_indices = @transform_7, window_bounds = array<i64: 1, 32>}, {pipeline_mode = #tpu.pipeline_mode<synchronous>, transform_indices = @transform_8, window_bounds = array<i64: 1, 32>}, {pipeline_mode = #tpu.pipeline_mode<synchronous>, transform_indices = @transform_9, window_bounds = array<i64: 1, 32>}, {pipeline_mode = #tpu.pipeline_mode<synchronous>, transform_indices = @transform_10, window_bounds = array<i64: 1, 32>}, {pipeline_mode = #tpu.pipeline_mode<synchronous>, transform_indices = @transform_11, window_bounds = array<i64: 1, 32>}, {pipeline_mode = #tpu.pipeline_mode<synchronous>, transform_indices = @transform_12, window_bounds = array<i64: 1, 32>}, {pipeline_mode = #tpu.pipeline_mode<synchronous>, transform_indices = @transform_13, window_bounds = array<i64: 4, 1, 8>}, {pipeline_mode = #tpu.pipeline_mode<synchronous>, transform_indices = @transform_14, window_bounds = array<i64: 4, 1, 8>}, {pipeline_mode = #tpu.pipeline_mode<synchronous>, transform_indices = @transform_15, window_bounds = array<i64: 4, 1, 8>}, {pipeline_mode = #tpu.pipeline_mode<synchronous>, transform_indices = @transform_16, window_bounds = array<i64: 32, 32>}, {pipeline_mode = #tpu.pipeline_mode<synchronous>, transform_indices = @transform_17, window_bounds = array<i64: 4, 32, 8>}, {pipeline_mode = #tpu.pipeline_mode<synchronous>, transform_indices = @transform_18, window_bounds = array<i64: 4, 32, 8>}, {pipeline_mode = #tpu.pipeline_mode<synchronous>, transform_indices = @transform_19, window_bounds = array<i64: 4, 32, 8>}, {pipeline_mode = #tpu.pipeline_mode<synchronous>, transform_indices = @transform_20, window_bounds = array<i64: 1, 64>}, {pipeline_mode = #tpu.pipeline_mode<synchronous>, transform_indices = @transform_21, window_bounds = array<i64: 32, 64>}, {pipeline_mode = #tpu.pipeline_mode<synchronous>, transform_indices = @transform_22, window_bounds = array<i64: 1, 32>}, {pipeline_mode = #tpu.pipeline_mode<synchronous>, transform_indices = @transform_23, window_bounds = array<i64: 64, 32>}, {pipeline_mode = #tpu.pipeline_mode<synchronous>, transform_indices = @transform_24, window_bounds = array<i64: 1, 32>}, {pipeline_mode = #tpu.pipeline_mode<synchronous>, transform_indices = @transform_25, window_bounds = array<i64: 1, 32>}, {pipeline_mode = #tpu.pipeline_mode<synchronous>, transform_indices = @transform_26, window_bounds = array<i64: 1, 32>}, {pipeline_mode = #tpu.pipeline_mode<synchronous>, transform_indices = @transform_27, window_bounds = array<i64: 1, 32>}, {pipeline_mode = #tpu.pipeline_mode<synchronous>, transform_indices = @transform_28, window_bounds = array<i64: 1, 32>}, {pipeline_mode = #tpu.pipeline_mode<synchronous>, transform_indices = @transform_29, window_bounds = array<i64: 1, 32>}, {pipeline_mode = #tpu.pipeline_mode<synchronous>, transform_indices = @transform_30, window_bounds = array<i64: 1, 32>}, {pipeline_mode = #tpu.pipeline_mode<synchronous>, transform_indices = @transform_31, window_bounds = array<i64: 4, 1, 8>}, {pipeline_mode = #tpu.pipeline_mode<synchronous>, transform_indices = @transform_32, window_bounds = array<i64: 4, 1, 8>}, {pipeline_mode = #tpu.pipeline_mode<synchronous>, transform_indices = @transform_33, window_bounds = array<i64: 4, 1, 8>}, {pipeline_mode = #tpu.pipeline_mode<synchronous>, transform_indices = @transform_34, window_bounds = array<i64: 32, 32>}, {pipeline_mode = #tpu.pipeline_mode<synchronous>, transform_indices = @transform_35, window_bounds = array<i64: 4, 32, 8>}, {pipeline_mode = #tpu.pipeline_mode<synchronous>, transform_indices = @transform_36, window_bounds = array<i64: 4, 32, 8>}, {pipeline_mode = #tpu.pipeline_mode<synchronous>, transform_indices = @transform_37, window_bounds = array<i64: 4, 32, 8>}, {pipeline_mode = #tpu.pipeline_mode<synchronous>, transform_indices = @transform_38, window_bounds = array<i64: 128, 32>}, {pipeline_mode = #tpu.pipeline_mode<synchronous>, transform_indices = @transform_39, window_bounds = array<i64: 1, 64>}, {pipeline_mode = #tpu.pipeline_mode<synchronous>, transform_indices = @transform_40, window_bounds = array<i64: 32, 64>}, {pipeline_mode = #tpu.pipeline_mode<synchronous>, transform_indices = @transform_41, window_bounds = array<i64: 1, 32>}, {pipeline_mode = #tpu.pipeline_mode<synchronous>, transform_indices = @transform_42, window_bounds = array<i64: 64, 32>}, {pipeline_mode = #tpu.pipeline_mode<synchronous>, transform_indices = @transform_43, window_bounds = array<i64: 1, 32>}, {pipeline_mode = #tpu.pipeline_mode<synchronous>, transform_indices = @transform_44, window_bounds = array<i64: 1, 32>}, {pipeline_mode = #tpu.pipeline_mode<synchronous>, transform_indices = @transform_45, window_bounds = array<i64: 1, 32>}, {pipeline_mode = #tpu.pipeline_mode<synchronous>, transform_indices = @transform_46, window_bounds = array<i64: 1, 32>}, {pipeline_mode = #tpu.pipeline_mode<synchronous>, transform_indices = @transform_47, window_bounds = array<i64: 1, 32>}, {pipeline_mode = #tpu.pipeline_mode<synchronous>, transform_indices = @transform_48, window_bounds = array<i64: 4, 1, 8>}, {pipeline_mode = #tpu.pipeline_mode<synchronous>, transform_indices = @transform_49, window_bounds = array<i64: 4, 1, 8>}, {pipeline_mode = #tpu.pipeline_mode<synchronous>, transform_indices = @transform_50, window_bounds = array<i64: 4, 1, 8>}, {pipeline_mode = #tpu.pipeline_mode<synchronous>, transform_indices = @transform_51, window_bounds = array<i64: 32, 32>}, {pipeline_mode = #tpu.pipeline_mode<synchronous>, transform_indices = @transform_52, window_bounds = array<i64: 4, 32, 8>}, {pipeline_mode = #tpu.pipeline_mode<synchronous>, transform_indices = @transform_53, window_bounds = array<i64: 4, 32, 8>}, {pipeline_mode = #tpu.pipeline_mode<synchronous>, transform_indices = @transform_54, window_bounds = array<i64: 4, 32, 8>}, {pipeline_mode = #tpu.pipeline_mode<synchronous>, transform_indices = @transform_55, window_bounds = array<i64: 1, 64>}, {pipeline_mode = #tpu.pipeline_mode<synchronous>, transform_indices = @transform_56, window_bounds = array<i64: 32, 64>}, {pipeline_mode = #tpu.pipeline_mode<synchronous>, transform_indices = @transform_57, window_bounds = array<i64: 1, 32>}, {pipeline_mode = #tpu.pipeline_mode<synchronous>, transform_indices = @transform_58, window_bounds = array<i64: 64, 32>}, {pipeline_mode = #tpu.pipeline_mode<synchronous>, transform_indices = @transform_59, window_bounds = array<i64: 1, 32>}, {pipeline_mode = #tpu.pipeline_mode<synchronous>, transform_indices = @transform_60, window_bounds = array<i64: 1, 32>}, {pipeline_mode = #tpu.pipeline_mode<synchronous>, transform_indices = @transform_61, window_bounds = array<i64: 1, 32>}, {pipeline_mode = #tpu.pipeline_mode<synchronous>, transform_indices = @transform_62, window_bounds = array<i64: 1, 32>}, {pipeline_mode = #tpu.pipeline_mode<synchronous>, transform_indices = @transform_63, window_bounds = array<i64: 1, 32>}, {pipeline_mode = #tpu.pipeline_mode<synchronous>, transform_indices = @transform_64, window_bounds = array<i64: 4, 1, 8>}, {pipeline_mode = #tpu.pipeline_mode<synchronous>, transform_indices = @transform_65, window_bounds = array<i64: 4, 1, 8>}, {pipeline_mode = #tpu.pipeline_mode<synchronous>, transform_indices = @transform_66, window_bounds = array<i64: 4, 1, 8>}, {pipeline_mode = #tpu.pipeline_mode<synchronous>, transform_indices = @transform_67, window_bounds = array<i64: 32, 32>}, {pipeline_mode = #tpu.pipeline_mode<synchronous>, transform_indices = @transform_68, window_bounds = array<i64: 4, 32, 8>}, {pipeline_mode = #tpu.pipeline_mode<synchronous>, transform_indices = @transform_69, window_bounds = array<i64: 4, 32, 8>}, {pipeline_mode = #tpu.pipeline_mode<synchronous>, transform_indices = @transform_70, window_bounds = array<i64: 4, 32, 8>}, {pipeline_mode = #tpu.pipeline_mode<synchronous>, transform_indices = @transform_71, window_bounds = array<i64: 1, 128>}, {pipeline_mode = #tpu.pipeline_mode<synchronous>, transform_indices = @transform_72, window_bounds = array<i64: 32, 128>}, {transform_indices = @transform_73, window_bounds = array<i64: 8, 128>}]} {
    %c0 = arith.constant 0 : index
    %c0_0 = arith.constant 0 : index
    %0 = vector.load %arg39[%c0, %c0_0] : memref<128x32xf32, #tpu.memory_space<vmem>>, vector<128x32xf32>
    %c0_1 = arith.constant 0 : index
    %c0_2 = arith.constant 0 : index
    %c0_3 = arith.constant 0 : index
    %1 = vector.load %arg1[%c0_1, %c0_2, %c0_3] : memref<1x16x1xi32, #tpu.memory_space<vmem>>, vector<1x16x1xi32>
    %2 = vector.shape_cast %1 : vector<1x16x1xi32> to vector<16x1xi32>
    %3 = tpu.iota {dimensions = array<i32: 1>} : vector<16x128xi32>
    %4 = vector.broadcast %2 : vector<16x1xi32> to vector<16x128xi32>
    %5 = arith.cmpi eq, %4, %3 : vector<16x128xi32>
    %cst = arith.constant 1.000000e+00 : f32
    %cst_4 = arith.constant 0.000000e+00 : f32
    %6 = vector.broadcast %cst : f32 to vector<16x128xf32>
    %7 = vector.broadcast %cst_4 : f32 to vector<16x128xf32>
    %8 = arith.select %5, %6, %7 : vector<16x128xi1>, vector<16x128xf32>
    %cst_5 = arith.constant dense<0.000000e+00> : vector<16x32xf32>
    %9 = tpu.matmul %8, %0, %cst_5 {dimension_numbers = #tpu.dot_dimension_numbers<[1], [0], [0], [1], [0, 0, 1, 1], [], []>} : vector<16x128xf32>, vector<128x32xf32>, vector<16x32xf32> -> vector<16x32xf32>
    %c0_6 = arith.constant 0 : index
    %c0_7 = arith.constant 0 : index
    %10 = vector.load %arg2[%c0_6, %c0_7] : memref<1x32xf32, #tpu.memory_space<vmem>>, vector<1x32xf32>
    %11 = vector.broadcast %10 : vector<1x32xf32> to vector<16x32xf32>
    %12 = arith.addf %9, %11 : vector<16x32xf32>
    %13 = vector.extract_strided_slice %12 {offsets = [0, 0], sizes = [8, 32], strides = [1, 1]} : vector<16x32xf32> to vector<8x32xf32>
    %14 = vector.extract_strided_slice %12 {offsets = [8, 0], sizes = [8, 32], strides = [1, 1]} : vector<16x32xf32> to vector<8x32xf32>
    %c0_8 = arith.constant 0 : index
    %c0_9 = arith.constant 0 : index
    %c0_10 = arith.constant 0 : index
    %15 = vector.load %arg54[%c0_8, %c0_9, %c0_10] : memref<4x32x8xf32, #tpu.memory_space<vmem>>, vector<1x32x8xf32>
    %16 = vector.shape_cast %15 : vector<1x32x8xf32> to vector<32x8xf32>
    %cst_11 = arith.constant dense<0.000000e+00> : vector<8x8xf32>
    %17 = tpu.matmul %13, %16, %cst_11 {dimension_numbers = #tpu.dot_dimension_numbers<[1], [0], [0], [1], [0, 0, 1, 1], [], []>} : vector<8x32xf32>, vector<32x8xf32>, vector<8x8xf32> -> vector<8x8xf32>
    %c0_12 = arith.constant 0 : index
    %c0_13 = arith.constant 0 : index
    %c0_14 = arith.constant 0 : index
    %18 = vector.load %arg50[%c0_12, %c0_13, %c0_14] : memref<4x1x8xf32, #tpu.memory_space<vmem>>, vector<1x1x8xf32>
    %19 = vector.shape_cast %18 : vector<1x1x8xf32> to vector<1x8xf32>
    %20 = vector.broadcast %19 : vector<1x8xf32> to vector<8x8xf32>
    %21 = arith.addf %17, %20 : vector<8x8xf32>
    %c1 = arith.constant 1 : index
    %c0_15 = arith.constant 0 : index
    %c0_16 = arith.constant 0 : index
    %22 = vector.load %arg54[%c1, %c0_15, %c0_16] : memref<4x32x8xf32, #tpu.memory_space<vmem>>, vector<1x32x8xf32>
    %23 = vector.shape_cast %22 : vector<1x32x8xf32> to vector<32x8xf32>
    %cst_17 = arith.constant dense<0.000000e+00> : vector<8x8xf32>
    %24 = tpu.matmul %13, %23, %cst_17 {dimension_numbers = #tpu.dot_dimension_numbers<[1], [0], [0], [1], [0, 0, 1, 1], [], []>} : vector<8x32xf32>, vector<32x8xf32>, vector<8x8xf32> -> vector<8x8xf32>
    %c1_18 = arith.constant 1 : index
    %c0_19 = arith.constant 0 : index
    %c0_20 = arith.constant 0 : index
    %25 = vector.load %arg50[%c1_18, %c0_19, %c0_20] : memref<4x1x8xf32, #tpu.memory_space<vmem>>, vector<1x1x8xf32>
    %26 = vector.shape_cast %25 : vector<1x1x8xf32> to vector<1x8xf32>
    %27 = vector.broadcast %26 : vector<1x8xf32> to vector<8x8xf32>
    %28 = arith.addf %24, %27 : vector<8x8xf32>
    %c2 = arith.constant 2 : index
    %c0_21 = arith.constant 0 : index
    %c0_22 = arith.constant 0 : index
    %29 = vector.load %arg54[%c2, %c0_21, %c0_22] : memref<4x32x8xf32, #tpu.memory_space<vmem>>, vector<1x32x8xf32>
    %30 = vector.shape_cast %29 : vector<1x32x8xf32> to vector<32x8xf32>
    %cst_23 = arith.constant dense<0.000000e+00> : vector<8x8xf32>
    %31 = tpu.matmul %13, %30, %cst_23 {dimension_numbers = #tpu.dot_dimension_numbers<[1], [0], [0], [1], [0, 0, 1, 1], [], []>} : vector<8x32xf32>, vector<32x8xf32>, vector<8x8xf32> -> vector<8x8xf32>
    %c2_24 = arith.constant 2 : index
    %c0_25 = arith.constant 0 : index
    %c0_26 = arith.constant 0 : index
    %32 = vector.load %arg50[%c2_24, %c0_25, %c0_26] : memref<4x1x8xf32, #tpu.memory_space<vmem>>, vector<1x1x8xf32>
    %33 = vector.shape_cast %32 : vector<1x1x8xf32> to vector<1x8xf32>
    %34 = vector.broadcast %33 : vector<1x8xf32> to vector<8x8xf32>
    %35 = arith.addf %31, %34 : vector<8x8xf32>
    %c3 = arith.constant 3 : index
    %c0_27 = arith.constant 0 : index
    %c0_28 = arith.constant 0 : index
    %36 = vector.load %arg54[%c3, %c0_27, %c0_28] : memref<4x32x8xf32, #tpu.memory_space<vmem>>, vector<1x32x8xf32>
    %37 = vector.shape_cast %36 : vector<1x32x8xf32> to vector<32x8xf32>
    %cst_29 = arith.constant dense<0.000000e+00> : vector<8x8xf32>
    %38 = tpu.matmul %13, %37, %cst_29 {dimension_numbers = #tpu.dot_dimension_numbers<[1], [0], [0], [1], [0, 0, 1, 1], [], []>} : vector<8x32xf32>, vector<32x8xf32>, vector<8x8xf32> -> vector<8x8xf32>
    %c3_30 = arith.constant 3 : index
    %c0_31 = arith.constant 0 : index
    %c0_32 = arith.constant 0 : index
    %39 = vector.load %arg50[%c3_30, %c0_31, %c0_32] : memref<4x1x8xf32, #tpu.memory_space<vmem>>, vector<1x1x8xf32>
    %40 = vector.shape_cast %39 : vector<1x1x8xf32> to vector<1x8xf32>
    %41 = vector.broadcast %40 : vector<1x8xf32> to vector<8x8xf32>
    %42 = arith.addf %38, %41 : vector<8x8xf32>
    %c0_33 = arith.constant 0 : index
    %c0_34 = arith.constant 0 : index
    %c0_35 = arith.constant 0 : index
    %43 = vector.load %arg53[%c0_33, %c0_34, %c0_35] : memref<4x32x8xf32, #tpu.memory_space<vmem>>, vector<1x32x8xf32>
    %44 = vector.shape_cast %43 : vector<1x32x8xf32> to vector<32x8xf32>
    %cst_36 = arith.constant dense<0.000000e+00> : vector<8x8xf32>
    %45 = tpu.matmul %13, %44, %cst_36 {dimension_numbers = #tpu.dot_dimension_numbers<[1], [0], [0], [1], [0, 0, 1, 1], [], []>} : vector<8x32xf32>, vector<32x8xf32>, vector<8x8xf32> -> vector<8x8xf32>
    %c0_37 = arith.constant 0 : index
    %c0_38 = arith.constant 0 : index
    %c0_39 = arith.constant 0 : index
    %46 = vector.load %arg49[%c0_37, %c0_38, %c0_39] : memref<4x1x8xf32, #tpu.memory_space<vmem>>, vector<1x1x8xf32>
    %47 = vector.shape_cast %46 : vector<1x1x8xf32> to vector<1x8xf32>
    %48 = vector.broadcast %47 : vector<1x8xf32> to vector<8x8xf32>
    %49 = arith.addf %45, %48 : vector<8x8xf32>
    %c1_40 = arith.constant 1 : index
    %c0_41 = arith.constant 0 : index
    %c0_42 = arith.constant 0 : index
    %50 = vector.load %arg53[%c1_40, %c0_41, %c0_42] : memref<4x32x8xf32, #tpu.memory_space<vmem>>, vector<1x32x8xf32>
    %51 = vector.shape_cast %50 : vector<1x32x8xf32> to vector<32x8xf32>
    %cst_43 = arith.constant dense<0.000000e+00> : vector<8x8xf32>
    %52 = tpu.matmul %13, %51, %cst_43 {dimension_numbers = #tpu.dot_dimension_numbers<[1], [0], [0], [1], [0, 0, 1, 1], [], []>} : vector<8x32xf32>, vector<32x8xf32>, vector<8x8xf32> -> vector<8x8xf32>
    %c1_44 = arith.constant 1 : index
    %c0_45 = arith.constant 0 : index
    %c0_46 = arith.constant 0 : index
    %53 = vector.load %arg49[%c1_44, %c0_45, %c0_46] : memref<4x1x8xf32, #tpu.memory_space<vmem>>, vector<1x1x8xf32>
    %54 = vector.shape_cast %53 : vector<1x1x8xf32> to vector<1x8xf32>
    %55 = vector.broadcast %54 : vector<1x8xf32> to vector<8x8xf32>
    %56 = arith.addf %52, %55 : vector<8x8xf32>
    %c2_47 = arith.constant 2 : index
    %c0_48 = arith.constant 0 : index
    %c0_49 = arith.constant 0 : index
    %57 = vector.load %arg53[%c2_47, %c0_48, %c0_49] : memref<4x32x8xf32, #tpu.memory_space<vmem>>, vector<1x32x8xf32>
    %58 = vector.shape_cast %57 : vector<1x32x8xf32> to vector<32x8xf32>
    %cst_50 = arith.constant dense<0.000000e+00> : vector<8x8xf32>
    %59 = tpu.matmul %13, %58, %cst_50 {dimension_numbers = #tpu.dot_dimension_numbers<[1], [0], [0], [1], [0, 0, 1, 1], [], []>} : vector<8x32xf32>, vector<32x8xf32>, vector<8x8xf32> -> vector<8x8xf32>
    %c2_51 = arith.constant 2 : index
    %c0_52 = arith.constant 0 : index
    %c0_53 = arith.constant 0 : index
    %60 = vector.load %arg49[%c2_51, %c0_52, %c0_53] : memref<4x1x8xf32, #tpu.memory_space<vmem>>, vector<1x1x8xf32>
    %61 = vector.shape_cast %60 : vector<1x1x8xf32> to vector<1x8xf32>
    %62 = vector.broadcast %61 : vector<1x8xf32> to vector<8x8xf32>
    %63 = arith.addf %59, %62 : vector<8x8xf32>
    %c3_54 = arith.constant 3 : index
    %c0_55 = arith.constant 0 : index
    %c0_56 = arith.constant 0 : index
    %64 = vector.load %arg53[%c3_54, %c0_55, %c0_56] : memref<4x32x8xf32, #tpu.memory_space<vmem>>, vector<1x32x8xf32>
    %65 = vector.shape_cast %64 : vector<1x32x8xf32> to vector<32x8xf32>
    %cst_57 = arith.constant dense<0.000000e+00> : vector<8x8xf32>
    %66 = tpu.matmul %13, %65, %cst_57 {dimension_numbers = #tpu.dot_dimension_numbers<[1], [0], [0], [1], [0, 0, 1, 1], [], []>} : vector<8x32xf32>, vector<32x8xf32>, vector<8x8xf32> -> vector<8x8xf32>
    %c3_58 = arith.constant 3 : index
    %c0_59 = arith.constant 0 : index
    %c0_60 = arith.constant 0 : index
    %67 = vector.load %arg49[%c3_58, %c0_59, %c0_60] : memref<4x1x8xf32, #tpu.memory_space<vmem>>, vector<1x1x8xf32>
    %68 = vector.shape_cast %67 : vector<1x1x8xf32> to vector<1x8xf32>
    %69 = vector.broadcast %68 : vector<1x8xf32> to vector<8x8xf32>
    %70 = arith.addf %66, %69 : vector<8x8xf32>
    %c0_61 = arith.constant 0 : index
    %c0_62 = arith.constant 0 : index
    %c0_63 = arith.constant 0 : index
    %71 = vector.load %arg55[%c0_61, %c0_62, %c0_63] : memref<4x32x8xf32, #tpu.memory_space<vmem>>, vector<1x32x8xf32>
    %72 = vector.shape_cast %71 : vector<1x32x8xf32> to vector<32x8xf32>
    %cst_64 = arith.constant dense<0.000000e+00> : vector<8x8xf32>
    %73 = tpu.matmul %13, %72, %cst_64 {dimension_numbers = #tpu.dot_dimension_numbers<[1], [0], [0], [1], [0, 0, 1, 1], [], []>} : vector<8x32xf32>, vector<32x8xf32>, vector<8x8xf32> -> vector<8x8xf32>
    %c0_65 = arith.constant 0 : index
    %c0_66 = arith.constant 0 : index
    %c0_67 = arith.constant 0 : index
    %74 = vector.load %arg51[%c0_65, %c0_66, %c0_67] : memref<4x1x8xf32, #tpu.memory_space<vmem>>, vector<1x1x8xf32>
    %75 = vector.shape_cast %74 : vector<1x1x8xf32> to vector<1x8xf32>
    %76 = vector.broadcast %75 : vector<1x8xf32> to vector<8x8xf32>
    %77 = arith.addf %73, %76 : vector<8x8xf32>
    %c1_68 = arith.constant 1 : index
    %c0_69 = arith.constant 0 : index
    %c0_70 = arith.constant 0 : index
    %78 = vector.load %arg55[%c1_68, %c0_69, %c0_70] : memref<4x32x8xf32, #tpu.memory_space<vmem>>, vector<1x32x8xf32>
    %79 = vector.shape_cast %78 : vector<1x32x8xf32> to vector<32x8xf32>
    %cst_71 = arith.constant dense<0.000000e+00> : vector<8x8xf32>
    %80 = tpu.matmul %13, %79, %cst_71 {dimension_numbers = #tpu.dot_dimension_numbers<[1], [0], [0], [1], [0, 0, 1, 1], [], []>} : vector<8x32xf32>, vector<32x8xf32>, vector<8x8xf32> -> vector<8x8xf32>
    %c1_72 = arith.constant 1 : index
    %c0_73 = arith.constant 0 : index
    %c0_74 = arith.constant 0 : index
    %81 = vector.load %arg51[%c1_72, %c0_73, %c0_74] : memref<4x1x8xf32, #tpu.memory_space<vmem>>, vector<1x1x8xf32>
    %82 = vector.shape_cast %81 : vector<1x1x8xf32> to vector<1x8xf32>
    %83 = vector.broadcast %82 : vector<1x8xf32> to vector<8x8xf32>
    %84 = arith.addf %80, %83 : vector<8x8xf32>
    %c2_75 = arith.constant 2 : index
    %c0_76 = arith.constant 0 : index
    %c0_77 = arith.constant 0 : index
    %85 = vector.load %arg55[%c2_75, %c0_76, %c0_77] : memref<4x32x8xf32, #tpu.memory_space<vmem>>, vector<1x32x8xf32>
    %86 = vector.shape_cast %85 : vector<1x32x8xf32> to vector<32x8xf32>
    %cst_78 = arith.constant dense<0.000000e+00> : vector<8x8xf32>
    %87 = tpu.matmul %13, %86, %cst_78 {dimension_numbers = #tpu.dot_dimension_numbers<[1], [0], [0], [1], [0, 0, 1, 1], [], []>} : vector<8x32xf32>, vector<32x8xf32>, vector<8x8xf32> -> vector<8x8xf32>
    %c2_79 = arith.constant 2 : index
    %c0_80 = arith.constant 0 : index
    %c0_81 = arith.constant 0 : index
    %88 = vector.load %arg51[%c2_79, %c0_80, %c0_81] : memref<4x1x8xf32, #tpu.memory_space<vmem>>, vector<1x1x8xf32>
    %89 = vector.shape_cast %88 : vector<1x1x8xf32> to vector<1x8xf32>
    %90 = vector.broadcast %89 : vector<1x8xf32> to vector<8x8xf32>
    %91 = arith.addf %87, %90 : vector<8x8xf32>
    %c3_82 = arith.constant 3 : index
    %c0_83 = arith.constant 0 : index
    %c0_84 = arith.constant 0 : index
    %92 = vector.load %arg55[%c3_82, %c0_83, %c0_84] : memref<4x32x8xf32, #tpu.memory_space<vmem>>, vector<1x32x8xf32>
    %93 = vector.shape_cast %92 : vector<1x32x8xf32> to vector<32x8xf32>
    %cst_85 = arith.constant dense<0.000000e+00> : vector<8x8xf32>
    %94 = tpu.matmul %13, %93, %cst_85 {dimension_numbers = #tpu.dot_dimension_numbers<[1], [0], [0], [1], [0, 0, 1, 1], [], []>} : vector<8x32xf32>, vector<32x8xf32>, vector<8x8xf32> -> vector<8x8xf32>
    %c3_86 = arith.constant 3 : index
    %c0_87 = arith.constant 0 : index
    %c0_88 = arith.constant 0 : index
    %95 = vector.load %arg51[%c3_86, %c0_87, %c0_88] : memref<4x1x8xf32, #tpu.memory_space<vmem>>, vector<1x1x8xf32>
    %96 = vector.shape_cast %95 : vector<1x1x8xf32> to vector<1x8xf32>
    %97 = vector.broadcast %96 : vector<1x8xf32> to vector<8x8xf32>
    %98 = arith.addf %94, %97 : vector<8x8xf32>
    %cst_89 = arith.constant dense<0.000000e+00> : vector<8x8xf32>
    %99 = tpu.matmul %49, %21, %cst_89 {dimension_numbers = #tpu.dot_dimension_numbers<[1], [1], [0], [0], [0, 0, 1, 0], [], []>} : vector<8x8xf32>, vector<8x8xf32>, vector<8x8xf32> -> vector<8x8xf32>
    %cst_90 = arith.constant 0.353553385 : f32
    %100 = vector.broadcast %cst_90 : f32 to vector<8x8xf32>
    %101 = arith.mulf %99, %100 : vector<8x8xf32>
    %cst_91 = arith.constant dense<0.000000e+00> : vector<8x8xf32>
    %102 = tpu.matmul %56, %28, %cst_91 {dimension_numbers = #tpu.dot_dimension_numbers<[1], [1], [0], [0], [0, 0, 1, 0], [], []>} : vector<8x8xf32>, vector<8x8xf32>, vector<8x8xf32> -> vector<8x8xf32>
    %cst_92 = arith.constant 0.353553385 : f32
    %103 = vector.broadcast %cst_92 : f32 to vector<8x8xf32>
    %104 = arith.mulf %102, %103 : vector<8x8xf32>
    %cst_93 = arith.constant dense<0.000000e+00> : vector<8x8xf32>
    %105 = tpu.matmul %63, %35, %cst_93 {dimension_numbers = #tpu.dot_dimension_numbers<[1], [1], [0], [0], [0, 0, 1, 0], [], []>} : vector<8x8xf32>, vector<8x8xf32>, vector<8x8xf32> -> vector<8x8xf32>
    %cst_94 = arith.constant 0.353553385 : f32
    %106 = vector.broadcast %cst_94 : f32 to vector<8x8xf32>
    %107 = arith.mulf %105, %106 : vector<8x8xf32>
    %cst_95 = arith.constant dense<0.000000e+00> : vector<8x8xf32>
    %108 = tpu.matmul %70, %42, %cst_95 {dimension_numbers = #tpu.dot_dimension_numbers<[1], [1], [0], [0], [0, 0, 1, 0], [], []>} : vector<8x8xf32>, vector<8x8xf32>, vector<8x8xf32> -> vector<8x8xf32>
    %cst_96 = arith.constant 0.353553385 : f32
    %109 = vector.broadcast %cst_96 : f32 to vector<8x8xf32>
    %110 = arith.mulf %108, %109 : vector<8x8xf32>
    %111 = tpu.concatenate %101, %104, %107, %110 in 0 : vector<8x8xf32>, vector<8x8xf32>, vector<8x8xf32>, vector<8x8xf32> -> vector<32x8xf32>
    %cst_97 = arith.constant dense<0xFF800000> : vector<32xf32>
    %112 = vector.multi_reduction <maximumf>, %111, %cst_97 [1] : vector<32x8xf32> to vector<32xf32>
    %113 = vector.shape_cast %112 : vector<32xf32> to vector<32x1xf32>
    %114 = vector.broadcast %113 : vector<32x1xf32> to vector<32x8xf32>
    %115 = arith.subf %111, %114 : vector<32x8xf32>
    %116 = math.exp %115 : vector<32x8xf32>
    %cst_98 = arith.constant dense<0.000000e+00> : vector<32xf32>
    %117 = vector.multi_reduction <add>, %116, %cst_98 [1] : vector<32x8xf32> to vector<32xf32>
    %118 = vector.shape_cast %117 : vector<32xf32> to vector<32x1xf32>
    %119 = tpu.reciprocal %118 : vector<32x1xf32> -> vector<32x1xf32>
    %120 = vector.broadcast %119 : vector<32x1xf32> to vector<32x8xf32>
    %121 = arith.mulf %116, %120 : vector<32x8xf32>
    %122 = vector.extract_strided_slice %121 {offsets = [0, 0], sizes = [8, 8], strides = [1, 1]} : vector<32x8xf32> to vector<8x8xf32>
    %cst_99 = arith.constant dense<0.000000e+00> : vector<8x8xf32>
    %123 = tpu.matmul %122, %77, %cst_99 {dimension_numbers = #tpu.dot_dimension_numbers<[1], [0], [0], [1], [0, 0, 1, 1], [], []>} : vector<8x8xf32>, vector<8x8xf32>, vector<8x8xf32> -> vector<8x8xf32>
    %124 = vector.extract_strided_slice %121 {offsets = [8, 0], sizes = [8, 8], strides = [1, 1]} : vector<32x8xf32> to vector<8x8xf32>
    %cst_100 = arith.constant dense<0.000000e+00> : vector<8x8xf32>
    %125 = tpu.matmul %124, %84, %cst_100 {dimension_numbers = #tpu.dot_dimension_numbers<[1], [0], [0], [1], [0, 0, 1, 1], [], []>} : vector<8x8xf32>, vector<8x8xf32>, vector<8x8xf32> -> vector<8x8xf32>
    %126 = vector.extract_strided_slice %121 {offsets = [16, 0], sizes = [8, 8], strides = [1, 1]} : vector<32x8xf32> to vector<8x8xf32>
    %cst_101 = arith.constant dense<0.000000e+00> : vector<8x8xf32>
    %127 = tpu.matmul %126, %91, %cst_101 {dimension_numbers = #tpu.dot_dimension_numbers<[1], [0], [0], [1], [0, 0, 1, 1], [], []>} : vector<8x8xf32>, vector<8x8xf32>, vector<8x8xf32> -> vector<8x8xf32>
    %128 = vector.extract_strided_slice %121 {offsets = [24, 0], sizes = [8, 8], strides = [1, 1]} : vector<32x8xf32> to vector<8x8xf32>
    %cst_102 = arith.constant dense<0.000000e+00> : vector<8x8xf32>
    %129 = tpu.matmul %128, %98, %cst_102 {dimension_numbers = #tpu.dot_dimension_numbers<[1], [0], [0], [1], [0, 0, 1, 1], [], []>} : vector<8x8xf32>, vector<8x8xf32>, vector<8x8xf32> -> vector<8x8xf32>
    %130 = tpu.concatenate %123, %125, %127, %129 in 1 : vector<8x8xf32>, vector<8x8xf32>, vector<8x8xf32>, vector<8x8xf32> -> vector<8x32xf32>
    %c0_103 = arith.constant 0 : index
    %c0_104 = arith.constant 0 : index
    %131 = vector.load %arg52[%c0_103, %c0_104] : memref<32x32xf32, #tpu.memory_space<vmem>>, vector<32x32xf32>
    %cst_105 = arith.constant dense<0.000000e+00> : vector<8x32xf32>
    %132 = tpu.matmul %130, %131, %cst_105 {dimension_numbers = #tpu.dot_dimension_numbers<[1], [0], [0], [1], [0, 0, 1, 1], [], []>} : vector<8x32xf32>, vector<32x32xf32>, vector<8x32xf32> -> vector<8x32xf32>
    %c0_106 = arith.constant 0 : index
    %c0_107 = arith.constant 0 : index
    %133 = vector.load %arg48[%c0_106, %c0_107] : memref<1x32xf32, #tpu.memory_space<vmem>>, vector<1x32xf32>
    %134 = vector.broadcast %133 : vector<1x32xf32> to vector<8x32xf32>
    %135 = arith.addf %132, %134 : vector<8x32xf32>
    %cst_108 = arith.constant dense<0.000000e+00> : vector<8xf32>
    %136 = vector.multi_reduction <add>, %135, %cst_108 [1] : vector<8x32xf32> to vector<8xf32>
    %137 = vector.shape_cast %136 : vector<8xf32> to vector<8x1xf32>
    %cst_109 = arith.constant 3.200000e+01 : f32
    %138 = vector.broadcast %cst_109 : f32 to vector<8x1xf32>
    %139 = arith.divf %137, %138 : vector<8x1xf32>
    %140 = vector.broadcast %139 : vector<8x1xf32> to vector<8x32xf32>
    %141 = arith.subf %135, %140 : vector<8x32xf32>
    %142 = arith.mulf %141, %141 : vector<8x32xf32>
    %cst_110 = arith.constant dense<0.000000e+00> : vector<8xf32>
    %143 = vector.multi_reduction <add>, %142, %cst_110 [1] : vector<8x32xf32> to vector<8xf32>
    %144 = vector.shape_cast %143 : vector<8xf32> to vector<8x1xf32>
    %cst_111 = arith.constant 3.200000e+01 : f32
    %145 = vector.broadcast %cst_111 : f32 to vector<8x1xf32>
    %146 = arith.divf %144, %145 : vector<8x1xf32>
    %147 = vector.broadcast %139 : vector<8x1xf32> to vector<8x32xf32>
    %148 = arith.subf %135, %147 : vector<8x32xf32>
    %cst_112 = arith.constant 9.99999974E-6 : f32
    %149 = vector.broadcast %cst_112 : f32 to vector<8x1xf32>
    %150 = arith.addf %146, %149 : vector<8x1xf32>
    %151 = math.rsqrt %150 : vector<8x1xf32>
    %152 = vector.broadcast %151 : vector<8x1xf32> to vector<8x32xf32>
    %153 = arith.mulf %148, %152 : vector<8x32xf32>
    %c0_113 = arith.constant 0 : index
    %c0_114 = arith.constant 0 : index
    %154 = vector.load %arg45[%c0_113, %c0_114] : memref<1x32xf32, #tpu.memory_space<vmem>>, vector<1x32xf32>
    %155 = vector.broadcast %154 : vector<1x32xf32> to vector<8x32xf32>
    %156 = arith.mulf %153, %155 : vector<8x32xf32>
    %c0_115 = arith.constant 0 : index
    %c0_116 = arith.constant 0 : index
    %157 = vector.load %arg44[%c0_115, %c0_116] : memref<1x32xf32, #tpu.memory_space<vmem>>, vector<1x32xf32>
    %158 = vector.broadcast %157 : vector<1x32xf32> to vector<8x32xf32>
    %159 = arith.addf %156, %158 : vector<8x32xf32>
    %160 = arith.addf %13, %159 : vector<8x32xf32>
    %c0_117 = arith.constant 0 : index
    %c0_118 = arith.constant 0 : index
    %161 = vector.load %arg41[%c0_117, %c0_118] : memref<32x64xf32, #tpu.memory_space<vmem>>, vector<32x64xf32>
    %cst_119 = arith.constant dense<0.000000e+00> : vector<8x64xf32>
    %162 = tpu.matmul %160, %161, %cst_119 {dimension_numbers = #tpu.dot_dimension_numbers<[1], [0], [0], [1], [0, 0, 1, 1], [], []>} : vector<8x32xf32>, vector<32x64xf32>, vector<8x64xf32> -> vector<8x64xf32>
    %c0_120 = arith.constant 0 : index
    %c0_121 = arith.constant 0 : index
    %163 = vector.load %arg40[%c0_120, %c0_121] : memref<1x64xf32, #tpu.memory_space<vmem>>, vector<1x64xf32>
    %164 = vector.broadcast %163 : vector<1x64xf32> to vector<8x64xf32>
    %165 = arith.addf %162, %164 : vector<8x64xf32>
    %cst_122 = arith.constant 0.000000e+00 : f32
    %166 = vector.broadcast %cst_122 : f32 to vector<8x64xf32>
    %167 = arith.cmpf oge, %165, %166 : vector<8x64xf32>
    %cst_123 = arith.constant 1.000000e-01 : f32
    %168 = vector.broadcast %cst_123 : f32 to vector<8x64xf32>
    %169 = arith.mulf %168, %165 : vector<8x64xf32>
    %170 = arith.select %167, %165, %169 : vector<8x64xi1>, vector<8x64xf32>
    %c0_124 = arith.constant 0 : index
    %c0_125 = arith.constant 0 : index
    %171 = vector.load %arg43[%c0_124, %c0_125] : memref<64x32xf32, #tpu.memory_space<vmem>>, vector<64x32xf32>
    %cst_126 = arith.constant dense<0.000000e+00> : vector<8x32xf32>
    %172 = tpu.matmul %170, %171, %cst_126 {dimension_numbers = #tpu.dot_dimension_numbers<[1], [0], [0], [1], [0, 0, 1, 1], [], []>} : vector<8x64xf32>, vector<64x32xf32>, vector<8x32xf32> -> vector<8x32xf32>
    %c0_127 = arith.constant 0 : index
    %c0_128 = arith.constant 0 : index
    %173 = vector.load %arg42[%c0_127, %c0_128] : memref<1x32xf32, #tpu.memory_space<vmem>>, vector<1x32xf32>
    %174 = vector.broadcast %173 : vector<1x32xf32> to vector<8x32xf32>
    %175 = arith.addf %172, %174 : vector<8x32xf32>
    %cst_129 = arith.constant dense<0.000000e+00> : vector<8xf32>
    %176 = vector.multi_reduction <add>, %175, %cst_129 [1] : vector<8x32xf32> to vector<8xf32>
    %177 = vector.shape_cast %176 : vector<8xf32> to vector<8x1xf32>
    %cst_130 = arith.constant 3.200000e+01 : f32
    %178 = vector.broadcast %cst_130 : f32 to vector<8x1xf32>
    %179 = arith.divf %177, %178 : vector<8x1xf32>
    %180 = vector.broadcast %179 : vector<8x1xf32> to vector<8x32xf32>
    %181 = arith.subf %175, %180 : vector<8x32xf32>
    %182 = arith.mulf %181, %181 : vector<8x32xf32>
    %cst_131 = arith.constant dense<0.000000e+00> : vector<8xf32>
    %183 = vector.multi_reduction <add>, %182, %cst_131 [1] : vector<8x32xf32> to vector<8xf32>
    %184 = vector.shape_cast %183 : vector<8xf32> to vector<8x1xf32>
    %cst_132 = arith.constant 3.200000e+01 : f32
    %185 = vector.broadcast %cst_132 : f32 to vector<8x1xf32>
    %186 = arith.divf %184, %185 : vector<8x1xf32>
    %187 = vector.broadcast %179 : vector<8x1xf32> to vector<8x32xf32>
    %188 = arith.subf %175, %187 : vector<8x32xf32>
    %cst_133 = arith.constant 9.99999974E-6 : f32
    %189 = vector.broadcast %cst_133 : f32 to vector<8x1xf32>
    %190 = arith.addf %186, %189 : vector<8x1xf32>
    %191 = math.rsqrt %190 : vector<8x1xf32>
    %192 = vector.broadcast %191 : vector<8x1xf32> to vector<8x32xf32>
    %193 = arith.mulf %188, %192 : vector<8x32xf32>
    %c0_134 = arith.constant 0 : index
    %c0_135 = arith.constant 0 : index
    %194 = vector.load %arg47[%c0_134, %c0_135] : memref<1x32xf32, #tpu.memory_space<vmem>>, vector<1x32xf32>
    %195 = vector.broadcast %194 : vector<1x32xf32> to vector<8x32xf32>
    %196 = arith.mulf %193, %195 : vector<8x32xf32>
    %c0_136 = arith.constant 0 : index
    %c0_137 = arith.constant 0 : index
    %197 = vector.load %arg46[%c0_136, %c0_137] : memref<1x32xf32, #tpu.memory_space<vmem>>, vector<1x32xf32>
    %198 = vector.broadcast %197 : vector<1x32xf32> to vector<8x32xf32>
    %199 = arith.addf %196, %198 : vector<8x32xf32>
    %200 = arith.addf %160, %199 : vector<8x32xf32>
    %c0_138 = arith.constant 0 : index
    %c0_139 = arith.constant 0 : index
    %c0_140 = arith.constant 0 : index
    %201 = vector.load %arg70[%c0_138, %c0_139, %c0_140] : memref<4x32x8xf32, #tpu.memory_space<vmem>>, vector<1x32x8xf32>
    %202 = vector.shape_cast %201 : vector<1x32x8xf32> to vector<32x8xf32>
    %cst_141 = arith.constant dense<0.000000e+00> : vector<8x8xf32>
    %203 = tpu.matmul %200, %202, %cst_141 {dimension_numbers = #tpu.dot_dimension_numbers<[1], [0], [0], [1], [0, 0, 1, 1], [], []>} : vector<8x32xf32>, vector<32x8xf32>, vector<8x8xf32> -> vector<8x8xf32>
    %c0_142 = arith.constant 0 : index
    %c0_143 = arith.constant 0 : index
    %c0_144 = arith.constant 0 : index
    %204 = vector.load %arg66[%c0_142, %c0_143, %c0_144] : memref<4x1x8xf32, #tpu.memory_space<vmem>>, vector<1x1x8xf32>
    %205 = vector.shape_cast %204 : vector<1x1x8xf32> to vector<1x8xf32>
    %206 = vector.broadcast %205 : vector<1x8xf32> to vector<8x8xf32>
    %207 = arith.addf %203, %206 : vector<8x8xf32>
    %c1_145 = arith.constant 1 : index
    %c0_146 = arith.constant 0 : index
    %c0_147 = arith.constant 0 : index
    %208 = vector.load %arg70[%c1_145, %c0_146, %c0_147] : memref<4x32x8xf32, #tpu.memory_space<vmem>>, vector<1x32x8xf32>
    %209 = vector.shape_cast %208 : vector<1x32x8xf32> to vector<32x8xf32>
    %cst_148 = arith.constant dense<0.000000e+00> : vector<8x8xf32>
    %210 = tpu.matmul %200, %209, %cst_148 {dimension_numbers = #tpu.dot_dimension_numbers<[1], [0], [0], [1], [0, 0, 1, 1], [], []>} : vector<8x32xf32>, vector<32x8xf32>, vector<8x8xf32> -> vector<8x8xf32>
    %c1_149 = arith.constant 1 : index
    %c0_150 = arith.constant 0 : index
    %c0_151 = arith.constant 0 : index
    %211 = vector.load %arg66[%c1_149, %c0_150, %c0_151] : memref<4x1x8xf32, #tpu.memory_space<vmem>>, vector<1x1x8xf32>
    %212 = vector.shape_cast %211 : vector<1x1x8xf32> to vector<1x8xf32>
    %213 = vector.broadcast %212 : vector<1x8xf32> to vector<8x8xf32>
    %214 = arith.addf %210, %213 : vector<8x8xf32>
    %c2_152 = arith.constant 2 : index
    %c0_153 = arith.constant 0 : index
    %c0_154 = arith.constant 0 : index
    %215 = vector.load %arg70[%c2_152, %c0_153, %c0_154] : memref<4x32x8xf32, #tpu.memory_space<vmem>>, vector<1x32x8xf32>
    %216 = vector.shape_cast %215 : vector<1x32x8xf32> to vector<32x8xf32>
    %cst_155 = arith.constant dense<0.000000e+00> : vector<8x8xf32>
    %217 = tpu.matmul %200, %216, %cst_155 {dimension_numbers = #tpu.dot_dimension_numbers<[1], [0], [0], [1], [0, 0, 1, 1], [], []>} : vector<8x32xf32>, vector<32x8xf32>, vector<8x8xf32> -> vector<8x8xf32>
    %c2_156 = arith.constant 2 : index
    %c0_157 = arith.constant 0 : index
    %c0_158 = arith.constant 0 : index
    %218 = vector.load %arg66[%c2_156, %c0_157, %c0_158] : memref<4x1x8xf32, #tpu.memory_space<vmem>>, vector<1x1x8xf32>
    %219 = vector.shape_cast %218 : vector<1x1x8xf32> to vector<1x8xf32>
    %220 = vector.broadcast %219 : vector<1x8xf32> to vector<8x8xf32>
    %221 = arith.addf %217, %220 : vector<8x8xf32>
    %c3_159 = arith.constant 3 : index
    %c0_160 = arith.constant 0 : index
    %c0_161 = arith.constant 0 : index
    %222 = vector.load %arg70[%c3_159, %c0_160, %c0_161] : memref<4x32x8xf32, #tpu.memory_space<vmem>>, vector<1x32x8xf32>
    %223 = vector.shape_cast %222 : vector<1x32x8xf32> to vector<32x8xf32>
    %cst_162 = arith.constant dense<0.000000e+00> : vector<8x8xf32>
    %224 = tpu.matmul %200, %223, %cst_162 {dimension_numbers = #tpu.dot_dimension_numbers<[1], [0], [0], [1], [0, 0, 1, 1], [], []>} : vector<8x32xf32>, vector<32x8xf32>, vector<8x8xf32> -> vector<8x8xf32>
    %c3_163 = arith.constant 3 : index
    %c0_164 = arith.constant 0 : index
    %c0_165 = arith.constant 0 : index
    %225 = vector.load %arg66[%c3_163, %c0_164, %c0_165] : memref<4x1x8xf32, #tpu.memory_space<vmem>>, vector<1x1x8xf32>
    %226 = vector.shape_cast %225 : vector<1x1x8xf32> to vector<1x8xf32>
    %227 = vector.broadcast %226 : vector<1x8xf32> to vector<8x8xf32>
    %228 = arith.addf %224, %227 : vector<8x8xf32>
    %c0_166 = arith.constant 0 : index
    %c0_167 = arith.constant 0 : index
    %c0_168 = arith.constant 0 : index
    %229 = vector.load %arg69[%c0_166, %c0_167, %c0_168] : memref<4x32x8xf32, #tpu.memory_space<vmem>>, vector<1x32x8xf32>
    %230 = vector.shape_cast %229 : vector<1x32x8xf32> to vector<32x8xf32>
    %cst_169 = arith.constant dense<0.000000e+00> : vector<8x8xf32>
    %231 = tpu.matmul %200, %230, %cst_169 {dimension_numbers = #tpu.dot_dimension_numbers<[1], [0], [0], [1], [0, 0, 1, 1], [], []>} : vector<8x32xf32>, vector<32x8xf32>, vector<8x8xf32> -> vector<8x8xf32>
    %c0_170 = arith.constant 0 : index
    %c0_171 = arith.constant 0 : index
    %c0_172 = arith.constant 0 : index
    %232 = vector.load %arg65[%c0_170, %c0_171, %c0_172] : memref<4x1x8xf32, #tpu.memory_space<vmem>>, vector<1x1x8xf32>
    %233 = vector.shape_cast %232 : vector<1x1x8xf32> to vector<1x8xf32>
    %234 = vector.broadcast %233 : vector<1x8xf32> to vector<8x8xf32>
    %235 = arith.addf %231, %234 : vector<8x8xf32>
    %c1_173 = arith.constant 1 : index
    %c0_174 = arith.constant 0 : index
    %c0_175 = arith.constant 0 : index
    %236 = vector.load %arg69[%c1_173, %c0_174, %c0_175] : memref<4x32x8xf32, #tpu.memory_space<vmem>>, vector<1x32x8xf32>
    %237 = vector.shape_cast %236 : vector<1x32x8xf32> to vector<32x8xf32>
    %cst_176 = arith.constant dense<0.000000e+00> : vector<8x8xf32>
    %238 = tpu.matmul %200, %237, %cst_176 {dimension_numbers = #tpu.dot_dimension_numbers<[1], [0], [0], [1], [0, 0, 1, 1], [], []>} : vector<8x32xf32>, vector<32x8xf32>, vector<8x8xf32> -> vector<8x8xf32>
    %c1_177 = arith.constant 1 : index
    %c0_178 = arith.constant 0 : index
    %c0_179 = arith.constant 0 : index
    %239 = vector.load %arg65[%c1_177, %c0_178, %c0_179] : memref<4x1x8xf32, #tpu.memory_space<vmem>>, vector<1x1x8xf32>
    %240 = vector.shape_cast %239 : vector<1x1x8xf32> to vector<1x8xf32>
    %241 = vector.broadcast %240 : vector<1x8xf32> to vector<8x8xf32>
    %242 = arith.addf %238, %241 : vector<8x8xf32>
    %c2_180 = arith.constant 2 : index
    %c0_181 = arith.constant 0 : index
    %c0_182 = arith.constant 0 : index
    %243 = vector.load %arg69[%c2_180, %c0_181, %c0_182] : memref<4x32x8xf32, #tpu.memory_space<vmem>>, vector<1x32x8xf32>
    %244 = vector.shape_cast %243 : vector<1x32x8xf32> to vector<32x8xf32>
    %cst_183 = arith.constant dense<0.000000e+00> : vector<8x8xf32>
    %245 = tpu.matmul %200, %244, %cst_183 {dimension_numbers = #tpu.dot_dimension_numbers<[1], [0], [0], [1], [0, 0, 1, 1], [], []>} : vector<8x32xf32>, vector<32x8xf32>, vector<8x8xf32> -> vector<8x8xf32>
    %c2_184 = arith.constant 2 : index
    %c0_185 = arith.constant 0 : index
    %c0_186 = arith.constant 0 : index
    %246 = vector.load %arg65[%c2_184, %c0_185, %c0_186] : memref<4x1x8xf32, #tpu.memory_space<vmem>>, vector<1x1x8xf32>
    %247 = vector.shape_cast %246 : vector<1x1x8xf32> to vector<1x8xf32>
    %248 = vector.broadcast %247 : vector<1x8xf32> to vector<8x8xf32>
    %249 = arith.addf %245, %248 : vector<8x8xf32>
    %c3_187 = arith.constant 3 : index
    %c0_188 = arith.constant 0 : index
    %c0_189 = arith.constant 0 : index
    %250 = vector.load %arg69[%c3_187, %c0_188, %c0_189] : memref<4x32x8xf32, #tpu.memory_space<vmem>>, vector<1x32x8xf32>
    %251 = vector.shape_cast %250 : vector<1x32x8xf32> to vector<32x8xf32>
    %cst_190 = arith.constant dense<0.000000e+00> : vector<8x8xf32>
    %252 = tpu.matmul %200, %251, %cst_190 {dimension_numbers = #tpu.dot_dimension_numbers<[1], [0], [0], [1], [0, 0, 1, 1], [], []>} : vector<8x32xf32>, vector<32x8xf32>, vector<8x8xf32> -> vector<8x8xf32>
    %c3_191 = arith.constant 3 : index
    %c0_192 = arith.constant 0 : index
    %c0_193 = arith.constant 0 : index
    %253 = vector.load %arg65[%c3_191, %c0_192, %c0_193] : memref<4x1x8xf32, #tpu.memory_space<vmem>>, vector<1x1x8xf32>
    %254 = vector.shape_cast %253 : vector<1x1x8xf32> to vector<1x8xf32>
    %255 = vector.broadcast %254 : vector<1x8xf32> to vector<8x8xf32>
    %256 = arith.addf %252, %255 : vector<8x8xf32>
    %c0_194 = arith.constant 0 : index
    %c0_195 = arith.constant 0 : index
    %c0_196 = arith.constant 0 : index
    %257 = vector.load %arg71[%c0_194, %c0_195, %c0_196] : memref<4x32x8xf32, #tpu.memory_space<vmem>>, vector<1x32x8xf32>
    %258 = vector.shape_cast %257 : vector<1x32x8xf32> to vector<32x8xf32>
    %cst_197 = arith.constant dense<0.000000e+00> : vector<8x8xf32>
    %259 = tpu.matmul %200, %258, %cst_197 {dimension_numbers = #tpu.dot_dimension_numbers<[1], [0], [0], [1], [0, 0, 1, 1], [], []>} : vector<8x32xf32>, vector<32x8xf32>, vector<8x8xf32> -> vector<8x8xf32>
    %c0_198 = arith.constant 0 : index
    %c0_199 = arith.constant 0 : index
    %c0_200 = arith.constant 0 : index
    %260 = vector.load %arg67[%c0_198, %c0_199, %c0_200] : memref<4x1x8xf32, #tpu.memory_space<vmem>>, vector<1x1x8xf32>
    %261 = vector.shape_cast %260 : vector<1x1x8xf32> to vector<1x8xf32>
    %262 = vector.broadcast %261 : vector<1x8xf32> to vector<8x8xf32>
    %263 = arith.addf %259, %262 : vector<8x8xf32>
    %c1_201 = arith.constant 1 : index
    %c0_202 = arith.constant 0 : index
    %c0_203 = arith.constant 0 : index
    %264 = vector.load %arg71[%c1_201, %c0_202, %c0_203] : memref<4x32x8xf32, #tpu.memory_space<vmem>>, vector<1x32x8xf32>
    %265 = vector.shape_cast %264 : vector<1x32x8xf32> to vector<32x8xf32>
    %cst_204 = arith.constant dense<0.000000e+00> : vector<8x8xf32>
    %266 = tpu.matmul %200, %265, %cst_204 {dimension_numbers = #tpu.dot_dimension_numbers<[1], [0], [0], [1], [0, 0, 1, 1], [], []>} : vector<8x32xf32>, vector<32x8xf32>, vector<8x8xf32> -> vector<8x8xf32>
    %c1_205 = arith.constant 1 : index
    %c0_206 = arith.constant 0 : index
    %c0_207 = arith.constant 0 : index
    %267 = vector.load %arg67[%c1_205, %c0_206, %c0_207] : memref<4x1x8xf32, #tpu.memory_space<vmem>>, vector<1x1x8xf32>
    %268 = vector.shape_cast %267 : vector<1x1x8xf32> to vector<1x8xf32>
    %269 = vector.broadcast %268 : vector<1x8xf32> to vector<8x8xf32>
    %270 = arith.addf %266, %269 : vector<8x8xf32>
    %c2_208 = arith.constant 2 : index
    %c0_209 = arith.constant 0 : index
    %c0_210 = arith.constant 0 : index
    %271 = vector.load %arg71[%c2_208, %c0_209, %c0_210] : memref<4x32x8xf32, #tpu.memory_space<vmem>>, vector<1x32x8xf32>
    %272 = vector.shape_cast %271 : vector<1x32x8xf32> to vector<32x8xf32>
    %cst_211 = arith.constant dense<0.000000e+00> : vector<8x8xf32>
    %273 = tpu.matmul %200, %272, %cst_211 {dimension_numbers = #tpu.dot_dimension_numbers<[1], [0], [0], [1], [0, 0, 1, 1], [], []>} : vector<8x32xf32>, vector<32x8xf32>, vector<8x8xf32> -> vector<8x8xf32>
    %c2_212 = arith.constant 2 : index
    %c0_213 = arith.constant 0 : index
    %c0_214 = arith.constant 0 : index
    %274 = vector.load %arg67[%c2_212, %c0_213, %c0_214] : memref<4x1x8xf32, #tpu.memory_space<vmem>>, vector<1x1x8xf32>
    %275 = vector.shape_cast %274 : vector<1x1x8xf32> to vector<1x8xf32>
    %276 = vector.broadcast %275 : vector<1x8xf32> to vector<8x8xf32>
    %277 = arith.addf %273, %276 : vector<8x8xf32>
    %c3_215 = arith.constant 3 : index
    %c0_216 = arith.constant 0 : index
    %c0_217 = arith.constant 0 : index
    %278 = vector.load %arg71[%c3_215, %c0_216, %c0_217] : memref<4x32x8xf32, #tpu.memory_space<vmem>>, vector<1x32x8xf32>
    %279 = vector.shape_cast %278 : vector<1x32x8xf32> to vector<32x8xf32>
    %cst_218 = arith.constant dense<0.000000e+00> : vector<8x8xf32>
    %280 = tpu.matmul %200, %279, %cst_218 {dimension_numbers = #tpu.dot_dimension_numbers<[1], [0], [0], [1], [0, 0, 1, 1], [], []>} : vector<8x32xf32>, vector<32x8xf32>, vector<8x8xf32> -> vector<8x8xf32>
    %c3_219 = arith.constant 3 : index
    %c0_220 = arith.constant 0 : index
    %c0_221 = arith.constant 0 : index
    %281 = vector.load %arg67[%c3_219, %c0_220, %c0_221] : memref<4x1x8xf32, #tpu.memory_space<vmem>>, vector<1x1x8xf32>
    %282 = vector.shape_cast %281 : vector<1x1x8xf32> to vector<1x8xf32>
    %283 = vector.broadcast %282 : vector<1x8xf32> to vector<8x8xf32>
    %284 = arith.addf %280, %283 : vector<8x8xf32>
    %cst_222 = arith.constant dense<0.000000e+00> : vector<8x8xf32>
    %285 = tpu.matmul %235, %207, %cst_222 {dimension_numbers = #tpu.dot_dimension_numbers<[1], [1], [0], [0], [0, 0, 1, 0], [], []>} : vector<8x8xf32>, vector<8x8xf32>, vector<8x8xf32> -> vector<8x8xf32>
    %cst_223 = arith.constant 0.353553385 : f32
    %286 = vector.broadcast %cst_223 : f32 to vector<8x8xf32>
    %287 = arith.mulf %285, %286 : vector<8x8xf32>
    %cst_224 = arith.constant dense<0.000000e+00> : vector<8x8xf32>
    %288 = tpu.matmul %242, %214, %cst_224 {dimension_numbers = #tpu.dot_dimension_numbers<[1], [1], [0], [0], [0, 0, 1, 0], [], []>} : vector<8x8xf32>, vector<8x8xf32>, vector<8x8xf32> -> vector<8x8xf32>
    %cst_225 = arith.constant 0.353553385 : f32
    %289 = vector.broadcast %cst_225 : f32 to vector<8x8xf32>
    %290 = arith.mulf %288, %289 : vector<8x8xf32>
    %cst_226 = arith.constant dense<0.000000e+00> : vector<8x8xf32>
    %291 = tpu.matmul %249, %221, %cst_226 {dimension_numbers = #tpu.dot_dimension_numbers<[1], [1], [0], [0], [0, 0, 1, 0], [], []>} : vector<8x8xf32>, vector<8x8xf32>, vector<8x8xf32> -> vector<8x8xf32>
    %cst_227 = arith.constant 0.353553385 : f32
    %292 = vector.broadcast %cst_227 : f32 to vector<8x8xf32>
    %293 = arith.mulf %291, %292 : vector<8x8xf32>
    %cst_228 = arith.constant dense<0.000000e+00> : vector<8x8xf32>
    %294 = tpu.matmul %256, %228, %cst_228 {dimension_numbers = #tpu.dot_dimension_numbers<[1], [1], [0], [0], [0, 0, 1, 0], [], []>} : vector<8x8xf32>, vector<8x8xf32>, vector<8x8xf32> -> vector<8x8xf32>
    %cst_229 = arith.constant 0.353553385 : f32
    %295 = vector.broadcast %cst_229 : f32 to vector<8x8xf32>
    %296 = arith.mulf %294, %295 : vector<8x8xf32>
    %297 = tpu.concatenate %287, %290, %293, %296 in 0 : vector<8x8xf32>, vector<8x8xf32>, vector<8x8xf32>, vector<8x8xf32> -> vector<32x8xf32>
    %cst_230 = arith.constant dense<0xFF800000> : vector<32xf32>
    %298 = vector.multi_reduction <maximumf>, %297, %cst_230 [1] : vector<32x8xf32> to vector<32xf32>
    %299 = vector.shape_cast %298 : vector<32xf32> to vector<32x1xf32>
    %300 = vector.broadcast %299 : vector<32x1xf32> to vector<32x8xf32>
    %301 = arith.subf %297, %300 : vector<32x8xf32>
    %302 = math.exp %301 : vector<32x8xf32>
    %cst_231 = arith.constant dense<0.000000e+00> : vector<32xf32>
    %303 = vector.multi_reduction <add>, %302, %cst_231 [1] : vector<32x8xf32> to vector<32xf32>
    %304 = vector.shape_cast %303 : vector<32xf32> to vector<32x1xf32>
    %305 = tpu.reciprocal %304 : vector<32x1xf32> -> vector<32x1xf32>
    %306 = vector.broadcast %305 : vector<32x1xf32> to vector<32x8xf32>
    %307 = arith.mulf %302, %306 : vector<32x8xf32>
    %308 = vector.extract_strided_slice %307 {offsets = [0, 0], sizes = [8, 8], strides = [1, 1]} : vector<32x8xf32> to vector<8x8xf32>
    %cst_232 = arith.constant dense<0.000000e+00> : vector<8x8xf32>
    %309 = tpu.matmul %308, %263, %cst_232 {dimension_numbers = #tpu.dot_dimension_numbers<[1], [0], [0], [1], [0, 0, 1, 1], [], []>} : vector<8x8xf32>, vector<8x8xf32>, vector<8x8xf32> -> vector<8x8xf32>
    %310 = vector.extract_strided_slice %307 {offsets = [8, 0], sizes = [8, 8], strides = [1, 1]} : vector<32x8xf32> to vector<8x8xf32>
    %cst_233 = arith.constant dense<0.000000e+00> : vector<8x8xf32>
    %311 = tpu.matmul %310, %270, %cst_233 {dimension_numbers = #tpu.dot_dimension_numbers<[1], [0], [0], [1], [0, 0, 1, 1], [], []>} : vector<8x8xf32>, vector<8x8xf32>, vector<8x8xf32> -> vector<8x8xf32>
    %312 = vector.extract_strided_slice %307 {offsets = [16, 0], sizes = [8, 8], strides = [1, 1]} : vector<32x8xf32> to vector<8x8xf32>
    %cst_234 = arith.constant dense<0.000000e+00> : vector<8x8xf32>
    %313 = tpu.matmul %312, %277, %cst_234 {dimension_numbers = #tpu.dot_dimension_numbers<[1], [0], [0], [1], [0, 0, 1, 1], [], []>} : vector<8x8xf32>, vector<8x8xf32>, vector<8x8xf32> -> vector<8x8xf32>
    %314 = vector.extract_strided_slice %307 {offsets = [24, 0], sizes = [8, 8], strides = [1, 1]} : vector<32x8xf32> to vector<8x8xf32>
    %cst_235 = arith.constant dense<0.000000e+00> : vector<8x8xf32>
    %315 = tpu.matmul %314, %284, %cst_235 {dimension_numbers = #tpu.dot_dimension_numbers<[1], [0], [0], [1], [0, 0, 1, 1], [], []>} : vector<8x8xf32>, vector<8x8xf32>, vector<8x8xf32> -> vector<8x8xf32>
    %316 = tpu.concatenate %309, %311, %313, %315 in 1 : vector<8x8xf32>, vector<8x8xf32>, vector<8x8xf32>, vector<8x8xf32> -> vector<8x32xf32>
    %c0_236 = arith.constant 0 : index
    %c0_237 = arith.constant 0 : index
    %317 = vector.load %arg68[%c0_236, %c0_237] : memref<32x32xf32, #tpu.memory_space<vmem>>, vector<32x32xf32>
    %cst_238 = arith.constant dense<0.000000e+00> : vector<8x32xf32>
    %318 = tpu.matmul %316, %317, %cst_238 {dimension_numbers = #tpu.dot_dimension_numbers<[1], [0], [0], [1], [0, 0, 1, 1], [], []>} : vector<8x32xf32>, vector<32x32xf32>, vector<8x32xf32> -> vector<8x32xf32>
    %c0_239 = arith.constant 0 : index
    %c0_240 = arith.constant 0 : index
    %319 = vector.load %arg64[%c0_239, %c0_240] : memref<1x32xf32, #tpu.memory_space<vmem>>, vector<1x32xf32>
    %320 = vector.broadcast %319 : vector<1x32xf32> to vector<8x32xf32>
    %321 = arith.addf %318, %320 : vector<8x32xf32>
    %cst_241 = arith.constant dense<0.000000e+00> : vector<8xf32>
    %322 = vector.multi_reduction <add>, %321, %cst_241 [1] : vector<8x32xf32> to vector<8xf32>
    %323 = vector.shape_cast %322 : vector<8xf32> to vector<8x1xf32>
    %cst_242 = arith.constant 3.200000e+01 : f32
    %324 = vector.broadcast %cst_242 : f32 to vector<8x1xf32>
    %325 = arith.divf %323, %324 : vector<8x1xf32>
    %326 = vector.broadcast %325 : vector<8x1xf32> to vector<8x32xf32>
    %327 = arith.subf %321, %326 : vector<8x32xf32>
    %328 = arith.mulf %327, %327 : vector<8x32xf32>
    %cst_243 = arith.constant dense<0.000000e+00> : vector<8xf32>
    %329 = vector.multi_reduction <add>, %328, %cst_243 [1] : vector<8x32xf32> to vector<8xf32>
    %330 = vector.shape_cast %329 : vector<8xf32> to vector<8x1xf32>
    %cst_244 = arith.constant 3.200000e+01 : f32
    %331 = vector.broadcast %cst_244 : f32 to vector<8x1xf32>
    %332 = arith.divf %330, %331 : vector<8x1xf32>
    %333 = vector.broadcast %325 : vector<8x1xf32> to vector<8x32xf32>
    %334 = arith.subf %321, %333 : vector<8x32xf32>
    %cst_245 = arith.constant 9.99999974E-6 : f32
    %335 = vector.broadcast %cst_245 : f32 to vector<8x1xf32>
    %336 = arith.addf %332, %335 : vector<8x1xf32>
    %337 = math.rsqrt %336 : vector<8x1xf32>
    %338 = vector.broadcast %337 : vector<8x1xf32> to vector<8x32xf32>
    %339 = arith.mulf %334, %338 : vector<8x32xf32>
    %c0_246 = arith.constant 0 : index
    %c0_247 = arith.constant 0 : index
    %340 = vector.load %arg61[%c0_246, %c0_247] : memref<1x32xf32, #tpu.memory_space<vmem>>, vector<1x32xf32>
    %341 = vector.broadcast %340 : vector<1x32xf32> to vector<8x32xf32>
    %342 = arith.mulf %339, %341 : vector<8x32xf32>
    %c0_248 = arith.constant 0 : index
    %c0_249 = arith.constant 0 : index
    %343 = vector.load %arg60[%c0_248, %c0_249] : memref<1x32xf32, #tpu.memory_space<vmem>>, vector<1x32xf32>
    %344 = vector.broadcast %343 : vector<1x32xf32> to vector<8x32xf32>
    %345 = arith.addf %342, %344 : vector<8x32xf32>
    %346 = arith.addf %200, %345 : vector<8x32xf32>
    %c0_250 = arith.constant 0 : index
    %c0_251 = arith.constant 0 : index
    %347 = vector.load %arg57[%c0_250, %c0_251] : memref<32x64xf32, #tpu.memory_space<vmem>>, vector<32x64xf32>
    %cst_252 = arith.constant dense<0.000000e+00> : vector<8x64xf32>
    %348 = tpu.matmul %346, %347, %cst_252 {dimension_numbers = #tpu.dot_dimension_numbers<[1], [0], [0], [1], [0, 0, 1, 1], [], []>} : vector<8x32xf32>, vector<32x64xf32>, vector<8x64xf32> -> vector<8x64xf32>
    %c0_253 = arith.constant 0 : index
    %c0_254 = arith.constant 0 : index
    %349 = vector.load %arg56[%c0_253, %c0_254] : memref<1x64xf32, #tpu.memory_space<vmem>>, vector<1x64xf32>
    %350 = vector.broadcast %349 : vector<1x64xf32> to vector<8x64xf32>
    %351 = arith.addf %348, %350 : vector<8x64xf32>
    %cst_255 = arith.constant 0.000000e+00 : f32
    %352 = vector.broadcast %cst_255 : f32 to vector<8x64xf32>
    %353 = arith.cmpf oge, %351, %352 : vector<8x64xf32>
    %cst_256 = arith.constant 1.000000e-01 : f32
    %354 = vector.broadcast %cst_256 : f32 to vector<8x64xf32>
    %355 = arith.mulf %354, %351 : vector<8x64xf32>
    %356 = arith.select %353, %351, %355 : vector<8x64xi1>, vector<8x64xf32>
    %c0_257 = arith.constant 0 : index
    %c0_258 = arith.constant 0 : index
    %357 = vector.load %arg59[%c0_257, %c0_258] : memref<64x32xf32, #tpu.memory_space<vmem>>, vector<64x32xf32>
    %cst_259 = arith.constant dense<0.000000e+00> : vector<8x32xf32>
    %358 = tpu.matmul %356, %357, %cst_259 {dimension_numbers = #tpu.dot_dimension_numbers<[1], [0], [0], [1], [0, 0, 1, 1], [], []>} : vector<8x64xf32>, vector<64x32xf32>, vector<8x32xf32> -> vector<8x32xf32>
    %c0_260 = arith.constant 0 : index
    %c0_261 = arith.constant 0 : index
    %359 = vector.load %arg58[%c0_260, %c0_261] : memref<1x32xf32, #tpu.memory_space<vmem>>, vector<1x32xf32>
    %360 = vector.broadcast %359 : vector<1x32xf32> to vector<8x32xf32>
    %361 = arith.addf %358, %360 : vector<8x32xf32>
    %cst_262 = arith.constant dense<0.000000e+00> : vector<8xf32>
    %362 = vector.multi_reduction <add>, %361, %cst_262 [1] : vector<8x32xf32> to vector<8xf32>
    %363 = vector.shape_cast %362 : vector<8xf32> to vector<8x1xf32>
    %cst_263 = arith.constant 3.200000e+01 : f32
    %364 = vector.broadcast %cst_263 : f32 to vector<8x1xf32>
    %365 = arith.divf %363, %364 : vector<8x1xf32>
    %366 = vector.broadcast %365 : vector<8x1xf32> to vector<8x32xf32>
    %367 = arith.subf %361, %366 : vector<8x32xf32>
    %368 = arith.mulf %367, %367 : vector<8x32xf32>
    %cst_264 = arith.constant dense<0.000000e+00> : vector<8xf32>
    %369 = vector.multi_reduction <add>, %368, %cst_264 [1] : vector<8x32xf32> to vector<8xf32>
    %370 = vector.shape_cast %369 : vector<8xf32> to vector<8x1xf32>
    %cst_265 = arith.constant 3.200000e+01 : f32
    %371 = vector.broadcast %cst_265 : f32 to vector<8x1xf32>
    %372 = arith.divf %370, %371 : vector<8x1xf32>
    %373 = vector.broadcast %365 : vector<8x1xf32> to vector<8x32xf32>
    %374 = arith.subf %361, %373 : vector<8x32xf32>
    %cst_266 = arith.constant 9.99999974E-6 : f32
    %375 = vector.broadcast %cst_266 : f32 to vector<8x1xf32>
    %376 = arith.addf %372, %375 : vector<8x1xf32>
    %377 = math.rsqrt %376 : vector<8x1xf32>
    %378 = vector.broadcast %377 : vector<8x1xf32> to vector<8x32xf32>
    %379 = arith.mulf %374, %378 : vector<8x32xf32>
    %c0_267 = arith.constant 0 : index
    %c0_268 = arith.constant 0 : index
    %380 = vector.load %arg63[%c0_267, %c0_268] : memref<1x32xf32, #tpu.memory_space<vmem>>, vector<1x32xf32>
    %381 = vector.broadcast %380 : vector<1x32xf32> to vector<8x32xf32>
    %382 = arith.mulf %379, %381 : vector<8x32xf32>
    %c0_269 = arith.constant 0 : index
    %c0_270 = arith.constant 0 : index
    %383 = vector.load %arg62[%c0_269, %c0_270] : memref<1x32xf32, #tpu.memory_space<vmem>>, vector<1x32xf32>
    %384 = vector.broadcast %383 : vector<1x32xf32> to vector<8x32xf32>
    %385 = arith.addf %382, %384 : vector<8x32xf32>
    %386 = arith.addf %346, %385 : vector<8x32xf32>
    %c0_271 = arith.constant 0 : index
    %c0_272 = arith.constant 0 : index
    %c0_273 = arith.constant 0 : index
    %387 = vector.load %arg19[%c0_271, %c0_272, %c0_273] : memref<4x32x8xf32, #tpu.memory_space<vmem>>, vector<1x32x8xf32>
    %388 = vector.shape_cast %387 : vector<1x32x8xf32> to vector<32x8xf32>
    %cst_274 = arith.constant dense<0.000000e+00> : vector<8x8xf32>
    %389 = tpu.matmul %14, %388, %cst_274 {dimension_numbers = #tpu.dot_dimension_numbers<[1], [0], [0], [1], [0, 0, 1, 1], [], []>} : vector<8x32xf32>, vector<32x8xf32>, vector<8x8xf32> -> vector<8x8xf32>
    %c0_275 = arith.constant 0 : index
    %c0_276 = arith.constant 0 : index
    %c0_277 = arith.constant 0 : index
    %390 = vector.load %arg15[%c0_275, %c0_276, %c0_277] : memref<4x1x8xf32, #tpu.memory_space<vmem>>, vector<1x1x8xf32>
    %391 = vector.shape_cast %390 : vector<1x1x8xf32> to vector<1x8xf32>
    %392 = vector.broadcast %391 : vector<1x8xf32> to vector<8x8xf32>
    %393 = arith.addf %389, %392 : vector<8x8xf32>
    %c1_278 = arith.constant 1 : index
    %c0_279 = arith.constant 0 : index
    %c0_280 = arith.constant 0 : index
    %394 = vector.load %arg19[%c1_278, %c0_279, %c0_280] : memref<4x32x8xf32, #tpu.memory_space<vmem>>, vector<1x32x8xf32>
    %395 = vector.shape_cast %394 : vector<1x32x8xf32> to vector<32x8xf32>
    %cst_281 = arith.constant dense<0.000000e+00> : vector<8x8xf32>
    %396 = tpu.matmul %14, %395, %cst_281 {dimension_numbers = #tpu.dot_dimension_numbers<[1], [0], [0], [1], [0, 0, 1, 1], [], []>} : vector<8x32xf32>, vector<32x8xf32>, vector<8x8xf32> -> vector<8x8xf32>
    %c1_282 = arith.constant 1 : index
    %c0_283 = arith.constant 0 : index
    %c0_284 = arith.constant 0 : index
    %397 = vector.load %arg15[%c1_282, %c0_283, %c0_284] : memref<4x1x8xf32, #tpu.memory_space<vmem>>, vector<1x1x8xf32>
    %398 = vector.shape_cast %397 : vector<1x1x8xf32> to vector<1x8xf32>
    %399 = vector.broadcast %398 : vector<1x8xf32> to vector<8x8xf32>
    %400 = arith.addf %396, %399 : vector<8x8xf32>
    %c2_285 = arith.constant 2 : index
    %c0_286 = arith.constant 0 : index
    %c0_287 = arith.constant 0 : index
    %401 = vector.load %arg19[%c2_285, %c0_286, %c0_287] : memref<4x32x8xf32, #tpu.memory_space<vmem>>, vector<1x32x8xf32>
    %402 = vector.shape_cast %401 : vector<1x32x8xf32> to vector<32x8xf32>
    %cst_288 = arith.constant dense<0.000000e+00> : vector<8x8xf32>
    %403 = tpu.matmul %14, %402, %cst_288 {dimension_numbers = #tpu.dot_dimension_numbers<[1], [0], [0], [1], [0, 0, 1, 1], [], []>} : vector<8x32xf32>, vector<32x8xf32>, vector<8x8xf32> -> vector<8x8xf32>
    %c2_289 = arith.constant 2 : index
    %c0_290 = arith.constant 0 : index
    %c0_291 = arith.constant 0 : index
    %404 = vector.load %arg15[%c2_289, %c0_290, %c0_291] : memref<4x1x8xf32, #tpu.memory_space<vmem>>, vector<1x1x8xf32>
    %405 = vector.shape_cast %404 : vector<1x1x8xf32> to vector<1x8xf32>
    %406 = vector.broadcast %405 : vector<1x8xf32> to vector<8x8xf32>
    %407 = arith.addf %403, %406 : vector<8x8xf32>
    %c3_292 = arith.constant 3 : index
    %c0_293 = arith.constant 0 : index
    %c0_294 = arith.constant 0 : index
    %408 = vector.load %arg19[%c3_292, %c0_293, %c0_294] : memref<4x32x8xf32, #tpu.memory_space<vmem>>, vector<1x32x8xf32>
    %409 = vector.shape_cast %408 : vector<1x32x8xf32> to vector<32x8xf32>
    %cst_295 = arith.constant dense<0.000000e+00> : vector<8x8xf32>
    %410 = tpu.matmul %14, %409, %cst_295 {dimension_numbers = #tpu.dot_dimension_numbers<[1], [0], [0], [1], [0, 0, 1, 1], [], []>} : vector<8x32xf32>, vector<32x8xf32>, vector<8x8xf32> -> vector<8x8xf32>
    %c3_296 = arith.constant 3 : index
    %c0_297 = arith.constant 0 : index
    %c0_298 = arith.constant 0 : index
    %411 = vector.load %arg15[%c3_296, %c0_297, %c0_298] : memref<4x1x8xf32, #tpu.memory_space<vmem>>, vector<1x1x8xf32>
    %412 = vector.shape_cast %411 : vector<1x1x8xf32> to vector<1x8xf32>
    %413 = vector.broadcast %412 : vector<1x8xf32> to vector<8x8xf32>
    %414 = arith.addf %410, %413 : vector<8x8xf32>
    %c0_299 = arith.constant 0 : index
    %c0_300 = arith.constant 0 : index
    %c0_301 = arith.constant 0 : index
    %415 = vector.load %arg18[%c0_299, %c0_300, %c0_301] : memref<4x32x8xf32, #tpu.memory_space<vmem>>, vector<1x32x8xf32>
    %416 = vector.shape_cast %415 : vector<1x32x8xf32> to vector<32x8xf32>
    %cst_302 = arith.constant dense<0.000000e+00> : vector<8x8xf32>
    %417 = tpu.matmul %14, %416, %cst_302 {dimension_numbers = #tpu.dot_dimension_numbers<[1], [0], [0], [1], [0, 0, 1, 1], [], []>} : vector<8x32xf32>, vector<32x8xf32>, vector<8x8xf32> -> vector<8x8xf32>
    %c0_303 = arith.constant 0 : index
    %c0_304 = arith.constant 0 : index
    %c0_305 = arith.constant 0 : index
    %418 = vector.load %arg14[%c0_303, %c0_304, %c0_305] : memref<4x1x8xf32, #tpu.memory_space<vmem>>, vector<1x1x8xf32>
    %419 = vector.shape_cast %418 : vector<1x1x8xf32> to vector<1x8xf32>
    %420 = vector.broadcast %419 : vector<1x8xf32> to vector<8x8xf32>
    %421 = arith.addf %417, %420 : vector<8x8xf32>
    %c1_306 = arith.constant 1 : index
    %c0_307 = arith.constant 0 : index
    %c0_308 = arith.constant 0 : index
    %422 = vector.load %arg18[%c1_306, %c0_307, %c0_308] : memref<4x32x8xf32, #tpu.memory_space<vmem>>, vector<1x32x8xf32>
    %423 = vector.shape_cast %422 : vector<1x32x8xf32> to vector<32x8xf32>
    %cst_309 = arith.constant dense<0.000000e+00> : vector<8x8xf32>
    %424 = tpu.matmul %14, %423, %cst_309 {dimension_numbers = #tpu.dot_dimension_numbers<[1], [0], [0], [1], [0, 0, 1, 1], [], []>} : vector<8x32xf32>, vector<32x8xf32>, vector<8x8xf32> -> vector<8x8xf32>
    %c1_310 = arith.constant 1 : index
    %c0_311 = arith.constant 0 : index
    %c0_312 = arith.constant 0 : index
    %425 = vector.load %arg14[%c1_310, %c0_311, %c0_312] : memref<4x1x8xf32, #tpu.memory_space<vmem>>, vector<1x1x8xf32>
    %426 = vector.shape_cast %425 : vector<1x1x8xf32> to vector<1x8xf32>
    %427 = vector.broadcast %426 : vector<1x8xf32> to vector<8x8xf32>
    %428 = arith.addf %424, %427 : vector<8x8xf32>
    %c2_313 = arith.constant 2 : index
    %c0_314 = arith.constant 0 : index
    %c0_315 = arith.constant 0 : index
    %429 = vector.load %arg18[%c2_313, %c0_314, %c0_315] : memref<4x32x8xf32, #tpu.memory_space<vmem>>, vector<1x32x8xf32>
    %430 = vector.shape_cast %429 : vector<1x32x8xf32> to vector<32x8xf32>
    %cst_316 = arith.constant dense<0.000000e+00> : vector<8x8xf32>
    %431 = tpu.matmul %14, %430, %cst_316 {dimension_numbers = #tpu.dot_dimension_numbers<[1], [0], [0], [1], [0, 0, 1, 1], [], []>} : vector<8x32xf32>, vector<32x8xf32>, vector<8x8xf32> -> vector<8x8xf32>
    %c2_317 = arith.constant 2 : index
    %c0_318 = arith.constant 0 : index
    %c0_319 = arith.constant 0 : index
    %432 = vector.load %arg14[%c2_317, %c0_318, %c0_319] : memref<4x1x8xf32, #tpu.memory_space<vmem>>, vector<1x1x8xf32>
    %433 = vector.shape_cast %432 : vector<1x1x8xf32> to vector<1x8xf32>
    %434 = vector.broadcast %433 : vector<1x8xf32> to vector<8x8xf32>
    %435 = arith.addf %431, %434 : vector<8x8xf32>
    %c3_320 = arith.constant 3 : index
    %c0_321 = arith.constant 0 : index
    %c0_322 = arith.constant 0 : index
    %436 = vector.load %arg18[%c3_320, %c0_321, %c0_322] : memref<4x32x8xf32, #tpu.memory_space<vmem>>, vector<1x32x8xf32>
    %437 = vector.shape_cast %436 : vector<1x32x8xf32> to vector<32x8xf32>
    %cst_323 = arith.constant dense<0.000000e+00> : vector<8x8xf32>
    %438 = tpu.matmul %14, %437, %cst_323 {dimension_numbers = #tpu.dot_dimension_numbers<[1], [0], [0], [1], [0, 0, 1, 1], [], []>} : vector<8x32xf32>, vector<32x8xf32>, vector<8x8xf32> -> vector<8x8xf32>
    %c3_324 = arith.constant 3 : index
    %c0_325 = arith.constant 0 : index
    %c0_326 = arith.constant 0 : index
    %439 = vector.load %arg14[%c3_324, %c0_325, %c0_326] : memref<4x1x8xf32, #tpu.memory_space<vmem>>, vector<1x1x8xf32>
    %440 = vector.shape_cast %439 : vector<1x1x8xf32> to vector<1x8xf32>
    %441 = vector.broadcast %440 : vector<1x8xf32> to vector<8x8xf32>
    %442 = arith.addf %438, %441 : vector<8x8xf32>
    %c0_327 = arith.constant 0 : index
    %c0_328 = arith.constant 0 : index
    %c0_329 = arith.constant 0 : index
    %443 = vector.load %arg20[%c0_327, %c0_328, %c0_329] : memref<4x32x8xf32, #tpu.memory_space<vmem>>, vector<1x32x8xf32>
    %444 = vector.shape_cast %443 : vector<1x32x8xf32> to vector<32x8xf32>
    %cst_330 = arith.constant dense<0.000000e+00> : vector<8x8xf32>
    %445 = tpu.matmul %14, %444, %cst_330 {dimension_numbers = #tpu.dot_dimension_numbers<[1], [0], [0], [1], [0, 0, 1, 1], [], []>} : vector<8x32xf32>, vector<32x8xf32>, vector<8x8xf32> -> vector<8x8xf32>
    %c0_331 = arith.constant 0 : index
    %c0_332 = arith.constant 0 : index
    %c0_333 = arith.constant 0 : index
    %446 = vector.load %arg16[%c0_331, %c0_332, %c0_333] : memref<4x1x8xf32, #tpu.memory_space<vmem>>, vector<1x1x8xf32>
    %447 = vector.shape_cast %446 : vector<1x1x8xf32> to vector<1x8xf32>
    %448 = vector.broadcast %447 : vector<1x8xf32> to vector<8x8xf32>
    %449 = arith.addf %445, %448 : vector<8x8xf32>
    %c1_334 = arith.constant 1 : index
    %c0_335 = arith.constant 0 : index
    %c0_336 = arith.constant 0 : index
    %450 = vector.load %arg20[%c1_334, %c0_335, %c0_336] : memref<4x32x8xf32, #tpu.memory_space<vmem>>, vector<1x32x8xf32>
    %451 = vector.shape_cast %450 : vector<1x32x8xf32> to vector<32x8xf32>
    %cst_337 = arith.constant dense<0.000000e+00> : vector<8x8xf32>
    %452 = tpu.matmul %14, %451, %cst_337 {dimension_numbers = #tpu.dot_dimension_numbers<[1], [0], [0], [1], [0, 0, 1, 1], [], []>} : vector<8x32xf32>, vector<32x8xf32>, vector<8x8xf32> -> vector<8x8xf32>
    %c1_338 = arith.constant 1 : index
    %c0_339 = arith.constant 0 : index
    %c0_340 = arith.constant 0 : index
    %453 = vector.load %arg16[%c1_338, %c0_339, %c0_340] : memref<4x1x8xf32, #tpu.memory_space<vmem>>, vector<1x1x8xf32>
    %454 = vector.shape_cast %453 : vector<1x1x8xf32> to vector<1x8xf32>
    %455 = vector.broadcast %454 : vector<1x8xf32> to vector<8x8xf32>
    %456 = arith.addf %452, %455 : vector<8x8xf32>
    %c2_341 = arith.constant 2 : index
    %c0_342 = arith.constant 0 : index
    %c0_343 = arith.constant 0 : index
    %457 = vector.load %arg20[%c2_341, %c0_342, %c0_343] : memref<4x32x8xf32, #tpu.memory_space<vmem>>, vector<1x32x8xf32>
    %458 = vector.shape_cast %457 : vector<1x32x8xf32> to vector<32x8xf32>
    %cst_344 = arith.constant dense<0.000000e+00> : vector<8x8xf32>
    %459 = tpu.matmul %14, %458, %cst_344 {dimension_numbers = #tpu.dot_dimension_numbers<[1], [0], [0], [1], [0, 0, 1, 1], [], []>} : vector<8x32xf32>, vector<32x8xf32>, vector<8x8xf32> -> vector<8x8xf32>
    %c2_345 = arith.constant 2 : index
    %c0_346 = arith.constant 0 : index
    %c0_347 = arith.constant 0 : index
    %460 = vector.load %arg16[%c2_345, %c0_346, %c0_347] : memref<4x1x8xf32, #tpu.memory_space<vmem>>, vector<1x1x8xf32>
    %461 = vector.shape_cast %460 : vector<1x1x8xf32> to vector<1x8xf32>
    %462 = vector.broadcast %461 : vector<1x8xf32> to vector<8x8xf32>
    %463 = arith.addf %459, %462 : vector<8x8xf32>
    %c3_348 = arith.constant 3 : index
    %c0_349 = arith.constant 0 : index
    %c0_350 = arith.constant 0 : index
    %464 = vector.load %arg20[%c3_348, %c0_349, %c0_350] : memref<4x32x8xf32, #tpu.memory_space<vmem>>, vector<1x32x8xf32>
    %465 = vector.shape_cast %464 : vector<1x32x8xf32> to vector<32x8xf32>
    %cst_351 = arith.constant dense<0.000000e+00> : vector<8x8xf32>
    %466 = tpu.matmul %14, %465, %cst_351 {dimension_numbers = #tpu.dot_dimension_numbers<[1], [0], [0], [1], [0, 0, 1, 1], [], []>} : vector<8x32xf32>, vector<32x8xf32>, vector<8x8xf32> -> vector<8x8xf32>
    %c3_352 = arith.constant 3 : index
    %c0_353 = arith.constant 0 : index
    %c0_354 = arith.constant 0 : index
    %467 = vector.load %arg16[%c3_352, %c0_353, %c0_354] : memref<4x1x8xf32, #tpu.memory_space<vmem>>, vector<1x1x8xf32>
    %468 = vector.shape_cast %467 : vector<1x1x8xf32> to vector<1x8xf32>
    %469 = vector.broadcast %468 : vector<1x8xf32> to vector<8x8xf32>
    %470 = arith.addf %466, %469 : vector<8x8xf32>
    %cst_355 = arith.constant dense<0.000000e+00> : vector<8x8xf32>
    %471 = tpu.matmul %421, %393, %cst_355 {dimension_numbers = #tpu.dot_dimension_numbers<[1], [1], [0], [0], [0, 0, 1, 0], [], []>} : vector<8x8xf32>, vector<8x8xf32>, vector<8x8xf32> -> vector<8x8xf32>
    %cst_356 = arith.constant 0.353553385 : f32
    %472 = vector.broadcast %cst_356 : f32 to vector<8x8xf32>
    %473 = arith.mulf %471, %472 : vector<8x8xf32>
    %cst_357 = arith.constant dense<0.000000e+00> : vector<8x8xf32>
    %474 = tpu.matmul %428, %400, %cst_357 {dimension_numbers = #tpu.dot_dimension_numbers<[1], [1], [0], [0], [0, 0, 1, 0], [], []>} : vector<8x8xf32>, vector<8x8xf32>, vector<8x8xf32> -> vector<8x8xf32>
    %cst_358 = arith.constant 0.353553385 : f32
    %475 = vector.broadcast %cst_358 : f32 to vector<8x8xf32>
    %476 = arith.mulf %474, %475 : vector<8x8xf32>
    %cst_359 = arith.constant dense<0.000000e+00> : vector<8x8xf32>
    %477 = tpu.matmul %435, %407, %cst_359 {dimension_numbers = #tpu.dot_dimension_numbers<[1], [1], [0], [0], [0, 0, 1, 0], [], []>} : vector<8x8xf32>, vector<8x8xf32>, vector<8x8xf32> -> vector<8x8xf32>
    %cst_360 = arith.constant 0.353553385 : f32
    %478 = vector.broadcast %cst_360 : f32 to vector<8x8xf32>
    %479 = arith.mulf %477, %478 : vector<8x8xf32>
    %cst_361 = arith.constant dense<0.000000e+00> : vector<8x8xf32>
    %480 = tpu.matmul %442, %414, %cst_361 {dimension_numbers = #tpu.dot_dimension_numbers<[1], [1], [0], [0], [0, 0, 1, 0], [], []>} : vector<8x8xf32>, vector<8x8xf32>, vector<8x8xf32> -> vector<8x8xf32>
    %cst_362 = arith.constant 0.353553385 : f32
    %481 = vector.broadcast %cst_362 : f32 to vector<8x8xf32>
    %482 = arith.mulf %480, %481 : vector<8x8xf32>
    %483 = tpu.concatenate %473, %476, %479, %482 in 0 : vector<8x8xf32>, vector<8x8xf32>, vector<8x8xf32>, vector<8x8xf32> -> vector<32x8xf32>
    %cst_363 = arith.constant dense<0xFF800000> : vector<32xf32>
    %484 = vector.multi_reduction <maximumf>, %483, %cst_363 [1] : vector<32x8xf32> to vector<32xf32>
    %485 = vector.shape_cast %484 : vector<32xf32> to vector<32x1xf32>
    %486 = vector.broadcast %485 : vector<32x1xf32> to vector<32x8xf32>
    %487 = arith.subf %483, %486 : vector<32x8xf32>
    %488 = math.exp %487 : vector<32x8xf32>
    %cst_364 = arith.constant dense<0.000000e+00> : vector<32xf32>
    %489 = vector.multi_reduction <add>, %488, %cst_364 [1] : vector<32x8xf32> to vector<32xf32>
    %490 = vector.shape_cast %489 : vector<32xf32> to vector<32x1xf32>
    %491 = tpu.reciprocal %490 : vector<32x1xf32> -> vector<32x1xf32>
    %492 = vector.broadcast %491 : vector<32x1xf32> to vector<32x8xf32>
    %493 = arith.mulf %488, %492 : vector<32x8xf32>
    %494 = vector.extract_strided_slice %493 {offsets = [0, 0], sizes = [8, 8], strides = [1, 1]} : vector<32x8xf32> to vector<8x8xf32>
    %cst_365 = arith.constant dense<0.000000e+00> : vector<8x8xf32>
    %495 = tpu.matmul %494, %449, %cst_365 {dimension_numbers = #tpu.dot_dimension_numbers<[1], [0], [0], [1], [0, 0, 1, 1], [], []>} : vector<8x8xf32>, vector<8x8xf32>, vector<8x8xf32> -> vector<8x8xf32>
    %496 = vector.extract_strided_slice %493 {offsets = [8, 0], sizes = [8, 8], strides = [1, 1]} : vector<32x8xf32> to vector<8x8xf32>
    %cst_366 = arith.constant dense<0.000000e+00> : vector<8x8xf32>
    %497 = tpu.matmul %496, %456, %cst_366 {dimension_numbers = #tpu.dot_dimension_numbers<[1], [0], [0], [1], [0, 0, 1, 1], [], []>} : vector<8x8xf32>, vector<8x8xf32>, vector<8x8xf32> -> vector<8x8xf32>
    %498 = vector.extract_strided_slice %493 {offsets = [16, 0], sizes = [8, 8], strides = [1, 1]} : vector<32x8xf32> to vector<8x8xf32>
    %cst_367 = arith.constant dense<0.000000e+00> : vector<8x8xf32>
    %499 = tpu.matmul %498, %463, %cst_367 {dimension_numbers = #tpu.dot_dimension_numbers<[1], [0], [0], [1], [0, 0, 1, 1], [], []>} : vector<8x8xf32>, vector<8x8xf32>, vector<8x8xf32> -> vector<8x8xf32>
    %500 = vector.extract_strided_slice %493 {offsets = [24, 0], sizes = [8, 8], strides = [1, 1]} : vector<32x8xf32> to vector<8x8xf32>
    %cst_368 = arith.constant dense<0.000000e+00> : vector<8x8xf32>
    %501 = tpu.matmul %500, %470, %cst_368 {dimension_numbers = #tpu.dot_dimension_numbers<[1], [0], [0], [1], [0, 0, 1, 1], [], []>} : vector<8x8xf32>, vector<8x8xf32>, vector<8x8xf32> -> vector<8x8xf32>
    %502 = tpu.concatenate %495, %497, %499, %501 in 1 : vector<8x8xf32>, vector<8x8xf32>, vector<8x8xf32>, vector<8x8xf32> -> vector<8x32xf32>
    %c0_369 = arith.constant 0 : index
    %c0_370 = arith.constant 0 : index
    %503 = vector.load %arg17[%c0_369, %c0_370] : memref<32x32xf32, #tpu.memory_space<vmem>>, vector<32x32xf32>
    %cst_371 = arith.constant dense<0.000000e+00> : vector<8x32xf32>
    %504 = tpu.matmul %502, %503, %cst_371 {dimension_numbers = #tpu.dot_dimension_numbers<[1], [0], [0], [1], [0, 0, 1, 1], [], []>} : vector<8x32xf32>, vector<32x32xf32>, vector<8x32xf32> -> vector<8x32xf32>
    %c0_372 = arith.constant 0 : index
    %c0_373 = arith.constant 0 : index
    %505 = vector.load %arg13[%c0_372, %c0_373] : memref<1x32xf32, #tpu.memory_space<vmem>>, vector<1x32xf32>
    %506 = vector.broadcast %505 : vector<1x32xf32> to vector<8x32xf32>
    %507 = arith.addf %504, %506 : vector<8x32xf32>
    %cst_374 = arith.constant dense<0.000000e+00> : vector<8xf32>
    %508 = vector.multi_reduction <add>, %507, %cst_374 [1] : vector<8x32xf32> to vector<8xf32>
    %509 = vector.shape_cast %508 : vector<8xf32> to vector<8x1xf32>
    %cst_375 = arith.constant 3.200000e+01 : f32
    %510 = vector.broadcast %cst_375 : f32 to vector<8x1xf32>
    %511 = arith.divf %509, %510 : vector<8x1xf32>
    %512 = vector.broadcast %511 : vector<8x1xf32> to vector<8x32xf32>
    %513 = arith.subf %507, %512 : vector<8x32xf32>
    %514 = arith.mulf %513, %513 : vector<8x32xf32>
    %cst_376 = arith.constant dense<0.000000e+00> : vector<8xf32>
    %515 = vector.multi_reduction <add>, %514, %cst_376 [1] : vector<8x32xf32> to vector<8xf32>
    %516 = vector.shape_cast %515 : vector<8xf32> to vector<8x1xf32>
    %cst_377 = arith.constant 3.200000e+01 : f32
    %517 = vector.broadcast %cst_377 : f32 to vector<8x1xf32>
    %518 = arith.divf %516, %517 : vector<8x1xf32>
    %519 = vector.broadcast %511 : vector<8x1xf32> to vector<8x32xf32>
    %520 = arith.subf %507, %519 : vector<8x32xf32>
    %cst_378 = arith.constant 9.99999974E-6 : f32
    %521 = vector.broadcast %cst_378 : f32 to vector<8x1xf32>
    %522 = arith.addf %518, %521 : vector<8x1xf32>
    %523 = math.rsqrt %522 : vector<8x1xf32>
    %524 = vector.broadcast %523 : vector<8x1xf32> to vector<8x32xf32>
    %525 = arith.mulf %520, %524 : vector<8x32xf32>
    %c0_379 = arith.constant 0 : index
    %c0_380 = arith.constant 0 : index
    %526 = vector.load %arg8[%c0_379, %c0_380] : memref<1x32xf32, #tpu.memory_space<vmem>>, vector<1x32xf32>
    %527 = vector.broadcast %526 : vector<1x32xf32> to vector<8x32xf32>
    %528 = arith.mulf %525, %527 : vector<8x32xf32>
    %c0_381 = arith.constant 0 : index
    %c0_382 = arith.constant 0 : index
    %529 = vector.load %arg7[%c0_381, %c0_382] : memref<1x32xf32, #tpu.memory_space<vmem>>, vector<1x32xf32>
    %530 = vector.broadcast %529 : vector<1x32xf32> to vector<8x32xf32>
    %531 = arith.addf %528, %530 : vector<8x32xf32>
    %532 = arith.addf %14, %531 : vector<8x32xf32>
    %c0_383 = arith.constant 0 : index
    %c0_384 = arith.constant 0 : index
    %c0_385 = arith.constant 0 : index
    %533 = vector.load %arg19[%c0_383, %c0_384, %c0_385] : memref<4x32x8xf32, #tpu.memory_space<vmem>>, vector<1x32x8xf32>
    %534 = vector.shape_cast %533 : vector<1x32x8xf32> to vector<32x8xf32>
    %cst_386 = arith.constant dense<0.000000e+00> : vector<8x8xf32>
    %535 = tpu.matmul %532, %534, %cst_386 {dimension_numbers = #tpu.dot_dimension_numbers<[1], [0], [0], [1], [0, 0, 1, 1], [], []>} : vector<8x32xf32>, vector<32x8xf32>, vector<8x8xf32> -> vector<8x8xf32>
    %c0_387 = arith.constant 0 : index
    %c0_388 = arith.constant 0 : index
    %c0_389 = arith.constant 0 : index
    %536 = vector.load %arg15[%c0_387, %c0_388, %c0_389] : memref<4x1x8xf32, #tpu.memory_space<vmem>>, vector<1x1x8xf32>
    %537 = vector.shape_cast %536 : vector<1x1x8xf32> to vector<1x8xf32>
    %538 = vector.broadcast %537 : vector<1x8xf32> to vector<8x8xf32>
    %539 = arith.addf %535, %538 : vector<8x8xf32>
    %c1_390 = arith.constant 1 : index
    %c0_391 = arith.constant 0 : index
    %c0_392 = arith.constant 0 : index
    %540 = vector.load %arg19[%c1_390, %c0_391, %c0_392] : memref<4x32x8xf32, #tpu.memory_space<vmem>>, vector<1x32x8xf32>
    %541 = vector.shape_cast %540 : vector<1x32x8xf32> to vector<32x8xf32>
    %cst_393 = arith.constant dense<0.000000e+00> : vector<8x8xf32>
    %542 = tpu.matmul %532, %541, %cst_393 {dimension_numbers = #tpu.dot_dimension_numbers<[1], [0], [0], [1], [0, 0, 1, 1], [], []>} : vector<8x32xf32>, vector<32x8xf32>, vector<8x8xf32> -> vector<8x8xf32>
    %c1_394 = arith.constant 1 : index
    %c0_395 = arith.constant 0 : index
    %c0_396 = arith.constant 0 : index
    %543 = vector.load %arg15[%c1_394, %c0_395, %c0_396] : memref<4x1x8xf32, #tpu.memory_space<vmem>>, vector<1x1x8xf32>
    %544 = vector.shape_cast %543 : vector<1x1x8xf32> to vector<1x8xf32>
    %545 = vector.broadcast %544 : vector<1x8xf32> to vector<8x8xf32>
    %546 = arith.addf %542, %545 : vector<8x8xf32>
    %c2_397 = arith.constant 2 : index
    %c0_398 = arith.constant 0 : index
    %c0_399 = arith.constant 0 : index
    %547 = vector.load %arg19[%c2_397, %c0_398, %c0_399] : memref<4x32x8xf32, #tpu.memory_space<vmem>>, vector<1x32x8xf32>
    %548 = vector.shape_cast %547 : vector<1x32x8xf32> to vector<32x8xf32>
    %cst_400 = arith.constant dense<0.000000e+00> : vector<8x8xf32>
    %549 = tpu.matmul %532, %548, %cst_400 {dimension_numbers = #tpu.dot_dimension_numbers<[1], [0], [0], [1], [0, 0, 1, 1], [], []>} : vector<8x32xf32>, vector<32x8xf32>, vector<8x8xf32> -> vector<8x8xf32>
    %c2_401 = arith.constant 2 : index
    %c0_402 = arith.constant 0 : index
    %c0_403 = arith.constant 0 : index
    %550 = vector.load %arg15[%c2_401, %c0_402, %c0_403] : memref<4x1x8xf32, #tpu.memory_space<vmem>>, vector<1x1x8xf32>
    %551 = vector.shape_cast %550 : vector<1x1x8xf32> to vector<1x8xf32>
    %552 = vector.broadcast %551 : vector<1x8xf32> to vector<8x8xf32>
    %553 = arith.addf %549, %552 : vector<8x8xf32>
    %c3_404 = arith.constant 3 : index
    %c0_405 = arith.constant 0 : index
    %c0_406 = arith.constant 0 : index
    %554 = vector.load %arg19[%c3_404, %c0_405, %c0_406] : memref<4x32x8xf32, #tpu.memory_space<vmem>>, vector<1x32x8xf32>
    %555 = vector.shape_cast %554 : vector<1x32x8xf32> to vector<32x8xf32>
    %cst_407 = arith.constant dense<0.000000e+00> : vector<8x8xf32>
    %556 = tpu.matmul %532, %555, %cst_407 {dimension_numbers = #tpu.dot_dimension_numbers<[1], [0], [0], [1], [0, 0, 1, 1], [], []>} : vector<8x32xf32>, vector<32x8xf32>, vector<8x8xf32> -> vector<8x8xf32>
    %c3_408 = arith.constant 3 : index
    %c0_409 = arith.constant 0 : index
    %c0_410 = arith.constant 0 : index
    %557 = vector.load %arg15[%c3_408, %c0_409, %c0_410] : memref<4x1x8xf32, #tpu.memory_space<vmem>>, vector<1x1x8xf32>
    %558 = vector.shape_cast %557 : vector<1x1x8xf32> to vector<1x8xf32>
    %559 = vector.broadcast %558 : vector<1x8xf32> to vector<8x8xf32>
    %560 = arith.addf %556, %559 : vector<8x8xf32>
    %c0_411 = arith.constant 0 : index
    %c0_412 = arith.constant 0 : index
    %c0_413 = arith.constant 0 : index
    %561 = vector.load %arg18[%c0_411, %c0_412, %c0_413] : memref<4x32x8xf32, #tpu.memory_space<vmem>>, vector<1x32x8xf32>
    %562 = vector.shape_cast %561 : vector<1x32x8xf32> to vector<32x8xf32>
    %cst_414 = arith.constant dense<0.000000e+00> : vector<8x8xf32>
    %563 = tpu.matmul %386, %562, %cst_414 {dimension_numbers = #tpu.dot_dimension_numbers<[1], [0], [0], [1], [0, 0, 1, 1], [], []>} : vector<8x32xf32>, vector<32x8xf32>, vector<8x8xf32> -> vector<8x8xf32>
    %c0_415 = arith.constant 0 : index
    %c0_416 = arith.constant 0 : index
    %c0_417 = arith.constant 0 : index
    %564 = vector.load %arg14[%c0_415, %c0_416, %c0_417] : memref<4x1x8xf32, #tpu.memory_space<vmem>>, vector<1x1x8xf32>
    %565 = vector.shape_cast %564 : vector<1x1x8xf32> to vector<1x8xf32>
    %566 = vector.broadcast %565 : vector<1x8xf32> to vector<8x8xf32>
    %567 = arith.addf %563, %566 : vector<8x8xf32>
    %c1_418 = arith.constant 1 : index
    %c0_419 = arith.constant 0 : index
    %c0_420 = arith.constant 0 : index
    %568 = vector.load %arg18[%c1_418, %c0_419, %c0_420] : memref<4x32x8xf32, #tpu.memory_space<vmem>>, vector<1x32x8xf32>
    %569 = vector.shape_cast %568 : vector<1x32x8xf32> to vector<32x8xf32>
    %cst_421 = arith.constant dense<0.000000e+00> : vector<8x8xf32>
    %570 = tpu.matmul %386, %569, %cst_421 {dimension_numbers = #tpu.dot_dimension_numbers<[1], [0], [0], [1], [0, 0, 1, 1], [], []>} : vector<8x32xf32>, vector<32x8xf32>, vector<8x8xf32> -> vector<8x8xf32>
    %c1_422 = arith.constant 1 : index
    %c0_423 = arith.constant 0 : index
    %c0_424 = arith.constant 0 : index
    %571 = vector.load %arg14[%c1_422, %c0_423, %c0_424] : memref<4x1x8xf32, #tpu.memory_space<vmem>>, vector<1x1x8xf32>
    %572 = vector.shape_cast %571 : vector<1x1x8xf32> to vector<1x8xf32>
    %573 = vector.broadcast %572 : vector<1x8xf32> to vector<8x8xf32>
    %574 = arith.addf %570, %573 : vector<8x8xf32>
    %c2_425 = arith.constant 2 : index
    %c0_426 = arith.constant 0 : index
    %c0_427 = arith.constant 0 : index
    %575 = vector.load %arg18[%c2_425, %c0_426, %c0_427] : memref<4x32x8xf32, #tpu.memory_space<vmem>>, vector<1x32x8xf32>
    %576 = vector.shape_cast %575 : vector<1x32x8xf32> to vector<32x8xf32>
    %cst_428 = arith.constant dense<0.000000e+00> : vector<8x8xf32>
    %577 = tpu.matmul %386, %576, %cst_428 {dimension_numbers = #tpu.dot_dimension_numbers<[1], [0], [0], [1], [0, 0, 1, 1], [], []>} : vector<8x32xf32>, vector<32x8xf32>, vector<8x8xf32> -> vector<8x8xf32>
    %c2_429 = arith.constant 2 : index
    %c0_430 = arith.constant 0 : index
    %c0_431 = arith.constant 0 : index
    %578 = vector.load %arg14[%c2_429, %c0_430, %c0_431] : memref<4x1x8xf32, #tpu.memory_space<vmem>>, vector<1x1x8xf32>
    %579 = vector.shape_cast %578 : vector<1x1x8xf32> to vector<1x8xf32>
    %580 = vector.broadcast %579 : vector<1x8xf32> to vector<8x8xf32>
    %581 = arith.addf %577, %580 : vector<8x8xf32>
    %c3_432 = arith.constant 3 : index
    %c0_433 = arith.constant 0 : index
    %c0_434 = arith.constant 0 : index
    %582 = vector.load %arg18[%c3_432, %c0_433, %c0_434] : memref<4x32x8xf32, #tpu.memory_space<vmem>>, vector<1x32x8xf32>
    %583 = vector.shape_cast %582 : vector<1x32x8xf32> to vector<32x8xf32>
    %cst_435 = arith.constant dense<0.000000e+00> : vector<8x8xf32>
    %584 = tpu.matmul %386, %583, %cst_435 {dimension_numbers = #tpu.dot_dimension_numbers<[1], [0], [0], [1], [0, 0, 1, 1], [], []>} : vector<8x32xf32>, vector<32x8xf32>, vector<8x8xf32> -> vector<8x8xf32>
    %c3_436 = arith.constant 3 : index
    %c0_437 = arith.constant 0 : index
    %c0_438 = arith.constant 0 : index
    %585 = vector.load %arg14[%c3_436, %c0_437, %c0_438] : memref<4x1x8xf32, #tpu.memory_space<vmem>>, vector<1x1x8xf32>
    %586 = vector.shape_cast %585 : vector<1x1x8xf32> to vector<1x8xf32>
    %587 = vector.broadcast %586 : vector<1x8xf32> to vector<8x8xf32>
    %588 = arith.addf %584, %587 : vector<8x8xf32>
    %c0_439 = arith.constant 0 : index
    %c0_440 = arith.constant 0 : index
    %c0_441 = arith.constant 0 : index
    %589 = vector.load %arg20[%c0_439, %c0_440, %c0_441] : memref<4x32x8xf32, #tpu.memory_space<vmem>>, vector<1x32x8xf32>
    %590 = vector.shape_cast %589 : vector<1x32x8xf32> to vector<32x8xf32>
    %cst_442 = arith.constant dense<0.000000e+00> : vector<8x8xf32>
    %591 = tpu.matmul %386, %590, %cst_442 {dimension_numbers = #tpu.dot_dimension_numbers<[1], [0], [0], [1], [0, 0, 1, 1], [], []>} : vector<8x32xf32>, vector<32x8xf32>, vector<8x8xf32> -> vector<8x8xf32>
    %c0_443 = arith.constant 0 : index
    %c0_444 = arith.constant 0 : index
    %c0_445 = arith.constant 0 : index
    %592 = vector.load %arg16[%c0_443, %c0_444, %c0_445] : memref<4x1x8xf32, #tpu.memory_space<vmem>>, vector<1x1x8xf32>
    %593 = vector.shape_cast %592 : vector<1x1x8xf32> to vector<1x8xf32>
    %594 = vector.broadcast %593 : vector<1x8xf32> to vector<8x8xf32>
    %595 = arith.addf %591, %594 : vector<8x8xf32>
    %c1_446 = arith.constant 1 : index
    %c0_447 = arith.constant 0 : index
    %c0_448 = arith.constant 0 : index
    %596 = vector.load %arg20[%c1_446, %c0_447, %c0_448] : memref<4x32x8xf32, #tpu.memory_space<vmem>>, vector<1x32x8xf32>
    %597 = vector.shape_cast %596 : vector<1x32x8xf32> to vector<32x8xf32>
    %cst_449 = arith.constant dense<0.000000e+00> : vector<8x8xf32>
    %598 = tpu.matmul %386, %597, %cst_449 {dimension_numbers = #tpu.dot_dimension_numbers<[1], [0], [0], [1], [0, 0, 1, 1], [], []>} : vector<8x32xf32>, vector<32x8xf32>, vector<8x8xf32> -> vector<8x8xf32>
    %c1_450 = arith.constant 1 : index
    %c0_451 = arith.constant 0 : index
    %c0_452 = arith.constant 0 : index
    %599 = vector.load %arg16[%c1_450, %c0_451, %c0_452] : memref<4x1x8xf32, #tpu.memory_space<vmem>>, vector<1x1x8xf32>
    %600 = vector.shape_cast %599 : vector<1x1x8xf32> to vector<1x8xf32>
    %601 = vector.broadcast %600 : vector<1x8xf32> to vector<8x8xf32>
    %602 = arith.addf %598, %601 : vector<8x8xf32>
    %c2_453 = arith.constant 2 : index
    %c0_454 = arith.constant 0 : index
    %c0_455 = arith.constant 0 : index
    %603 = vector.load %arg20[%c2_453, %c0_454, %c0_455] : memref<4x32x8xf32, #tpu.memory_space<vmem>>, vector<1x32x8xf32>
    %604 = vector.shape_cast %603 : vector<1x32x8xf32> to vector<32x8xf32>
    %cst_456 = arith.constant dense<0.000000e+00> : vector<8x8xf32>
    %605 = tpu.matmul %386, %604, %cst_456 {dimension_numbers = #tpu.dot_dimension_numbers<[1], [0], [0], [1], [0, 0, 1, 1], [], []>} : vector<8x32xf32>, vector<32x8xf32>, vector<8x8xf32> -> vector<8x8xf32>
    %c2_457 = arith.constant 2 : index
    %c0_458 = arith.constant 0 : index
    %c0_459 = arith.constant 0 : index
    %606 = vector.load %arg16[%c2_457, %c0_458, %c0_459] : memref<4x1x8xf32, #tpu.memory_space<vmem>>, vector<1x1x8xf32>
    %607 = vector.shape_cast %606 : vector<1x1x8xf32> to vector<1x8xf32>
    %608 = vector.broadcast %607 : vector<1x8xf32> to vector<8x8xf32>
    %609 = arith.addf %605, %608 : vector<8x8xf32>
    %c3_460 = arith.constant 3 : index
    %c0_461 = arith.constant 0 : index
    %c0_462 = arith.constant 0 : index
    %610 = vector.load %arg20[%c3_460, %c0_461, %c0_462] : memref<4x32x8xf32, #tpu.memory_space<vmem>>, vector<1x32x8xf32>
    %611 = vector.shape_cast %610 : vector<1x32x8xf32> to vector<32x8xf32>
    %cst_463 = arith.constant dense<0.000000e+00> : vector<8x8xf32>
    %612 = tpu.matmul %386, %611, %cst_463 {dimension_numbers = #tpu.dot_dimension_numbers<[1], [0], [0], [1], [0, 0, 1, 1], [], []>} : vector<8x32xf32>, vector<32x8xf32>, vector<8x8xf32> -> vector<8x8xf32>
    %c3_464 = arith.constant 3 : index
    %c0_465 = arith.constant 0 : index
    %c0_466 = arith.constant 0 : index
    %613 = vector.load %arg16[%c3_464, %c0_465, %c0_466] : memref<4x1x8xf32, #tpu.memory_space<vmem>>, vector<1x1x8xf32>
    %614 = vector.shape_cast %613 : vector<1x1x8xf32> to vector<1x8xf32>
    %615 = vector.broadcast %614 : vector<1x8xf32> to vector<8x8xf32>
    %616 = arith.addf %612, %615 : vector<8x8xf32>
    %cst_467 = arith.constant dense<0.000000e+00> : vector<8x8xf32>
    %617 = tpu.matmul %567, %539, %cst_467 {dimension_numbers = #tpu.dot_dimension_numbers<[1], [1], [0], [0], [0, 0, 1, 0], [], []>} : vector<8x8xf32>, vector<8x8xf32>, vector<8x8xf32> -> vector<8x8xf32>
    %cst_468 = arith.constant 0.353553385 : f32
    %618 = vector.broadcast %cst_468 : f32 to vector<8x8xf32>
    %619 = arith.mulf %617, %618 : vector<8x8xf32>
    %cst_469 = arith.constant dense<0.000000e+00> : vector<8x8xf32>
    %620 = tpu.matmul %574, %546, %cst_469 {dimension_numbers = #tpu.dot_dimension_numbers<[1], [1], [0], [0], [0, 0, 1, 0], [], []>} : vector<8x8xf32>, vector<8x8xf32>, vector<8x8xf32> -> vector<8x8xf32>
    %cst_470 = arith.constant 0.353553385 : f32
    %621 = vector.broadcast %cst_470 : f32 to vector<8x8xf32>
    %622 = arith.mulf %620, %621 : vector<8x8xf32>
    %cst_471 = arith.constant dense<0.000000e+00> : vector<8x8xf32>
    %623 = tpu.matmul %581, %553, %cst_471 {dimension_numbers = #tpu.dot_dimension_numbers<[1], [1], [0], [0], [0, 0, 1, 0], [], []>} : vector<8x8xf32>, vector<8x8xf32>, vector<8x8xf32> -> vector<8x8xf32>
    %cst_472 = arith.constant 0.353553385 : f32
    %624 = vector.broadcast %cst_472 : f32 to vector<8x8xf32>
    %625 = arith.mulf %623, %624 : vector<8x8xf32>
    %cst_473 = arith.constant dense<0.000000e+00> : vector<8x8xf32>
    %626 = tpu.matmul %588, %560, %cst_473 {dimension_numbers = #tpu.dot_dimension_numbers<[1], [1], [0], [0], [0, 0, 1, 0], [], []>} : vector<8x8xf32>, vector<8x8xf32>, vector<8x8xf32> -> vector<8x8xf32>
    %cst_474 = arith.constant 0.353553385 : f32
    %627 = vector.broadcast %cst_474 : f32 to vector<8x8xf32>
    %628 = arith.mulf %626, %627 : vector<8x8xf32>
    %629 = tpu.concatenate %619, %622, %625, %628 in 0 : vector<8x8xf32>, vector<8x8xf32>, vector<8x8xf32>, vector<8x8xf32> -> vector<32x8xf32>
    %cst_475 = arith.constant dense<0xFF800000> : vector<32xf32>
    %630 = vector.multi_reduction <maximumf>, %629, %cst_475 [1] : vector<32x8xf32> to vector<32xf32>
    %631 = vector.shape_cast %630 : vector<32xf32> to vector<32x1xf32>
    %632 = vector.broadcast %631 : vector<32x1xf32> to vector<32x8xf32>
    %633 = arith.subf %629, %632 : vector<32x8xf32>
    %634 = math.exp %633 : vector<32x8xf32>
    %cst_476 = arith.constant dense<0.000000e+00> : vector<32xf32>
    %635 = vector.multi_reduction <add>, %634, %cst_476 [1] : vector<32x8xf32> to vector<32xf32>
    %636 = vector.shape_cast %635 : vector<32xf32> to vector<32x1xf32>
    %637 = tpu.reciprocal %636 : vector<32x1xf32> -> vector<32x1xf32>
    %638 = vector.broadcast %637 : vector<32x1xf32> to vector<32x8xf32>
    %639 = arith.mulf %634, %638 : vector<32x8xf32>
    %640 = vector.extract_strided_slice %639 {offsets = [0, 0], sizes = [8, 8], strides = [1, 1]} : vector<32x8xf32> to vector<8x8xf32>
    %cst_477 = arith.constant dense<0.000000e+00> : vector<8x8xf32>
    %641 = tpu.matmul %640, %595, %cst_477 {dimension_numbers = #tpu.dot_dimension_numbers<[1], [0], [0], [1], [0, 0, 1, 1], [], []>} : vector<8x8xf32>, vector<8x8xf32>, vector<8x8xf32> -> vector<8x8xf32>
    %642 = vector.extract_strided_slice %639 {offsets = [8, 0], sizes = [8, 8], strides = [1, 1]} : vector<32x8xf32> to vector<8x8xf32>
    %cst_478 = arith.constant dense<0.000000e+00> : vector<8x8xf32>
    %643 = tpu.matmul %642, %602, %cst_478 {dimension_numbers = #tpu.dot_dimension_numbers<[1], [0], [0], [1], [0, 0, 1, 1], [], []>} : vector<8x8xf32>, vector<8x8xf32>, vector<8x8xf32> -> vector<8x8xf32>
    %644 = vector.extract_strided_slice %639 {offsets = [16, 0], sizes = [8, 8], strides = [1, 1]} : vector<32x8xf32> to vector<8x8xf32>
    %cst_479 = arith.constant dense<0.000000e+00> : vector<8x8xf32>
    %645 = tpu.matmul %644, %609, %cst_479 {dimension_numbers = #tpu.dot_dimension_numbers<[1], [0], [0], [1], [0, 0, 1, 1], [], []>} : vector<8x8xf32>, vector<8x8xf32>, vector<8x8xf32> -> vector<8x8xf32>
    %646 = vector.extract_strided_slice %639 {offsets = [24, 0], sizes = [8, 8], strides = [1, 1]} : vector<32x8xf32> to vector<8x8xf32>
    %cst_480 = arith.constant dense<0.000000e+00> : vector<8x8xf32>
    %647 = tpu.matmul %646, %616, %cst_480 {dimension_numbers = #tpu.dot_dimension_numbers<[1], [0], [0], [1], [0, 0, 1, 1], [], []>} : vector<8x8xf32>, vector<8x8xf32>, vector<8x8xf32> -> vector<8x8xf32>
    %648 = tpu.concatenate %641, %643, %645, %647 in 1 : vector<8x8xf32>, vector<8x8xf32>, vector<8x8xf32>, vector<8x8xf32> -> vector<8x32xf32>
    %c0_481 = arith.constant 0 : index
    %c0_482 = arith.constant 0 : index
    %649 = vector.load %arg17[%c0_481, %c0_482] : memref<32x32xf32, #tpu.memory_space<vmem>>, vector<32x32xf32>
    %cst_483 = arith.constant dense<0.000000e+00> : vector<8x32xf32>
    %650 = tpu.matmul %648, %649, %cst_483 {dimension_numbers = #tpu.dot_dimension_numbers<[1], [0], [0], [1], [0, 0, 1, 1], [], []>} : vector<8x32xf32>, vector<32x32xf32>, vector<8x32xf32> -> vector<8x32xf32>
    %c0_484 = arith.constant 0 : index
    %c0_485 = arith.constant 0 : index
    %651 = vector.load %arg13[%c0_484, %c0_485] : memref<1x32xf32, #tpu.memory_space<vmem>>, vector<1x32xf32>
    %652 = vector.broadcast %651 : vector<1x32xf32> to vector<8x32xf32>
    %653 = arith.addf %650, %652 : vector<8x32xf32>
    %cst_486 = arith.constant dense<0.000000e+00> : vector<8xf32>
    %654 = vector.multi_reduction <add>, %653, %cst_486 [1] : vector<8x32xf32> to vector<8xf32>
    %655 = vector.shape_cast %654 : vector<8xf32> to vector<8x1xf32>
    %cst_487 = arith.constant 3.200000e+01 : f32
    %656 = vector.broadcast %cst_487 : f32 to vector<8x1xf32>
    %657 = arith.divf %655, %656 : vector<8x1xf32>
    %658 = vector.broadcast %657 : vector<8x1xf32> to vector<8x32xf32>
    %659 = arith.subf %653, %658 : vector<8x32xf32>
    %660 = arith.mulf %659, %659 : vector<8x32xf32>
    %cst_488 = arith.constant dense<0.000000e+00> : vector<8xf32>
    %661 = vector.multi_reduction <add>, %660, %cst_488 [1] : vector<8x32xf32> to vector<8xf32>
    %662 = vector.shape_cast %661 : vector<8xf32> to vector<8x1xf32>
    %cst_489 = arith.constant 3.200000e+01 : f32
    %663 = vector.broadcast %cst_489 : f32 to vector<8x1xf32>
    %664 = arith.divf %662, %663 : vector<8x1xf32>
    %665 = vector.broadcast %657 : vector<8x1xf32> to vector<8x32xf32>
    %666 = arith.subf %653, %665 : vector<8x32xf32>
    %cst_490 = arith.constant 9.99999974E-6 : f32
    %667 = vector.broadcast %cst_490 : f32 to vector<8x1xf32>
    %668 = arith.addf %664, %667 : vector<8x1xf32>
    %669 = math.rsqrt %668 : vector<8x1xf32>
    %670 = vector.broadcast %669 : vector<8x1xf32> to vector<8x32xf32>
    %671 = arith.mulf %666, %670 : vector<8x32xf32>
    %c0_491 = arith.constant 0 : index
    %c0_492 = arith.constant 0 : index
    %672 = vector.load %arg10[%c0_491, %c0_492] : memref<1x32xf32, #tpu.memory_space<vmem>>, vector<1x32xf32>
    %673 = vector.broadcast %672 : vector<1x32xf32> to vector<8x32xf32>
    %674 = arith.mulf %671, %673 : vector<8x32xf32>
    %c0_493 = arith.constant 0 : index
    %c0_494 = arith.constant 0 : index
    %675 = vector.load %arg9[%c0_493, %c0_494] : memref<1x32xf32, #tpu.memory_space<vmem>>, vector<1x32xf32>
    %676 = vector.broadcast %675 : vector<1x32xf32> to vector<8x32xf32>
    %677 = arith.addf %674, %676 : vector<8x32xf32>
    %678 = arith.addf %532, %677 : vector<8x32xf32>
    %c0_495 = arith.constant 0 : index
    %c0_496 = arith.constant 0 : index
    %679 = vector.load %arg4[%c0_495, %c0_496] : memref<32x64xf32, #tpu.memory_space<vmem>>, vector<32x64xf32>
    %cst_497 = arith.constant dense<0.000000e+00> : vector<8x64xf32>
    %680 = tpu.matmul %678, %679, %cst_497 {dimension_numbers = #tpu.dot_dimension_numbers<[1], [0], [0], [1], [0, 0, 1, 1], [], []>} : vector<8x32xf32>, vector<32x64xf32>, vector<8x64xf32> -> vector<8x64xf32>
    %c0_498 = arith.constant 0 : index
    %c0_499 = arith.constant 0 : index
    %681 = vector.load %arg3[%c0_498, %c0_499] : memref<1x64xf32, #tpu.memory_space<vmem>>, vector<1x64xf32>
    %682 = vector.broadcast %681 : vector<1x64xf32> to vector<8x64xf32>
    %683 = arith.addf %680, %682 : vector<8x64xf32>
    %cst_500 = arith.constant 0.000000e+00 : f32
    %684 = vector.broadcast %cst_500 : f32 to vector<8x64xf32>
    %685 = arith.cmpf oge, %683, %684 : vector<8x64xf32>
    %cst_501 = arith.constant 1.000000e-01 : f32
    %686 = vector.broadcast %cst_501 : f32 to vector<8x64xf32>
    %687 = arith.mulf %686, %683 : vector<8x64xf32>
    %688 = arith.select %685, %683, %687 : vector<8x64xi1>, vector<8x64xf32>
    %c0_502 = arith.constant 0 : index
    %c0_503 = arith.constant 0 : index
    %689 = vector.load %arg6[%c0_502, %c0_503] : memref<64x32xf32, #tpu.memory_space<vmem>>, vector<64x32xf32>
    %cst_504 = arith.constant dense<0.000000e+00> : vector<8x32xf32>
    %690 = tpu.matmul %688, %689, %cst_504 {dimension_numbers = #tpu.dot_dimension_numbers<[1], [0], [0], [1], [0, 0, 1, 1], [], []>} : vector<8x64xf32>, vector<64x32xf32>, vector<8x32xf32> -> vector<8x32xf32>
    %c0_505 = arith.constant 0 : index
    %c0_506 = arith.constant 0 : index
    %691 = vector.load %arg5[%c0_505, %c0_506] : memref<1x32xf32, #tpu.memory_space<vmem>>, vector<1x32xf32>
    %692 = vector.broadcast %691 : vector<1x32xf32> to vector<8x32xf32>
    %693 = arith.addf %690, %692 : vector<8x32xf32>
    %cst_507 = arith.constant dense<0.000000e+00> : vector<8xf32>
    %694 = vector.multi_reduction <add>, %693, %cst_507 [1] : vector<8x32xf32> to vector<8xf32>
    %695 = vector.shape_cast %694 : vector<8xf32> to vector<8x1xf32>
    %cst_508 = arith.constant 3.200000e+01 : f32
    %696 = vector.broadcast %cst_508 : f32 to vector<8x1xf32>
    %697 = arith.divf %695, %696 : vector<8x1xf32>
    %698 = vector.broadcast %697 : vector<8x1xf32> to vector<8x32xf32>
    %699 = arith.subf %693, %698 : vector<8x32xf32>
    %700 = arith.mulf %699, %699 : vector<8x32xf32>
    %cst_509 = arith.constant dense<0.000000e+00> : vector<8xf32>
    %701 = vector.multi_reduction <add>, %700, %cst_509 [1] : vector<8x32xf32> to vector<8xf32>
    %702 = vector.shape_cast %701 : vector<8xf32> to vector<8x1xf32>
    %cst_510 = arith.constant 3.200000e+01 : f32
    %703 = vector.broadcast %cst_510 : f32 to vector<8x1xf32>
    %704 = arith.divf %702, %703 : vector<8x1xf32>
    %705 = vector.broadcast %697 : vector<8x1xf32> to vector<8x32xf32>
    %706 = arith.subf %693, %705 : vector<8x32xf32>
    %cst_511 = arith.constant 9.99999974E-6 : f32
    %707 = vector.broadcast %cst_511 : f32 to vector<8x1xf32>
    %708 = arith.addf %704, %707 : vector<8x1xf32>
    %709 = math.rsqrt %708 : vector<8x1xf32>
    %710 = vector.broadcast %709 : vector<8x1xf32> to vector<8x32xf32>
    %711 = arith.mulf %706, %710 : vector<8x32xf32>
    %c0_512 = arith.constant 0 : index
    %c0_513 = arith.constant 0 : index
    %712 = vector.load %arg12[%c0_512, %c0_513] : memref<1x32xf32, #tpu.memory_space<vmem>>, vector<1x32xf32>
    %713 = vector.broadcast %712 : vector<1x32xf32> to vector<8x32xf32>
    %714 = arith.mulf %711, %713 : vector<8x32xf32>
    %c0_514 = arith.constant 0 : index
    %c0_515 = arith.constant 0 : index
    %715 = vector.load %arg11[%c0_514, %c0_515] : memref<1x32xf32, #tpu.memory_space<vmem>>, vector<1x32xf32>
    %716 = vector.broadcast %715 : vector<1x32xf32> to vector<8x32xf32>
    %717 = arith.addf %714, %716 : vector<8x32xf32>
    %718 = arith.addf %693, %717 : vector<8x32xf32>
    %c0_516 = arith.constant 0 : index
    %c0_517 = arith.constant 0 : index
    %c0_518 = arith.constant 0 : index
    %719 = vector.load %arg37[%c0_516, %c0_517, %c0_518] : memref<4x32x8xf32, #tpu.memory_space<vmem>>, vector<1x32x8xf32>
    %720 = vector.shape_cast %719 : vector<1x32x8xf32> to vector<32x8xf32>
    %cst_519 = arith.constant dense<0.000000e+00> : vector<8x8xf32>
    %721 = tpu.matmul %718, %720, %cst_519 {dimension_numbers = #tpu.dot_dimension_numbers<[1], [0], [0], [1], [0, 0, 1, 1], [], []>} : vector<8x32xf32>, vector<32x8xf32>, vector<8x8xf32> -> vector<8x8xf32>
    %c0_520 = arith.constant 0 : index
    %c0_521 = arith.constant 0 : index
    %c0_522 = arith.constant 0 : index
    %722 = vector.load %arg33[%c0_520, %c0_521, %c0_522] : memref<4x1x8xf32, #tpu.memory_space<vmem>>, vector<1x1x8xf32>
    %723 = vector.shape_cast %722 : vector<1x1x8xf32> to vector<1x8xf32>
    %724 = vector.broadcast %723 : vector<1x8xf32> to vector<8x8xf32>
    %725 = arith.addf %721, %724 : vector<8x8xf32>
    %c1_523 = arith.constant 1 : index
    %c0_524 = arith.constant 0 : index
    %c0_525 = arith.constant 0 : index
    %726 = vector.load %arg37[%c1_523, %c0_524, %c0_525] : memref<4x32x8xf32, #tpu.memory_space<vmem>>, vector<1x32x8xf32>
    %727 = vector.shape_cast %726 : vector<1x32x8xf32> to vector<32x8xf32>
    %cst_526 = arith.constant dense<0.000000e+00> : vector<8x8xf32>
    %728 = tpu.matmul %718, %727, %cst_526 {dimension_numbers = #tpu.dot_dimension_numbers<[1], [0], [0], [1], [0, 0, 1, 1], [], []>} : vector<8x32xf32>, vector<32x8xf32>, vector<8x8xf32> -> vector<8x8xf32>
    %c1_527 = arith.constant 1 : index
    %c0_528 = arith.constant 0 : index
    %c0_529 = arith.constant 0 : index
    %729 = vector.load %arg33[%c1_527, %c0_528, %c0_529] : memref<4x1x8xf32, #tpu.memory_space<vmem>>, vector<1x1x8xf32>
    %730 = vector.shape_cast %729 : vector<1x1x8xf32> to vector<1x8xf32>
    %731 = vector.broadcast %730 : vector<1x8xf32> to vector<8x8xf32>
    %732 = arith.addf %728, %731 : vector<8x8xf32>
    %c2_530 = arith.constant 2 : index
    %c0_531 = arith.constant 0 : index
    %c0_532 = arith.constant 0 : index
    %733 = vector.load %arg37[%c2_530, %c0_531, %c0_532] : memref<4x32x8xf32, #tpu.memory_space<vmem>>, vector<1x32x8xf32>
    %734 = vector.shape_cast %733 : vector<1x32x8xf32> to vector<32x8xf32>
    %cst_533 = arith.constant dense<0.000000e+00> : vector<8x8xf32>
    %735 = tpu.matmul %718, %734, %cst_533 {dimension_numbers = #tpu.dot_dimension_numbers<[1], [0], [0], [1], [0, 0, 1, 1], [], []>} : vector<8x32xf32>, vector<32x8xf32>, vector<8x8xf32> -> vector<8x8xf32>
    %c2_534 = arith.constant 2 : index
    %c0_535 = arith.constant 0 : index
    %c0_536 = arith.constant 0 : index
    %736 = vector.load %arg33[%c2_534, %c0_535, %c0_536] : memref<4x1x8xf32, #tpu.memory_space<vmem>>, vector<1x1x8xf32>
    %737 = vector.shape_cast %736 : vector<1x1x8xf32> to vector<1x8xf32>
    %738 = vector.broadcast %737 : vector<1x8xf32> to vector<8x8xf32>
    %739 = arith.addf %735, %738 : vector<8x8xf32>
    %c3_537 = arith.constant 3 : index
    %c0_538 = arith.constant 0 : index
    %c0_539 = arith.constant 0 : index
    %740 = vector.load %arg37[%c3_537, %c0_538, %c0_539] : memref<4x32x8xf32, #tpu.memory_space<vmem>>, vector<1x32x8xf32>
    %741 = vector.shape_cast %740 : vector<1x32x8xf32> to vector<32x8xf32>
    %cst_540 = arith.constant dense<0.000000e+00> : vector<8x8xf32>
    %742 = tpu.matmul %718, %741, %cst_540 {dimension_numbers = #tpu.dot_dimension_numbers<[1], [0], [0], [1], [0, 0, 1, 1], [], []>} : vector<8x32xf32>, vector<32x8xf32>, vector<8x8xf32> -> vector<8x8xf32>
    %c3_541 = arith.constant 3 : index
    %c0_542 = arith.constant 0 : index
    %c0_543 = arith.constant 0 : index
    %743 = vector.load %arg33[%c3_541, %c0_542, %c0_543] : memref<4x1x8xf32, #tpu.memory_space<vmem>>, vector<1x1x8xf32>
    %744 = vector.shape_cast %743 : vector<1x1x8xf32> to vector<1x8xf32>
    %745 = vector.broadcast %744 : vector<1x8xf32> to vector<8x8xf32>
    %746 = arith.addf %742, %745 : vector<8x8xf32>
    %c0_544 = arith.constant 0 : index
    %c0_545 = arith.constant 0 : index
    %c0_546 = arith.constant 0 : index
    %747 = vector.load %arg36[%c0_544, %c0_545, %c0_546] : memref<4x32x8xf32, #tpu.memory_space<vmem>>, vector<1x32x8xf32>
    %748 = vector.shape_cast %747 : vector<1x32x8xf32> to vector<32x8xf32>
    %cst_547 = arith.constant dense<0.000000e+00> : vector<8x8xf32>
    %749 = tpu.matmul %718, %748, %cst_547 {dimension_numbers = #tpu.dot_dimension_numbers<[1], [0], [0], [1], [0, 0, 1, 1], [], []>} : vector<8x32xf32>, vector<32x8xf32>, vector<8x8xf32> -> vector<8x8xf32>
    %c0_548 = arith.constant 0 : index
    %c0_549 = arith.constant 0 : index
    %c0_550 = arith.constant 0 : index
    %750 = vector.load %arg32[%c0_548, %c0_549, %c0_550] : memref<4x1x8xf32, #tpu.memory_space<vmem>>, vector<1x1x8xf32>
    %751 = vector.shape_cast %750 : vector<1x1x8xf32> to vector<1x8xf32>
    %752 = vector.broadcast %751 : vector<1x8xf32> to vector<8x8xf32>
    %753 = arith.addf %749, %752 : vector<8x8xf32>
    %c1_551 = arith.constant 1 : index
    %c0_552 = arith.constant 0 : index
    %c0_553 = arith.constant 0 : index
    %754 = vector.load %arg36[%c1_551, %c0_552, %c0_553] : memref<4x32x8xf32, #tpu.memory_space<vmem>>, vector<1x32x8xf32>
    %755 = vector.shape_cast %754 : vector<1x32x8xf32> to vector<32x8xf32>
    %cst_554 = arith.constant dense<0.000000e+00> : vector<8x8xf32>
    %756 = tpu.matmul %718, %755, %cst_554 {dimension_numbers = #tpu.dot_dimension_numbers<[1], [0], [0], [1], [0, 0, 1, 1], [], []>} : vector<8x32xf32>, vector<32x8xf32>, vector<8x8xf32> -> vector<8x8xf32>
    %c1_555 = arith.constant 1 : index
    %c0_556 = arith.constant 0 : index
    %c0_557 = arith.constant 0 : index
    %757 = vector.load %arg32[%c1_555, %c0_556, %c0_557] : memref<4x1x8xf32, #tpu.memory_space<vmem>>, vector<1x1x8xf32>
    %758 = vector.shape_cast %757 : vector<1x1x8xf32> to vector<1x8xf32>
    %759 = vector.broadcast %758 : vector<1x8xf32> to vector<8x8xf32>
    %760 = arith.addf %756, %759 : vector<8x8xf32>
    %c2_558 = arith.constant 2 : index
    %c0_559 = arith.constant 0 : index
    %c0_560 = arith.constant 0 : index
    %761 = vector.load %arg36[%c2_558, %c0_559, %c0_560] : memref<4x32x8xf32, #tpu.memory_space<vmem>>, vector<1x32x8xf32>
    %762 = vector.shape_cast %761 : vector<1x32x8xf32> to vector<32x8xf32>
    %cst_561 = arith.constant dense<0.000000e+00> : vector<8x8xf32>
    %763 = tpu.matmul %718, %762, %cst_561 {dimension_numbers = #tpu.dot_dimension_numbers<[1], [0], [0], [1], [0, 0, 1, 1], [], []>} : vector<8x32xf32>, vector<32x8xf32>, vector<8x8xf32> -> vector<8x8xf32>
    %c2_562 = arith.constant 2 : index
    %c0_563 = arith.constant 0 : index
    %c0_564 = arith.constant 0 : index
    %764 = vector.load %arg32[%c2_562, %c0_563, %c0_564] : memref<4x1x8xf32, #tpu.memory_space<vmem>>, vector<1x1x8xf32>
    %765 = vector.shape_cast %764 : vector<1x1x8xf32> to vector<1x8xf32>
    %766 = vector.broadcast %765 : vector<1x8xf32> to vector<8x8xf32>
    %767 = arith.addf %763, %766 : vector<8x8xf32>
    %c3_565 = arith.constant 3 : index
    %c0_566 = arith.constant 0 : index
    %c0_567 = arith.constant 0 : index
    %768 = vector.load %arg36[%c3_565, %c0_566, %c0_567] : memref<4x32x8xf32, #tpu.memory_space<vmem>>, vector<1x32x8xf32>
    %769 = vector.shape_cast %768 : vector<1x32x8xf32> to vector<32x8xf32>
    %cst_568 = arith.constant dense<0.000000e+00> : vector<8x8xf32>
    %770 = tpu.matmul %718, %769, %cst_568 {dimension_numbers = #tpu.dot_dimension_numbers<[1], [0], [0], [1], [0, 0, 1, 1], [], []>} : vector<8x32xf32>, vector<32x8xf32>, vector<8x8xf32> -> vector<8x8xf32>
    %c3_569 = arith.constant 3 : index
    %c0_570 = arith.constant 0 : index
    %c0_571 = arith.constant 0 : index
    %771 = vector.load %arg32[%c3_569, %c0_570, %c0_571] : memref<4x1x8xf32, #tpu.memory_space<vmem>>, vector<1x1x8xf32>
    %772 = vector.shape_cast %771 : vector<1x1x8xf32> to vector<1x8xf32>
    %773 = vector.broadcast %772 : vector<1x8xf32> to vector<8x8xf32>
    %774 = arith.addf %770, %773 : vector<8x8xf32>
    %c0_572 = arith.constant 0 : index
    %c0_573 = arith.constant 0 : index
    %c0_574 = arith.constant 0 : index
    %775 = vector.load %arg38[%c0_572, %c0_573, %c0_574] : memref<4x32x8xf32, #tpu.memory_space<vmem>>, vector<1x32x8xf32>
    %776 = vector.shape_cast %775 : vector<1x32x8xf32> to vector<32x8xf32>
    %cst_575 = arith.constant dense<0.000000e+00> : vector<8x8xf32>
    %777 = tpu.matmul %718, %776, %cst_575 {dimension_numbers = #tpu.dot_dimension_numbers<[1], [0], [0], [1], [0, 0, 1, 1], [], []>} : vector<8x32xf32>, vector<32x8xf32>, vector<8x8xf32> -> vector<8x8xf32>
    %c0_576 = arith.constant 0 : index
    %c0_577 = arith.constant 0 : index
    %c0_578 = arith.constant 0 : index
    %778 = vector.load %arg34[%c0_576, %c0_577, %c0_578] : memref<4x1x8xf32, #tpu.memory_space<vmem>>, vector<1x1x8xf32>
    %779 = vector.shape_cast %778 : vector<1x1x8xf32> to vector<1x8xf32>
    %780 = vector.broadcast %779 : vector<1x8xf32> to vector<8x8xf32>
    %781 = arith.addf %777, %780 : vector<8x8xf32>
    %c1_579 = arith.constant 1 : index
    %c0_580 = arith.constant 0 : index
    %c0_581 = arith.constant 0 : index
    %782 = vector.load %arg38[%c1_579, %c0_580, %c0_581] : memref<4x32x8xf32, #tpu.memory_space<vmem>>, vector<1x32x8xf32>
    %783 = vector.shape_cast %782 : vector<1x32x8xf32> to vector<32x8xf32>
    %cst_582 = arith.constant dense<0.000000e+00> : vector<8x8xf32>
    %784 = tpu.matmul %718, %783, %cst_582 {dimension_numbers = #tpu.dot_dimension_numbers<[1], [0], [0], [1], [0, 0, 1, 1], [], []>} : vector<8x32xf32>, vector<32x8xf32>, vector<8x8xf32> -> vector<8x8xf32>
    %c1_583 = arith.constant 1 : index
    %c0_584 = arith.constant 0 : index
    %c0_585 = arith.constant 0 : index
    %785 = vector.load %arg34[%c1_583, %c0_584, %c0_585] : memref<4x1x8xf32, #tpu.memory_space<vmem>>, vector<1x1x8xf32>
    %786 = vector.shape_cast %785 : vector<1x1x8xf32> to vector<1x8xf32>
    %787 = vector.broadcast %786 : vector<1x8xf32> to vector<8x8xf32>
    %788 = arith.addf %784, %787 : vector<8x8xf32>
    %c2_586 = arith.constant 2 : index
    %c0_587 = arith.constant 0 : index
    %c0_588 = arith.constant 0 : index
    %789 = vector.load %arg38[%c2_586, %c0_587, %c0_588] : memref<4x32x8xf32, #tpu.memory_space<vmem>>, vector<1x32x8xf32>
    %790 = vector.shape_cast %789 : vector<1x32x8xf32> to vector<32x8xf32>
    %cst_589 = arith.constant dense<0.000000e+00> : vector<8x8xf32>
    %791 = tpu.matmul %718, %790, %cst_589 {dimension_numbers = #tpu.dot_dimension_numbers<[1], [0], [0], [1], [0, 0, 1, 1], [], []>} : vector<8x32xf32>, vector<32x8xf32>, vector<8x8xf32> -> vector<8x8xf32>
    %c2_590 = arith.constant 2 : index
    %c0_591 = arith.constant 0 : index
    %c0_592 = arith.constant 0 : index
    %792 = vector.load %arg34[%c2_590, %c0_591, %c0_592] : memref<4x1x8xf32, #tpu.memory_space<vmem>>, vector<1x1x8xf32>
    %793 = vector.shape_cast %792 : vector<1x1x8xf32> to vector<1x8xf32>
    %794 = vector.broadcast %793 : vector<1x8xf32> to vector<8x8xf32>
    %795 = arith.addf %791, %794 : vector<8x8xf32>
    %c3_593 = arith.constant 3 : index
    %c0_594 = arith.constant 0 : index
    %c0_595 = arith.constant 0 : index
    %796 = vector.load %arg38[%c3_593, %c0_594, %c0_595] : memref<4x32x8xf32, #tpu.memory_space<vmem>>, vector<1x32x8xf32>
    %797 = vector.shape_cast %796 : vector<1x32x8xf32> to vector<32x8xf32>
    %cst_596 = arith.constant dense<0.000000e+00> : vector<8x8xf32>
    %798 = tpu.matmul %718, %797, %cst_596 {dimension_numbers = #tpu.dot_dimension_numbers<[1], [0], [0], [1], [0, 0, 1, 1], [], []>} : vector<8x32xf32>, vector<32x8xf32>, vector<8x8xf32> -> vector<8x8xf32>
    %c3_597 = arith.constant 3 : index
    %c0_598 = arith.constant 0 : index
    %c0_599 = arith.constant 0 : index
    %799 = vector.load %arg34[%c3_597, %c0_598, %c0_599] : memref<4x1x8xf32, #tpu.memory_space<vmem>>, vector<1x1x8xf32>
    %800 = vector.shape_cast %799 : vector<1x1x8xf32> to vector<1x8xf32>
    %801 = vector.broadcast %800 : vector<1x8xf32> to vector<8x8xf32>
    %802 = arith.addf %798, %801 : vector<8x8xf32>
    %cst_600 = arith.constant dense<0.000000e+00> : vector<8x8xf32>
    %803 = tpu.matmul %753, %725, %cst_600 {dimension_numbers = #tpu.dot_dimension_numbers<[1], [1], [0], [0], [0, 0, 1, 0], [], []>} : vector<8x8xf32>, vector<8x8xf32>, vector<8x8xf32> -> vector<8x8xf32>
    %cst_601 = arith.constant 0.353553385 : f32
    %804 = vector.broadcast %cst_601 : f32 to vector<8x8xf32>
    %805 = arith.mulf %803, %804 : vector<8x8xf32>
    %cst_602 = arith.constant dense<0.000000e+00> : vector<8x8xf32>
    %806 = tpu.matmul %760, %732, %cst_602 {dimension_numbers = #tpu.dot_dimension_numbers<[1], [1], [0], [0], [0, 0, 1, 0], [], []>} : vector<8x8xf32>, vector<8x8xf32>, vector<8x8xf32> -> vector<8x8xf32>
    %cst_603 = arith.constant 0.353553385 : f32
    %807 = vector.broadcast %cst_603 : f32 to vector<8x8xf32>
    %808 = arith.mulf %806, %807 : vector<8x8xf32>
    %cst_604 = arith.constant dense<0.000000e+00> : vector<8x8xf32>
    %809 = tpu.matmul %767, %739, %cst_604 {dimension_numbers = #tpu.dot_dimension_numbers<[1], [1], [0], [0], [0, 0, 1, 0], [], []>} : vector<8x8xf32>, vector<8x8xf32>, vector<8x8xf32> -> vector<8x8xf32>
    %cst_605 = arith.constant 0.353553385 : f32
    %810 = vector.broadcast %cst_605 : f32 to vector<8x8xf32>
    %811 = arith.mulf %809, %810 : vector<8x8xf32>
    %cst_606 = arith.constant dense<0.000000e+00> : vector<8x8xf32>
    %812 = tpu.matmul %774, %746, %cst_606 {dimension_numbers = #tpu.dot_dimension_numbers<[1], [1], [0], [0], [0, 0, 1, 0], [], []>} : vector<8x8xf32>, vector<8x8xf32>, vector<8x8xf32> -> vector<8x8xf32>
    %cst_607 = arith.constant 0.353553385 : f32
    %813 = vector.broadcast %cst_607 : f32 to vector<8x8xf32>
    %814 = arith.mulf %812, %813 : vector<8x8xf32>
    %815 = tpu.concatenate %805, %808, %811, %814 in 0 : vector<8x8xf32>, vector<8x8xf32>, vector<8x8xf32>, vector<8x8xf32> -> vector<32x8xf32>
    %cst_608 = arith.constant dense<0xFF800000> : vector<32xf32>
    %816 = vector.multi_reduction <maximumf>, %815, %cst_608 [1] : vector<32x8xf32> to vector<32xf32>
    %817 = vector.shape_cast %816 : vector<32xf32> to vector<32x1xf32>
    %818 = vector.broadcast %817 : vector<32x1xf32> to vector<32x8xf32>
    %819 = arith.subf %815, %818 : vector<32x8xf32>
    %820 = math.exp %819 : vector<32x8xf32>
    %cst_609 = arith.constant dense<0.000000e+00> : vector<32xf32>
    %821 = vector.multi_reduction <add>, %820, %cst_609 [1] : vector<32x8xf32> to vector<32xf32>
    %822 = vector.shape_cast %821 : vector<32xf32> to vector<32x1xf32>
    %823 = tpu.reciprocal %822 : vector<32x1xf32> -> vector<32x1xf32>
    %824 = vector.broadcast %823 : vector<32x1xf32> to vector<32x8xf32>
    %825 = arith.mulf %820, %824 : vector<32x8xf32>
    %826 = vector.extract_strided_slice %825 {offsets = [0, 0], sizes = [8, 8], strides = [1, 1]} : vector<32x8xf32> to vector<8x8xf32>
    %cst_610 = arith.constant dense<0.000000e+00> : vector<8x8xf32>
    %827 = tpu.matmul %826, %781, %cst_610 {dimension_numbers = #tpu.dot_dimension_numbers<[1], [0], [0], [1], [0, 0, 1, 1], [], []>} : vector<8x8xf32>, vector<8x8xf32>, vector<8x8xf32> -> vector<8x8xf32>
    %828 = vector.extract_strided_slice %825 {offsets = [8, 0], sizes = [8, 8], strides = [1, 1]} : vector<32x8xf32> to vector<8x8xf32>
    %cst_611 = arith.constant dense<0.000000e+00> : vector<8x8xf32>
    %829 = tpu.matmul %828, %788, %cst_611 {dimension_numbers = #tpu.dot_dimension_numbers<[1], [0], [0], [1], [0, 0, 1, 1], [], []>} : vector<8x8xf32>, vector<8x8xf32>, vector<8x8xf32> -> vector<8x8xf32>
    %830 = vector.extract_strided_slice %825 {offsets = [16, 0], sizes = [8, 8], strides = [1, 1]} : vector<32x8xf32> to vector<8x8xf32>
    %cst_612 = arith.constant dense<0.000000e+00> : vector<8x8xf32>
    %831 = tpu.matmul %830, %795, %cst_612 {dimension_numbers = #tpu.dot_dimension_numbers<[1], [0], [0], [1], [0, 0, 1, 1], [], []>} : vector<8x8xf32>, vector<8x8xf32>, vector<8x8xf32> -> vector<8x8xf32>
    %832 = vector.extract_strided_slice %825 {offsets = [24, 0], sizes = [8, 8], strides = [1, 1]} : vector<32x8xf32> to vector<8x8xf32>
    %cst_613 = arith.constant dense<0.000000e+00> : vector<8x8xf32>
    %833 = tpu.matmul %832, %802, %cst_613 {dimension_numbers = #tpu.dot_dimension_numbers<[1], [0], [0], [1], [0, 0, 1, 1], [], []>} : vector<8x8xf32>, vector<8x8xf32>, vector<8x8xf32> -> vector<8x8xf32>
    %834 = tpu.concatenate %827, %829, %831, %833 in 1 : vector<8x8xf32>, vector<8x8xf32>, vector<8x8xf32>, vector<8x8xf32> -> vector<8x32xf32>
    %c0_614 = arith.constant 0 : index
    %c0_615 = arith.constant 0 : index
    %835 = vector.load %arg35[%c0_614, %c0_615] : memref<32x32xf32, #tpu.memory_space<vmem>>, vector<32x32xf32>
    %cst_616 = arith.constant dense<0.000000e+00> : vector<8x32xf32>
    %836 = tpu.matmul %834, %835, %cst_616 {dimension_numbers = #tpu.dot_dimension_numbers<[1], [0], [0], [1], [0, 0, 1, 1], [], []>} : vector<8x32xf32>, vector<32x32xf32>, vector<8x32xf32> -> vector<8x32xf32>
    %c0_617 = arith.constant 0 : index
    %c0_618 = arith.constant 0 : index
    %837 = vector.load %arg31[%c0_617, %c0_618] : memref<1x32xf32, #tpu.memory_space<vmem>>, vector<1x32xf32>
    %838 = vector.broadcast %837 : vector<1x32xf32> to vector<8x32xf32>
    %839 = arith.addf %836, %838 : vector<8x32xf32>
    %cst_619 = arith.constant dense<0.000000e+00> : vector<8xf32>
    %840 = vector.multi_reduction <add>, %839, %cst_619 [1] : vector<8x32xf32> to vector<8xf32>
    %841 = vector.shape_cast %840 : vector<8xf32> to vector<8x1xf32>
    %cst_620 = arith.constant 3.200000e+01 : f32
    %842 = vector.broadcast %cst_620 : f32 to vector<8x1xf32>
    %843 = arith.divf %841, %842 : vector<8x1xf32>
    %844 = vector.broadcast %843 : vector<8x1xf32> to vector<8x32xf32>
    %845 = arith.subf %839, %844 : vector<8x32xf32>
    %846 = arith.mulf %845, %845 : vector<8x32xf32>
    %cst_621 = arith.constant dense<0.000000e+00> : vector<8xf32>
    %847 = vector.multi_reduction <add>, %846, %cst_621 [1] : vector<8x32xf32> to vector<8xf32>
    %848 = vector.shape_cast %847 : vector<8xf32> to vector<8x1xf32>
    %cst_622 = arith.constant 3.200000e+01 : f32
    %849 = vector.broadcast %cst_622 : f32 to vector<8x1xf32>
    %850 = arith.divf %848, %849 : vector<8x1xf32>
    %851 = vector.broadcast %843 : vector<8x1xf32> to vector<8x32xf32>
    %852 = arith.subf %839, %851 : vector<8x32xf32>
    %cst_623 = arith.constant 9.99999974E-6 : f32
    %853 = vector.broadcast %cst_623 : f32 to vector<8x1xf32>
    %854 = arith.addf %850, %853 : vector<8x1xf32>
    %855 = math.rsqrt %854 : vector<8x1xf32>
    %856 = vector.broadcast %855 : vector<8x1xf32> to vector<8x32xf32>
    %857 = arith.mulf %852, %856 : vector<8x32xf32>
    %c0_624 = arith.constant 0 : index
    %c0_625 = arith.constant 0 : index
    %858 = vector.load %arg26[%c0_624, %c0_625] : memref<1x32xf32, #tpu.memory_space<vmem>>, vector<1x32xf32>
    %859 = vector.broadcast %858 : vector<1x32xf32> to vector<8x32xf32>
    %860 = arith.mulf %857, %859 : vector<8x32xf32>
    %c0_626 = arith.constant 0 : index
    %c0_627 = arith.constant 0 : index
    %861 = vector.load %arg25[%c0_626, %c0_627] : memref<1x32xf32, #tpu.memory_space<vmem>>, vector<1x32xf32>
    %862 = vector.broadcast %861 : vector<1x32xf32> to vector<8x32xf32>
    %863 = arith.addf %860, %862 : vector<8x32xf32>
    %864 = arith.addf %718, %863 : vector<8x32xf32>
    %c0_628 = arith.constant 0 : index
    %c0_629 = arith.constant 0 : index
    %c0_630 = arith.constant 0 : index
    %865 = vector.load %arg37[%c0_628, %c0_629, %c0_630] : memref<4x32x8xf32, #tpu.memory_space<vmem>>, vector<1x32x8xf32>
    %866 = vector.shape_cast %865 : vector<1x32x8xf32> to vector<32x8xf32>
    %cst_631 = arith.constant dense<0.000000e+00> : vector<8x8xf32>
    %867 = tpu.matmul %864, %866, %cst_631 {dimension_numbers = #tpu.dot_dimension_numbers<[1], [0], [0], [1], [0, 0, 1, 1], [], []>} : vector<8x32xf32>, vector<32x8xf32>, vector<8x8xf32> -> vector<8x8xf32>
    %c0_632 = arith.constant 0 : index
    %c0_633 = arith.constant 0 : index
    %c0_634 = arith.constant 0 : index
    %868 = vector.load %arg33[%c0_632, %c0_633, %c0_634] : memref<4x1x8xf32, #tpu.memory_space<vmem>>, vector<1x1x8xf32>
    %869 = vector.shape_cast %868 : vector<1x1x8xf32> to vector<1x8xf32>
    %870 = vector.broadcast %869 : vector<1x8xf32> to vector<8x8xf32>
    %871 = arith.addf %867, %870 : vector<8x8xf32>
    %c1_635 = arith.constant 1 : index
    %c0_636 = arith.constant 0 : index
    %c0_637 = arith.constant 0 : index
    %872 = vector.load %arg37[%c1_635, %c0_636, %c0_637] : memref<4x32x8xf32, #tpu.memory_space<vmem>>, vector<1x32x8xf32>
    %873 = vector.shape_cast %872 : vector<1x32x8xf32> to vector<32x8xf32>
    %cst_638 = arith.constant dense<0.000000e+00> : vector<8x8xf32>
    %874 = tpu.matmul %864, %873, %cst_638 {dimension_numbers = #tpu.dot_dimension_numbers<[1], [0], [0], [1], [0, 0, 1, 1], [], []>} : vector<8x32xf32>, vector<32x8xf32>, vector<8x8xf32> -> vector<8x8xf32>
    %c1_639 = arith.constant 1 : index
    %c0_640 = arith.constant 0 : index
    %c0_641 = arith.constant 0 : index
    %875 = vector.load %arg33[%c1_639, %c0_640, %c0_641] : memref<4x1x8xf32, #tpu.memory_space<vmem>>, vector<1x1x8xf32>
    %876 = vector.shape_cast %875 : vector<1x1x8xf32> to vector<1x8xf32>
    %877 = vector.broadcast %876 : vector<1x8xf32> to vector<8x8xf32>
    %878 = arith.addf %874, %877 : vector<8x8xf32>
    %c2_642 = arith.constant 2 : index
    %c0_643 = arith.constant 0 : index
    %c0_644 = arith.constant 0 : index
    %879 = vector.load %arg37[%c2_642, %c0_643, %c0_644] : memref<4x32x8xf32, #tpu.memory_space<vmem>>, vector<1x32x8xf32>
    %880 = vector.shape_cast %879 : vector<1x32x8xf32> to vector<32x8xf32>
    %cst_645 = arith.constant dense<0.000000e+00> : vector<8x8xf32>
    %881 = tpu.matmul %864, %880, %cst_645 {dimension_numbers = #tpu.dot_dimension_numbers<[1], [0], [0], [1], [0, 0, 1, 1], [], []>} : vector<8x32xf32>, vector<32x8xf32>, vector<8x8xf32> -> vector<8x8xf32>
    %c2_646 = arith.constant 2 : index
    %c0_647 = arith.constant 0 : index
    %c0_648 = arith.constant 0 : index
    %882 = vector.load %arg33[%c2_646, %c0_647, %c0_648] : memref<4x1x8xf32, #tpu.memory_space<vmem>>, vector<1x1x8xf32>
    %883 = vector.shape_cast %882 : vector<1x1x8xf32> to vector<1x8xf32>
    %884 = vector.broadcast %883 : vector<1x8xf32> to vector<8x8xf32>
    %885 = arith.addf %881, %884 : vector<8x8xf32>
    %c3_649 = arith.constant 3 : index
    %c0_650 = arith.constant 0 : index
    %c0_651 = arith.constant 0 : index
    %886 = vector.load %arg37[%c3_649, %c0_650, %c0_651] : memref<4x32x8xf32, #tpu.memory_space<vmem>>, vector<1x32x8xf32>
    %887 = vector.shape_cast %886 : vector<1x32x8xf32> to vector<32x8xf32>
    %cst_652 = arith.constant dense<0.000000e+00> : vector<8x8xf32>
    %888 = tpu.matmul %864, %887, %cst_652 {dimension_numbers = #tpu.dot_dimension_numbers<[1], [0], [0], [1], [0, 0, 1, 1], [], []>} : vector<8x32xf32>, vector<32x8xf32>, vector<8x8xf32> -> vector<8x8xf32>
    %c3_653 = arith.constant 3 : index
    %c0_654 = arith.constant 0 : index
    %c0_655 = arith.constant 0 : index
    %889 = vector.load %arg33[%c3_653, %c0_654, %c0_655] : memref<4x1x8xf32, #tpu.memory_space<vmem>>, vector<1x1x8xf32>
    %890 = vector.shape_cast %889 : vector<1x1x8xf32> to vector<1x8xf32>
    %891 = vector.broadcast %890 : vector<1x8xf32> to vector<8x8xf32>
    %892 = arith.addf %888, %891 : vector<8x8xf32>
    %c0_656 = arith.constant 0 : index
    %c0_657 = arith.constant 0 : index
    %c0_658 = arith.constant 0 : index
    %893 = vector.load %arg36[%c0_656, %c0_657, %c0_658] : memref<4x32x8xf32, #tpu.memory_space<vmem>>, vector<1x32x8xf32>
    %894 = vector.shape_cast %893 : vector<1x32x8xf32> to vector<32x8xf32>
    %cst_659 = arith.constant dense<0.000000e+00> : vector<8x8xf32>
    %895 = tpu.matmul %386, %894, %cst_659 {dimension_numbers = #tpu.dot_dimension_numbers<[1], [0], [0], [1], [0, 0, 1, 1], [], []>} : vector<8x32xf32>, vector<32x8xf32>, vector<8x8xf32> -> vector<8x8xf32>
    %c0_660 = arith.constant 0 : index
    %c0_661 = arith.constant 0 : index
    %c0_662 = arith.constant 0 : index
    %896 = vector.load %arg32[%c0_660, %c0_661, %c0_662] : memref<4x1x8xf32, #tpu.memory_space<vmem>>, vector<1x1x8xf32>
    %897 = vector.shape_cast %896 : vector<1x1x8xf32> to vector<1x8xf32>
    %898 = vector.broadcast %897 : vector<1x8xf32> to vector<8x8xf32>
    %899 = arith.addf %895, %898 : vector<8x8xf32>
    %c1_663 = arith.constant 1 : index
    %c0_664 = arith.constant 0 : index
    %c0_665 = arith.constant 0 : index
    %900 = vector.load %arg36[%c1_663, %c0_664, %c0_665] : memref<4x32x8xf32, #tpu.memory_space<vmem>>, vector<1x32x8xf32>
    %901 = vector.shape_cast %900 : vector<1x32x8xf32> to vector<32x8xf32>
    %cst_666 = arith.constant dense<0.000000e+00> : vector<8x8xf32>
    %902 = tpu.matmul %386, %901, %cst_666 {dimension_numbers = #tpu.dot_dimension_numbers<[1], [0], [0], [1], [0, 0, 1, 1], [], []>} : vector<8x32xf32>, vector<32x8xf32>, vector<8x8xf32> -> vector<8x8xf32>
    %c1_667 = arith.constant 1 : index
    %c0_668 = arith.constant 0 : index
    %c0_669 = arith.constant 0 : index
    %903 = vector.load %arg32[%c1_667, %c0_668, %c0_669] : memref<4x1x8xf32, #tpu.memory_space<vmem>>, vector<1x1x8xf32>
    %904 = vector.shape_cast %903 : vector<1x1x8xf32> to vector<1x8xf32>
    %905 = vector.broadcast %904 : vector<1x8xf32> to vector<8x8xf32>
    %906 = arith.addf %902, %905 : vector<8x8xf32>
    %c2_670 = arith.constant 2 : index
    %c0_671 = arith.constant 0 : index
    %c0_672 = arith.constant 0 : index
    %907 = vector.load %arg36[%c2_670, %c0_671, %c0_672] : memref<4x32x8xf32, #tpu.memory_space<vmem>>, vector<1x32x8xf32>
    %908 = vector.shape_cast %907 : vector<1x32x8xf32> to vector<32x8xf32>
    %cst_673 = arith.constant dense<0.000000e+00> : vector<8x8xf32>
    %909 = tpu.matmul %386, %908, %cst_673 {dimension_numbers = #tpu.dot_dimension_numbers<[1], [0], [0], [1], [0, 0, 1, 1], [], []>} : vector<8x32xf32>, vector<32x8xf32>, vector<8x8xf32> -> vector<8x8xf32>
    %c2_674 = arith.constant 2 : index
    %c0_675 = arith.constant 0 : index
    %c0_676 = arith.constant 0 : index
    %910 = vector.load %arg32[%c2_674, %c0_675, %c0_676] : memref<4x1x8xf32, #tpu.memory_space<vmem>>, vector<1x1x8xf32>
    %911 = vector.shape_cast %910 : vector<1x1x8xf32> to vector<1x8xf32>
    %912 = vector.broadcast %911 : vector<1x8xf32> to vector<8x8xf32>
    %913 = arith.addf %909, %912 : vector<8x8xf32>
    %c3_677 = arith.constant 3 : index
    %c0_678 = arith.constant 0 : index
    %c0_679 = arith.constant 0 : index
    %914 = vector.load %arg36[%c3_677, %c0_678, %c0_679] : memref<4x32x8xf32, #tpu.memory_space<vmem>>, vector<1x32x8xf32>
    %915 = vector.shape_cast %914 : vector<1x32x8xf32> to vector<32x8xf32>
    %cst_680 = arith.constant dense<0.000000e+00> : vector<8x8xf32>
    %916 = tpu.matmul %386, %915, %cst_680 {dimension_numbers = #tpu.dot_dimension_numbers<[1], [0], [0], [1], [0, 0, 1, 1], [], []>} : vector<8x32xf32>, vector<32x8xf32>, vector<8x8xf32> -> vector<8x8xf32>
    %c3_681 = arith.constant 3 : index
    %c0_682 = arith.constant 0 : index
    %c0_683 = arith.constant 0 : index
    %917 = vector.load %arg32[%c3_681, %c0_682, %c0_683] : memref<4x1x8xf32, #tpu.memory_space<vmem>>, vector<1x1x8xf32>
    %918 = vector.shape_cast %917 : vector<1x1x8xf32> to vector<1x8xf32>
    %919 = vector.broadcast %918 : vector<1x8xf32> to vector<8x8xf32>
    %920 = arith.addf %916, %919 : vector<8x8xf32>
    %c0_684 = arith.constant 0 : index
    %c0_685 = arith.constant 0 : index
    %c0_686 = arith.constant 0 : index
    %921 = vector.load %arg38[%c0_684, %c0_685, %c0_686] : memref<4x32x8xf32, #tpu.memory_space<vmem>>, vector<1x32x8xf32>
    %922 = vector.shape_cast %921 : vector<1x32x8xf32> to vector<32x8xf32>
    %cst_687 = arith.constant dense<0.000000e+00> : vector<8x8xf32>
    %923 = tpu.matmul %386, %922, %cst_687 {dimension_numbers = #tpu.dot_dimension_numbers<[1], [0], [0], [1], [0, 0, 1, 1], [], []>} : vector<8x32xf32>, vector<32x8xf32>, vector<8x8xf32> -> vector<8x8xf32>
    %c0_688 = arith.constant 0 : index
    %c0_689 = arith.constant 0 : index
    %c0_690 = arith.constant 0 : index
    %924 = vector.load %arg34[%c0_688, %c0_689, %c0_690] : memref<4x1x8xf32, #tpu.memory_space<vmem>>, vector<1x1x8xf32>
    %925 = vector.shape_cast %924 : vector<1x1x8xf32> to vector<1x8xf32>
    %926 = vector.broadcast %925 : vector<1x8xf32> to vector<8x8xf32>
    %927 = arith.addf %923, %926 : vector<8x8xf32>
    %c1_691 = arith.constant 1 : index
    %c0_692 = arith.constant 0 : index
    %c0_693 = arith.constant 0 : index
    %928 = vector.load %arg38[%c1_691, %c0_692, %c0_693] : memref<4x32x8xf32, #tpu.memory_space<vmem>>, vector<1x32x8xf32>
    %929 = vector.shape_cast %928 : vector<1x32x8xf32> to vector<32x8xf32>
    %cst_694 = arith.constant dense<0.000000e+00> : vector<8x8xf32>
    %930 = tpu.matmul %386, %929, %cst_694 {dimension_numbers = #tpu.dot_dimension_numbers<[1], [0], [0], [1], [0, 0, 1, 1], [], []>} : vector<8x32xf32>, vector<32x8xf32>, vector<8x8xf32> -> vector<8x8xf32>
    %c1_695 = arith.constant 1 : index
    %c0_696 = arith.constant 0 : index
    %c0_697 = arith.constant 0 : index
    %931 = vector.load %arg34[%c1_695, %c0_696, %c0_697] : memref<4x1x8xf32, #tpu.memory_space<vmem>>, vector<1x1x8xf32>
    %932 = vector.shape_cast %931 : vector<1x1x8xf32> to vector<1x8xf32>
    %933 = vector.broadcast %932 : vector<1x8xf32> to vector<8x8xf32>
    %934 = arith.addf %930, %933 : vector<8x8xf32>
    %c2_698 = arith.constant 2 : index
    %c0_699 = arith.constant 0 : index
    %c0_700 = arith.constant 0 : index
    %935 = vector.load %arg38[%c2_698, %c0_699, %c0_700] : memref<4x32x8xf32, #tpu.memory_space<vmem>>, vector<1x32x8xf32>
    %936 = vector.shape_cast %935 : vector<1x32x8xf32> to vector<32x8xf32>
    %cst_701 = arith.constant dense<0.000000e+00> : vector<8x8xf32>
    %937 = tpu.matmul %386, %936, %cst_701 {dimension_numbers = #tpu.dot_dimension_numbers<[1], [0], [0], [1], [0, 0, 1, 1], [], []>} : vector<8x32xf32>, vector<32x8xf32>, vector<8x8xf32> -> vector<8x8xf32>
    %c2_702 = arith.constant 2 : index
    %c0_703 = arith.constant 0 : index
    %c0_704 = arith.constant 0 : index
    %938 = vector.load %arg34[%c2_702, %c0_703, %c0_704] : memref<4x1x8xf32, #tpu.memory_space<vmem>>, vector<1x1x8xf32>
    %939 = vector.shape_cast %938 : vector<1x1x8xf32> to vector<1x8xf32>
    %940 = vector.broadcast %939 : vector<1x8xf32> to vector<8x8xf32>
    %941 = arith.addf %937, %940 : vector<8x8xf32>
    %c3_705 = arith.constant 3 : index
    %c0_706 = arith.constant 0 : index
    %c0_707 = arith.constant 0 : index
    %942 = vector.load %arg38[%c3_705, %c0_706, %c0_707] : memref<4x32x8xf32, #tpu.memory_space<vmem>>, vector<1x32x8xf32>
    %943 = vector.shape_cast %942 : vector<1x32x8xf32> to vector<32x8xf32>
    %cst_708 = arith.constant dense<0.000000e+00> : vector<8x8xf32>
    %944 = tpu.matmul %386, %943, %cst_708 {dimension_numbers = #tpu.dot_dimension_numbers<[1], [0], [0], [1], [0, 0, 1, 1], [], []>} : vector<8x32xf32>, vector<32x8xf32>, vector<8x8xf32> -> vector<8x8xf32>
    %c3_709 = arith.constant 3 : index
    %c0_710 = arith.constant 0 : index
    %c0_711 = arith.constant 0 : index
    %945 = vector.load %arg34[%c3_709, %c0_710, %c0_711] : memref<4x1x8xf32, #tpu.memory_space<vmem>>, vector<1x1x8xf32>
    %946 = vector.shape_cast %945 : vector<1x1x8xf32> to vector<1x8xf32>
    %947 = vector.broadcast %946 : vector<1x8xf32> to vector<8x8xf32>
    %948 = arith.addf %944, %947 : vector<8x8xf32>
    %cst_712 = arith.constant dense<0.000000e+00> : vector<8x8xf32>
    %949 = tpu.matmul %899, %871, %cst_712 {dimension_numbers = #tpu.dot_dimension_numbers<[1], [1], [0], [0], [0, 0, 1, 0], [], []>} : vector<8x8xf32>, vector<8x8xf32>, vector<8x8xf32> -> vector<8x8xf32>
    %cst_713 = arith.constant 0.353553385 : f32
    %950 = vector.broadcast %cst_713 : f32 to vector<8x8xf32>
    %951 = arith.mulf %949, %950 : vector<8x8xf32>
    %cst_714 = arith.constant dense<0.000000e+00> : vector<8x8xf32>
    %952 = tpu.matmul %906, %878, %cst_714 {dimension_numbers = #tpu.dot_dimension_numbers<[1], [1], [0], [0], [0, 0, 1, 0], [], []>} : vector<8x8xf32>, vector<8x8xf32>, vector<8x8xf32> -> vector<8x8xf32>
    %cst_715 = arith.constant 0.353553385 : f32
    %953 = vector.broadcast %cst_715 : f32 to vector<8x8xf32>
    %954 = arith.mulf %952, %953 : vector<8x8xf32>
    %cst_716 = arith.constant dense<0.000000e+00> : vector<8x8xf32>
    %955 = tpu.matmul %913, %885, %cst_716 {dimension_numbers = #tpu.dot_dimension_numbers<[1], [1], [0], [0], [0, 0, 1, 0], [], []>} : vector<8x8xf32>, vector<8x8xf32>, vector<8x8xf32> -> vector<8x8xf32>
    %cst_717 = arith.constant 0.353553385 : f32
    %956 = vector.broadcast %cst_717 : f32 to vector<8x8xf32>
    %957 = arith.mulf %955, %956 : vector<8x8xf32>
    %cst_718 = arith.constant dense<0.000000e+00> : vector<8x8xf32>
    %958 = tpu.matmul %920, %892, %cst_718 {dimension_numbers = #tpu.dot_dimension_numbers<[1], [1], [0], [0], [0, 0, 1, 0], [], []>} : vector<8x8xf32>, vector<8x8xf32>, vector<8x8xf32> -> vector<8x8xf32>
    %cst_719 = arith.constant 0.353553385 : f32
    %959 = vector.broadcast %cst_719 : f32 to vector<8x8xf32>
    %960 = arith.mulf %958, %959 : vector<8x8xf32>
    %961 = tpu.concatenate %951, %954, %957, %960 in 0 : vector<8x8xf32>, vector<8x8xf32>, vector<8x8xf32>, vector<8x8xf32> -> vector<32x8xf32>
    %cst_720 = arith.constant dense<0xFF800000> : vector<32xf32>
    %962 = vector.multi_reduction <maximumf>, %961, %cst_720 [1] : vector<32x8xf32> to vector<32xf32>
    %963 = vector.shape_cast %962 : vector<32xf32> to vector<32x1xf32>
    %964 = vector.broadcast %963 : vector<32x1xf32> to vector<32x8xf32>
    %965 = arith.subf %961, %964 : vector<32x8xf32>
    %966 = math.exp %965 : vector<32x8xf32>
    %cst_721 = arith.constant dense<0.000000e+00> : vector<32xf32>
    %967 = vector.multi_reduction <add>, %966, %cst_721 [1] : vector<32x8xf32> to vector<32xf32>
    %968 = vector.shape_cast %967 : vector<32xf32> to vector<32x1xf32>
    %969 = tpu.reciprocal %968 : vector<32x1xf32> -> vector<32x1xf32>
    %970 = vector.broadcast %969 : vector<32x1xf32> to vector<32x8xf32>
    %971 = arith.mulf %966, %970 : vector<32x8xf32>
    %972 = vector.extract_strided_slice %971 {offsets = [0, 0], sizes = [8, 8], strides = [1, 1]} : vector<32x8xf32> to vector<8x8xf32>
    %cst_722 = arith.constant dense<0.000000e+00> : vector<8x8xf32>
    %973 = tpu.matmul %972, %927, %cst_722 {dimension_numbers = #tpu.dot_dimension_numbers<[1], [0], [0], [1], [0, 0, 1, 1], [], []>} : vector<8x8xf32>, vector<8x8xf32>, vector<8x8xf32> -> vector<8x8xf32>
    %974 = vector.extract_strided_slice %971 {offsets = [8, 0], sizes = [8, 8], strides = [1, 1]} : vector<32x8xf32> to vector<8x8xf32>
    %cst_723 = arith.constant dense<0.000000e+00> : vector<8x8xf32>
    %975 = tpu.matmul %974, %934, %cst_723 {dimension_numbers = #tpu.dot_dimension_numbers<[1], [0], [0], [1], [0, 0, 1, 1], [], []>} : vector<8x8xf32>, vector<8x8xf32>, vector<8x8xf32> -> vector<8x8xf32>
    %976 = vector.extract_strided_slice %971 {offsets = [16, 0], sizes = [8, 8], strides = [1, 1]} : vector<32x8xf32> to vector<8x8xf32>
    %cst_724 = arith.constant dense<0.000000e+00> : vector<8x8xf32>
    %977 = tpu.matmul %976, %941, %cst_724 {dimension_numbers = #tpu.dot_dimension_numbers<[1], [0], [0], [1], [0, 0, 1, 1], [], []>} : vector<8x8xf32>, vector<8x8xf32>, vector<8x8xf32> -> vector<8x8xf32>
    %978 = vector.extract_strided_slice %971 {offsets = [24, 0], sizes = [8, 8], strides = [1, 1]} : vector<32x8xf32> to vector<8x8xf32>
    %cst_725 = arith.constant dense<0.000000e+00> : vector<8x8xf32>
    %979 = tpu.matmul %978, %948, %cst_725 {dimension_numbers = #tpu.dot_dimension_numbers<[1], [0], [0], [1], [0, 0, 1, 1], [], []>} : vector<8x8xf32>, vector<8x8xf32>, vector<8x8xf32> -> vector<8x8xf32>
    %980 = tpu.concatenate %973, %975, %977, %979 in 1 : vector<8x8xf32>, vector<8x8xf32>, vector<8x8xf32>, vector<8x8xf32> -> vector<8x32xf32>
    %c0_726 = arith.constant 0 : index
    %c0_727 = arith.constant 0 : index
    %981 = vector.load %arg35[%c0_726, %c0_727] : memref<32x32xf32, #tpu.memory_space<vmem>>, vector<32x32xf32>
    %cst_728 = arith.constant dense<0.000000e+00> : vector<8x32xf32>
    %982 = tpu.matmul %980, %981, %cst_728 {dimension_numbers = #tpu.dot_dimension_numbers<[1], [0], [0], [1], [0, 0, 1, 1], [], []>} : vector<8x32xf32>, vector<32x32xf32>, vector<8x32xf32> -> vector<8x32xf32>
    %c0_729 = arith.constant 0 : index
    %c0_730 = arith.constant 0 : index
    %983 = vector.load %arg31[%c0_729, %c0_730] : memref<1x32xf32, #tpu.memory_space<vmem>>, vector<1x32xf32>
    %984 = vector.broadcast %983 : vector<1x32xf32> to vector<8x32xf32>
    %985 = arith.addf %982, %984 : vector<8x32xf32>
    %cst_731 = arith.constant dense<0.000000e+00> : vector<8xf32>
    %986 = vector.multi_reduction <add>, %985, %cst_731 [1] : vector<8x32xf32> to vector<8xf32>
    %987 = vector.shape_cast %986 : vector<8xf32> to vector<8x1xf32>
    %cst_732 = arith.constant 3.200000e+01 : f32
    %988 = vector.broadcast %cst_732 : f32 to vector<8x1xf32>
    %989 = arith.divf %987, %988 : vector<8x1xf32>
    %990 = vector.broadcast %989 : vector<8x1xf32> to vector<8x32xf32>
    %991 = arith.subf %985, %990 : vector<8x32xf32>
    %992 = arith.mulf %991, %991 : vector<8x32xf32>
    %cst_733 = arith.constant dense<0.000000e+00> : vector<8xf32>
    %993 = vector.multi_reduction <add>, %992, %cst_733 [1] : vector<8x32xf32> to vector<8xf32>
    %994 = vector.shape_cast %993 : vector<8xf32> to vector<8x1xf32>
    %cst_734 = arith.constant 3.200000e+01 : f32
    %995 = vector.broadcast %cst_734 : f32 to vector<8x1xf32>
    %996 = arith.divf %994, %995 : vector<8x1xf32>
    %997 = vector.broadcast %989 : vector<8x1xf32> to vector<8x32xf32>
    %998 = arith.subf %985, %997 : vector<8x32xf32>
    %cst_735 = arith.constant 9.99999974E-6 : f32
    %999 = vector.broadcast %cst_735 : f32 to vector<8x1xf32>
    %1000 = arith.addf %996, %999 : vector<8x1xf32>
    %1001 = math.rsqrt %1000 : vector<8x1xf32>
    %1002 = vector.broadcast %1001 : vector<8x1xf32> to vector<8x32xf32>
    %1003 = arith.mulf %998, %1002 : vector<8x32xf32>
    %c0_736 = arith.constant 0 : index
    %c0_737 = arith.constant 0 : index
    %1004 = vector.load %arg28[%c0_736, %c0_737] : memref<1x32xf32, #tpu.memory_space<vmem>>, vector<1x32xf32>
    %1005 = vector.broadcast %1004 : vector<1x32xf32> to vector<8x32xf32>
    %1006 = arith.mulf %1003, %1005 : vector<8x32xf32>
    %c0_738 = arith.constant 0 : index
    %c0_739 = arith.constant 0 : index
    %1007 = vector.load %arg27[%c0_738, %c0_739] : memref<1x32xf32, #tpu.memory_space<vmem>>, vector<1x32xf32>
    %1008 = vector.broadcast %1007 : vector<1x32xf32> to vector<8x32xf32>
    %1009 = arith.addf %1006, %1008 : vector<8x32xf32>
    %1010 = arith.addf %864, %1009 : vector<8x32xf32>
    %c0_740 = arith.constant 0 : index
    %c0_741 = arith.constant 0 : index
    %1011 = vector.load %arg22[%c0_740, %c0_741] : memref<32x64xf32, #tpu.memory_space<vmem>>, vector<32x64xf32>
    %cst_742 = arith.constant dense<0.000000e+00> : vector<8x64xf32>
    %1012 = tpu.matmul %1010, %1011, %cst_742 {dimension_numbers = #tpu.dot_dimension_numbers<[1], [0], [0], [1], [0, 0, 1, 1], [], []>} : vector<8x32xf32>, vector<32x64xf32>, vector<8x64xf32> -> vector<8x64xf32>
    %c0_743 = arith.constant 0 : index
    %c0_744 = arith.constant 0 : index
    %1013 = vector.load %arg21[%c0_743, %c0_744] : memref<1x64xf32, #tpu.memory_space<vmem>>, vector<1x64xf32>
    %1014 = vector.broadcast %1013 : vector<1x64xf32> to vector<8x64xf32>
    %1015 = arith.addf %1012, %1014 : vector<8x64xf32>
    %cst_745 = arith.constant 0.000000e+00 : f32
    %1016 = vector.broadcast %cst_745 : f32 to vector<8x64xf32>
    %1017 = arith.cmpf oge, %1015, %1016 : vector<8x64xf32>
    %cst_746 = arith.constant 1.000000e-01 : f32
    %1018 = vector.broadcast %cst_746 : f32 to vector<8x64xf32>
    %1019 = arith.mulf %1018, %1015 : vector<8x64xf32>
    %1020 = arith.select %1017, %1015, %1019 : vector<8x64xi1>, vector<8x64xf32>
    %c0_747 = arith.constant 0 : index
    %c0_748 = arith.constant 0 : index
    %1021 = vector.load %arg24[%c0_747, %c0_748] : memref<64x32xf32, #tpu.memory_space<vmem>>, vector<64x32xf32>
    %cst_749 = arith.constant dense<0.000000e+00> : vector<8x32xf32>
    %1022 = tpu.matmul %1020, %1021, %cst_749 {dimension_numbers = #tpu.dot_dimension_numbers<[1], [0], [0], [1], [0, 0, 1, 1], [], []>} : vector<8x64xf32>, vector<64x32xf32>, vector<8x32xf32> -> vector<8x32xf32>
    %c0_750 = arith.constant 0 : index
    %c0_751 = arith.constant 0 : index
    %1023 = vector.load %arg23[%c0_750, %c0_751] : memref<1x32xf32, #tpu.memory_space<vmem>>, vector<1x32xf32>
    %1024 = vector.broadcast %1023 : vector<1x32xf32> to vector<8x32xf32>
    %1025 = arith.addf %1022, %1024 : vector<8x32xf32>
    %cst_752 = arith.constant dense<0.000000e+00> : vector<8xf32>
    %1026 = vector.multi_reduction <add>, %1025, %cst_752 [1] : vector<8x32xf32> to vector<8xf32>
    %1027 = vector.shape_cast %1026 : vector<8xf32> to vector<8x1xf32>
    %cst_753 = arith.constant 3.200000e+01 : f32
    %1028 = vector.broadcast %cst_753 : f32 to vector<8x1xf32>
    %1029 = arith.divf %1027, %1028 : vector<8x1xf32>
    %1030 = vector.broadcast %1029 : vector<8x1xf32> to vector<8x32xf32>
    %1031 = arith.subf %1025, %1030 : vector<8x32xf32>
    %1032 = arith.mulf %1031, %1031 : vector<8x32xf32>
    %cst_754 = arith.constant dense<0.000000e+00> : vector<8xf32>
    %1033 = vector.multi_reduction <add>, %1032, %cst_754 [1] : vector<8x32xf32> to vector<8xf32>
    %1034 = vector.shape_cast %1033 : vector<8xf32> to vector<8x1xf32>
    %cst_755 = arith.constant 3.200000e+01 : f32
    %1035 = vector.broadcast %cst_755 : f32 to vector<8x1xf32>
    %1036 = arith.divf %1034, %1035 : vector<8x1xf32>
    %1037 = vector.broadcast %1029 : vector<8x1xf32> to vector<8x32xf32>
    %1038 = arith.subf %1025, %1037 : vector<8x32xf32>
    %cst_756 = arith.constant 9.99999974E-6 : f32
    %1039 = vector.broadcast %cst_756 : f32 to vector<8x1xf32>
    %1040 = arith.addf %1036, %1039 : vector<8x1xf32>
    %1041 = math.rsqrt %1040 : vector<8x1xf32>
    %1042 = vector.broadcast %1041 : vector<8x1xf32> to vector<8x32xf32>
    %1043 = arith.mulf %1038, %1042 : vector<8x32xf32>
    %c0_757 = arith.constant 0 : index
    %c0_758 = arith.constant 0 : index
    %1044 = vector.load %arg30[%c0_757, %c0_758] : memref<1x32xf32, #tpu.memory_space<vmem>>, vector<1x32xf32>
    %1045 = vector.broadcast %1044 : vector<1x32xf32> to vector<8x32xf32>
    %1046 = arith.mulf %1043, %1045 : vector<8x32xf32>
    %c0_759 = arith.constant 0 : index
    %c0_760 = arith.constant 0 : index
    %1047 = vector.load %arg29[%c0_759, %c0_760] : memref<1x32xf32, #tpu.memory_space<vmem>>, vector<1x32xf32>
    %1048 = vector.broadcast %1047 : vector<1x32xf32> to vector<8x32xf32>
    %1049 = arith.addf %1046, %1048 : vector<8x32xf32>
    %1050 = arith.addf %1025, %1049 : vector<8x32xf32>
    %c0_761 = arith.constant 0 : index
    %c0_762 = arith.constant 0 : index
    %1051 = vector.load %arg73[%c0_761, %c0_762] : memref<32x128xf32, #tpu.memory_space<vmem>>, vector<32x128xf32>
    %cst_763 = arith.constant dense<0.000000e+00> : vector<8x128xf32>
    %1052 = tpu.matmul %1050, %1051, %cst_763 {dimension_numbers = #tpu.dot_dimension_numbers<[1], [0], [0], [1], [0, 0, 1, 1], [], []>} : vector<8x32xf32>, vector<32x128xf32>, vector<8x128xf32> -> vector<8x128xf32>
    %c0_764 = arith.constant 0 : index
    %c0_765 = arith.constant 0 : index
    %1053 = vector.load %arg72[%c0_764, %c0_765] : memref<1x128xf32, #tpu.memory_space<vmem>>, vector<1x128xf32>
    %1054 = vector.broadcast %1053 : vector<1x128xf32> to vector<8x128xf32>
    %1055 = arith.addf %1052, %1054 : vector<8x128xf32>
    %c0_766 = arith.constant 0 : index
    %c0_767 = arith.constant 0 : index
    %1056 = vector.load %arg74[%c0_766, %c0_767] : memref<8x128xf32, #tpu.memory_space<vmem>>, vector<8x128xf32>
    tpu.vector_store %arg74[%c0_766, %c0_767], %1055 {strides = array<i32>} : memref<8x128xf32, #tpu.memory_space<vmem>>, vector<8x128xf32>,
    return
  }
  func.func @transform_0(%arg0: i32) -> (i32, i32, i32) {
    %c0_i32 = arith.constant 0 : i32
    %c0_i32_0 = arith.constant 0 : i32
    %c0_i32_1 = arith.constant 0 : i32
    return %arg0, %c0_i32, %c0_i32_0 : i32, i32, i32
  }
  func.func @transform_1(%arg0: i32) -> (i32, i32) {
    %c0_i32 = arith.constant 0 : i32
    %c0_i32_0 = arith.constant 0 : i32
    %c0_i32_1 = arith.constant 0 : i32
    return %c0_i32, %c0_i32_0 : i32, i32
  }
  func.func @transform_2(%arg0: i32) -> (i32, i32) {
    %c0_i32 = arith.constant 0 : i32
    %c0_i32_0 = arith.constant 0 : i32
    %c0_i32_1 = arith.constant 0 : i32
    return %c0_i32, %c0_i32_0 : i32, i32
  }
  func.func @transform_3(%arg0: i32) -> (i32, i32) {
    %c0_i32 = arith.constant 0 : i32
    %c0_i32_0 = arith.constant 0 : i32
    %c0_i32_1 = arith.constant 0 : i32
    return %c0_i32, %c0_i32_0 : i32, i32
  }
  func.func @transform_4(%arg0: i32) -> (i32, i32) {
    %c0_i32 = arith.constant 0 : i32
    %c0_i32_0 = arith.constant 0 : i32
    %c0_i32_1 = arith.constant 0 : i32
    return %c0_i32, %c0_i32_0 : i32, i32
  }
  func.func @transform_5(%arg0: i32) -> (i32, i32) {
    %c0_i32 = arith.constant 0 : i32
    %c0_i32_0 = arith.constant 0 : i32
    %c0_i32_1 = arith.constant 0 : i32
    return %c0_i32, %c0_i32_0 : i32, i32
  }
  func.func @transform_6(%arg0: i32) -> (i32, i32) {
    %c0_i32 = arith.constant 0 : i32
    %c0_i32_0 = arith.constant 0 : i32
    %c0_i32_1 = arith.constant 0 : i32
    return %c0_i32, %c0_i32_0 : i32, i32
  }
  func.func @transform_7(%arg0: i32) -> (i32, i32) {
    %c0_i32 = arith.constant 0 : i32
    %c0_i32_0 = arith.constant 0 : i32
    %c0_i32_1 = arith.constant 0 : i32
    return %c0_i32, %c0_i32_0 : i32, i32
  }
  func.func @transform_8(%arg0: i32) -> (i32, i32) {
    %c0_i32 = arith.constant 0 : i32
    %c0_i32_0 = arith.constant 0 : i32
    %c0_i32_1 = arith.constant 0 : i32
    return %c0_i32, %c0_i32_0 : i32, i32
  }
  func.func @transform_9(%arg0: i32) -> (i32, i32) {
    %c0_i32 = arith.constant 0 : i32
    %c0_i32_0 = arith.constant 0 : i32
    %c0_i32_1 = arith.constant 0 : i32
    return %c0_i32, %c0_i32_0 : i32, i32
  }
  func.func @transform_10(%arg0: i32) -> (i32, i32) {
    %c0_i32 = arith.constant 0 : i32
    %c0_i32_0 = arith.constant 0 : i32
    %c0_i32_1 = arith.constant 0 : i32
    return %c0_i32, %c0_i32_0 : i32, i32
  }
  func.func @transform_11(%arg0: i32) -> (i32, i32) {
    %c0_i32 = arith.constant 0 : i32
    %c0_i32_0 = arith.constant 0 : i32
    %c0_i32_1 = arith.constant 0 : i32
    return %c0_i32, %c0_i32_0 : i32, i32
  }
  func.func @transform_12(%arg0: i32) -> (i32, i32) {
    %c0_i32 = arith.constant 0 : i32
    %c0_i32_0 = arith.constant 0 : i32
    %c0_i32_1 = arith.constant 0 : i32
    return %c0_i32, %c0_i32_0 : i32, i32
  }
  func.func @transform_13(%arg0: i32) -> (i32, i32, i32) {
    %c0_i32 = arith.constant 0 : i32
    %c0_i32_0 = arith.constant 0 : i32
    %c0_i32_1 = arith.constant 0 : i32
    %c0_i32_2 = arith.constant 0 : i32
    return %c0_i32, %c0_i32_0, %c0_i32_1 : i32, i32, i32
  }
  func.func @transform_14(%arg0: i32) -> (i32, i32, i32) {
    %c0_i32 = arith.constant 0 : i32
    %c0_i32_0 = arith.constant 0 : i32
    %c0_i32_1 = arith.constant 0 : i32
    %c0_i32_2 = arith.constant 0 : i32
    return %c0_i32, %c0_i32_0, %c0_i32_1 : i32, i32, i32
  }
  func.func @transform_15(%arg0: i32) -> (i32, i32, i32) {
    %c0_i32 = arith.constant 0 : i32
    %c0_i32_0 = arith.constant 0 : i32
    %c0_i32_1 = arith.constant 0 : i32
    %c0_i32_2 = arith.constant 0 : i32
    return %c0_i32, %c0_i32_0, %c0_i32_1 : i32, i32, i32
  }
  func.func @transform_16(%arg0: i32) -> (i32, i32) {
    %c0_i32 = arith.constant 0 : i32
    %c0_i32_0 = arith.constant 0 : i32
    %c0_i32_1 = arith.constant 0 : i32
    return %c0_i32, %c0_i32_0 : i32, i32
  }
  func.func @transform_17(%arg0: i32) -> (i32, i32, i32) {
    %c0_i32 = arith.constant 0 : i32
    %c0_i32_0 = arith.constant 0 : i32
    %c0_i32_1 = arith.constant 0 : i32
    %c0_i32_2 = arith.constant 0 : i32
    return %c0_i32, %c0_i32_0, %c0_i32_1 : i32, i32, i32
  }
  func.func @transform_18(%arg0: i32) -> (i32, i32, i32) {
    %c0_i32 = arith.constant 0 : i32
    %c0_i32_0 = arith.constant 0 : i32
    %c0_i32_1 = arith.constant 0 : i32
    %c0_i32_2 = arith.constant 0 : i32
    return %c0_i32, %c0_i32_0, %c0_i32_1 : i32, i32, i32
  }
  func.func @transform_19(%arg0: i32) -> (i32, i32, i32) {
    %c0_i32 = arith.constant 0 : i32
    %c0_i32_0 = arith.constant 0 : i32
    %c0_i32_1 = arith.constant 0 : i32
    %c0_i32_2 = arith.constant 0 : i32
    return %c0_i32, %c0_i32_0, %c0_i32_1 : i32, i32, i32
  }
  func.func @transform_20(%arg0: i32) -> (i32, i32) {
    %c0_i32 = arith.constant 0 : i32
    %c0_i32_0 = arith.constant 0 : i32
    %c0_i32_1 = arith.constant 0 : i32
    return %c0_i32, %c0_i32_0 : i32, i32
  }
  func.func @transform_21(%arg0: i32) -> (i32, i32) {
    %c0_i32 = arith.constant 0 : i32
    %c0_i32_0 = arith.constant 0 : i32
    %c0_i32_1 = arith.constant 0 : i32
    return %c0_i32, %c0_i32_0 : i32, i32
  }
  func.func @transform_22(%arg0: i32) -> (i32, i32) {
    %c0_i32 = arith.constant 0 : i32
    %c0_i32_0 = arith.constant 0 : i32
    %c0_i32_1 = arith.constant 0 : i32
    return %c0_i32, %c0_i32_0 : i32, i32
  }
  func.func @transform_23(%arg0: i32) -> (i32, i32) {
    %c0_i32 = arith.constant 0 : i32
    %c0_i32_0 = arith.constant 0 : i32
    %c0_i32_1 = arith.constant 0 : i32
    return %c0_i32, %c0_i32_0 : i32, i32
  }
  func.func @transform_24(%arg0: i32) -> (i32, i32) {
    %c0_i32 = arith.constant 0 : i32
    %c0_i32_0 = arith.constant 0 : i32
    %c0_i32_1 = arith.constant 0 : i32
    return %c0_i32, %c0_i32_0 : i32, i32
  }
  func.func @transform_25(%arg0: i32) -> (i32, i32) {
    %c0_i32 = arith.constant 0 : i32
    %c0_i32_0 = arith.constant 0 : i32
    %c0_i32_1 = arith.constant 0 : i32
    return %c0_i32, %c0_i32_0 : i32, i32
  }
  func.func @transform_26(%arg0: i32) -> (i32, i32) {
    %c0_i32 = arith.constant 0 : i32
    %c0_i32_0 = arith.constant 0 : i32
    %c0_i32_1 = arith.constant 0 : i32
    return %c0_i32, %c0_i32_0 : i32, i32
  }
  func.func @transform_27(%arg0: i32) -> (i32, i32) {
    %c0_i32 = arith.constant 0 : i32
    %c0_i32_0 = arith.constant 0 : i32
    %c0_i32_1 = arith.constant 0 : i32
    return %c0_i32, %c0_i32_0 : i32, i32
  }
  func.func @transform_28(%arg0: i32) -> (i32, i32) {
    %c0_i32 = arith.constant 0 : i32
    %c0_i32_0 = arith.constant 0 : i32
    %c0_i32_1 = arith.constant 0 : i32
    return %c0_i32, %c0_i32_0 : i32, i32
  }
  func.func @transform_29(%arg0: i32) -> (i32, i32) {
    %c0_i32 = arith.constant 0 : i32
    %c0_i32_0 = arith.constant 0 : i32
    %c0_i32_1 = arith.constant 0 : i32
    return %c0_i32, %c0_i32_0 : i32, i32
  }
  func.func @transform_30(%arg0: i32) -> (i32, i32) {
    %c0_i32 = arith.constant 0 : i32
    %c0_i32_0 = arith.constant 0 : i32
    %c0_i32_1 = arith.constant 0 : i32
    return %c0_i32, %c0_i32_0 : i32, i32
  }
  func.func @transform_31(%arg0: i32) -> (i32, i32, i32) {
    %c0_i32 = arith.constant 0 : i32
    %c0_i32_0 = arith.constant 0 : i32
    %c0_i32_1 = arith.constant 0 : i32
    %c0_i32_2 = arith.constant 0 : i32
    return %c0_i32, %c0_i32_0, %c0_i32_1 : i32, i32, i32
  }
  func.func @transform_32(%arg0: i32) -> (i32, i32, i32) {
    %c0_i32 = arith.constant 0 : i32
    %c0_i32_0 = arith.constant 0 : i32
    %c0_i32_1 = arith.constant 0 : i32
    %c0_i32_2 = arith.constant 0 : i32
    return %c0_i32, %c0_i32_0, %c0_i32_1 : i32, i32, i32
  }
  func.func @transform_33(%arg0: i32) -> (i32, i32, i32) {
    %c0_i32 = arith.constant 0 : i32
    %c0_i32_0 = arith.constant 0 : i32
    %c0_i32_1 = arith.constant 0 : i32
    %c0_i32_2 = arith.constant 0 : i32
    return %c0_i32, %c0_i32_0, %c0_i32_1 : i32, i32, i32
  }
  func.func @transform_34(%arg0: i32) -> (i32, i32) {
    %c0_i32 = arith.constant 0 : i32
    %c0_i32_0 = arith.constant 0 : i32
    %c0_i32_1 = arith.constant 0 : i32
    return %c0_i32, %c0_i32_0 : i32, i32
  }
  func.func @transform_35(%arg0: i32) -> (i32, i32, i32) {
    %c0_i32 = arith.constant 0 : i32
    %c0_i32_0 = arith.constant 0 : i32
    %c0_i32_1 = arith.constant 0 : i32
    %c0_i32_2 = arith.constant 0 : i32
    return %c0_i32, %c0_i32_0, %c0_i32_1 : i32, i32, i32
  }
  func.func @transform_36(%arg0: i32) -> (i32, i32, i32) {
    %c0_i32 = arith.constant 0 : i32
    %c0_i32_0 = arith.constant 0 : i32
    %c0_i32_1 = arith.constant 0 : i32
    %c0_i32_2 = arith.constant 0 : i32
    return %c0_i32, %c0_i32_0, %c0_i32_1 : i32, i32, i32
  }
  func.func @transform_37(%arg0: i32) -> (i32, i32, i32) {
    %c0_i32 = arith.constant 0 : i32
    %c0_i32_0 = arith.constant 0 : i32
    %c0_i32_1 = arith.constant 0 : i32
    %c0_i32_2 = arith.constant 0 : i32
    return %c0_i32, %c0_i32_0, %c0_i32_1 : i32, i32, i32
  }
  func.func @transform_38(%arg0: i32) -> (i32, i32) {
    %c0_i32 = arith.constant 0 : i32
    %c0_i32_0 = arith.constant 0 : i32
    %c0_i32_1 = arith.constant 0 : i32
    return %c0_i32, %c0_i32_0 : i32, i32
  }
  func.func @transform_39(%arg0: i32) -> (i32, i32) {
    %c0_i32 = arith.constant 0 : i32
    %c0_i32_0 = arith.constant 0 : i32
    %c0_i32_1 = arith.constant 0 : i32
    return %c0_i32, %c0_i32_0 : i32, i32
  }
  func.func @transform_40(%arg0: i32) -> (i32, i32) {
    %c0_i32 = arith.constant 0 : i32
    %c0_i32_0 = arith.constant 0 : i32
    %c0_i32_1 = arith.constant 0 : i32
    return %c0_i32, %c0_i32_0 : i32, i32
  }
  func.func @transform_41(%arg0: i32) -> (i32, i32) {
    %c0_i32 = arith.constant 0 : i32
    %c0_i32_0 = arith.constant 0 : i32
    %c0_i32_1 = arith.constant 0 : i32
    return %c0_i32, %c0_i32_0 : i32, i32
  }
  func.func @transform_42(%arg0: i32) -> (i32, i32) {
    %c0_i32 = arith.constant 0 : i32
    %c0_i32_0 = arith.constant 0 : i32
    %c0_i32_1 = arith.constant 0 : i32
    return %c0_i32, %c0_i32_0 : i32, i32
  }
  func.func @transform_43(%arg0: i32) -> (i32, i32) {
    %c0_i32 = arith.constant 0 : i32
    %c0_i32_0 = arith.constant 0 : i32
    %c0_i32_1 = arith.constant 0 : i32
    return %c0_i32, %c0_i32_0 : i32, i32
  }
  func.func @transform_44(%arg0: i32) -> (i32, i32) {
    %c0_i32 = arith.constant 0 : i32
    %c0_i32_0 = arith.constant 0 : i32
    %c0_i32_1 = arith.constant 0 : i32
    return %c0_i32, %c0_i32_0 : i32, i32
  }
  func.func @transform_45(%arg0: i32) -> (i32, i32) {
    %c0_i32 = arith.constant 0 : i32
    %c0_i32_0 = arith.constant 0 : i32
    %c0_i32_1 = arith.constant 0 : i32
    return %c0_i32, %c0_i32_0 : i32, i32
  }
  func.func @transform_46(%arg0: i32) -> (i32, i32) {
    %c0_i32 = arith.constant 0 : i32
    %c0_i32_0 = arith.constant 0 : i32
    %c0_i32_1 = arith.constant 0 : i32
    return %c0_i32, %c0_i32_0 : i32, i32
  }
  func.func @transform_47(%arg0: i32) -> (i32, i32) {
    %c0_i32 = arith.constant 0 : i32
    %c0_i32_0 = arith.constant 0 : i32
    %c0_i32_1 = arith.constant 0 : i32
    return %c0_i32, %c0_i32_0 : i32, i32
  }
  func.func @transform_48(%arg0: i32) -> (i32, i32, i32) {
    %c0_i32 = arith.constant 0 : i32
    %c0_i32_0 = arith.constant 0 : i32
    %c0_i32_1 = arith.constant 0 : i32
    %c0_i32_2 = arith.constant 0 : i32
    return %c0_i32, %c0_i32_0, %c0_i32_1 : i32, i32, i32
  }
  func.func @transform_49(%arg0: i32) -> (i32, i32, i32) {
    %c0_i32 = arith.constant 0 : i32
    %c0_i32_0 = arith.constant 0 : i32
    %c0_i32_1 = arith.constant 0 : i32
    %c0_i32_2 = arith.constant 0 : i32
    return %c0_i32, %c0_i32_0, %c0_i32_1 : i32, i32, i32
  }
  func.func @transform_50(%arg0: i32) -> (i32, i32, i32) {
    %c0_i32 = arith.constant 0 : i32
    %c0_i32_0 = arith.constant 0 : i32
    %c0_i32_1 = arith.constant 0 : i32
    %c0_i32_2 = arith.constant 0 : i32
    return %c0_i32, %c0_i32_0, %c0_i32_1 : i32, i32, i32
  }
  func.func @transform_51(%arg0: i32) -> (i32, i32) {
    %c0_i32 = arith.constant 0 : i32
    %c0_i32_0 = arith.constant 0 : i32
    %c0_i32_1 = arith.constant 0 : i32
    return %c0_i32, %c0_i32_0 : i32, i32
  }
  func.func @transform_52(%arg0: i32) -> (i32, i32, i32) {
    %c0_i32 = arith.constant 0 : i32
    %c0_i32_0 = arith.constant 0 : i32
    %c0_i32_1 = arith.constant 0 : i32
    %c0_i32_2 = arith.constant 0 : i32
    return %c0_i32, %c0_i32_0, %c0_i32_1 : i32, i32, i32
  }
  func.func @transform_53(%arg0: i32) -> (i32, i32, i32) {
    %c0_i32 = arith.constant 0 : i32
    %c0_i32_0 = arith.constant 0 : i32
    %c0_i32_1 = arith.constant 0 : i32
    %c0_i32_2 = arith.constant 0 : i32
    return %c0_i32, %c0_i32_0, %c0_i32_1 : i32, i32, i32
  }
  func.func @transform_54(%arg0: i32) -> (i32, i32, i32) {
    %c0_i32 = arith.constant 0 : i32
    %c0_i32_0 = arith.constant 0 : i32
    %c0_i32_1 = arith.constant 0 : i32
    %c0_i32_2 = arith.constant 0 : i32
    return %c0_i32, %c0_i32_0, %c0_i32_1 : i32, i32, i32
  }
  func.func @transform_55(%arg0: i32) -> (i32, i32) {
    %c0_i32 = arith.constant 0 : i32
    %c0_i32_0 = arith.constant 0 : i32
    %c0_i32_1 = arith.constant 0 : i32
    return %c0_i32, %c0_i32_0 : i32, i32
  }
  func.func @transform_56(%arg0: i32) -> (i32, i32) {
    %c0_i32 = arith.constant 0 : i32
    %c0_i32_0 = arith.constant 0 : i32
    %c0_i32_1 = arith.constant 0 : i32
    return %c0_i32, %c0_i32_0 : i32, i32
  }
  func.func @transform_57(%arg0: i32) -> (i32, i32) {
    %c0_i32 = arith.constant 0 : i32
    %c0_i32_0 = arith.constant 0 : i32
    %c0_i32_1 = arith.constant 0 : i32
    return %c0_i32, %c0_i32_0 : i32, i32
  }
  func.func @transform_58(%arg0: i32) -> (i32, i32) {
    %c0_i32 = arith.constant 0 : i32
    %c0_i32_0 = arith.constant 0 : i32
    %c0_i32_1 = arith.constant 0 : i32
    return %c0_i32, %c0_i32_0 : i32, i32
  }
  func.func @transform_59(%arg0: i32) -> (i32, i32) {
    %c0_i32 = arith.constant 0 : i32
    %c0_i32_0 = arith.constant 0 : i32
    %c0_i32_1 = arith.constant 0 : i32
    return %c0_i32, %c0_i32_0 : i32, i32
  }
  func.func @transform_60(%arg0: i32) -> (i32, i32) {
    %c0_i32 = arith.constant 0 : i32
    %c0_i32_0 = arith.constant 0 : i32
    %c0_i32_1 = arith.constant 0 : i32
    return %c0_i32, %c0_i32_0 : i32, i32
  }
  func.func @transform_61(%arg0: i32) -> (i32, i32) {
    %c0_i32 = arith.constant 0 : i32
    %c0_i32_0 = arith.constant 0 : i32
    %c0_i32_1 = arith.constant 0 : i32
    return %c0_i32, %c0_i32_0 : i32, i32
  }
  func.func @transform_62(%arg0: i32) -> (i32, i32) {
    %c0_i32 = arith.constant 0 : i32
    %c0_i32_0 = arith.constant 0 : i32
    %c0_i32_1 = arith.constant 0 : i32
    return %c0_i32, %c0_i32_0 : i32, i32
  }
  func.func @transform_63(%arg0: i32) -> (i32, i32) {
    %c0_i32 = arith.constant 0 : i32
    %c0_i32_0 = arith.constant 0 : i32
    %c0_i32_1 = arith.constant 0 : i32
    return %c0_i32, %c0_i32_0 : i32, i32
  }
  func.func @transform_64(%arg0: i32) -> (i32, i32, i32) {
    %c0_i32 = arith.constant 0 : i32
    %c0_i32_0 = arith.constant 0 : i32
    %c0_i32_1 = arith.constant 0 : i32
    %c0_i32_2 = arith.constant 0 : i32
    return %c0_i32, %c0_i32_0, %c0_i32_1 : i32, i32, i32
  }
  func.func @transform_65(%arg0: i32) -> (i32, i32, i32) {
    %c0_i32 = arith.constant 0 : i32
    %c0_i32_0 = arith.constant 0 : i32
    %c0_i32_1 = arith.constant 0 : i32
    %c0_i32_2 = arith.constant 0 : i32
    return %c0_i32, %c0_i32_0, %c0_i32_1 : i32, i32, i32
  }
  func.func @transform_66(%arg0: i32) -> (i32, i32, i32) {
    %c0_i32 = arith.constant 0 : i32
    %c0_i32_0 = arith.constant 0 : i32
    %c0_i32_1 = arith.constant 0 : i32
    %c0_i32_2 = arith.constant 0 : i32
    return %c0_i32, %c0_i32_0, %c0_i32_1 : i32, i32, i32
  }
  func.func @transform_67(%arg0: i32) -> (i32, i32) {
    %c0_i32 = arith.constant 0 : i32
    %c0_i32_0 = arith.constant 0 : i32
    %c0_i32_1 = arith.constant 0 : i32
    return %c0_i32, %c0_i32_0 : i32, i32
  }
  func.func @transform_68(%arg0: i32) -> (i32, i32, i32) {
    %c0_i32 = arith.constant 0 : i32
    %c0_i32_0 = arith.constant 0 : i32
    %c0_i32_1 = arith.constant 0 : i32
    %c0_i32_2 = arith.constant 0 : i32
    return %c0_i32, %c0_i32_0, %c0_i32_1 : i32, i32, i32
  }
  func.func @transform_69(%arg0: i32) -> (i32, i32, i32) {
    %c0_i32 = arith.constant 0 : i32
    %c0_i32_0 = arith.constant 0 : i32
    %c0_i32_1 = arith.constant 0 : i32
    %c0_i32_2 = arith.constant 0 : i32
    return %c0_i32, %c0_i32_0, %c0_i32_1 : i32, i32, i32
  }
  func.func @transform_70(%arg0: i32) -> (i32, i32, i32) {
    %c0_i32 = arith.constant 0 : i32
    %c0_i32_0 = arith.constant 0 : i32
    %c0_i32_1 = arith.constant 0 : i32
    %c0_i32_2 = arith.constant 0 : i32
    return %c0_i32, %c0_i32_0, %c0_i32_1 : i32, i32, i32
  }
  func.func @transform_71(%arg0: i32) -> (i32, i32) {
    %c0_i32 = arith.constant 0 : i32
    %c0_i32_0 = arith.constant 0 : i32
    %c0_i32_1 = arith.constant 0 : i32
    return %c0_i32, %c0_i32_0 : i32, i32
  }
  func.func @transform_72(%arg0: i32) -> (i32, i32) {
    %c0_i32 = arith.constant 0 : i32
    %c0_i32_0 = arith.constant 0 : i32
    %c0_i32_1 = arith.constant 0 : i32
    return %c0_i32, %c0_i32_0 : i32, i32
  }
  func.func @transform_73(%arg0: i32) -> (i32, i32) {
    %c0_i32 = arith.constant 0 : i32
    %c0_i32_0 = arith.constant 0 : i32
    return %arg0, %c0_i32 : i32, i32
  }
}

</mosaic_0001>

<bundles_post_ra>
// kernel: fused_transformer_forward.1
= control target key start
LH: loop header
LB: loop body
LE: loop exit
PB: predicated region body
PF: predicated region fallthrough
CT: control target
= control target key end

     0   :  { %s17775_s6 = smov 1   ;;  %s17776_s10 = smov 2   ;;  %s20091_s0 = inlined_call_operand.smem [shape: u32[74], index: -1, kind: input, shape index: {}] }
   0x1   :  { %s17882_s5 = sld [smem:[%s20091_s0]]   ;;  %s17777_s14 = smov 3  }
   0x2   :  { %s17887_s9 = sld [smem:[%s20091_s0 + %s17775_s6]]   ;;  %s17778_s18 = smov 4  }
   0x3   :  { %s17892_s13 = sld [smem:[%s20091_s0 + %s17776_s10]]   ;;  %s17779_s22 = smov 5  }
   0x4   :  { %s17897_s17 = sld [smem:[%s20091_s0 + %s17777_s14]]   ;;  %s17780_s26 = smov 6  }
   0x5   :  { %s17902_s21 = sld [smem:[%s20091_s0 + %s17778_s18]]   ;;  %s17781_s30 = smov 7  }
   0x6   :  { %s17907_s25 = sld [smem:[%s20091_s0 + %s17779_s22]]   ;;  %s17782_s4 = smov 8  }
   0x7   :  { %20171 = sst [smem:[#allocation40_spill]] %s17882_s5  ;;  %s17783_s10 = smov 9  }
   0x8   :  { %20172 = sst [smem:[#allocation41_spill]] %s17887_s9  ;;  %s17784_s15 = smov 10  }
   0x9   :  { %20173 = sst [smem:[#allocation42_spill]] %s17892_s13  ;;  %s17785_s20 = smov 11  }
   0xa   :  { %20174 = sst [smem:[#allocation43_spill]] %s17897_s17  ;;  %s17787_s1 = smov 13  }
   0xb   :  { %20175 = sst [smem:[#allocation44_spill]] %s17902_s21  ;;  %s17788_s7 = smov 14  }
   0xc   :  { %20176 = sst [smem:[#allocation45_spill]] %s17907_s25  ;;  %s17790_s22 = smov 16  }
   0xd   :  { %s17912_s29 = sld [smem:[%s20091_s0 + %s17780_s26]]   ;;  %s17786_s26 = smov 12  }
   0xe   :  { %s17917_s3 = sld [smem:[%s20091_s0 + %s17781_s30]]   ;;  %s17791_s28 = smov 17  }
   0xf   :  { %s17922_s8 = sld [smem:[%s20091_s0 + %s17782_s4]]  }
  0x10   :  { %s17927_s14 = sld [smem:[%s20091_s0 + %s17783_s10]]  }
  0x11   :  { %s17932_s19 = sld [smem:[%s20091_s0 + %s17784_s15]]   ;;  %s17789_s15 = smov 15  }
  0x12   :  { %s17937_s24 = sld [smem:[%s20091_s0 + %s17785_s20]]  }
  0x13   :  { %20177 = sst [smem:[#allocation46_spill]] %s17912_s29 }
  0x14   :  { %20178 = sst [smem:[#allocation47_spill]] %s17917_s3 }
  0x15   :  { %20179 = sst [smem:[#allocation48_spill]] %s17922_s8 }
  0x16   :  { %20180 = sst [smem:[#allocation49_spill]] %s17927_s14 }
  0x17   :  { %20181 = sst [smem:[#allocation50_spill]] %s17932_s19 }
  0x18   :  { %20182 = sst [smem:[#allocation51_spill]] %s17937_s24 }
  0x19   :  { %s17942_s30 = sld [smem:[%s20091_s0 + %s17786_s26]]  }
  0x1a   :  { %s17947_s6 = sld [smem:[%s20091_s0 + %s17787_s1]]  }
  0x1b   :  { %s17952_s12 = sld [smem:[%s20091_s0 + %s17788_s7]]   ;;  %s17792_s7 = smov 18  }
  0x1c   :  { %s17957_s20 = sld [smem:[%s20091_s0 + %s17789_s15]]   ;;  %s17793_s15 = smov 19  }
  0x1d   :  { %s17962_s27 = sld [smem:[%s20091_s0 + %s17790_s22]]   ;;  %s17794_s22 = smov 20  }
  0x1e   :  { %s17967_s4 = sld [smem:[%s20091_s0 + %s17791_s28]]   ;;  %s17795_s28 = smov 21  }
  0x1f   :  { %20183 = sst [smem:[#allocation52_spill]] %s17942_s30 }
  0x20   :  { %20184 = sst [smem:[#allocation53_spill]] %s17947_s6 }
  0x21   :  { %20185 = sst [smem:[#allocation54_spill]] %s17952_s12 }
  0x22   :  { %20186 = sst [smem:[#allocation55_spill]] %s17957_s20 }
  0x23   :  { %20187 = sst [smem:[#allocation56_spill]] %s17962_s27 }
  0x24   :  { %20188 = sst [smem:[#allocation57_spill]] %s17967_s4 }
  0x25   :  { %s17972_s19 = sld [smem:[%s20091_s0 + %s17792_s7]]   ;;  %s17796_s7 = smov 22  }
  0x26   :  { %s17977_s24 = sld [smem:[%s20091_s0 + %s17793_s15]]   ;;  %s17797_s15 = smov 23  }
  0x27   :  { %s17982_s21 = sld [smem:[%s20091_s0 + %s17794_s22]]   ;;  %s17798_s22 = smov 24  }
  0x28   :  { %s17987_s13 = sld [smem:[%s20091_s0 + %s17795_s28]]   ;;  %s17799_s28 = smov 25  }
  0x29   :  { %s17992_s8 = sld [smem:[%s20091_s0 + %s17796_s7]]   ;;  %s17800_s7 = smov 26  }
  0x2a   :  { %s17997_s14 = sld [smem:[%s20091_s0 + %s17797_s15]]   ;;  %s17801_s15 = smov 27  }
  0x2b   :  { %20189 = sst [smem:[#allocation58_spill]] %s17972_s19 }
  0x2c   :  { %20190 = sst [smem:[#allocation59_spill]] %s17977_s24 }
  0x2d   :  { %20191 = sst [smem:[#allocation60_spill]] %s17982_s21 }
  0x2e   :  { %20192 = sst [smem:[#allocation61_spill]] %s17987_s13 }
  0x2f   :  { %20193 = sst [smem:[#allocation62_spill]] %s17992_s8 }
  0x30   :  { %20194 = sst [smem:[#allocation63_spill]] %s17997_s14 }
  0x31   :  { %s18002_s21 = sld [smem:[%s20091_s0 + %s17798_s22]]   ;;  %s17802_s22 = smov 28  }
  0x32   :  { %s18007_s13 = sld [smem:[%s20091_s0 + %s17799_s28]]   ;;  %s17803_s28 = smov 29  }
  0x33   :  { %s18012_s8 = sld [smem:[%s20091_s0 + %s17800_s7]]   ;;  %s17804_s7 = smov 30  }
  0x34   :  { %s18017_s14 = sld [smem:[%s20091_s0 + %s17801_s15]]   ;;  %s17805_s15 = smov 31  }
  0x37   :  { %20195 = sst [smem:[#allocation64_spill]] %s18002_s21 }
  0x38   :  { %20196 = sst [smem:[#allocation65_spill]] %s18007_s13 }
  0x39   :  { %20197 = sst [smem:[#allocation66_spill]] %s18012_s8 }
  0x3a   :  { %20198 = sst [smem:[#allocation67_spill]] %s18017_s14 }
  0x3b   :  { %s18022_s21 = sld [smem:[%s20091_s0 + %s17802_s22]]   ;;  %s17806_s22 = smov 32  }
  0x3c   :  { %s18027_s13 = sld [smem:[%s20091_s0 + %s17803_s28]]   ;;  %s17807_s28 = smov 33  }
  0x3d   :  { %s18032_s8 = sld [smem:[%s20091_s0 + %s17804_s7]]   ;;  %s17808_s7 = smov 34  }
  0x3e   :  { %s18037_s14 = sld [smem:[%s20091_s0 + %s17805_s15]]   ;;  %s17809_s15 = smov 35  }
  0x3f   :  { %s18042_s25 = sld [smem:[%s20091_s0 + %s17806_s22]]   ;;  %s17810_s22 = smov 36  }
  0x40   :  { %s18047_s17 = sld [smem:[%s20091_s0 + %s17807_s28]]   ;;  %s17811_s28 = smov 37  }
  0x41   :  { %s18052_s29 = sld [smem:[%s20091_s0 + %s17808_s7]]   ;;  %s17812_s7 = smov 38  }
  0x43   :  { %20199 = sst [smem:[#allocation68_spill]] %s18032_s8 }
  0x44   :  { %20200 = sst [smem:[#allocation69_spill]] %s18037_s14 }
  0x45   :  { %20201 = sst [smem:[#allocation70_spill]] %s18042_s25 }
  0x46   :  { %20202 = sst [smem:[#allocation71_spill]] %s18047_s17 }
  0x47   :  { %20203 = sst [smem:[#allocation72_spill]] %s18052_s29 }
  0x48   :  { %s18057_s14 = sld [smem:[%s20091_s0 + %s17809_s15]]   ;;  %s17813_s15 = smov 39  }
  0x49   :  { %s18062_s25 = sld [smem:[%s20091_s0 + %s17810_s22]]   ;;  %s17814_s22 = smov 40  }
  0x4a   :  { %s18067_s17 = sld [smem:[%s20091_s0 + %s17811_s28]]   ;;  %s17815_s28 = smov 41  }
  0x4b   :  { %s18072_s29 = sld [smem:[%s20091_s0 + %s17812_s7]]   ;;  %s17816_s7 = smov 42  }
  0x4c   :  { %s18092_s3 = sld [smem:[%s20091_s0 + %s17816_s7]]   ;;  %s17820_s7 = smov 46  }
  0x4d   :  { %s18112_s6 = sld [smem:[%s20091_s0 + %s17820_s7]]   ;;  %s17824_s7 = smov 50  }
  0x4e   :  { %20204 = sst [smem:[#allocation73_spill]] %s18057_s14 }
  0x4f   :  { %20205 = sst [smem:[#allocation74_spill]] %s18062_s25 }
  0x50   :  { %20206 = sst [smem:[#allocation75_spill]] %s18067_s17 }
  0x51   :  { %20207 = sst [smem:[#allocation76_spill]] %s18072_s29 }
  0x52   :  { %s18077_s14 = sld [smem:[%s20091_s0 + %s17813_s15]]   ;;  %s17817_s15 = smov 43  }
  0x53   :  { %s18082_s25 = sld [smem:[%s20091_s0 + %s17814_s22]]   ;;  %s17818_s22 = smov 44  }
  0x54   :  { %s18087_s17 = sld [smem:[%s20091_s0 + %s17815_s28]]   ;;  %s17819_s28 = smov 45  }
  0x55   :  { %20209 = sst [smem:[#allocation78_spill]] %s18092_s3 }
  0x56   :  { %s18097_s30 = sld [smem:[%s20091_s0 + %s17817_s15]]   ;;  %s17821_s15 = smov 47  }
  0x57   :  { %s18102_s27 = sld [smem:[%s20091_s0 + %s17818_s22]]   ;;  %s17822_s22 = smov 48  }
  0x58   :  { %s18107_s20 = sld [smem:[%s20091_s0 + %s17819_s28]]   ;;  %s17823_s28 = smov 49  }
  0x59   :  { %20208 = sst [smem:[#allocation77_spill]] %s18082_s25 }
  0x5a   :  { %20210 = sst [smem:[#allocation79_spill]] %s18112_s6 }
  0x5b   :  { %s18117_s12 = sld [smem:[%s20091_s0 + %s17821_s15]]   ;;  %s17825_s15 = smov 51  }
  0x5c   :  { %s18122_s24 = sld [smem:[%s20091_s0 + %s17822_s22]]   ;;  %s17826_s22 = smov 52  }
  0x5d   :  { %s18127_s4 = sld [smem:[%s20091_s0 + %s17823_s28]]   ;;  %s17827_s28 = smov 53  }
  0x5e   :  { %s18132_s19 = sld [smem:[%s20091_s0 + %s17824_s7]]   ;;  %s17828_s7 = smov 54  }
  0x5f   :  { %s18137_s3 = sld [smem:[%s20091_s0 + %s17825_s15]]   ;;  %s17829_s15 = smov 55  }
  0x60   :  { %s18142_s25 = sld [smem:[%s20091_s0 + %s17826_s22]]   ;;  %s17830_s22 = smov 56  }
  0x62   :  { %20211 = sst [smem:[#allocation80_spill]] %s18122_s24 }
  0x63   :  { %20212 = sst [smem:[#allocation81_spill]] %s18127_s4 }
  0x64   :  { %20213 = sst [smem:[#allocation82_spill]] %s18132_s19 }
  0x65   :  { %20214 = sst [smem:[#allocation83_spill]] %s18137_s3 }
  0x66   :  { %20215 = sst [smem:[#allocation84_spill]] %s18142_s25 }
  0x67   :  { %s18147_s24 = sld [smem:[%s20091_s0 + %s17827_s28]]   ;;  %s17831_s28 = smov 57  }
  0x68   :  { %s18152_s19 = sld [smem:[%s20091_s0 + %s17828_s7]]   ;;  %s17832_s7 = smov 58  }
  0x69   :  { %s18157_s3 = sld [smem:[%s20091_s0 + %s17829_s15]]   ;;  %s17833_s15 = smov 59  }
  0x6a   :  { %s18162_s4 = sld [smem:[%s20091_s0 + %s17830_s22]]   ;;  %s17834_s22 = smov 60  }
  0x6b   :  { %s18167_s9 = sld [smem:[%s20091_s0 + %s17831_s28]]   ;;  %s17835_s28 = smov 61  }
  0x6c   :  { %s18177_s25 = sld [smem:[%s20091_s0 + %s17833_s15]]   ;;  %s17837_s15 = smov 63  }
  0x6d   :  { %20216 = sst [smem:[#allocation85_spill]] %s18147_s24 }
  0x6e   :  { %20217 = sst [smem:[#allocation86_spill]] %s18152_s19 }
  0x6f   :  { %20218 = sst [smem:[#allocation87_spill]] %s18157_s3 }
  0x70   :  { %20219 = sst [smem:[#allocation88_spill]] %s18162_s4 }
  0x71   :  { %20220 = sst [smem:[#allocation89_spill]] %s18167_s9 }
  0x72   :  { %s18172_s19 = sld [smem:[%s20091_s0 + %s17832_s7]]   ;;  %s17836_s7 = smov 62  }
  0x73   :  { %20222 = sst [smem:[#allocation91_spill]] %s18177_s25 }
  0x74   :  { %s18182_s4 = sld [smem:[%s20091_s0 + %s17834_s22]]   ;;  %s17838_s22 = smov 64  }
  0x75   :  { %s18187_s24 = sld [smem:[%s20091_s0 + %s17835_s28]]   ;;  %s17839_s28 = smov 65  }
  0x76   :  { %s18197_s29 = sld [smem:[%s20091_s0 + %s17837_s15]]   ;;  %s17841_s15 = smov 67  }
  0x77   :  { %s18202_s5 = sld [smem:[%s20091_s0 + %s17838_s22]]   ;;  %s17842_s22 = smov 68  }
  0x78   :  { %20221 = sst [smem:[#allocation90_spill]] %s18172_s19 }
  0x79   :  { %s18192_s19 = sld [smem:[%s20091_s0 + %s17836_s7]]   ;;  %s17840_s7 = smov 66  }
  0x7a   :  { %20223 = sst [smem:[#allocation92_spill]] %s18182_s4 }
  0x7b   :  { %20224 = sst [smem:[#allocation93_spill]] %s18187_s24 }
  0x7c   :  { %20225 = sst [smem:[#allocation94_spill]] %s18197_s29 }
  0x7d   :  { %20226 = sst [smem:[#allocation95_spill]] %s18202_s5 }
  0x7e   :  { %s18207_s24 = sld [smem:[%s20091_s0 + %s17839_s28]]   ;;  %s17843_s28 = smov 69  }
  0x7f   :  { %s18212_s25 = sld [smem:[%s20091_s0 + %s17840_s7]]   ;;  %s17844_s7 = smov 70  }
  0x80   :  { %s18217_s29 = sld [smem:[%s20091_s0 + %s17841_s15]]   ;;  %s17845_s15 = smov 71  }
  0x81   :  { %s18222_s5 = sld [smem:[%s20091_s0 + %s17842_s22]]   ;;  %s17846_s22 = smov 72  }
  0x84   :  { %20227 = sst [smem:[#allocation96_spill]] %s18207_s24 }
  0x85   :  { %20228 = sst [smem:[#allocation97_spill]] %s18212_s25 }
  0x86   :  { %20229 = sst [smem:[#allocation98_spill]] %s18217_s29 }
  0x87   :  { %20230 = sst [smem:[#allocation99_spill]] %s18222_s5 }
  0x88   :  { %s18227_s24 = sld [smem:[%s20091_s0 + %s17843_s28]]   ;;  %s17847_s28 = smov 73  }
  0x89   :  { %s18232_s25 = sld [smem:[%s20091_s0 + %s17844_s7]]  }
  0x8a   :  { %s18237_s29 = sld [smem:[%s20091_s0 + %s17845_s15]]  }
  0x8b   :  { %s18242_s5 = sld [smem:[%s20091_s0 + %s17846_s22]]  }
  0x8e   :  { %20231 = sst [smem:[#allocation100_spill]] %s18227_s24 }
  0x8f   :  { %s18247_s24 = sld [smem:[%s20091_s0 + %s17847_s28]]  }
  0x90   :  { %152 = vsyncpa [#allocation3], 0 }
  0x91   :  { %153 = vsyncpa [#allocation5], 0 }
  0x92   :  { %154 = vsyncpa [#allocation8], 0 }
  0x93   :  { %155 = vsyncpa [#allocation11], 0 }
  0x94   :  { %156 = vsyncpa [#allocation14], 0 }
  0x95   :  { %157 = vsyncpa [#allocation17], 0 }
  0x96   :  { %158 = vsyncpa [#allocation20], 0 }
  0x97   :  { %159 = vsyncpa [#allocation23], 0 }
  0x98   :  { %160 = vsyncpa [#allocation26], 0 }
  0x99   :  { %161 = vsyncpa [#allocation29], 0  ;;  %s18249_s7 = smov 0  }
  0x9a LB: > { %s20232_s9 = sld [smem:[#allocation89_spill]]  ;;  %s20233_s8 = sld [smem:[#allocation68_spill]]  ;;  %s17773_s7 = sphi %s18249_s7, %s167_s7  }
  0x9b   : > { %s20234_s6 = sld [smem:[#allocation79_spill]]  ;;  %s20236_s4 = sld [smem:[#allocation92_spill]] }
  0x9c   : > { %s20235_s3 = sld [smem:[#allocation87_spill]]  ;;  %s17848_s0 = smov [#allocation4]  }
  0x9d   : > { %s1841_s10 = sshll.u32 %s17848_s0, 4  ;;  %s18255_s11 = sadd.s32 4294967295, %s17773_s7   ;;  %s18260_s10 = int_to_ptr.vmem [resolvable:$true] %s1841_s10 }
  0x9e   : > { %p13961_p0 = scmp.ge.s32.totalorder %s17773_s7, 1  ;;  %p1736_p1 = scmp.lt.s32.totalorder %s17773_s7, 3 }
  0x9f   : > { %p20131_p2 = scmp.eq.s32.totalorder %s18255_s11, 0  ;;  %s17849_s16 = smov [#allocation7]  }
  0xa0   : > { %p18262_p3 = pnand %p13961_p0, %p1736_p1  ;;  %s1887_s18 = sshll.u32 %s17849_s16, 4  ;;  %s18268_s18 = int_to_ptr.vmem [resolvable:$true] %s1887_s18 }
  0xa1   : > { %s17850_s22 = smov [#allocation10]   ;;  %s17851_s28 = smov [#allocation13]  }
  0xa2   : > { %s20237_s15 = scalar_select %p18262_p3, 1, 0 }
  0xa3   : > { %p16908_p4 = pneg %p18262_p3  ;;  %s1915_s23 = sshll.u32 %s17850_s22, 4  ;;  %s18276_s23 = int_to_ptr.vmem [resolvable:$true] %s1915_s23 }
  0xa4   : > { %s1937_s1 = sshll.u32 %s17851_s28, 4  ;;  %s17223_s2 = scalar_lea.hbm %s18027_s13, 16  ;;  %s18278_s1 = int_to_ptr.vmem [resolvable:$true] %s1937_s1 }
  0xa5   : > { %p18272_p5 = pnand %p20131_p2, %p16908_p4  ;;  %p17224_p6 = scmp.ne.s32.totalorder %s18027_s13, %s17223_s2 }
  0xa6   : > { %p17230_p10 = scmp.lt.u32.totalorder %s17223_s2, %s18027_s13 }
  0xa7   : > { %p18284_p7 = pneg %p18272_p5 }
  0xa9   : > { %p17226_p8 = pnand %p18284_p7, %p17224_p6 }
  0xab   : > { %p17227_p9 = pneg %p17226_p8 }
  0xad   : > { %p17232_p11 = pnand %p17230_p10, %p17227_p9 }
  0xaf   : > { %17235 = shalt.err (!%p17232_p11)
}
  0xb0   : > { %s17236_s16 = scalar_lea.vmem %s18260_s10, 16  ;;  %s17243_s22 = scalar_lea.vmem %s18260_s10, 32 }
  0xb1   : > { %p17237_p12 = scmp.ne.s32.totalorder %s18260_s10, %s17236_s16  ;;  %p17244_p1 = scmp.lt.s32.totalorder %s18260_s10, %s18260_s10 }
  0xb2   : > { %p17245_p4 = scmp.lt.s32.totalorder %s17243_s22, %s17236_s16 }
  0xb3   : > { %p17239_p13 = pnand %p17237_p12, %p18284_p7 }
  0xb4   : > { %p17246_p2 = por %p17245_p4, %p17244_p1 }
  0xb5   : > { %p17240_p0 = pneg %p17239_p13 }
  0xb7   : > { %p17247_p6 = pnand %p17246_p2, %p17240_p0 }
  0xb9   : > { %17250 = shalt.err (!%p17247_p6)
}
  0xba   : > { %16914 = dma.hbm_to_vmem [thread:$0]  (!%p18272_p5), %s18027_s13, 16, %s18260_s10, [#allocation5]  }
  0xbb   : > { %s17251_s28 = scalar_lea.hbm %s18077_s14, 16 }
  0xbc   : > { %p17252_p8 = scmp.ne.s32.totalorder %s18077_s14, %s17251_s28  ;;  %p17258_p11 = scmp.lt.u32.totalorder %s17251_s28, %s18077_s14 }
  0xbe   : > { %p17254_p9 = pnand %p17252_p8, %p18284_p7 }
  0xc0   : > { %p17255_p10 = pneg %p17254_p9 }
  0xc2   : > { %p17260_p12 = pnand %p17258_p11, %p17255_p10 }
  0xc4   : > { %17263 = shalt.err (!%p17260_p12)
}
  0xc5   : > { %s17264_s2 = scalar_lea.vmem %s18268_s18, 16  ;;  %s17271_s16 = scalar_lea.vmem %s18268_s18, 32 }
  0xc6   : > { %p17265_p2 = scmp.ne.s32.totalorder %s18268_s18, %s17264_s2  ;;  %p17272_p1 = scmp.lt.s32.totalorder %s18268_s18, %s18268_s18 }
  0xc7   : > { %p17273_p4 = scmp.lt.s32.totalorder %s17271_s16, %s17264_s2 }
  0xc8   : > { %p17267_p13 = pnand %p17265_p2, %p18284_p7 }
  0xc9   : > { %p17274_p6 = por %p17273_p4, %p17272_p1 }
  0xca   : > { %p17268_p0 = pneg %p17267_p13 }
  0xcc   : > { %p17275_p8 = pnand %p17274_p6, %p17268_p0 }
  0xce   : > { %17278 = shalt.err (!%p17275_p8)
}
  0xcf   : > { %16920 = dma.hbm_to_vmem [thread:$0]  (!%p18272_p5), %s18077_s14, 16, %s18268_s18, [#allocation8]  }
  0xd0   : > { %s17279_s10 = scalar_lea.hbm %s18097_s30, 16 }
  0xd1   : > { %p17280_p9 = scmp.ne.s32.totalorder %s18097_s30, %s17279_s10  ;;  %p17286_p12 = scmp.lt.u32.totalorder %s17279_s10, %s18097_s30 }
  0xd3   : > { %p17282_p10 = pnand %p17280_p9, %p18284_p7 }
  0xd5   : > { %p17283_p11 = pneg %p17282_p10 }
  0xd7   : > { %p17288_p2 = pnand %p17286_p12, %p17283_p11 }
  0xd9   : > { %17291 = shalt.err (!%p17288_p2)
}
  0xda   : > { %s17292_s22 = scalar_lea.vmem %s18276_s23, 16  ;;  %s17299_s28 = scalar_lea.vmem %s18276_s23, 32 }
  0xdb   : > { %p17293_p13 = scmp.ne.s32.totalorder %s18276_s23, %s17292_s22  ;;  %p17300_p4 = scmp.lt.s32.totalorder %s18276_s23, %s18276_s23 }
  0xdc   : > { %p17301_p6 = scmp.lt.s32.totalorder %s17299_s28, %s17292_s22 }
  0xdd   : > { %p17295_p0 = pnand %p17293_p13, %p18284_p7 }
  0xde   : > { %p17302_p8 = por %p17301_p6, %p17300_p4 }
  0xdf   : > { %p17296_p1 = pneg %p17295_p0 }
  0xe1   : > { %p17303_p9 = pnand %p17302_p8, %p17296_p1 }
  0xe3   : > { %17306 = shalt.err (!%p17303_p9)
}
  0xe4   : > { %16926 = dma.hbm_to_vmem [thread:$0]  (!%p18272_p5), %s18097_s30, 16, %s18276_s23, [#allocation11]  }
  0xe5   : > { %s17307_s18 = scalar_lea.hbm %s18107_s20, 16 }
  0xe6   : > { %p17308_p10 = scmp.ne.s32.totalorder %s18107_s20, %s17307_s18  ;;  %p17314_p2 = scmp.lt.u32.totalorder %s17307_s18, %s18107_s20 }
  0xe8   : > { %p17310_p11 = pnand %p17308_p10, %p18284_p7 }
  0xea   : > { %p17311_p12 = pneg %p17310_p11 }
  0xec   : > { %p17316_p13 = pnand %p17314_p2, %p17311_p12 }
  0xee   : > { %17319 = shalt.err (!%p17316_p13)
}
  0xef   : > { %s17320_s2 = scalar_lea.vmem %s18278_s1, 16  ;;  %s17327_s16 = scalar_lea.vmem %s18278_s1, 32 }
  0xf0   : > { %p17321_p0 = scmp.ne.s32.totalorder %s18278_s1, %s17320_s2  ;;  %p17328_p6 = scmp.lt.s32.totalorder %s18278_s1, %s18278_s1 }
  0xf1   : > { %p17329_p8 = scmp.lt.s32.totalorder %s17327_s16, %s17320_s2 }
  0xf2   : > { %p17323_p1 = pnand %p17321_p0, %p18284_p7 }
  0xf3   : > { %p17330_p9 = por %p17329_p8, %p17328_p6 }
  0xf4   : > { %p17324_p4 = pneg %p17323_p1 }
  0xf6   : > { %p17331_p10 = pnand %p17330_p9, %p17324_p4 }
  0xf8   : > { %17334 = shalt.err (!%p17331_p10)
}
  0xf9   : > { %16932 = dma.hbm_to_vmem [thread:$0]  (!%p18272_p5), %s18107_s20, 16, %s18278_s1, [#allocation14]  }
  0xfa   : > { %s17852_s23 = smov [#allocation16]   ;;  %s17853_s22 = smov [#allocation19]  }
  0xfb   : > { %s1959_s10 = sshll.u32 %s17852_s23, 4  ;;  %s2005_s28 = sshll.u32 %s17853_s22, 4  ;;  %s1960_s10 = int_to_ptr.vmem [resolvable:$true] %s1959_s10  ;;  %s2006_s28 = int_to_ptr.vmem [resolvable:$true] %s2005_s28 }
  0xfc   : > { %s17335_s18 = scalar_lea.hbm %s18117_s12, 16 }
  0xfd   : > { %p17336_p11 = scmp.ne.s32.totalorder %s18117_s12, %s17335_s18  ;;  %p17342_p13 = scmp.lt.u32.totalorder %s17335_s18, %s18117_s12 }
  0xff   : > { %p17338_p12 = pnand %p17336_p11, %p18284_p7 }
 0x101   : > { %p17339_p2 = pneg %p17338_p12 }
 0x103   : > { %p17344_p0 = pnand %p17342_p13, %p17339_p2 }
 0x105   : > { %17347 = shalt.err (!%p17344_p0)
}
 0x106   : > { %s17348_s2 = scalar_lea.vmem %s1960_s10, 16  ;;  %s17355_s1 = scalar_lea.vmem %s1960_s10, 32 }
 0x107   : > { %p17349_p1 = scmp.ne.s32.totalorder %s1960_s10, %s17348_s2  ;;  %p17356_p8 = scmp.lt.s32.totalorder %s1960_s10, %s1960_s10 }
 0x108   : > { %p17357_p9 = scmp.lt.s32.totalorder %s17355_s1, %s17348_s2 }
 0x109   : > { %p17351_p4 = pnand %p17349_p1, %p18284_p7 }
 0x10a   : > { %p17358_p10 = por %p17357_p9, %p17356_p8 }
 0x10b   : > { %p17352_p6 = pneg %p17351_p4 }
 0x10d   : > { %p17359_p3 = pnand %p17358_p10, %p17352_p6 }
 0x10f   : > { %17362 = shalt.err (!%p17359_p3)
}
 0x110   : > { %16938 = dma.hbm_to_vmem [thread:$0]  (!%p18272_p5), %s18117_s12, 16, %s1960_s10, [#allocation17]  }
 0x111   : > { %s17363_s16 = scalar_lea.hbm %s20232_s9, 16 }
 0x112   : > { %p17364_p11 = scmp.ne.s32.totalorder %s20232_s9, %s17363_s16  ;;  %p17370_p13 = scmp.lt.u32.totalorder %s17363_s16, %s20232_s9 }
 0x114   : > { %p17366_p12 = pnand %p17364_p11, %p18284_p7 }
 0x116   : > { %p17367_p2 = pneg %p17366_p12 }
 0x118   : > { %p17372_p0 = pnand %p17370_p13, %p17367_p2 }
 0x11a   : > { %17375 = shalt.err (!%p17372_p0)
}
 0x11b   : > { %s17376_s23 = scalar_lea.vmem %s2006_s28, 16  ;;  %s17383_s22 = scalar_lea.vmem %s2006_s28, 32 }
 0x11c   : > { %p17377_p3 = scmp.ne.s32.totalorder %s2006_s28, %s17376_s23  ;;  %p17384_p6 = scmp.lt.s32.totalorder %s2006_s28, %s2006_s28 }
 0x11d   : > { %p17385_p8 = scmp.lt.s32.totalorder %s17383_s22, %s17376_s23 }
 0x11e   : > { %p17379_p1 = pnand %p17377_p3, %p18284_p7 }
 0x11f   : > { %p17386_p9 = por %p17385_p8, %p17384_p6 }
 0x120   : > { %p17380_p4 = pneg %p17379_p1 }
 0x122   : > { %p17387_p10 = pnand %p17386_p9, %p17380_p4 }
 0x124   : > { %17390 = shalt.err (!%p17387_p10)
}
 0x125   : > { %16944 = dma.hbm_to_vmem [thread:$0]  (!%p18272_p5), %s20232_s9, 16, %s2006_s28, [#allocation20]  }
 0x126   : > { %s17854_s10 = smov [#allocation22]   ;;  %s17855_s2 = smov [#allocation25]  }
 0x127   : > { %s2030_s18 = sshll.u32 %s17854_s10, 4  ;;  %s2052_s1 = sshll.u32 %s17855_s2, 4  ;;  %s2031_s18 = int_to_ptr.vmem [resolvable:$true] %s2030_s18  ;;  %s2053_s1 = int_to_ptr.vmem [resolvable:$true] %s2052_s1 }
 0x128   : > { %s17391_s16 = scalar_lea.hbm %s20236_s4, 16 }
 0x129   : > { %p17392_p11 = scmp.ne.s32.totalorder %s20236_s4, %s17391_s16  ;;  %p17398_p13 = scmp.lt.u32.totalorder %s17391_s16, %s20236_s4 }
 0x12b   : > { %p17394_p12 = pnand %p17392_p11, %p18284_p7 }
 0x12d   : > { %p17395_p2 = pneg %p17394_p12 }
 0x12f   : > { %p17400_p0 = pnand %p17398_p13, %p17395_p2 }
 0x131   : > { %17403 = shalt.err (!%p17400_p0)
}
 0x132   : > { %s17404_s23 = scalar_lea.vmem %s2031_s18, 16  ;;  %s17411_s28 = scalar_lea.vmem %s2031_s18, 32 }
 0x133   : > { %p17405_p3 = scmp.ne.s32.totalorder %s2031_s18, %s17404_s23  ;;  %p17412_p6 = scmp.lt.s32.totalorder %s2031_s18, %s2031_s18 }
 0x134   : > { %p17413_p8 = scmp.lt.s32.totalorder %s17411_s28, %s17404_s23 }
 0x135   : > { %p17407_p1 = pnand %p17405_p3, %p18284_p7 }
 0x136   : > { %p17414_p9 = por %p17413_p8, %p17412_p6 }
 0x137   : > { %p17408_p4 = pneg %p17407_p1 }
 0x139   : > { %p17415_p10 = pnand %p17414_p9, %p17408_p4 }
 0x13b   : > { %17418 = shalt.err (!%p17415_p10)
}
 0x13c   : > { %16950 = dma.hbm_to_vmem [thread:$0]  (!%p18272_p5), %s20236_s4, 16, %s2031_s18, [#allocation23]  }
 0x13d   : > { %s17419_s22 = scalar_lea.hbm %s18192_s19, 16 }
 0x13e   : > { %p17420_p11 = scmp.ne.s32.totalorder %s18192_s19, %s17419_s22  ;;  %p17426_p13 = scmp.lt.u32.totalorder %s17419_s22, %s18192_s19 }
 0x140   : > { %p17422_p12 = pnand %p17420_p11, %p18284_p7 }
 0x142   : > { %p17423_p2 = pneg %p17422_p12 }
 0x144   : > { %p17428_p0 = pnand %p17426_p13, %p17423_p2 }
 0x146   : > { %17431 = shalt.err (!%p17428_p0)
}
 0x147   : > { %s17432_s10 = scalar_lea.vmem %s2053_s1, 16  ;;  %s17439_s2 = scalar_lea.vmem %s2053_s1, 32 }
 0x148   : > { %p17433_p3 = scmp.ne.s32.totalorder %s2053_s1, %s17432_s10  ;;  %p17440_p6 = scmp.lt.s32.totalorder %s2053_s1, %s2053_s1 }
 0x149   : > { %p17441_p8 = scmp.lt.s32.totalorder %s17439_s2, %s17432_s10 }
 0x14a   : > { %p17435_p1 = pnand %p17433_p3, %p18284_p7 }
 0x14b   : > { %p17442_p9 = por %p17441_p8, %p17440_p6 }
 0x14c   : > { %p17436_p4 = pneg %p17435_p1 }
 0x14e   : > { %p17443_p10 = pnand %p17442_p9, %p17436_p4 }
 0x150   : > { %17446 = shalt.err (!%p17443_p10)
}
 0x151   : > { %16956 = dma.hbm_to_vmem [thread:$0]  (!%p18272_p5), %s18192_s19, 16, %s2053_s1, [#allocation26]  }
 0x152   : > { %s17856_s18 = smov [#allocation2]   ;;  %s17857_s23 = smov [#allocation6]  }
 0x153   : > { %s1830_s16 = sshll.u32 %s17856_s18, 4  ;;  %s1852_s28 = sshll.u32 %s17857_s23, 4  ;;  %s1831_s16 = int_to_ptr.vmem [resolvable:$true] %s1830_s16  ;;  %s1853_s28 = int_to_ptr.vmem [resolvable:$true] %s1852_s28 }
 0x154   : > { %s17447_s22 = scalar_lea.hbm %s18022_s21, 16 }
 0x155   : > { %p17448_p11 = scmp.ne.s32.totalorder %s18022_s21, %s17447_s22  ;;  %p17454_p13 = scmp.lt.u32.totalorder %s17447_s22, %s18022_s21 }
 0x157   : > { %p17450_p12 = pnand %p17448_p11, %p18284_p7 }
 0x159   : > { %p17451_p2 = pneg %p17450_p12 }
 0x15b   : > { %p17456_p0 = pnand %p17454_p13, %p17451_p2 }
 0x15d   : > { %17459 = shalt.err (!%p17456_p0)
}
 0x15e   : > { %s17460_s10 = scalar_lea.vmem %s1831_s16, 16  ;;  %s17467_s1 = scalar_lea.vmem %s1831_s16, 32 }
 0x15f   : > { %p17461_p3 = scmp.ne.s32.totalorder %s1831_s16, %s17460_s10  ;;  %p17468_p6 = scmp.lt.s32.totalorder %s1831_s16, %s1831_s16 }
 0x160   : > { %p17469_p8 = scmp.lt.s32.totalorder %s17467_s1, %s17460_s10 }
 0x161   : > { %p17463_p1 = pnand %p17461_p3, %p18284_p7 }
 0x162   : > { %p17470_p9 = por %p17469_p8, %p17468_p6 }
 0x163   : > { %p17464_p4 = pneg %p17463_p1 }
 0x165   : > { %p17471_p10 = pnand %p17470_p9, %p17464_p4 }
 0x167   : > { %17474 = shalt.err (!%p17471_p10)
}
 0x168   : > { %16911 = dma.hbm_to_vmem [thread:$0]  (!%p18272_p5), %s18022_s21, 16, %s1831_s16, [#allocation3]  }
 0x169   : > { %s17475_s2 = scalar_lea.hbm %s20233_s8, 16 }
 0x16a   : > { %p17476_p11 = scmp.ne.s32.totalorder %s20233_s8, %s17475_s2  ;;  %p17482_p13 = scmp.lt.u32.totalorder %s17475_s2, %s20233_s8 }
 0x16c   : > { %p17478_p12 = pnand %p17476_p11, %p18284_p7 }
 0x16e   : > { %p17479_p2 = pneg %p17478_p12 }
 0x170   : > { %p17484_p0 = pnand %p17482_p13, %p17479_p2 }
 0x172   : > { %17487 = shalt.err (!%p17484_p0)
}
 0x173   : > { %s17488_s18 = scalar_lea.vmem %s1853_s28, 16  ;;  %s17495_s23 = scalar_lea.vmem %s1853_s28, 32 }
 0x174   : > { %p17489_p3 = scmp.ne.s32.totalorder %s1853_s28, %s17488_s18  ;;  %p17496_p6 = scmp.lt.s32.totalorder %s1853_s28, %s1853_s28 }
 0x175   : > { %p17497_p8 = scmp.lt.s32.totalorder %s17495_s23, %s17488_s18 }
 0x176   : > { %p17491_p1 = pnand %p17489_p3, %p18284_p7 }
 0x177   : > { %p17498_p9 = por %p17497_p8, %p17496_p6 }
 0x178   : > { %p17492_p4 = pneg %p17491_p1 }
 0x17a   : > { %p17499_p10 = pnand %p17498_p9, %p17492_p4 }
 0x17c   : > { %17502 = shalt.err (!%p17499_p10)
}
 0x17d   : > { %16917 = dma.hbm_to_vmem [thread:$0]  (!%p18272_p5), %s20233_s8, 16, %s1853_s28, [#allocation5]  }
 0x17e   : > { %s17858_s16 = smov [#allocation9]   ;;  %s17859_s10 = smov [#allocation12]  }
 0x17f   : > { %s1901_s22 = sshll.u32 %s17858_s16, 4  ;;  %s1926_s1 = sshll.u32 %s17859_s10, 4  ;;  %s1902_s22 = int_to_ptr.vmem [resolvable:$true] %s1901_s22  ;;  %s1927_s1 = int_to_ptr.vmem [resolvable:$true] %s1926_s1 }
 0x180   : > { %s17503_s2 = scalar_lea.hbm %s18087_s17, 16 }
 0x181   : > { %p17504_p11 = scmp.ne.s32.totalorder %s18087_s17, %s17503_s2  ;;  %p17510_p13 = scmp.lt.u32.totalorder %s17503_s2, %s18087_s17 }
 0x183   : > { %p17506_p12 = pnand %p17504_p11, %p18284_p7 }
 0x185   : > { %p17507_p2 = pneg %p17506_p12 }
 0x187   : > { %p17512_p0 = pnand %p17510_p13, %p17507_p2 }
 0x189   : > { %17515 = shalt.err (!%p17512_p0)
}
 0x18a   : > { %s17516_s18 = scalar_lea.vmem %s1902_s22, 16  ;;  %s17523_s28 = scalar_lea.vmem %s1902_s22, 32 }
 0x18b   : > { %p17517_p3 = scmp.ne.s32.totalorder %s1902_s22, %s17516_s18  ;;  %p17524_p6 = scmp.lt.s32.totalorder %s1902_s22, %s1902_s22 }
 0x18c   : > { %p17525_p8 = scmp.lt.s32.totalorder %s17523_s28, %s17516_s18 }
 0x18d   : > { %p17519_p1 = pnand %p17517_p3, %p18284_p7 }
 0x18e   : > { %p17526_p9 = por %p17525_p8, %p17524_p6 }
 0x18f   : > { %p17520_p4 = pneg %p17519_p1 }
 0x191   : > { %p17527_p10 = pnand %p17526_p9, %p17520_p4 }
 0x193   : > { %17530 = shalt.err (!%p17527_p10)
}
 0x194   : > { %16923 = dma.hbm_to_vmem [thread:$0]  (!%p18272_p5), %s18087_s17, 16, %s1902_s22, [#allocation8]  }
 0x195   : > { %s17531_s23 = scalar_lea.hbm %s18102_s27, 16 }
 0x196   : > { %p17532_p11 = scmp.ne.s32.totalorder %s18102_s27, %s17531_s23  ;;  %p17538_p13 = scmp.lt.u32.totalorder %s17531_s23, %s18102_s27 }
 0x198   : > { %p17534_p12 = pnand %p17532_p11, %p18284_p7 }
 0x19a   : > { %p17535_p2 = pneg %p17534_p12 }
 0x19c   : > { %p17540_p0 = pnand %p17538_p13, %p17535_p2 }
 0x19e   : > { %17543 = shalt.err (!%p17540_p0)
}
 0x19f   : > { %s17544_s16 = scalar_lea.vmem %s1927_s1, 16  ;;  %s17551_s10 = scalar_lea.vmem %s1927_s1, 32 }
 0x1a0   : > { %p17545_p3 = scmp.ne.s32.totalorder %s1927_s1, %s17544_s16  ;;  %p17552_p6 = scmp.lt.s32.totalorder %s1927_s1, %s1927_s1 }
 0x1a1   : > { %p17553_p8 = scmp.lt.s32.totalorder %s17551_s10, %s17544_s16 }
 0x1a2   : > { %p17547_p1 = pnand %p17545_p3, %p18284_p7 }
 0x1a3   : > { %p17554_p9 = por %p17553_p8, %p17552_p6 }
 0x1a4   : > { %p17548_p4 = pneg %p17547_p1 }
 0x1a6   : > { %p17555_p10 = pnand %p17554_p9, %p17548_p4 }
 0x1a8   : > { %17558 = shalt.err (!%p17555_p10)
}
 0x1a9   : > { %16929 = dma.hbm_to_vmem [thread:$0]  (!%p18272_p5), %s18102_s27, 16, %s1927_s1, [#allocation11]  }
 0x1aa   : > { %s17860_s22 = smov [#allocation15]   ;;  %s17861_s18 = smov [#allocation18]  }
 0x1ab   : > { %s1948_s2 = sshll.u32 %s17860_s22, 4  ;;  %s1991_s28 = sshll.u32 %s17861_s18, 4  ;;  %s1949_s2 = int_to_ptr.vmem [resolvable:$true] %s1948_s2  ;;  %s1992_s28 = int_to_ptr.vmem [resolvable:$true] %s1991_s28 }
 0x1ac   : > { %s17559_s23 = scalar_lea.hbm %s20234_s6, 16 }
 0x1ad   : > { %p17560_p11 = scmp.ne.s32.totalorder %s20234_s6, %s17559_s23  ;;  %p17566_p13 = scmp.lt.u32.totalorder %s17559_s23, %s20234_s6 }
 0x1af   : > { %p17562_p12 = pnand %p17560_p11, %p18284_p7 }
 0x1b1   : > { %p17563_p2 = pneg %p17562_p12 }
 0x1b3   : > { %p17568_p0 = pnand %p17566_p13, %p17563_p2 }
 0x1b5   : > { %17571 = shalt.err (!%p17568_p0)
}
 0x1b6   : > { %s17572_s16 = scalar_lea.vmem %s1949_s2, 16  ;;  %s17579_s1 = scalar_lea.vmem %s1949_s2, 32 }
 0x1b7   : > { %p17573_p3 = scmp.ne.s32.totalorder %s1949_s2, %s17572_s16  ;;  %p17580_p6 = scmp.lt.s32.totalorder %s1949_s2, %s1949_s2 }
 0x1b8   : > { %p17581_p8 = scmp.lt.s32.totalorder %s17579_s1, %s17572_s16 }
 0x1b9   : > { %p17575_p1 = pnand %p17573_p3, %p18284_p7 }
 0x1ba   : > { %p17582_p9 = por %p17581_p8, %p17580_p6 }
 0x1bb   : > { %p17576_p4 = pneg %p17575_p1 }
 0x1bd   : > { %p17583_p10 = pnand %p17582_p9, %p17576_p4 }
 0x1bf   : > { %17586 = shalt.err (!%p17583_p10)
}
 0x1c0   : > { %16935 = dma.hbm_to_vmem [thread:$0]  (!%p18272_p5), %s20234_s6, 16, %s1949_s2, [#allocation14]  }
 0x1c1   : > { %s17587_s10 = scalar_lea.hbm %s20235_s3, 16 }
 0x1c2   : > { %p17588_p11 = scmp.ne.s32.totalorder %s20235_s3, %s17587_s10  ;;  %p17594_p13 = scmp.lt.u32.totalorder %s17587_s10, %s20235_s3 }
 0x1c4   : > { %p17590_p12 = pnand %p17588_p11, %p18284_p7 }
 0x1c6   : > { %p17591_p2 = pneg %p17590_p12 }
 0x1c8   : > { %p17596_p0 = pnand %p17594_p13, %p17591_p2 }
 0x1ca   : > { %17599 = shalt.err (!%p17596_p0)
}
 0x1cb   : > { %s17600_s22 = scalar_lea.vmem %s1992_s28, 16  ;;  %s17607_s18 = scalar_lea.vmem %s1992_s28, 32 }
 0x1cc   : > { %p17601_p3 = scmp.ne.s32.totalorder %s1992_s28, %s17600_s22  ;;  %p17608_p6 = scmp.lt.s32.totalorder %s1992_s28, %s1992_s28 }
 0x1cd   : > { %p17609_p8 = scmp.lt.s32.totalorder %s17607_s18, %s17600_s22 }
 0x1ce   : > { %p17603_p1 = pnand %p17601_p3, %p18284_p7 }
 0x1cf   : > { %p17610_p9 = por %p17609_p8, %p17608_p6 }
 0x1d0   : > { %p17604_p4 = pneg %p17603_p1 }
 0x1d2   : > { %p17611_p10 = pnand %p17610_p9, %p17604_p4 }
 0x1d4   : > { %17614 = shalt.err (!%p17611_p10)
}
 0x1d5   : > { %s20240_s2 = sld [smem:[#allocation91_spill]]  ;;  %s17862_s23 = smov [#allocation21]  }
 0x1d6   : > { %16941 = dma.hbm_to_vmem [thread:$0]  (!%p18272_p5), %s20235_s3, 16, %s1992_s28, [#allocation17]  }
 0x1d7   : > { %s2019_s16 = sshll.u32 %s17862_s23, 4  ;;  %s17863_s1 = smov [#allocation24]   ;;  %s2020_s16 = int_to_ptr.vmem [resolvable:$true] %s2019_s16 }
 0x1d8   : > { %s2041_s10 = sshll.u32 %s17863_s1, 4  ;;  %s2042_s10 = int_to_ptr.vmem [resolvable:$true] %s2041_s10 }
 0x1db   : > { %s17615_s4 = scalar_lea.hbm %s20240_s2, 16 }
 0x1dc   : > { %p17616_p11 = scmp.ne.s32.totalorder %s20240_s2, %s17615_s4  ;;  %p17622_p13 = scmp.lt.u32.totalorder %s17615_s4, %s20240_s2 }
 0x1de   : > { %p17618_p12 = pnand %p17616_p11, %p18284_p7 }
 0x1e0   : > { %p17619_p2 = pneg %p17618_p12 }
 0x1e2   : > { %p17624_p0 = pnand %p17622_p13, %p17619_p2 }
 0x1e4   : > { %17627 = shalt.err (!%p17624_p0)
}
 0x1e5   : > { %s17628_s22 = scalar_lea.vmem %s2020_s16, 16  ;;  %s17635_s28 = scalar_lea.vmem %s2020_s16, 32 }
 0x1e6   : > { %p17629_p3 = scmp.ne.s32.totalorder %s2020_s16, %s17628_s22  ;;  %p17636_p6 = scmp.lt.s32.totalorder %s2020_s16, %s2020_s16 }
 0x1e7   : > { %p17637_p8 = scmp.lt.s32.totalorder %s17635_s28, %s17628_s22 }
 0x1e8   : > { %p17631_p1 = pnand %p17629_p3, %p18284_p7 }
 0x1e9   : > { %p17638_p9 = por %p17637_p8, %p17636_p6 }
 0x1ea   : > { %p17632_p4 = pneg %p17631_p1 }
 0x1ec   : > { %p17639_p10 = pnand %p17638_p9, %p17632_p4 }
 0x1ee   : > { %17642 = shalt.err (!%p17639_p10)
}
 0x1ef   : > { %s20241_s18 = sld [smem:[#allocation93_spill]] }
 0x1f0   : > { %16947 = dma.hbm_to_vmem [thread:$0]  (!%p18272_p5), %s20240_s2, 16, %s2020_s16, [#allocation20]  }
 0x1f5   : > { %s17643_s4 = scalar_lea.hbm %s20241_s18, 16 }
 0x1f6   : > { %p17644_p11 = scmp.ne.s32.totalorder %s20241_s18, %s17643_s4  ;;  %p17650_p13 = scmp.lt.u32.totalorder %s17643_s4, %s20241_s18 }
 0x1f8   : > { %p17646_p12 = pnand %p17644_p11, %p18284_p7 }
 0x1fa   : > { %p17647_p2 = pneg %p17646_p12 }
 0x1fc   : > { %p17652_p0 = pnand %p17650_p13, %p17647_p2 }
 0x1fe   : > { %17655 = shalt.err (!%p17652_p0)
}
 0x1ff   : > { %s17656_s23 = scalar_lea.vmem %s2042_s10, 16  ;;  %s17663_s1 = scalar_lea.vmem %s2042_s10, 32 }
 0x200   : > { %p17657_p3 = scmp.ne.s32.totalorder %s2042_s10, %s17656_s23  ;;  %p17664_p6 = scmp.lt.s32.totalorder %s2042_s10, %s2042_s10 }
 0x201   : > { %p17665_p8 = scmp.lt.s32.totalorder %s17663_s1, %s17656_s23 }
 0x202   : > { %p17659_p1 = pnand %p17657_p3, %p18284_p7 }
 0x203   : > { %p17666_p9 = por %p17665_p8, %p17664_p6 }
 0x204   : > { %p17660_p4 = pneg %p17659_p1 }
 0x206   : > { %p17667_p10 = pnand %p17666_p9, %p17660_p4 }
 0x208   : > { %17670 = shalt.err (!%p17667_p10)
}
 0x209   : > { %s20242_s16 = sld [smem:[#allocation94_spill]]  ;;  %s17864_s22 = smov [#allocation27]  }
 0x20a   : > { %16953 = dma.hbm_to_vmem [thread:$0]  (!%p18272_p5), %s20241_s18, 16, %s2042_s10, [#allocation23]  }
 0x20b   : > { %s2063_s28 = sshll.u32 %s17864_s22, 4  ;;  %s17865_s4 = smov [#allocation28]   ;;  %s2064_s28 = int_to_ptr.vmem [resolvable:$true] %s2063_s28 }
 0x20c   : > { %s2095_s2 = sshll.u32 %s17865_s4, 4  ;;  %s2096_s2 = int_to_ptr.vmem [resolvable:$true] %s2095_s2 }
 0x20f   : > { %s17671_s3 = scalar_lea.hbm %s20242_s16, 16 }
 0x210   : > { %p17672_p11 = scmp.ne.s32.totalorder %s20242_s16, %s17671_s3  ;;  %p17678_p13 = scmp.lt.u32.totalorder %s17671_s3, %s20242_s16 }
 0x212   : > { %p17674_p12 = pnand %p17672_p11, %p18284_p7 }
 0x214   : > { %p17675_p2 = pneg %p17674_p12 }
 0x216   : > { %p17680_p0 = pnand %p17678_p13, %p17675_p2 }
 0x218   : > { %17683 = shalt.err (!%p17680_p0)
}
 0x219   : > { %s17684_s23 = scalar_lea.vmem %s2064_s28, 16  ;;  %s17691_s10 = scalar_lea.vmem %s2064_s28, 32 }
 0x21a   : > { %p17685_p3 = scmp.ne.s32.totalorder %s2064_s28, %s17684_s23  ;;  %p17692_p6 = scmp.lt.s32.totalorder %s2064_s28, %s2064_s28 }
 0x21b   : > { %p17693_p8 = scmp.lt.s32.totalorder %s17691_s10, %s17684_s23 }
 0x21c   : > { %p17687_p1 = pnand %p17685_p3, %p18284_p7 }
 0x21d   : > { %p17694_p9 = por %p17693_p8, %p17692_p6 }
 0x21e   : > { %p17688_p4 = pneg %p17687_p1 }
 0x220   : > { %p17695_p10 = pnand %p17694_p9, %p17688_p4 }
 0x222   : > { %17698 = shalt.err (!%p17695_p10)
}
 0x223   : > { %16959 = dma.hbm_to_vmem [thread:$0]  (!%p18272_p5), %s20242_s16, 16, %s2064_s28, [#allocation26]  }
 0x224   : > { %s17699_s3 = scalar_lea.hbm %s18237_s29, 16 }
 0x225   : > { %p17700_p11 = scmp.ne.s32.totalorder %s18237_s29, %s17699_s3  ;;  %p17706_p13 = scmp.lt.u32.totalorder %s17699_s3, %s18237_s29 }
 0x227   : > { %p17702_p12 = pnand %p17700_p11, %p18284_p7 }
 0x229   : > { %p17703_p2 = pneg %p17702_p12 }
 0x22b   : > { %p17708_p0 = pnand %p17706_p13, %p17703_p2 }
 0x22d   : > { %17711 = shalt.err (!%p17708_p0)
}
 0x22e   : > { %s17712_s1 = scalar_lea.vmem %s2096_s2, 16  ;;  %s17719_s22 = scalar_lea.vmem %s2096_s2, 32 }
 0x22f   : > { %p17713_p3 = scmp.ne.s32.totalorder %s2096_s2, %s17712_s1  ;;  %p17720_p6 = scmp.lt.s32.totalorder %s2096_s2, %s2096_s2 }
 0x230   : > { %p17721_p8 = scmp.lt.s32.totalorder %s17719_s22, %s17712_s1 }
 0x231   : > { %p17715_p1 = pnand %p17713_p3, %p18284_p7 }
 0x232   : > { %p17722_p9 = por %p17721_p8, %p17720_p6 }
 0x233   : > { %p17716_p4 = pneg %p17715_p1 }
 0x235   : > { %p17723_p10 = pnand %p17722_p9, %p17716_p4 }
 0x237   : > { %17726 = shalt.err (!%p17723_p10)
}
 0x238   : > { %16962 = dma.hbm_to_vmem [thread:$0]  (!%p18272_p5), %s18237_s29, 16, %s2096_s2, [#allocation29]  }
 0x239   : > { %p20243_p11 = scmp.ne.s32.totalorder %s20237_s15, 0 }
 0x23a   : > { %p20244_p12 = scmp.eq.s32.totalorder (!%p20243_p11), %s18255_s11, 0 }
 0x23b   : > { %2119 = sbr.rel (%p20243_p11) target bundleno = 13412 (0x3464), region = 312 }
 0x242   : > { %17732 = dma.done.wait (%p20244_p12), [#allocation3], 16   ;;  %p20245_p2 = pmov %p20244_p12 }
 0x244   : > { %17734 = vsyncadd (%p20245_p2), [#allocation3], 4294967280  ;;  %p20246_p7 = pmov %p20245_p2 }
 0x245   : > { %p20247_p13 = pmov %p20245_p2 }
 0x246   : > { %17736 = dma.done.wait (%p20246_p7), [#allocation5], 32  }
 0x247   : > { %17738 = vsyncadd (%p20247_p13), [#allocation5], 4294967264  ;;  %p20248_p0 = pmov %p20245_p2 }
 0x249   : > { %17740 = dma.done.wait (%p20248_p0), [#allocation8], 32   ;;  %p20249_p5 = pmov %p20248_p0 }
 0x24a   : > { %p20250_p3 = pmov %p20248_p0 }
 0x24b   : > { %17742 = vsyncadd (%p20249_p5), [#allocation8], 4294967264 }
 0x24c   : > { %17744 = dma.done.wait (%p20250_p3), [#allocation11], 32   ;;  %p20251_p1 = pmov %p20248_p0 }
 0x24d   : > { %p20252_p4 = pmov %p20248_p0 }
 0x24e   : > { %17746 = vsyncadd (%p20251_p1), [#allocation11], 4294967264 }
 0x24f   : > { %17748 = dma.done.wait (%p20252_p4), [#allocation14], 32   ;;  %p20253_p6 = pmov %p20248_p0 }
 0x250   : > { %p20254_p8 = pmov %p20248_p0 }
 0x251   : > { %17750 = vsyncadd (%p20253_p6), [#allocation14], 4294967264 }
 0x252   : > { %17752 = dma.done.wait (%p20254_p8), [#allocation17], 32   ;;  %p20255_p9 = pmov %p20248_p0 }
 0x253   : > { %p20256_p10 = pmov %p20248_p0 }
 0x254   : > { %17754 = vsyncadd (%p20255_p9), [#allocation17], 4294967264 }
 0x255   : > { %17756 = dma.done.wait (%p20256_p10), [#allocation20], 32   ;;  %p20257_p11 = pmov %p20248_p0 }
 0x256   : > { %p20258_p12 = pmov %p20248_p0 }
 0x257   : > { %17758 = vsyncadd (%p20257_p11), [#allocation20], 4294967264 }
 0x258   : > { %17760 = dma.done.wait (%p20258_p12), [#allocation23], 32   ;;  %p20259_p2 = pmov %p20248_p0 }
 0x259   : > { %p20260_p7 = pmov %p20248_p0 }
 0x25a   : > { %17762 = vsyncadd (%p20259_p2), [#allocation23], 4294967264 }
 0x25b   : > { %17764 = dma.done.wait (%p20260_p7), [#allocation26], 32   ;;  %p20261_p13 = pmov %p20248_p0 }
 0x25d   : > { %17766 = vsyncadd (%p20261_p13), [#allocation26], 4294967264 }
 0x25e   : > { %17768 = dma.done.wait (%p20248_p0), [#allocation29], 16   ;;  %p20262_p5 = pmov %p20248_p0 }
 0x25f   : > { %s20263_s15 = sld [smem:[#allocation40_spill]]  ;;  %s20264_s26 = sld [smem:[#allocation76_spill]]  ;;  %v17866_v0 = vmov 0   ;;  %v17867_v16 = vmov 0.0|0.0   ;;  %v2377_v31 = vlaneseq  ;;  %v17868_v36 = vmov 1.0  }
 0x260   : > { %17770 = vsyncadd (%p20262_p5), [#allocation29], 4294967280  ;;  %p2350_p3 = scmp.lt.s32.totalorder %s18255_s11, 1  ;;  %17106 = vset.pattern.permute.xlu0 %v17866_v0  ;;  %s20265_s28 = sld [smem:[#allocation85_spill]]  ;;  %16290 = vmatprep.subr.bf16.mxu1 %v17867_v16  ;;  %vm17869_vm2 = vmmov 0   ;;  %v17870_v45 = vmov 0.0  }
 0x261   : > { %s20266_s4 = sld [smem:[#allocation84_spill]]  ;;  %v2378_v32 = vand.u32 127, %v2377_v31  ;;  %s20267_s23 = sld [smem:[#allocation41_spill]]  ;;  %15037 = vmatprep.mubr.msk.f32.mxu1 %vm17869_vm2, %v17870_v45  ;;  %vm2482_vm3 = vcmask 261120   ;;  %vm3465_vm4 = vcmask 64512   ;;  %vm4123_vm5 = vcmask 130048  }
 0x262   : > { %s20320_s11 = smov (!%p2350_p3, %s18255_s11), 1  ;;  %s20268_s10 = sld [smem:[#allocation86_spill]]  ;;  %vm4125_vm6 = vcmask 195584   ;;  %vm4344_vm8 = vcmask 523264  }
 0x263   : > { %s14428_s0 = sshll.u32 %s20320_s11, 4  ;;  %s20269_s3 = sld [smem:[#allocation81_spill]] }
 0x264   : > { %s20270_s1 = sld [smem:[#allocation80_spill]]  ;;  %s20271_s22 = sld [smem:[#allocation82_spill]] }
 0x265   : > { %s2354_s2 = scalar_lea.vmem %s20263_s15, %s14428_s0  ;;  %v2359_v2 = vld [vmem:[%s20264_s26] sm:$0xff]  ;;  %v2360_v3 = vld [vmem:[%s20264_s26 + $0x8] sm:$0xff]  ;;  %v2361_v4 = vld [vmem:[%s20264_s26 + $0x10] sm:$0xff]  ;;  %s20272_s15 = sld [smem:[#allocation83_spill]] }
 0x266   : > { %v2375_v1 = vld [vmem:[%s2354_s2] sm:$0xff]  ;;  %v2362_v5 = vld [vmem:[%s20264_s26 + $0x18] sm:$0xff]  ;;  %v2376_v6 = vld [vmem:[%s2354_s2 + $0x8] sm:$0xff]  ;;  %v16258_v7 = vpack.c.bf16 %v2360_v3, %v2359_v2  ;;  %s20136_s0 = smov 16   ;;  %s20140_s2 = smov 8  }
 0x267   : > { %2380 = vperm.xlu0 %17106, %v2375_v1   ;;  %v16262_v8 = vpack.c.bf16 %v2362_v5, %v2361_v4  ;;  %v2363_v9 = vld [vmem:[%s20264_s26 + $0x20] sm:$0xff]  ;;  %v2364_v10 = vld [vmem:[%s20264_s26 + $0x28] sm:$0xff]  ;;  %v2365_v14 = vld [vmem:[%s20264_s26 + $0x30] sm:$0xff]  ;;  %s20286_s6 = sld [smem:[#allocation58_spill]]  ;;  %s20288_s8 = sld [smem:[#allocation59_spill]] }
 0x268   : > { %16259 = vmatprep.subr.bf16.mxu0 %v16258_v7  ;;  %v16266_v11 = vpack.c.bf16 %v2364_v10, %v2363_v9  ;;  %v2471_v12 = vld [vmem:[%s20265_s28] sm:$0xff]  ;;  %v2472_v13 = vld [vmem:[%s20265_s28 + $0x8] sm:$0xff]  ;;  %v2366_v15 = vld [vmem:[%s20264_s26 + $0x38] sm:$0xff]  ;;  %s20301_s9 = sld [smem:[#allocation44_spill]] }
 0x269   : > { %16261 = vmatpush3.bf16.msra.mxu0 %v16258_v7  ;;  %v16291_v17 = vpack.c.bf16 %v2472_v13, %v2471_v12  ;;  %v16270_v18 = vpack.c.bf16 %v2366_v15, %v2365_v14  ;;  %v2367_v19 = vld [vmem:[%s20264_s26 + $0x40] sm:$0xff]  ;;  %v2368_v20 = vld [vmem:[%s20264_s26 + $0x48] sm:$0xff]  ;;  %v2369_v22 = vld [vmem:[%s20264_s26 + $0x50] sm:$0xff] }
 0x26a   : > { %16263 = vmatprep.subr.bf16.mxu0 %v16262_v8  ;;  %v16274_v21 = vpack.c.bf16 %v2368_v20, %v2367_v19  ;;  %v2370_v23 = vld [vmem:[%s20264_s26 + $0x58] sm:$0xff]  ;;  %v2371_v25 = vld [vmem:[%s20264_s26 + $0x60] sm:$0xff]  ;;  %v2372_v26 = vld [vmem:[%s20264_s26 + $0x68] sm:$0xff] }
 0x26b   : > { %2383 = vperm.xlu0 %17106, %v2376_v6   ;;  %16292 = vmatpush3.bf16.msra.mxu1 %v16291_v17  ;;  %v16278_v24 = vpack.c.bf16 %v2370_v23, %v2369_v22  ;;  %v16282_v27 = vpack.c.bf16 %v2372_v26, %v2371_v25  ;;  %v2373_v28 = vld [vmem:[%s20264_s26 + $0x70] sm:$0xff]  ;;  %v2374_v29 = vld [vmem:[%s20264_s26 + $0x78] sm:$0xff]  ;;  %v2805_v34 = vld [vmem:[%s20266_s4] sm:$0xff] }
 0x26c   : > { %16293 = vmatprep.subr.bf16.mxu1 %v17867_v16  ;;  %v16286_v30 = vpack.c.bf16 %v2374_v29, %v2373_v28  ;;  %v2806_v35 = vld [vmem:[%s20266_s4 + $0x8] sm:$0xff]  ;;  %v2473_v39 = vld [vmem:[%s20265_s28 + $0x10] sm:$0xff]  ;;  %v2474_v40 = vld [vmem:[%s20265_s28 + $0x18] sm:$0xff] }
 0x26d   : > { %16265 = vmatpush3.bf16.msra.mxu0 %v16262_v8  ;;  %v16315_v37 = vpack.c.bf16 %v2806_v35, %v2805_v34  ;;  %v2807_v41 = vld [vmem:[%s20266_s4 + $0x10] sm:$0xff]  ;;  %v16294_v42 = vpack.c.bf16 %v2474_v40, %v2473_v39  ;;  %v2808_v43 = vld [vmem:[%s20266_s4 + $0x18] sm:$0xff]  ;;  %v14003_v46 = vld [vmem:[%s20267_s23] ss:$0 sm:$0xff]  ;;  %s20138_s23 = smov 24  }
 0x26e   : > { %16267 = vmatprep.subr.bf16.mxu0 %v16266_v11  ;;  %v16318_v44 = vpack.c.bf16 %v2808_v43, %v2807_v41  ;;  %v14008_v47 = vld [vmem:[%s20265_s28 + $0x20] sm:$0xff]  ;;  %v14009_v48 = vld [vmem:[%s20265_s28 + $0x28] sm:$0xff]  ;;  %v14010_v56 = vld [vmem:[%s20265_s28 + $0x30] sm:$0xff] }
 0x26f   : > { %16295 = vmatpush3.bf16.msra.mxu1 %v16294_v42  ;;  %v14038_v49 = vld [vmem:[%s20266_s4 + $0x40] sm:$0xff]  ;;  %v14039_v50 = vld [vmem:[%s20266_s4 + $0x48] sm:$0xff]  ;;  %v16297_v54 = vpack.c.bf16 %v14009_v48, %v14008_v47  ;;  %v14011_v58 = vld [vmem:[%s20265_s28 + $0x38] sm:$0xff] }
 0x270   : > { %16296 = vmatprep.subr.bf16.mxu1 %v17867_v16  ;;  %v16327_v55 = vpack.c.bf16 %v14039_v50, %v14038_v49  ;;  %v14040_v59 = vld [vmem:[%s20266_s4 + $0x50] sm:$0xff]  ;;  %v14041_v60 = vld [vmem:[%s20266_s4 + $0x58] sm:$0xff]  ;;  %v16300_v61 = vpack.c.bf16 %v14011_v58, %v14010_v56  ;;  %v14015_v63 = vld [vmem:[%s20265_s28 + $0x40] sm:$0xff] }
 0x271   : > { %16269 = vmatpush3.bf16.msra.mxu0 %v16266_v11  ;;  %v16330_v62 = vpack.c.bf16 %v14041_v60, %v14040_v59  ;;  %v14016_v0 = vld [vmem:[%s20265_s28 + $0x48] sm:$0xff]  ;;  %v3135_v1 = vld [vmem:[%s20268_s10] sm:$0xff]  ;;  %v14017_v5 = vld [vmem:[%s20265_s28 + $0x50] sm:$0xff] }
 0x272   : > { %16271 = vmatprep.subr.bf16.mxu0 %v16270_v18  ;;  %v3136_v2 = vld [vmem:[%s20268_s10 + $0x8] sm:$0xff]  ;;  %v16303_v3 = vpack.c.bf16 %v14016_v0, %v14015_v63  ;;  %v14018_v6 = vld [vmem:[%s20265_s28 + $0x58] sm:$0xff]  ;;  %v3137_v7 = vld [vmem:[%s20268_s10 + $0x10] sm:$0xff] }
 0x273   : > { %v16339_v4 = vpack.c.bf16 %v3136_v2, %v3135_v1  ;;  %v3138_v8 = vld [vmem:[%s20268_s10 + $0x18] sm:$0xff]  ;;  %v16306_v9 = vpack.c.bf16 %v14018_v6, %v14017_v5  ;;  %v14022_v11 = vld [vmem:[%s20265_s28 + $0x60] sm:$0xff]  ;;  %v14023_v12 = vld [vmem:[%s20265_s28 + $0x68] sm:$0xff] }
 0x274   : > { %v16342_v10 = vpack.c.bf16 %v3138_v8, %v3137_v7  ;;  %v14061_v13 = vld [vmem:[%s20268_s10 + $0x40] sm:$0xff]  ;;  %v14062_v14 = vld [vmem:[%s20268_s10 + $0x48] sm:$0xff]  ;;  %v16309_v15 = vpack.c.bf16 %v14023_v12, %v14022_v11  ;;  %v14025_v19 = vld [vmem:[%s20265_s28 + $0x78] sm:$0xff] }
 0x275   : > { %16273 = vmatpush3.bf16.msra.mxu0 %v16270_v18  ;;  %v16351_v17 = vpack.c.bf16 %v14062_v14, %v14061_v13  ;;  %v14024_v18 = vld [vmem:[%s20265_s28 + $0x70] sm:$0xff]  ;;  %v14032_v25 = vld [vmem:[%s20266_s4 + $0x28] sm:$0xff]  ;;  %v14034_v28 = vld [vmem:[%s20266_s4 + $0x38] sm:$0xff] }
 0x276   : > { %16275 = vmatprep.subr.bf16.mxu0 %v16274_v21  ;;  %v14063_v20 = vld [vmem:[%s20268_s10 + $0x50] sm:$0xff]  ;;  %v16312_v22 = vpack.c.bf16 %v14025_v19, %v14024_v18  ;;  %v14046_v31 = vld [vmem:[%s20266_s4 + $0x68] sm:$0xff]  ;;  %v14048_v34 = vld [vmem:[%s20266_s4 + $0x78] sm:$0xff] }
 0x277   : > { %v14056_v39 = vld [vmem:[%s20268_s10 + $0x30] sm:$0xff]  ;;  %v14057_v40 = vld [vmem:[%s20268_s10 + $0x38] sm:$0xff]  ;;  %v14068_v42 = vld [vmem:[%s20268_s10 + $0x60] sm:$0xff] }
 0x278   : > { %v16348_v41 = vpack.c.bf16 %v14057_v40, %v14056_v39  ;;  %v14069_v43 = vld [vmem:[%s20268_s10 + $0x68] sm:$0xff]  ;;  %v14071_v47 = vld [vmem:[%s20268_s10 + $0x78] sm:$0xff]  ;;  %v14006_v49 = vld [vmem:[%s20269_s3] ss:$0 sm:$0xff] }
 0x279   : > { %16277 = vmatpush3.bf16.msra.mxu0 %v16274_v21  ;;  %v14064_v21 = vld [vmem:[%s20268_s10 + $0x58] sm:$0xff]  ;;  %v14013_v59 = vld [vmem:[%s20269_s3 + $0x1] ss:$0 sm:$0xff]  ;;  %v14020_v1 = vld [vmem:[%s20269_s3 + $0x2] ss:$0 sm:$0xff] }
 0x27a   : > { %16279 = vmatprep.subr.bf16.mxu0 %v16278_v24  ;;  %v16354_v23 = vpack.c.bf16 %v14064_v21, %v14063_v20  ;;  %v14052_v8 = vld [vmem:[%s20271_s22] ss:$0 sm:$0xff] }
 0x27d   : > { %16281 = vmatpush3.bf16.msra.mxu0 %v16278_v24  ;;  %v14031_v24 = vld [vmem:[%s20266_s4 + $0x20] sm:$0xff] }
 0x27e   : > { %16283 = vmatprep.subr.bf16.mxu0 %v16282_v27  ;;  %v16321_v26 = vpack.c.bf16 %v14032_v25, %v14031_v24 }
 0x281   : > { %16285 = vmatpush3.bf16.msra.mxu0 %v16282_v27  ;;  %v14033_v27 = vld [vmem:[%s20266_s4 + $0x30] sm:$0xff] }
 0x282   : > { %16287 = vmatprep.subr.bf16.mxu0 %v16286_v30  ;;  %v16324_v29 = vpack.c.bf16 %v14034_v28, %v14033_v27 }
 0x285   : > { %16289 = vmatpush3.bf16.msra.mxu0 %v16286_v30  ;;  %v14045_v30 = vld [vmem:[%s20266_s4 + $0x60] sm:$0xff] }
 0x286   : > { %16314 = vmatprep.subr.bf16.mxu0 %v17867_v16 }
 0x2e6   : > { %v2381_v33 = vpop.permute.xlu0 %2380 }
 0x2e7   : > { %vm2385_vm0 = vcmp.eq.s32.totalorder %v2381_v33, %v2378_v32  ;;  %v14047_v33 = vld [vmem:[%s20266_s4 + $0x70] sm:$0xff]  ;;  %s20285_s4 = sld [smem:[#allocation90_spill]] }
 0x2e8   : > { %15026 = vmatprep.mubr.msk.f32.mxu0 %vm2385_vm0, %v17868_v36  ;;  %v16336_v35 = vpack.c.bf16 %v14048_v34, %v14047_v33 }
 0x2ea   : > { %v2384_v38 = vpop.permute.xlu0 %2383 }
 0x2eb   : > { %vm2386_vm1 = vcmp.eq.s32.totalorder %v2384_v38, %v2378_v32  ;;  %v16333_v32 = vpack.c.bf16 %v14046_v31, %v14045_v30 }
 0x2ec   : > { %15027 = vmatmul.mubr.msk.f32.vlgmr.msra.gmra.mrb[0].mxu0 %vm2386_vm1, %v17868_v36  ;;  %v14054_v36 = vld [vmem:[%s20268_s10 + $0x20] sm:$0xff] }
 0x2ed   : > { %16316 = vmatpush3.bf16.msra.mxu0 %v16315_v37  ;;  %15081 = vmatprep.mubr.msk.f32.mxu0 %vm17869_vm2, %v17870_v45  ;;  %v14055_v37 = vld [vmem:[%s20268_s10 + $0x28] sm:$0xff] }
 0x2ee   : > { %16317 = vmatprep.subr.bf16.mxu0 %v17867_v16  ;;  %v16345_v38 = vpack.c.bf16 %v14055_v37, %v14054_v36 }
 0x2f1   : > { %16319 = vmatpush3.bf16.msra.mxu0 %v16318_v44  ;;  %v16357_v44 = vpack.c.bf16 %v14069_v43, %v14068_v42 }
 0x2f2   : > { %16326 = vmatprep.subr.bf16.mxu0 %v17867_v16 }
 0x3bf   : > { %v15028_v51 = vpop.f32.mrb[0].mxu0 }
 0x3c0   : > { %v18577_v52 = vadd.f32 %v15028_v51, %v14003_v46  ;;  %v2462_v53 = vpop.f32.mrb[1].mxu0 }
 0x3c1   : > { %v18580_v57 = vadd.f32 %v14003_v46, %v2462_v53  ;;  %v14070_v46 = vld [vmem:[%s20268_s10 + $0x70] sm:$0xff] }
 0x3c2   : > { %v16360_v48 = vpack.c.bf16 %v14071_v47, %v14070_v46 }
 0x3c3   : > { %15038 = vmatmul.mubr.msk.f32.vlgmr.msra.gmra.mrb[0].mxu1 %vm2482_vm3, %v18580_v57  ;;  %15082 = vmatmul.mubr.msk.f32.vlgmr.msra.gmra.mrb[2].mxu0 %vm2482_vm3, %v18580_v57 }
 0x3c4   : > { %16298 = vmatpush3.bf16.msra.mxu1 %v16297_v54  ;;  %16328 = vmatpush3.bf16.msra.mxu0 %v16327_v55  ;;  %v14029_v54 = vld [vmem:[%s20270_s1] ss:$0 sm:$0xff] }
 0x3c5   : > { %16299 = vmatprep.subr.bf16.mxu1 %v17867_v16  ;;  %16329 = vmatprep.subr.bf16.mxu0 %v17867_v16 }
 0x3c6   : > { %15048 = vmatprep.mubr.msk.f32.mxu1 %vm17869_vm2, %v17870_v45  ;;  %15103 = vmatprep.mubr.msk.f32.mxu0 %vm17869_vm2, %v17870_v45 }
 0x3c8   : > { %16301 = vmatpush3.bf16.msra.mxu1 %v16300_v61  ;;  %16331 = vmatpush3.bf16.msra.mxu0 %v16330_v62 }
 0x3c9   : > { %16302 = vmatprep.subr.bf16.mxu1 %v17867_v16  ;;  %16338 = vmatprep.subr.bf16.mxu0 %v17867_v16 }
 0x3cb   : > { %15049 = vmatmul.mubr.msk.f32.vlgmr.msra.gmra.mrb[2].mxu1 %vm2482_vm3, %v18580_v57  ;;  %15104 = vmatmul.mubr.msk.f32.vlgmr.msra.gmra.mrb[4].mxu0 %vm2482_vm3, %v18580_v57 }
 0x3cc   : > { %16304 = vmatpush3.bf16.msra.mxu1 %v16303_v3  ;;  %16340 = vmatpush3.bf16.msra.mxu0 %v16339_v4  ;;  %v14043_v4 = vld [vmem:[%s20270_s1 + $0x2] ss:$0 sm:$0xff] }
 0x3cd   : > { %16305 = vmatprep.subr.bf16.mxu1 %v17867_v16  ;;  %16341 = vmatprep.subr.bf16.mxu0 %v17867_v16 }
 0x3ce   : > { %15059 = vmatprep.mubr.msk.f32.mxu1 %vm17869_vm2, %v17870_v45  ;;  %15125 = vmatprep.mubr.msk.f32.mxu0 %vm17869_vm2, %v17870_v45 }
 0x3d0   : > { %16307 = vmatpush3.bf16.msra.mxu1 %v16306_v9  ;;  %16343 = vmatpush3.bf16.msra.mxu0 %v16342_v10 }
 0x3d1   : > { %16308 = vmatprep.subr.bf16.mxu1 %v17867_v16  ;;  %16350 = vmatprep.subr.bf16.mxu0 %v17867_v16 }
 0x3d3   : > { %15060 = vmatmul.mubr.msk.f32.vlgmr.msra.gmra.mrb[4].mxu1 %vm2482_vm3, %v18580_v57  ;;  %15126 = vmatmul.mubr.msk.f32.vlgmr.msra.gmra.mrb[6].mxu0 %vm2482_vm3, %v18580_v57 }
 0x3d4   : > { %16310 = vmatpush3.bf16.msra.mxu1 %v16309_v15  ;;  %16352 = vmatpush3.bf16.msra.mxu0 %v16351_v17  ;;  %v14036_v15 = vld [vmem:[%s20270_s1 + $0x1] ss:$0 sm:$0xff]  ;;  %v14027_v17 = vld [vmem:[%s20269_s3 + $0x3] ss:$0 sm:$0xff]  ;;  %s20283_s3 = smov 24  }
 0x3d5   : > { %16311 = vmatprep.subr.bf16.mxu1 %v17867_v16  ;;  %16353 = vmatprep.subr.bf16.mxu0 %v17867_v16 }
 0x3d6   : > { %15070 = vmatprep.mubr.msk.f32.mxu1 %vm17869_vm2, %v17870_v45  ;;  %15147 = vmatprep.mubr.msk.f32.mxu0 %vm17869_vm2, %v17870_v45 }
 0x3d8   : > { %16313 = vmatpush3.bf16.msra.mxu1 %v16312_v22  ;;  %16355 = vmatpush3.bf16.msra.mxu0 %v16354_v23  ;;  %v14050_v22 = vld [vmem:[%s20270_s1 + $0x3] ss:$0 sm:$0xff]  ;;  %s20278_s1 = sld [smem:[#allocation95_spill]] }
 0x3d9   : > { %16320 = vmatprep.subr.bf16.mxu1 %v17867_v16  ;;  %15171 = vmatprep.subr.mxu0 %v17870_v45 }
 0x3db   : > { %15071 = vmatmul.mubr.msk.f32.vlgmr.msra.gmra.mrb[6].mxu1 %vm2482_vm3, %v18580_v57  ;;  %15148 = vmatmul.mubr.msk.f32.vlgmr.msra.gmra.mrb[8].mxu0 %vm2482_vm3, %v18580_v57 }
 0x3dc   : > { %16322 = vmatpush3.bf16.msra.mxu1 %v16321_v26  ;;  %15092 = vmatprep.mubr.msk.f32.mxu1 %vm17869_vm2, %v17870_v45  ;;  %v14059_v26 = vld [vmem:[%s20271_s22 + $0x1] ss:$0 sm:$0xff] }
 0x3dd   : > { %16323 = vmatprep.subr.bf16.mxu1 %v17867_v16  ;;  %15173 = vmatprep.mubr.msk.f32.mxu0 %vm17869_vm2, %v17870_v45 }
 0x3e0   : > { %16325 = vmatpush3.bf16.msra.mxu1 %v16324_v29 }
 0x3e1   : > { %16332 = vmatprep.subr.bf16.mxu1 %v17867_v16 }
 0x3e3   : > { %15093 = vmatmul.mubr.msk.f32.vlgmr.msra.gmra.mrb[8].mxu1 %vm2482_vm3, %v18580_v57 }
 0x3e4   : > { %16334 = vmatpush3.bf16.msra.mxu1 %v16333_v32  ;;  %15114 = vmatprep.mubr.msk.f32.mxu1 %vm17869_vm2, %v17870_v45 }
 0x3e5   : > { %16335 = vmatprep.subr.bf16.mxu1 %v17867_v16 }
 0x3e8   : > { %16337 = vmatpush3.bf16.msra.mxu1 %v16336_v35 }
 0x3e9   : > { %16344 = vmatprep.subr.bf16.mxu1 %v17867_v16 }
 0x3eb   : > { %15115 = vmatmul.mubr.msk.f32.vlgmr.msra.gmra.mrb[10].mxu1 %vm2482_vm3, %v18580_v57 }
 0x3ec   : > { %16346 = vmatpush3.bf16.msra.mxu1 %v16345_v38  ;;  %15136 = vmatprep.mubr.msk.f32.mxu1 %vm17869_vm2, %v17870_v45 }
 0x3ed   : > { %16347 = vmatprep.subr.bf16.mxu1 %v17867_v16 }
 0x3f0   : > { %16349 = vmatpush3.bf16.msra.mxu1 %v16348_v41 }
 0x3f1   : > { %16356 = vmatprep.subr.bf16.mxu1 %v17867_v16 }
 0x3f3   : > { %15137 = vmatmul.mubr.msk.f32.vlgmr.msra.gmra.mrb[12].mxu1 %vm2482_vm3, %v18580_v57 }
 0x3f4   : > { %16358 = vmatpush3.bf16.msra.mxu1 %v16357_v44  ;;  %15158 = vmatprep.mubr.msk.f32.mxu1 %vm17869_vm2, %v17870_v45 }
 0x3f5   : > { %16359 = vmatprep.subr.bf16.mxu1 %v17867_v16 }
 0x3f8   : > { %16361 = vmatpush3.bf16.msra.mxu1 %v16360_v48 }
 0x3f9   : > { %15161 = vmatprep.subr.mxu1 %v17870_v45 }
 0x3fb   : > { %15159 = vmatmul.mubr.msk.f32.vlgmr.msra.gmra.mrb[14].mxu1 %vm2482_vm3, %v18580_v57 }
 0x3fc   : > { %15163 = vmatprep.mubr.msk.f32.mxu1 %vm17869_vm2, %v17870_v45 }
 0x496   : > { %v2552_v50 = vpop.f32.mrb[0].mxu1  ;;  %v2882_v51 = vpop.f32.mrb[2].mxu0 }
 0x497   : > { %v2553_v53 = vadd.f32 %v14006_v49, %v2552_v50  ;;  %v15039_v55 = vpop.f32.mrb[1].mxu1  ;;  %v15083_v56 = vpop.f32.mrb[3].mxu0  ;;  %v2883_v58 = vadd.f32 %v14029_v54, %v2882_v51 }
 0x499   : > { %15162 = vmatpush3.xpose.msk.msra.mxu1 %vm3465_vm4, %v2553_v53 }
 0x49a   : > { %15166 = vmatprep.subr.mxu1 %v17870_v45 }
 0x49c   : > { %15164 = vmatmul.mubr.msk.f32.vlgmr.msra.gmra.mrb[16].mxu1 %vm3465_vm4, %v2883_v58 }
 0x49d   : > { %15168 = vmatprep.mubr.msk.f32.mxu1 %vm17869_vm2, %v17870_v45 }
 0x49e   : > { %v2635_v60 = vpop.f32.mrb[2].mxu1  ;;  %v3048_v61 = vpop.f32.mrb[4].mxu0 }
 0x49f   : > { %v2636_v62 = vadd.f32 %v14013_v59, %v2635_v60  ;;  %v15050_v63 = vpop.f32.mrb[3].mxu1  ;;  %v15105_v0 = vpop.f32.mrb[5].mxu0  ;;  %v3049_v9 = vadd.f32 %v14043_v4, %v3048_v61 }
 0x4a1   : > { %15167 = vmatpush3.xpose.msk.msra.mxu1 %vm3465_vm4, %v2636_v62 }
 0x4a2   : > { %15176 = vmatprep.subr.mxu1 %v17870_v45 }
 0x4a6   : > { %v2718_v2 = vpop.f32.mrb[4].mxu1  ;;  %v3212_v3 = vpop.f32.mrb[6].mxu0 }
 0x4a7   : > { %v2719_v5 = vadd.f32 %v14020_v1, %v2718_v2  ;;  %v15061_v6 = vpop.f32.mrb[5].mxu1  ;;  %v15127_v7 = vpop.f32.mrb[7].mxu0  ;;  %v3213_v10 = vadd.f32 %v14052_v8, %v3212_v3  ;;  %v14066_v8 = vld [vmem:[%s20271_s22 + $0x2] ss:$0 sm:$0xff] }
 0x4a9   : > { %15172 = vmatpush3.xpose.msk.msra.mxu0 %vm3465_vm4, %v2719_v5 }
 0x4aa   : > { %15181 = vmatprep.subr.mxu0 %v17870_v45 }
 0x4ac   : > { %15174 = vmatmul.mubr.msk.f32.vlgmr.msra.gmra.mrb[10].mxu0 %vm3465_vm4, %v3049_v9 }
 0x4ad   : > { %15182 = vmatpush3.msra.mxu0 %v3213_v10  ;;  %15183 = vmatprep.mubr.msk.f32.mxu0 %vm17869_vm2, %v17870_v45 }
 0x4ae   : > { %v2801_v11 = vpop.f32.mrb[6].mxu1  ;;  %v18703_v12 = vpop.f32.mrb[8].mxu0  ;;  %15191 = vmatprep.subr.mxu0 %v17870_v45 }
 0x4af   : > { %v15072_v13 = vpop.f32.mrb[7].mxu1  ;;  %v15149_v14 = vpop.f32.mrb[9].mxu0  ;;  %v2802_v21 = vadd.f32 %v14027_v17, %v2801_v11  ;;  %v3379_v11 = vadd.f32 %v14066_v8, %v18703_v12 }
 0x4b6   : > { %v2965_v18 = vpop.f32.mrb[8].mxu1 }
 0x4b7   : > { %v2966_v19 = vadd.f32 %v14036_v15, %v2965_v18  ;;  %v15094_v20 = vpop.f32.mrb[9].mxu1  ;;  %v14073_v18 = vld [vmem:[%s20271_s22 + $0x3] ss:$0 sm:$0xff] }
 0x4b9   : > { %15169 = vmatmul.mubr.msk.f32.vlgmr.msra.gmra.mrb[18].mxu1 %vm3465_vm4, %v2966_v19 }
 0x4ba   : > { %15177 = vmatpush3.xpose.msk.msra.mxu1 %vm3465_vm4, %v2802_v21  ;;  %15178 = vmatprep.mubr.msk.f32.mxu1 %vm17869_vm2, %v17870_v45 }
 0x4bb   : > { %15186 = vmatprep.subr.mxu1 %v17870_v45 }
 0x4be   : > { %v3131_v23 = vpop.f32.mrb[10].mxu1 }
 0x4bf   : > { %v3132_v24 = vadd.f32 %v14050_v22, %v3131_v23  ;;  %v15116_v25 = vpop.f32.mrb[11].mxu1 }
 0x4c1   : > { %15179 = vmatmul.mubr.msk.f32.vlgmr.msra.gmra.mrb[20].mxu1 %vm3465_vm4, %v3132_v24 }
 0x4c2   : > { %15188 = vmatprep.mubr.msk.f32.mxu1 %vm17869_vm2, %v17870_v45 }
 0x4c6   : > { %v3295_v27 = vpop.f32.mrb[12].mxu1 }
 0x4c7   : > { %v3296_v28 = vadd.f32 %v14059_v26, %v3295_v27  ;;  %v15138_v29 = vpop.f32.mrb[13].mxu1 }
 0x4c8   : > { %v4128_v29 = vld [vmem:[%s20272_s15 + $0x8] sm:$0xff] }
 0x4c9   : > { %15187 = vmatpush3.msra.mxu1 %v3296_v28  ;;  %v4127_v28 = vld [vmem:[%s20272_s15] sm:$0xff] }
 0x4ca   : > { %15196 = vmatprep.subr.mxu1 %v17870_v45 }
 0x4ce   : > { %v18719_v30 = vpop.f32.mrb[14].mxu1 }
 0x4cf   : > { %v15160_v31 = vpop.f32.mrb[15].mxu1  ;;  %v3462_v21 = vadd.f32 %v14073_v18, %v18719_v30  ;;  %v4129_v30 = vld [vmem:[%s20272_s15 + $0x10] sm:$0xff] }
 0x4d0   : > { %v16363_v31 = vpack.c.bf16 %v4128_v29, %v4127_v28 }
 0x56f   : > { %v3538_v32 = vpop.f32.mrb[16].mxu1 }
 0x570   : > { %v3542_v33 = vmul.f32 0.35355338, %v3538_v32  ;;  %v15165_v34 = vpop.f32.mrb[17].mxu1  ;;  %v4130_v32 = vld [vmem:[%s20272_s15 + $0x18] sm:$0xff] }
 0x572   : > { %v3774_v35 = vsel %vm3465_vm4, %v3542_v33, -inf }
 0x573   : > { %3775 = vmax.xlane.f32.xlu1 %v3774_v35 }
 0x57f   : > { %v3692_v36 = vpop.f32.mrb[10].mxu0 }
 0x580   : > { %v3696_v37 = vmul.f32 0.35355338, %v3692_v36  ;;  %v15175_v38 = vpop.f32.mrb[11].mxu0 }
 0x582   : > { %v3780_v39 = vsel %vm3465_vm4, %v3696_v37, -inf }
 0x583   : > { %3781 = vmax.xlane.f32.xlu0 %v3780_v39 }
 0x58c   : > { %v3615_v40 = vpop.f32.mrb[18].mxu1 }
 0x58d   : > { %v3619_v41 = vmul.f32 0.35355338, %v3615_v40  ;;  %v15170_v42 = vpop.f32.mrb[19].mxu1 }
 0x58f   : > { %v3777_v43 = vsel %vm3465_vm4, %v3619_v41, -inf }
 0x590   : > { %3778 = vmax.xlane.f32.xlu1 %v3777_v43 }
 0x594   : > { %v3769_v44 = vpop.f32.mrb[20].mxu1 }
 0x595   : > { %v3773_v46 = vmul.f32 0.35355338, %v3769_v44  ;;  %v15180_v47 = vpop.f32.mrb[21].mxu1  ;;  %v14087_v44 = vld [vmem:[#allocation16] ss:$0 sm:$0xff] }
 0x597   : > { %v3783_v48 = vsel %vm3465_vm4, %v3773_v46, -inf }
 0x598   : > { %3784 = vmax.xlane.f32.xlu1 %v3783_v48 }
 0x600   : > { %v3776_v49 = vpop.xlane.xlu1 %3775 }
 0x601   : > { %v3786_v50 = vsub.f32 %v3542_v33, %v3776_v49  ;;  %v16366_v33 = vpack.c.bf16 %v4130_v32, %v4129_v30 }
 0x603   : > { %v3790_v51 = vmul.f32 1.442695, %v3786_v50 }
 0x605   : > { %17107 = vpow2.f32 %v3790_v51 }
 0x60f   : > { %v17108_v53 = vpop.eup %17107 }
 0x610   : > { %v3782_v54 = vpop.xlane.xlu0 %3781  ;;  %v3798_v55 = vsel %vm3465_vm4, %v17108_v53, 0.0 }
 0x611   : > { %v3788_v56 = vsub.f32 %v3696_v37, %v3782_v54  ;;  %3799 = vadd.xlane.f32.xlu1 %v3798_v55 }
 0x613   : > { %v3794_v58 = vmul.f32 1.442695, %v3788_v56 }
 0x615   : > { %17109 = vpow2.f32 %v3794_v58 }
 0x61d   : > { %v3779_v59 = vpop.xlane.xlu1 %3778 }
 0x61e   : > { %v3787_v60 = vsub.f32 %v3619_v41, %v3779_v59 }
 0x61f   : > { %v17110_v61 = vpop.eup %17109 }
 0x620   : > { %v3792_v62 = vmul.f32 1.442695, %v3787_v60  ;;  %v3804_v63 = vsel %vm3465_vm4, %v17110_v61, 0.0 }
 0x621   : > { %3805 = vadd.xlane.f32.xlu1 %v3804_v63 }
 0x622   : > { %17111 = vpow2.f32 %v3792_v62 }
 0x625   : > { %v3785_v0 = vpop.xlane.xlu1 %3784 }
 0x626   : > { %v3789_v1 = vsub.f32 %v3773_v46, %v3785_v0 }
 0x628   : > { %v3796_v2 = vmul.f32 1.442695, %v3789_v1 }
 0x62a   : > { %17113 = vpow2.f32 %v3796_v2 }
 0x62c   : > { %v17112_v3 = vpop.eup %17111 }
 0x62d   : > { %v3801_v4 = vsel %vm3465_vm4, %v17112_v3, 0.0 }
 0x62e   : > { %3802 = vadd.xlane.f32.xlu1 %v3801_v4 }
 0x634   : > { %v17114_v5 = vpop.eup %17113 }
 0x635   : > { %v3807_v6 = vsel %vm3465_vm4, %v17114_v5, 0.0 }
 0x636   : > { %3808 = vadd.xlane.f32.xlu1 %v3807_v6 }
 0x69e   : > { %v3800_v7 = vpop.xlane.xlu1 %3799 }
 0x69f   : > { %17115 = vrcp.f32 %v3800_v7 }
 0x6a9   : > { %v17116_v9 = vpop.eup %17115 }
 0x6aa   : > { %v3814_v10 = vmul.f32 %v17116_v9, %v17108_v53 }
 0x6ac   : > { %15184 = vmatmul.mubr.msk.f32.vlgmr.msra.gmra.mrb[12].mxu0 %vm3465_vm4, %v3814_v10 }
 0x6ad   : > { %15192 = vmatpush3.msra.mxu0 %v3379_v11  ;;  %15193 = vmatprep.mubr.msk.f32.mxu0 %vm17869_vm2, %v17870_v45 }
 0x6ae   : > { %v3806_v13 = vpop.xlane.xlu1 %3805  ;;  %16362 = vmatprep.subr.bf16.mxu0 %v17867_v16 }
 0x6af   : > { %17117 = vrcp.f32 %v3806_v13  ;;  %v14089_v13 = vld [vmem:[#allocation12] ss:$0 sm:$0xff] }
 0x6b9   : > { %v17118_v14 = vpop.eup %17117 }
 0x6ba   : > { %v3816_v15 = vmul.f32 %v17118_v14, %v17110_v61 }
 0x6bb   : > { %v3803_v17 = vpop.xlane.xlu1 %3802 }
 0x6bc   : > { %17119 = vrcp.f32 %v3803_v17  ;;  %15194 = vmatmul.mubr.msk.f32.vlgmr.msra.gmra.mrb[14].mxu0 %vm3465_vm4, %v3816_v15  ;;  %v14090_v15 = vld [vmem:[#allocation10] ss:$0 sm:$0xff] }
 0x6bd   : > { %15209 = vmatprep.mubr.msk.f32.mxu0 %vm17869_vm2, %v17870_v45  ;;  %16364 = vmatpush3.bf16.msra.mxu0 %v16363_v31 }
 0x6be   : > { %16365 = vmatprep.subr.bf16.mxu0 %v17867_v16 }
 0x6c1   : > { %16367 = vmatpush3.bf16.msra.mxu0 %v16366_v33 }
 0x6c2   : > { %16374 = vmatprep.subr.bf16.mxu0 %v17867_v16 }
 0x6c3   : > { %v3809_v12 = vpop.xlane.xlu1 %3808 }
 0x6c4   : > { %17121 = vrcp.f32 %v3809_v12 }
 0x6c6   : > { %v17120_v19 = vpop.eup %17119 }
 0x6c7   : > { %v3815_v20 = vmul.f32 %v17120_v19, %v17112_v3 }
 0x6c9   : > { %15189 = vmatmul.mubr.msk.f32.vlgmr.msra.gmra.mrb[22].mxu1 %vm3465_vm4, %v3815_v20 }
 0x6ca   : > { %15197 = vmatpush3.msra.mxu1 %v3462_v21  ;;  %15198 = vmatprep.mubr.msk.f32.mxu1 %vm17869_vm2, %v17870_v45 }
 0x6cb   : > { %16368 = vmatprep.subr.bf16.mxu1 %v17867_v16 }
 0x6ce   : > { %v17122_v22 = vpop.eup %17121 }
 0x6cf   : > { %v3817_v23 = vmul.f32 %v17122_v22, %v17114_v5  ;;  %v14091_v22 = vld [vmem:[#allocation7] ss:$0 sm:$0xff] }
 0x6d1   : > { %15199 = vmatmul.mubr.msk.f32.vlgmr.msra.gmra.mrb[24].mxu1 %vm3465_vm4, %v3817_v23 }
 0x6d2   : > { %15220 = vmatprep.mubr.msk.f32.mxu1 %vm17869_vm2, %v17870_v45 }
 0x77f   : > { %v3887_v24 = vpop.f32.mrb[12].mxu0 }
 0x780   : > { %v15185_v25 = vpop.f32.mrb[13].mxu0 }
 0x78f   : > { %v4033_v26 = vpop.f32.mrb[14].mxu0 }
 0x790   : > { %4115 = vrot.lane.b32.xlu0 %v4033_v26, %s20136_s0  ;;  %v15195_v27 = vpop.f32.mrb[15].mxu0  ;;  %s20273_s0 = sld [smem:[#allocation77_spill]] }
 0x791   : > { %v14093_v27 = vld [vmem:[#allocation9] ss:$0 sm:$0xff] }
 0x796   : > { %v4242_v56 = vld [vmem:[%s20273_s0] sm:$0xff]  ;;  %v4243_v58 = vld [vmem:[%s20273_s0 + $0x8] sm:$0xff]  ;;  %v4244_v60 = vld [vmem:[%s20273_s0 + $0x10] sm:$0xff] }
 0x797   : > { %v16369_v59 = vpack.c.bf16 %v4243_v58, %v4242_v56  ;;  %v4245_v61 = vld [vmem:[%s20273_s0 + $0x18] sm:$0xff]  ;;  %s20276_s0 = sld [smem:[#allocation99_spill]]  ;;  %v14096_v58 = vld [vmem:[#allocation13] ss:$0 sm:$0xff] }
 0x798   : > { %v16372_v62 = vpack.c.bf16 %v4245_v61, %v4244_v60 }
 0x799   : > { %16370 = vmatpush3.bf16.msra.mxu1 %v16369_v59 }
 0x79a   : > { %16371 = vmatprep.subr.bf16.mxu1 %v17867_v16 }
 0x79c   : > { %v3960_v34 = vpop.f32.mrb[22].mxu1 }
 0x79d   : > { %4111 = vrot.lane.b32.xlu1 %v3960_v34, %s20140_s2  ;;  %v15190_v35 = vpop.f32.mrb[23].mxu1  ;;  %16373 = vmatpush3.bf16.msra.mxu1 %v16372_v62  ;;  %s20275_s2 = sld [smem:[#allocation100_spill]]  ;;  %v4781_v62 = vld [vmem:[%s20276_s0] sm:$0xff] }
 0x79e   : > { %16386 = vmatprep.subr.bf16.mxu1 %v17867_v16 }
 0x7a3   : > { %v14099_v59 = vld [vmem:[%s20275_s2 + $0x20] sm:$0xff]  ;;  %v14100_v61 = vld [vmem:[%s20275_s2 + $0x28] sm:$0xff] }
 0x7a4   : > { %v4106_v36 = vpop.f32.mrb[24].mxu1 }
 0x7a5   : > { %4119 = vrot.lane.b32.xlu1 %v4106_v36, %s20138_s23  ;;  %v15200_v37 = vpop.f32.mrb[25].mxu1  ;;  %s20274_s23 = sld [smem:[#allocation78_spill]] }
 0x7a6   : > { %v4448_v37 = vld [vmem:[%s20275_s2] sm:$0xff] }
 0x7ab   : > { %v4329_v63 = vld [vmem:[%s20274_s23] sm:$0xff]  ;;  %v4330_v0 = vld [vmem:[%s20274_s23 + $0x8] sm:$0xff]  ;;  %v4331_v1 = vld [vmem:[%s20274_s23 + $0x10] sm:$0xff] }
 0x7ac   : > { %v16375_v2 = vpack.c.bf16 %v4330_v0, %v4329_v63  ;;  %v4332_v3 = vld [vmem:[%s20274_s23 + $0x18] sm:$0xff]  ;;  %v4333_v5 = vld [vmem:[%s20274_s23 + $0x20] sm:$0xff]  ;;  %v4334_v6 = vld [vmem:[%s20274_s23 + $0x28] sm:$0xff] }
 0x7ad   : > { %v16378_v4 = vpack.c.bf16 %v4332_v3, %v4331_v1  ;;  %v16381_v7 = vpack.c.bf16 %v4334_v6, %v4333_v5  ;;  %v4335_v19 = vld [vmem:[%s20274_s23 + $0x30] sm:$0xff]  ;;  %v4336_v20 = vld [vmem:[%s20274_s23 + $0x38] sm:$0xff]  ;;  %v4782_v63 = vld [vmem:[%s20276_s0 + $0x8] sm:$0xff]  ;;  %v16393_v1 = vpack.c.bf16 %v14100_v61, %v14099_v59 }
 0x7ae   : > { %v16384_v21 = vpack.c.bf16 %v4336_v20, %v4335_v19  ;;  %v14101_v3 = vld [vmem:[%s20275_s2 + $0x30] sm:$0xff]  ;;  %v14102_v5 = vld [vmem:[%s20275_s2 + $0x38] sm:$0xff] }
 0x7af   : > { %v4783_v6 = vld [vmem:[%s20276_s0 + $0x10] sm:$0xff]  ;;  %v14132_v20 = vld [vmem:[%s20276_s0 + $0x58] sm:$0xff] }
 0x7b0   : > { %v14131_v19 = vld [vmem:[%s20276_s0 + $0x50] sm:$0xff]  ;;  %v14162_v59 = vld [vmem:[%s18232_s25 + $0x78] sm:$0xff] }
 0x802   : > { %v4116_v40 = vpop.permute.xlu0 %4115 }
 0x80f   : > { %v4112_v38 = vpop.permute.xlu1 %4111 }
 0x810   : > { %v4122_v39 = vsel %vm3465_vm4, %v3887_v24, %v4112_v38  ;;  %v4449_v38 = vld [vmem:[%s20275_s2 + $0x8] sm:$0xff] }
 0x811   : > { %v4124_v41 = vsel %vm4123_vm5, %v4122_v39, %v4116_v40  ;;  %v14106_v39 = vld [vmem:[%s20275_s2 + $0x40] sm:$0xff]  ;;  %v16387_v40 = vpack.c.bf16 %v4449_v38, %v4448_v37  ;;  %v14153_v37 = vld [vmem:[%s18232_s25 + $0x48] sm:$0xff] }
 0x817   : > { %v4120_v42 = vpop.permute.xlu1 %4119 }
 0x818   : > { %v4126_v43 = vsel %vm4125_vm6, %v4124_v41, %v4120_v42  ;;  %v14107_v41 = vld [vmem:[%s20275_s2 + $0x48] sm:$0xff] }
 0x819   : > { %15210 = vmatmul.mubr.msk.f32.vlgmr.msra.gmra.mrb[16].mxu0 %vm2482_vm3, %v4126_v43  ;;  %v16399_v42 = vpack.c.bf16 %v14107_v41, %v14106_v39  ;;  %v4450_v43 = vld [vmem:[%s20275_s2 + $0x10] sm:$0xff]  ;;  %v14139_v41 = vld [vmem:[%s20276_s0 + $0x78] sm:$0xff] }
 0x81a   : > { %15239 = vmatprep.mubr.msk.f32.mxu0 %vm17869_vm2, %v17870_v45  ;;  %16376 = vmatpush3.bf16.msra.mxu0 %v16375_v2  ;;  %v16411_v2 = vpack.c.bf16 %v4782_v63, %v4781_v62 }
 0x81b   : > { %16377 = vmatprep.subr.bf16.mxu0 %v17867_v16 }
 0x81e   : > { %16379 = vmatpush3.bf16.msra.mxu0 %v16378_v4 }
 0x81f   : > { %16380 = vmatprep.subr.bf16.mxu0 %v17867_v16 }
 0x822   : > { %16382 = vmatpush3.bf16.msra.mxu0 %v16381_v7  ;;  %v4784_v7 = vld [vmem:[%s20276_s0 + $0x18] sm:$0xff] }
 0x823   : > { %16383 = vmatprep.subr.bf16.mxu0 %v17867_v16 }
 0x826   : > { %16385 = vmatpush3.bf16.msra.mxu0 %v16384_v21 }
 0x827   : > { %16398 = vmatprep.subr.bf16.mxu0 %v17867_v16 }
 0x8ec   : > { %v4207_v46 = vpop.f32.mrb[16].mxu0 }
 0x8ed   : > { %v4208_v47 = vadd.f32 %v14087_v44, %v4207_v46  ;;  %v15211_v48 = vpop.f32.mrb[17].mxu0  ;;  %v4451_v44 = vld [vmem:[%s20275_s2 + $0x18] sm:$0xff]  ;;  %v14108_v46 = vld [vmem:[%s20275_s2 + $0x50] sm:$0xff] }
 0x8ee   : > { %v14109_v48 = vld [vmem:[%s20275_s2 + $0x58] sm:$0xff] }
 0x8ef   : > { %v4211_v49 = vsel %vm2482_vm3, %v4208_v47, 0.0 }
 0x8f0   : > { %4212 = vadd.xlane.f32.xlu1 %v4211_v49  ;;  %v16402_v49 = vpack.c.bf16 %v14109_v48, %v14108_v46  ;;  %v14146_v48 = vld [vmem:[%s18232_s25 + $0x28] sm:$0xff] }
 0x97d   : > { %v4213_v50 = vpop.xlane.xlu1 %4212 }
 0x97e   : > { %v4215_v51 = vmul.f32 0.03125, %v4213_v50 }
 0x980   : > { %v4216_v53 = vsub.f32 %v4208_v47, %v4215_v51  ;;  %v16390_v47 = vpack.c.bf16 %v4451_v44, %v4450_v43  ;;  %v14155_v43 = vld [vmem:[%s18232_s25 + $0x58] sm:$0xff] }
 0x982   : > { %v4217_v54 = vmul.f32 %v4216_v53, %v4216_v53 }
 0x984   : > { %v4218_v55 = vsel %vm2482_vm3, %v4217_v54, 0.0 }
 0x985   : > { %4219 = vadd.xlane.f32.xlu0 %v4218_v55  ;;  %v14095_v55 = vld [vmem:[#allocation15] ss:$0 sm:$0xff] }
 0xa12   : > { %v4220_v8 = vpop.xlane.xlu0 %4219 }
 0xa13   : > { %v4221_v9 = vmul.f32 0.03125, %v4220_v8  ;;  %v16396_v8 = vpack.c.bf16 %v14102_v5, %v14101_v3  ;;  %v14120_v5 = vld [vmem:[%s20278_s1] ss:$0 sm:$0xff] }
 0xa15   : > { %v4222_v10 = vadd.f32 1e-05, %v4221_v9  ;;  %v16414_v9 = vpack.c.bf16 %v4784_v7, %v4783_v6 }
 0xa17   : > { %17123 = vrsqrt.f32 %v4222_v10  ;;  %v14113_v10 = vld [vmem:[%s20275_s2 + $0x60] sm:$0xff] }
 0xa21   : > { %v17124_v11 = vpop.eup %17123 }
 0xa22   : > { %v4224_v14 = vmul.f32 %v17124_v11, %v4216_v53  ;;  %v14114_v11 = vld [vmem:[%s20275_s2 + $0x68] sm:$0xff] }
 0xa24   : > { %v4232_v17 = vmul.f32 %v14089_v13, %v4224_v14  ;;  %v14129_v13 = vld [vmem:[%s20276_s0 + $0x40] sm:$0xff]  ;;  %v14130_v14 = vld [vmem:[%s20276_s0 + $0x48] sm:$0xff] }
 0xa26   : > { %v4240_v12 = vadd.f32 %v14090_v15, %v4232_v17  ;;  %v16405_v15 = vpack.c.bf16 %v14114_v11, %v14113_v10  ;;  %v16423_v17 = vpack.c.bf16 %v14130_v14, %v14129_v13 }
 0xa28   : > { %v18780_v18 = vadd.f32 %v4240_v12, %v18580_v57  ;;  %v14115_v12 = vld [vmem:[%s20275_s2 + $0x70] sm:$0xff] }
 0xa2a   : > { %15221 = vmatmul.mubr.msk.f32.vlgmr.msra.gmra.mrb[26].mxu1 %vm2482_vm3, %v18780_v18 }
 0xa2b   : > { %15250 = vmatprep.mubr.msk.f32.mxu1 %vm17869_vm2, %v17870_v45  ;;  %16388 = vmatpush3.bf16.msra.mxu1 %v16387_v40  ;;  %v14138_v40 = vld [vmem:[%s20276_s0 + $0x70] sm:$0xff] }
 0xa2c   : > { %16389 = vmatprep.subr.bf16.mxu1 %v17867_v16  ;;  %v16432_v44 = vpack.c.bf16 %v14139_v41, %v14138_v40 }
 0xa2f   : > { %16391 = vmatpush3.bf16.msra.mxu1 %v16390_v47  ;;  %v14145_v47 = vld [vmem:[%s18232_s25 + $0x20] sm:$0xff] }
 0xa30   : > { %16392 = vmatprep.subr.bf16.mxu1 %v17867_v16 }
 0xafd   : > { %v4322_v23 = vpop.f32.mrb[26].mxu1 }
 0xafe   : > { %v4323_v24 = vadd.f32 %v14091_v22, %v4322_v23  ;;  %v15222_v25 = vpop.f32.mrb[27].mxu1  ;;  %v16426_v22 = vpack.c.bf16 %v14132_v20, %v14131_v19  ;;  %v14122_v23 = vld [vmem:[%s20276_s0 + $0x20] sm:$0xff] }
 0xaff   : > { %v5111_v25 = vld [vmem:[%s18232_s25] sm:$0xff] }
 0xb00   : > { %vm4326_vm7 = vcmp.ge.f32.partialorder %v4323_v24, 0.0  ;;  %v4327_v26 = vmul.f32 0.1, %v4323_v24 }
 0xb02   : > { %v4328_v57 = vsel %vm4326_vm7, %v4323_v24, %v4327_v26  ;;  %v14123_v24 = vld [vmem:[%s20276_s0 + $0x28] sm:$0xff] }
 0xb03   : > { %15240 = vmatmul.mubr.msk.f32.vlgmr.msra.gmra.mrb[18].mxu0 %vm4344_vm8, %v4328_v57  ;;  %v5112_v26 = vld [vmem:[%s18232_s25 + $0x8] sm:$0xff]  ;;  %v16417_v57 = vpack.c.bf16 %v14123_v24, %v14122_v23 }
 0xb04   : > { %15272 = vmatprep.mubr.msk.f32.mxu0 %vm17869_vm2, %v17870_v45  ;;  %16400 = vmatpush3.bf16.msra.mxu0 %v16399_v42  ;;  %v14154_v42 = vld [vmem:[%s18232_s25 + $0x50] sm:$0xff] }
 0xb05   : > { %16401 = vmatprep.subr.bf16.mxu0 %v17867_v16  ;;  %v16450_v46 = vpack.c.bf16 %v14155_v43, %v14154_v42 }
 0xb08   : > { %16403 = vmatpush3.bf16.msra.mxu0 %v16402_v49  ;;  %v16441_v49 = vpack.c.bf16 %v14146_v48, %v14145_v47 }
 0xb09   : > { %16410 = vmatprep.subr.bf16.mxu0 %v17867_v16 }
 0xbd6   : > { %v4414_v28 = vpop.f32.mrb[18].mxu0 }
 0xbd7   : > { %v4415_v29 = vadd.f32 %v14093_v27, %v4414_v28  ;;  %v15241_v30 = vpop.f32.mrb[19].mxu0  ;;  %v16435_v27 = vpack.c.bf16 %v5112_v26, %v5111_v25  ;;  %v14124_v28 = vld [vmem:[%s20276_s0 + $0x30] sm:$0xff] }
 0xbd8   : > { %v5113_v30 = vld [vmem:[%s18232_s25 + $0x10] sm:$0xff] }
 0xbd9   : > { %v4418_v31 = vsel %vm2482_vm3, %v4415_v29, 0.0 }
 0xbda   : > { %4419 = vadd.xlane.f32.xlu1 %v4418_v31  ;;  %v5114_v31 = vld [vmem:[%s18232_s25 + $0x18] sm:$0xff] }
 0xc67   : > { %v4420_v32 = vpop.xlane.xlu1 %4419 }
 0xc68   : > { %v4421_v33 = vmul.f32 0.03125, %v4420_v32 }
 0xc6a   : > { %v4422_v34 = vsub.f32 %v4415_v29, %v4421_v33  ;;  %v14125_v29 = vld [vmem:[%s20276_s0 + $0x38] sm:$0xff]  ;;  %v16438_v33 = vpack.c.bf16 %v5114_v31, %v5113_v30  ;;  %v14141_v30 = vld [vmem:[%s20278_s1 + $0x3] ss:$0 sm:$0xff] }
 0xc6b   : > { %v16420_v32 = vpack.c.bf16 %v14125_v29, %v14124_v28 }
 0xc6c   : > { %v4423_v35 = vmul.f32 %v4422_v34, %v4422_v34 }
 0xc6e   : > { %v4424_v36 = vsel %vm2482_vm3, %v4423_v35, 0.0  ;;  %v14137_v35 = vld [vmem:[%s20276_s0 + $0x68] sm:$0xff] }
 0xc6f   : > { %4425 = vadd.xlane.f32.xlu1 %v4424_v36  ;;  %v14152_v36 = vld [vmem:[%s18232_s25 + $0x40] sm:$0xff] }
 0xc70   : > { %v16447_v39 = vpack.c.bf16 %v14153_v37, %v14152_v36 }
 0xcfc   : > { %v4426_v50 = vpop.xlane.xlu1 %4425 }
 0xcfd   : > { %v4427_v51 = vmul.f32 0.03125, %v4426_v50  ;;  %v14147_v50 = vld [vmem:[%s18232_s25 + $0x30] sm:$0xff] }
 0xcff   : > { %v4428_v53 = vadd.f32 1e-05, %v4427_v51  ;;  %v14148_v51 = vld [vmem:[%s18232_s25 + $0x38] sm:$0xff] }
 0xd01   : > { %17125 = vrsqrt.f32 %v4428_v53  ;;  %v16444_v53 = vpack.c.bf16 %v14148_v51, %v14147_v50 }
 0xd0b   : > { %v17126_v54 = vpop.eup %17125 }
 0xd0c   : > { %v4430_v56 = vmul.f32 %v17126_v54, %v4422_v34  ;;  %v14136_v34 = vld [vmem:[%s20276_s0 + $0x60] sm:$0xff]  ;;  %s20277_s0 = sld [smem:[#allocation96_spill]] }
 0xd0d   : > { %v16429_v38 = vpack.c.bf16 %v14137_v35, %v14136_v34  ;;  %v14159_v54 = vld [vmem:[%s18232_s25 + $0x60] sm:$0xff] }
 0xd0e   : > { %v4438_v60 = vmul.f32 %v14095_v55, %v4430_v56  ;;  %v14160_v55 = vld [vmem:[%s18232_s25 + $0x68] sm:$0xff] }
 0xd0f   : > { %v16453_v56 = vpack.c.bf16 %v14160_v55, %v14159_v54 }
 0xd10   : > { %v4446_v0 = vadd.f32 %v14096_v58, %v4438_v60  ;;  %v14161_v58 = vld [vmem:[%s18232_s25 + $0x70] sm:$0xff] }
 0xd11   : > { %v16456_v60 = vpack.c.bf16 %v14162_v59, %v14161_v58 }
 0xd12   : > { %v18812_v4 = vadd.f32 %v4446_v0, %v18780_v18  ;;  %v14116_v18 = vld [vmem:[%s20275_s2 + $0x78] sm:$0xff]  ;;  %v14097_v61 = vld [vmem:[%s20277_s0] ss:$0 sm:$0xff]  ;;  %v14104_v3 = vld [vmem:[%s20277_s0 + $0x1] ss:$0 sm:$0xff]  ;;  %s20279_s2 = sld [smem:[#allocation97_spill]] }
 0xd13   : > { %v16408_v21 = vpack.c.bf16 %v14116_v18, %v14115_v12  ;;  %v14111_v6 = vld [vmem:[%s20277_s0 + $0x2] ss:$0 sm:$0xff]  ;;  %v14118_v23 = vld [vmem:[%s20277_s0 + $0x3] ss:$0 sm:$0xff]  ;;  %s20280_s0 = sld [smem:[#allocation98_spill]] }
 0xd14   : > { %15251 = vmatmul.mubr.msk.f32.vlgmr.msra.gmra.mrb[28].mxu1 %vm2482_vm3, %v18812_v4  ;;  %15273 = vmatmul.mubr.msk.f32.vlgmr.msra.gmra.mrb[20].mxu0 %vm2482_vm3, %v18812_v4 }
 0xd15   : > { %16394 = vmatpush3.bf16.msra.mxu1 %v16393_v1  ;;  %16412 = vmatpush3.bf16.msra.mxu0 %v16411_v2 }
 0xd16   : > { %16395 = vmatprep.subr.bf16.mxu1 %v17867_v16  ;;  %16413 = vmatprep.subr.bf16.mxu0 %v17867_v16 }
 0xd17   : > { %15261 = vmatprep.mubr.msk.f32.mxu1 %vm17869_vm2, %v17870_v45  ;;  %15294 = vmatprep.mubr.msk.f32.mxu0 %vm17869_vm2, %v17870_v45 }
 0xd18   : > { %v14150_v36 = vld [vmem:[%s20279_s2 + $0x1] ss:$0 sm:$0xff] }
 0xd19   : > { %16397 = vmatpush3.bf16.msra.mxu1 %v16396_v8  ;;  %16415 = vmatpush3.bf16.msra.mxu0 %v16414_v9 }
 0xd1a   : > { %16404 = vmatprep.subr.bf16.mxu1 %v17867_v16  ;;  %16422 = vmatprep.subr.bf16.mxu0 %v17867_v16 }
 0xd1c   : > { %15262 = vmatmul.mubr.msk.f32.vlgmr.msra.gmra.mrb[30].mxu1 %vm2482_vm3, %v18812_v4  ;;  %15295 = vmatmul.mubr.msk.f32.vlgmr.msra.gmra.mrb[22].mxu0 %vm2482_vm3, %v18812_v4 }
 0xd1d   : > { %16406 = vmatpush3.bf16.msra.mxu1 %v16405_v15  ;;  %16424 = vmatpush3.bf16.msra.mxu0 %v16423_v17  ;;  %v14134_v15 = vld [vmem:[%s20278_s1 + $0x2] ss:$0 sm:$0xff] }
 0xd1e   : > { %16407 = vmatprep.subr.bf16.mxu1 %v17867_v16  ;;  %16425 = vmatprep.subr.bf16.mxu0 %v17867_v16 }
 0xd1f   : > { %15283 = vmatprep.mubr.msk.f32.mxu1 %vm17869_vm2, %v17870_v45  ;;  %15316 = vmatprep.mubr.msk.f32.mxu0 %vm17869_vm2, %v17870_v45 }
 0xd21   : > { %16409 = vmatpush3.bf16.msra.mxu1 %v16408_v21  ;;  %16427 = vmatpush3.bf16.msra.mxu0 %v16426_v22  ;;  %v14127_v21 = vld [vmem:[%s20278_s1 + $0x1] ss:$0 sm:$0xff]  ;;  %v14143_v22 = vld [vmem:[%s20279_s2] ss:$0 sm:$0xff]  ;;  %s20281_s1 = smov 16  }
 0xd22   : > { %16416 = vmatprep.subr.bf16.mxu1 %v17867_v16  ;;  %16434 = vmatprep.subr.bf16.mxu0 %v17867_v16 }
 0xd24   : > { %15284 = vmatmul.mubr.msk.f32.vlgmr.msra.gmra.mrb[32].mxu1 %vm2482_vm3, %v18812_v4  ;;  %15317 = vmatmul.mubr.msk.f32.vlgmr.msra.gmra.mrb[24].mxu0 %vm2482_vm3, %v18812_v4 }
 0xd25   : > { %16418 = vmatpush3.bf16.msra.mxu1 %v16417_v57  ;;  %16436 = vmatpush3.bf16.msra.mxu0 %v16435_v27 }
 0xd26   : > { %16419 = vmatprep.subr.bf16.mxu1 %v17867_v16  ;;  %16437 = vmatprep.subr.bf16.mxu0 %v17867_v16 }
 0xd27   : > { %15305 = vmatprep.mubr.msk.f32.mxu1 %vm17869_vm2, %v17870_v45  ;;  %15338 = vmatprep.mubr.msk.f32.mxu0 %vm17869_vm2, %v17870_v45 }
 0xd29   : > { %16421 = vmatpush3.bf16.msra.mxu1 %v16420_v32  ;;  %16439 = vmatpush3.bf16.msra.mxu0 %v16438_v33 }
 0xd2a   : > { %16428 = vmatprep.subr.bf16.mxu1 %v17867_v16  ;;  %16446 = vmatprep.subr.bf16.mxu0 %v17867_v16 }
 0xd2c   : > { %15306 = vmatmul.mubr.msk.f32.vlgmr.msra.gmra.mrb[34].mxu1 %vm2482_vm3, %v18812_v4  ;;  %15339 = vmatmul.mubr.msk.f32.vlgmr.msra.gmra.mrb[26].mxu0 %vm2482_vm3, %v18812_v4 }
 0xd2d   : > { %16430 = vmatpush3.bf16.msra.mxu1 %v16429_v38  ;;  %16448 = vmatpush3.bf16.msra.mxu0 %v16447_v39 }
 0xd2e   : > { %16431 = vmatprep.subr.bf16.mxu1 %v17867_v16  ;;  %16449 = vmatprep.subr.bf16.mxu0 %v17867_v16 }
 0xd2f   : > { %15327 = vmatprep.mubr.msk.f32.mxu1 %vm17869_vm2, %v17870_v45  ;;  %15360 = vmatprep.mubr.msk.f32.mxu0 %vm17869_vm2, %v17870_v45 }
 0xd31   : > { %16433 = vmatpush3.bf16.msra.mxu1 %v16432_v44  ;;  %16451 = vmatpush3.bf16.msra.mxu0 %v16450_v46 }
 0xd32   : > { %16440 = vmatprep.subr.bf16.mxu1 %v17867_v16  ;;  %15374 = vmatprep.subr.mxu0 %v17870_v45 }
 0xd34   : > { %15328 = vmatmul.mubr.msk.f32.vlgmr.msra.gmra.mrb[36].mxu1 %vm2482_vm3, %v18812_v4  ;;  %15361 = vmatmul.mubr.msk.f32.vlgmr.msra.gmra.mrb[28].mxu0 %vm2482_vm3, %v18812_v4 }
 0xd35   : > { %16442 = vmatpush3.bf16.msra.mxu1 %v16441_v49  ;;  %15349 = vmatprep.mubr.msk.f32.mxu1 %vm17869_vm2, %v17870_v45 }
 0xd36   : > { %16443 = vmatprep.subr.bf16.mxu1 %v17867_v16  ;;  %15376 = vmatprep.mubr.msk.f32.mxu0 %vm17869_vm2, %v17870_v45 }
 0xd39   : > { %16445 = vmatpush3.bf16.msra.mxu1 %v16444_v53 }
 0xd3a   : > { %16452 = vmatprep.subr.bf16.mxu1 %v17867_v16 }
 0xd3c   : > { %15350 = vmatmul.mubr.msk.f32.vlgmr.msra.gmra.mrb[38].mxu1 %vm2482_vm3, %v18812_v4 }
 0xd3d   : > { %16454 = vmatpush3.bf16.msra.mxu1 %v16453_v56  ;;  %15371 = vmatprep.mubr.msk.f32.mxu1 %vm17869_vm2, %v17870_v45 }
 0xd3e   : > { %16455 = vmatprep.subr.bf16.mxu1 %v17867_v16 }
 0xd41   : > { %16457 = vmatpush3.bf16.msra.mxu1 %v16456_v60 }
 0xd42   : > { %15379 = vmatprep.subr.mxu1 %v17870_v45 }
 0xd44   : > { %15372 = vmatmul.mubr.msk.f32.vlgmr.msra.gmra.mrb[40].mxu1 %vm2482_vm3, %v18812_v4 }
 0xd45   : > { %15381 = vmatprep.mubr.msk.f32.mxu1 %vm17869_vm2, %v17870_v45 }
 0xde7   : > { %v4528_v62 = vpop.f32.mrb[28].mxu1  ;;  %v4694_v63 = vpop.f32.mrb[20].mxu0 }
 0xde8   : > { %v4529_v0 = vadd.f32 %v14097_v61, %v4528_v62  ;;  %v15252_v1 = vpop.f32.mrb[29].mxu1  ;;  %v15274_v2 = vpop.f32.mrb[21].mxu0  ;;  %v4695_v14 = vadd.f32 %v14111_v6, %v4694_v63 }
 0xdea   : > { %15375 = vmatpush3.xpose.msk.msra.mxu0 %vm3465_vm4, %v4529_v0 }
 0xdeb   : > { %15384 = vmatprep.subr.mxu0 %v17870_v45 }
 0xdef   : > { %v4611_v7 = vpop.f32.mrb[30].mxu1  ;;  %v4858_v8 = vpop.f32.mrb[22].mxu0 }
 0xdf0   : > { %v4612_v9 = vadd.f32 %v14104_v3, %v4611_v7  ;;  %v4859_v10 = vadd.f32 %v14120_v5, %v4858_v8  ;;  %v15263_v11 = vpop.f32.mrb[31].mxu1  ;;  %v15296_v13 = vpop.f32.mrb[23].mxu0 }
 0xdf2   : > { %15377 = vmatmul.mubr.msk.f32.vlgmr.msra.gmra.mrb[30].mxu0 %vm3465_vm4, %v4859_v10  ;;  %15380 = vmatpush3.xpose.msk.msra.mxu1 %vm3465_vm4, %v4612_v9 }
 0xdf3   : > { %15385 = vmatpush3.xpose.msk.msra.mxu0 %vm3465_vm4, %v4695_v14  ;;  %15386 = vmatprep.mubr.msk.f32.mxu0 %vm17869_vm2, %v17870_v45 }
 0xdf4   : > { %15389 = vmatprep.subr.mxu1 %v17870_v45  ;;  %15394 = vmatprep.subr.mxu0 %v17870_v45 }
 0xdf7   : > { %v4777_v17 = vpop.f32.mrb[32].mxu1  ;;  %v5024_v12 = vpop.f32.mrb[24].mxu0 }
 0xdf8   : > { %v5025_v18 = vadd.f32 %v14134_v15, %v5024_v12  ;;  %v15285_v19 = vpop.f32.mrb[33].mxu1  ;;  %v15318_v20 = vpop.f32.mrb[25].mxu0  ;;  %v4778_v29 = vadd.f32 %v14118_v23, %v4777_v17 }
 0xdfa   : > { %15387 = vmatmul.mubr.msk.f32.vlgmr.msra.gmra.mrb[32].mxu0 %vm3465_vm4, %v5025_v18 }
 0xdfb   : > { %15396 = vmatprep.mubr.msk.f32.mxu0 %vm17869_vm2, %v17870_v45 }
 0xdff   : > { %v4941_v24 = vpop.f32.mrb[34].mxu1  ;;  %v5188_v25 = vpop.f32.mrb[26].mxu0 }
 0xe00   : > { %v4942_v26 = vadd.f32 %v14127_v21, %v4941_v24  ;;  %v5189_v57 = vadd.f32 %v14143_v22, %v5188_v25  ;;  %v15307_v27 = vpop.f32.mrb[35].mxu1  ;;  %v15340_v28 = vpop.f32.mrb[27].mxu0  ;;  %v14157_v21 = vld [vmem:[%s20279_s2 + $0x2] ss:$0 sm:$0xff] }
 0xe01   : > { %v14164_v28 = vld [vmem:[%s20279_s2 + $0x3] ss:$0 sm:$0xff]  ;;  %s20282_s2 = smov 8  }
 0xe02   : > { %15382 = vmatmul.mubr.msk.f32.vlgmr.msra.gmra.mrb[42].mxu1 %vm3465_vm4, %v4942_v26  ;;  %15395 = vmatpush3.msra.mxu0 %v5189_v57 }
 0xe03   : > { %15390 = vmatpush3.xpose.msk.msra.mxu1 %vm3465_vm4, %v4778_v29  ;;  %15391 = vmatprep.mubr.msk.f32.mxu1 %vm17869_vm2, %v17870_v45 }
 0xe04   : > { %15399 = vmatprep.subr.mxu1 %v17870_v45  ;;  %15404 = vmatprep.subr.mxu0 %v17870_v45 }
 0xe07   : > { %v5107_v31 = vpop.f32.mrb[36].mxu1  ;;  %v18944_v32 = vpop.f32.mrb[28].mxu0 }
 0xe08   : > { %v5108_v33 = vadd.f32 %v14141_v30, %v5107_v31  ;;  %v15329_v34 = vpop.f32.mrb[37].mxu1  ;;  %v15362_v35 = vpop.f32.mrb[29].mxu0  ;;  %v5355_v24 = vadd.f32 %v14157_v21, %v18944_v32 }
 0xe0a   : > { %15392 = vmatmul.mubr.msk.f32.vlgmr.msra.gmra.mrb[44].mxu1 %vm3465_vm4, %v5108_v33 }
 0xe0b   : > { %15401 = vmatprep.mubr.msk.f32.mxu1 %vm17869_vm2, %v17870_v45 }
 0xe0f   : > { %v5271_v37 = vpop.f32.mrb[38].mxu1 }
 0xe10   : > { %v5272_v38 = vadd.f32 %v14150_v36, %v5271_v37  ;;  %v15351_v39 = vpop.f32.mrb[39].mxu1  ;;  %v6100_v36 = vld [vmem:[%s20280_s0] sm:$0xff]  ;;  %v6101_v37 = vld [vmem:[%s20280_s0 + $0x8] sm:$0xff] }
 0xe11   : > { %v16459_v39 = vpack.c.bf16 %v6101_v37, %v6100_v36  ;;  %v14191_v36 = vld [vmem:[%s20286_s6 + $0x28] sm:$0xff]  ;;  %v14192_v37 = vld [vmem:[%s20286_s6 + $0x30] sm:$0xff] }
 0xe12   : > { %15400 = vmatpush3.msra.mxu1 %v5272_v38  ;;  %v6102_v38 = vld [vmem:[%s20280_s0 + $0x10] sm:$0xff] }
 0xe13   : > { %15409 = vmatprep.subr.mxu1 %v17870_v45 }
 0xe17   : > { %v18951_v40 = vpop.f32.mrb[40].mxu1 }
 0xe18   : > { %v15373_v41 = vpop.f32.mrb[41].mxu1  ;;  %v5438_v31 = vadd.f32 %v14164_v28, %v18951_v40  ;;  %v6103_v40 = vld [vmem:[%s20280_s0 + $0x18] sm:$0xff]  ;;  %s20284_s0 = sld [smem:[#allocation88_spill]]  ;;  %v6420_v28 = vld [vmem:[%s20286_s6 + $0x8] sm:$0xff] }
 0xe19   : > { %v16462_v41 = vpack.c.bf16 %v6103_v40, %v6102_v38  ;;  %v14193_v38 = vld [vmem:[%s20286_s6 + $0x38] sm:$0xff]  ;;  %v14204_v40 = vld [vmem:[%s20286_s6 + $0x60] sm:$0xff] }
 0xec5   : > { %v5513_v42 = vpop.f32.mrb[30].mxu0 }
 0xec6   : > { %v5517_v43 = vmul.f32 0.35355338, %v5513_v42  ;;  %v15378_v44 = vpop.f32.mrb[31].mxu0 }
 0xec8   : > { %v5749_v46 = vsel %vm3465_vm4, %v5517_v43, -inf }
 0xec9   : > { %5750 = vmax.xlane.f32.xlu0 %v5749_v46 }
 0xecd   : > { %v5667_v47 = vpop.f32.mrb[32].mxu0 }
 0xece   : > { %v5671_v48 = vmul.f32 0.35355338, %v5667_v47  ;;  %v15388_v49 = vpop.f32.mrb[33].mxu0 }
 0xed0   : > { %v5755_v50 = vsel %vm3465_vm4, %v5671_v48, -inf }
 0xed1   : > { %5756 = vmax.xlane.f32.xlu0 %v5755_v50 }
 0xed5   : > { %v5590_v51 = vpop.f32.mrb[42].mxu1 }
 0xed6   : > { %v5594_v53 = vmul.f32 0.35355338, %v5590_v51  ;;  %v15383_v54 = vpop.f32.mrb[43].mxu1 }
 0xed8   : > { %v5752_v55 = vsel %vm3465_vm4, %v5594_v53, -inf }
 0xed9   : > { %5753 = vmax.xlane.f32.xlu1 %v5752_v55 }
 0xedd   : > { %v5744_v56 = vpop.f32.mrb[44].mxu1 }
 0xede   : > { %v5748_v58 = vmul.f32 0.35355338, %v5744_v56  ;;  %v15393_v59 = vpop.f32.mrb[45].mxu1  ;;  %v14178_v56 = vld [vmem:[#allocation27] ss:$0 sm:$0xff] }
 0xee0   : > { %v5758_v60 = vsel %vm3465_vm4, %v5748_v58, -inf }
 0xee1   : > { %5759 = vmax.xlane.f32.xlu1 %v5758_v60 }
 0xf56   : > { %v5751_v61 = vpop.xlane.xlu0 %5750 }
 0xf57   : > { %v5761_v62 = vsub.f32 %v5517_v43, %v5751_v61 }
 0xf59   : > { %v5765_v63 = vmul.f32 1.442695, %v5761_v62 }
 0xf5b   : > { %17127 = vpow2.f32 %v5765_v63 }
 0xf5e   : > { %v5757_v0 = vpop.xlane.xlu0 %5756 }
 0xf5f   : > { %v5763_v1 = vsub.f32 %v5671_v48, %v5757_v0 }
 0xf61   : > { %v5769_v2 = vmul.f32 1.442695, %v5763_v1 }
 0xf63   : > { %17129 = vpow2.f32 %v5769_v2 }
 0xf65   : > { %v17128_v3 = vpop.eup %17127 }
 0xf66   : > { %v5754_v5 = vpop.xlane.xlu1 %5753  ;;  %v5773_v6 = vsel %vm3465_vm4, %v17128_v3, 0.0 }
 0xf67   : > { %v5762_v7 = vsub.f32 %v5594_v53, %v5754_v5  ;;  %5774 = vadd.xlane.f32.xlu0 %v5773_v6  ;;  %v6215_v5 = vld [vmem:[%s20284_s0 + $0x8] sm:$0xff] }
 0xf69   : > { %v5767_v8 = vmul.f32 1.442695, %v5762_v7  ;;  %v6216_v7 = vld [vmem:[%s20284_s0 + $0x10] sm:$0xff] }
 0xf6b   : > { %17131 = vpow2.f32 %v5767_v8  ;;  %v6217_v8 = vld [vmem:[%s20284_s0 + $0x18] sm:$0xff] }
 0xf6d   : > { %v17130_v9 = vpop.eup %17129 }
 0xf6e   : > { %v5760_v10 = vpop.xlane.xlu1 %5759  ;;  %v5779_v11 = vsel %vm3465_vm4, %v17130_v9, 0.0 }
 0xf6f   : > { %v5764_v13 = vsub.f32 %v5748_v58, %v5760_v10  ;;  %5780 = vadd.xlane.f32.xlu0 %v5779_v11  ;;  %v6301_v10 = vld [vmem:[%s20285_s4] sm:$0xff]  ;;  %v6302_v11 = vld [vmem:[%s20285_s4 + $0x8] sm:$0xff] }
 0xf71   : > { %v5771_v14 = vmul.f32 1.442695, %v5764_v13  ;;  %v6303_v13 = vld [vmem:[%s20285_s4 + $0x10] sm:$0xff] }
 0xf73   : > { %17133 = vpow2.f32 %v5771_v14  ;;  %v16471_v14 = vpack.c.bf16 %v6302_v11, %v6301_v10  ;;  %v6307_v10 = vld [vmem:[%s20285_s4 + $0x30] sm:$0xff]  ;;  %v6308_v11 = vld [vmem:[%s20285_s4 + $0x38] sm:$0xff] }
 0xf75   : > { %v17132_v15 = vpop.eup %17131 }
 0xf76   : > { %v5776_v17 = vsel %vm3465_vm4, %v17132_v15, 0.0 }
 0xf77   : > { %5777 = vadd.xlane.f32.xlu1 %v5776_v17 }
 0xf7d   : > { %v17134_v12 = vpop.eup %17133 }
 0xf7e   : > { %v5782_v18 = vsel %vm3465_vm4, %v17134_v12, 0.0 }
 0xf7f   : > { %5783 = vadd.xlane.f32.xlu1 %v5782_v18  ;;  %v6306_v18 = vld [vmem:[%s20285_s4 + $0x28] sm:$0xff] }
 0xff4   : > { %v5775_v19 = vpop.xlane.xlu0 %5774 }
 0xff5   : > { %17135 = vrcp.f32 %v5775_v19 }
 0xffc   : > { %v5781_v20 = vpop.xlane.xlu0 %5780 }
 0xffd   : > { %17137 = vrcp.f32 %v5781_v20 }
 0xfff   : > { %v17136_v22 = vpop.eup %17135 }
0x1000   : > { %v5789_v23 = vmul.f32 %v17136_v22, %v17128_v3  ;;  %v6214_v3 = vld [vmem:[%s20284_s0] sm:$0xff]  ;;  %s20287_s0 = sld [smem:[#allocation57_spill]] }
0x1001   : > { %v16465_v6 = vpack.c.bf16 %v6215_v5, %v6214_v3  ;;  %v14250_v3 = vld [vmem:[%s20288_s8 + $0x60] sm:$0xff]  ;;  %v14251_v5 = vld [vmem:[%s20288_s8 + $0x68] sm:$0xff] }
0x1002   : > { %15397 = vmatmul.mubr.msk.f32.vlgmr.msra.gmra.mrb[34].mxu0 %vm3465_vm4, %v5789_v23 }
0x1003   : > { %15405 = vmatpush3.msra.mxu0 %v5355_v24  ;;  %15406 = vmatprep.mubr.msk.f32.mxu0 %vm17869_vm2, %v17870_v45  ;;  %v14180_v24 = vld [vmem:[#allocation22] ss:$0 sm:$0xff] }
0x1004   : > { %v5778_v25 = vpop.xlane.xlu1 %5777  ;;  %16458 = vmatprep.subr.bf16.mxu0 %v17867_v16 }
0x1005   : > { %17139 = vrcp.f32 %v5778_v25 }
0x1007   : > { %v17138_v26 = vpop.eup %17137 }
0x1008   : > { %v5791_v57 = vmul.f32 %v17138_v26, %v17130_v9  ;;  %v16468_v9 = vpack.c.bf16 %v6217_v8, %v6216_v7  ;;  %v14181_v26 = vld [vmem:[#allocation21] ss:$0 sm:$0xff]  ;;  %v14252_v7 = vld [vmem:[%s20288_s8 + $0x70] sm:$0xff] }
0x1009   : > { %v14253_v8 = vld [vmem:[%s20288_s8 + $0x78] sm:$0xff] }
0x100a   : > { %15407 = vmatmul.mubr.msk.f32.vlgmr.msra.gmra.mrb[36].mxu0 %vm3465_vm4, %v5791_v57 }
0x100b   : > { %15422 = vmatprep.mubr.msk.f32.mxu0 %vm17869_vm2, %v17870_v45  ;;  %16460 = vmatpush3.bf16.msra.mxu0 %v16459_v39  ;;  %v19039_v39 = vpack.c.bf16 %v14193_v38, %v14192_v37  ;;  %v14220_v38 = vld [vmem:[%s20287_s0 + $0x40] sm:$0xff] }
0x100c   : > { %v5784_v27 = vpop.xlane.xlu1 %5783  ;;  %16461 = vmatprep.subr.bf16.mxu0 %v17867_v16 }
0x100d   : > { %17141 = vrcp.f32 %v5784_v27  ;;  %v6419_v27 = vld [vmem:[%s20286_s6] sm:$0xff] }
0x100f   : > { %v17140_v29 = vpop.eup %17139  ;;  %16463 = vmatpush3.bf16.msra.mxu0 %v16462_v41  ;;  %v14205_v41 = vld [vmem:[%s20286_s6 + $0x68] sm:$0xff] }
0x1010   : > { %v5790_v30 = vmul.f32 %v17140_v29, %v17132_v15  ;;  %16470 = vmatprep.subr.bf16.mxu0 %v17867_v16  ;;  %v6304_v15 = vld [vmem:[%s20285_s4 + $0x18] sm:$0xff] }
0x1011   : > { %v16474_v17 = vpack.c.bf16 %v6304_v15, %v6303_v13  ;;  %v16480_v13 = vpack.c.bf16 %v6308_v11, %v6307_v10 }
0x1012   : > { %15402 = vmatmul.mubr.msk.f32.vlgmr.msra.gmra.mrb[46].mxu1 %vm3465_vm4, %v5790_v30  ;;  %v19013_v30 = vpack.c.bf16 %v6420_v28, %v6419_v27  ;;  %v6753_v27 = vld [vmem:[%s20287_s0 + $0x8] sm:$0xff] }
0x1013   : > { %15410 = vmatpush3.msra.mxu1 %v5438_v31  ;;  %15411 = vmatprep.mubr.msk.f32.mxu1 %vm17869_vm2, %v17870_v45 }
0x1014   : > { %16464 = vmatprep.subr.bf16.mxu1 %v17867_v16 }
0x1017   : > { %v17142_v32 = vpop.eup %17141 }
0x1018   : > { %v5792_v33 = vmul.f32 %v17142_v32, %v17134_v12  ;;  %v6305_v12 = vld [vmem:[%s20285_s4 + $0x20] sm:$0xff]  ;;  %v6421_v32 = vld [vmem:[%s20286_s6 + $0x10] sm:$0xff]  ;;  %s20289_s4 = sld [smem:[#allocation54_spill]] }
0x1019   : > { %v16477_v19 = vpack.c.bf16 %v6306_v18, %v6305_v12  ;;  %v14198_v12 = vld [vmem:[%s20286_s6 + $0x48] sm:$0xff] }
0x101a   : > { %15412 = vmatmul.mubr.msk.f32.vlgmr.msra.gmra.mrb[48].mxu1 %vm3465_vm4, %v5792_v33  ;;  %v6422_v33 = vld [vmem:[%s20286_s6 + $0x18] sm:$0xff] }
0x101b   : > { %15433 = vmatprep.mubr.msk.f32.mxu1 %vm17869_vm2, %v17870_v45  ;;  %16466 = vmatpush3.bf16.msra.mxu1 %v16465_v6  ;;  %v19111_v6 = vpack.c.bf16 %v14251_v5, %v14250_v3 }
0x101c   : > { %16467 = vmatprep.subr.bf16.mxu1 %v17867_v16 }
0x101f   : > { %16469 = vmatpush3.bf16.msra.mxu1 %v16468_v9  ;;  %v19119_v9 = vpack.c.bf16 %v14253_v8, %v14252_v7  ;;  %v14243_v7 = vld [vmem:[%s20288_s8 + $0x40] sm:$0xff]  ;;  %v14244_v8 = vld [vmem:[%s20288_s8 + $0x48] sm:$0xff] }
0x1020   : > { %16482 = vmatprep.subr.bf16.mxu1 %v17867_v16 }
0x10d5   : > { %v5862_v34 = vpop.f32.mrb[34].mxu0 }
0x10d6   : > { %v15398_v35 = vpop.f32.mrb[35].mxu0 }
0x10d7   : > { %v14190_v35 = vld [vmem:[%s20286_s6 + $0x20] sm:$0xff] }
0x10dd   : > { %v6008_v42 = vpop.f32.mrb[36].mxu0 }
0x10de   : > { %v15408_v43 = vpop.f32.mrb[37].mxu0  ;;  %6090 = vrot.lane.b32.xlu1 %v6008_v42, %s20281_s1  ;;  %v19047_v42 = vpack.c.bf16 %v14205_v41, %v14204_v40  ;;  %v14221_v40 = vld [vmem:[%s20287_s0 + $0x48] sm:$0xff] }
0x10df   : > { %v14206_v43 = vld [vmem:[%s20286_s6 + $0x70] sm:$0xff] }
0x10e5   : > { %v5935_v44 = vpop.f32.mrb[46].mxu1 }
0x10e6   : > { %6086 = vrot.lane.b32.xlu0 %v5935_v44, %s20282_s2  ;;  %v15403_v46 = vpop.f32.mrb[47].mxu1  ;;  %v14207_v44 = vld [vmem:[%s20286_s6 + $0x78] sm:$0xff] }
0x10e7   : > { %v19055_v46 = vpack.c.bf16 %v14207_v44, %v14206_v43  ;;  %v19172_v44 = vpack.c.bf16 %v14221_v40, %v14220_v38 }
0x10ed   : > { %v6081_v47 = vpop.f32.mrb[48].mxu1 }
0x10ee   : > { %6094 = vrot.lane.b32.xlu1 %v6081_v47, %s20283_s3  ;;  %v15413_v48 = vpop.f32.mrb[49].mxu1  ;;  %v14213_v47 = vld [vmem:[%s20287_s0 + $0x20] sm:$0xff] }
0x10ef   : > { %v14214_v48 = vld [vmem:[%s20287_s0 + $0x28] sm:$0xff] }
0x1150   : > { %v6091_v50 = vpop.permute.xlu1 %6090 }
0x1158   : > { %v6087_v49 = vpop.permute.xlu0 %6086 }
0x1159   : > { %v6097_v51 = vsel %vm3465_vm4, %v5862_v34, %v6087_v49  ;;  %v19023_v34 = vpack.c.bf16 %v6422_v33, %v6421_v32  ;;  %v19063_v49 = vpack.c.bf16 %v14214_v48, %v14213_v47  ;;  %v6754_v32 = vld [vmem:[%s20287_s0 + $0x10] sm:$0xff]  ;;  %v6755_v33 = vld [vmem:[%s20287_s0 + $0x18] sm:$0xff] }
0x115a   : > { %v6098_v53 = vsel %vm4123_vm5, %v6097_v51, %v6091_v50  ;;  %v14215_v50 = vld [vmem:[%s20287_s0 + $0x30] sm:$0xff]  ;;  %v14216_v51 = vld [vmem:[%s20287_s0 + $0x38] sm:$0xff] }
0x115b   : > { %v14222_v47 = vld [vmem:[%s20287_s0 + $0x50] sm:$0xff]  ;;  %v14223_v48 = vld [vmem:[%s20287_s0 + $0x58] sm:$0xff] }
0x1160   : > { %v6095_v54 = vpop.permute.xlu1 %6094 }
0x1161   : > { %v6099_v55 = vsel %vm4125_vm6, %v6098_v53, %v6095_v54  ;;  %v19071_v53 = vpack.c.bf16 %v14216_v51, %v14215_v50  ;;  %v14227_v54 = vld [vmem:[%s20287_s0 + $0x60] sm:$0xff]  ;;  %v19181_v50 = vpack.c.bf16 %v14223_v48, %v14222_v47 }
0x1162   : > { %15423 = vmatmul.mubr.msk.f32.vlgmr.msra.gmra.mrb[38].mxu0 %vm2482_vm3, %v6099_v55  ;;  %v14228_v55 = vld [vmem:[%s20287_s0 + $0x68] sm:$0xff]  ;;  %v19264_v48 = vld [vmem:[%s20289_s4 + $0x2] ss:$0 sm:$0xff] }
0x1163   : > { %15452 = vmatprep.mubr.msk.f32.mxu0 %vm17869_vm2, %v17870_v45  ;;  %16472 = vmatpush3.bf16.msra.mxu0 %v16471_v14  ;;  %v14182_v14 = vld [vmem:[#allocation18] ss:$0 sm:$0xff] }
0x1164   : > { %16473 = vmatprep.subr.bf16.mxu0 %v17867_v16 }
0x1167   : > { %16475 = vmatpush3.bf16.msra.mxu0 %v16474_v17  ;;  %v14197_v17 = vld [vmem:[%s20286_s6 + $0x40] sm:$0xff] }
0x1168   : > { %16476 = vmatprep.subr.bf16.mxu0 %v17867_v16 }
0x116b   : > { %16478 = vmatpush3.bf16.msra.mxu0 %v16477_v19 }
0x116c   : > { %16479 = vmatprep.subr.bf16.mxu0 %v17867_v16 }
0x116f   : > { %16481 = vmatpush3.bf16.msra.mxu0 %v16480_v13 }
0x1170   : > { %16494 = vmatprep.subr.bf16.mxu0 %v17867_v16 }
0x1235   : > { %v6180_v58 = vpop.f32.mrb[38].mxu0 }
0x1236   : > { %v6181_v59 = vadd.f32 %v14178_v56, %v6180_v58  ;;  %v15424_v60 = vpop.f32.mrb[39].mxu0  ;;  %v19079_v56 = vpack.c.bf16 %v14228_v55, %v14227_v54  ;;  %v14229_v58 = vld [vmem:[%s20287_s0 + $0x70] sm:$0xff]  ;;  %v7082_v54 = vld [vmem:[%s20288_s8] sm:$0xff]  ;;  %v7083_v55 = vld [vmem:[%s20288_s8 + $0x8] sm:$0xff] }
0x1238   : > { %v6184_v61 = vsel %vm2482_vm3, %v6181_v59, 0.0 }
0x1239   : > { %6185 = vadd.xlane.f32.xlu0 %v6184_v61  ;;  %v14236_v61 = vld [vmem:[%s20288_s8 + $0x20] sm:$0xff] }
0x12c6   : > { %v6186_v62 = vpop.xlane.xlu0 %6185 }
0x12c7   : > { %v6187_v63 = vmul.f32 0.03125, %v6186_v62  ;;  %v14237_v62 = vld [vmem:[%s20288_s8 + $0x28] sm:$0xff] }
0x12c9   : > { %v6188_v0 = vsub.f32 %v6181_v59, %v6187_v63  ;;  %v14230_v59 = vld [vmem:[%s20287_s0 + $0x78] sm:$0xff]  ;;  %v19095_v63 = vpack.c.bf16 %v14237_v62, %v14236_v61  ;;  %v7084_v61 = vld [vmem:[%s20288_s8 + $0x10] sm:$0xff] }
0x12ca   : > { %v19087_v60 = vpack.c.bf16 %v14230_v59, %v14229_v58  ;;  %v19189_v59 = vpack.c.bf16 %v7083_v55, %v7082_v54  ;;  %v7085_v62 = vld [vmem:[%s20288_s8 + $0x18] sm:$0xff] }
0x12cb   : > { %v6189_v1 = vmul.f32 %v6188_v0, %v6188_v0  ;;  %v19203_v3 = vpack.c.bf16 %v7085_v62, %v7084_v61 }
0x12cd   : > { %v6190_v2 = vsel %vm2482_vm3, %v6189_v1, 0.0  ;;  %v14239_v1 = vld [vmem:[%s20288_s8 + $0x38] sm:$0xff] }
0x12ce   : > { %6191 = vadd.xlane.f32.xlu1 %v6190_v2 }
0x135b   : > { %v6192_v20 = vpop.xlane.xlu1 %6191 }
0x135c   : > { %v6193_v21 = vmul.f32 0.03125, %v6192_v20 }
0x135e   : > { %v6194_v22 = vadd.f32 1e-05, %v6193_v21  ;;  %v19135_v21 = vpack.c.bf16 %v14198_v12, %v14197_v17  ;;  %v14246_v17 = vld [vmem:[%s20288_s8 + $0x58] sm:$0xff] }
0x1360   : > { %17143 = vrsqrt.f32 %v6194_v22  ;;  %v14199_v22 = vld [vmem:[%s20286_s6 + $0x50] sm:$0xff] }
0x136a   : > { %v17144_v23 = vpop.eup %17143 }
0x136b   : > { %v6196_v25 = vmul.f32 %v17144_v23, %v6188_v0  ;;  %v14238_v0 = vld [vmem:[%s20288_s8 + $0x30] sm:$0xff]  ;;  %v14200_v23 = vld [vmem:[%s20286_s6 + $0x58] sm:$0xff]  ;;  %s20290_s6 = sld [smem:[#allocation53_spill]] }
0x136c   : > { %v19103_v2 = vpack.c.bf16 %v14239_v1, %v14238_v0  ;;  %v19200_v1 = vld [vmem:[%s20289_s4 + $0x3] ss:$0 sm:$0xff] }
0x136d   : > { %v6204_v57 = vmul.f32 %v14180_v24, %v6196_v25  ;;  %v19141_v25 = vpack.c.bf16 %v14200_v23, %v14199_v22 }
0x136f   : > { %v6212_v29 = vadd.f32 %v14181_v26, %v6204_v57  ;;  %v6752_v57 = vld [vmem:[%s20287_s0] sm:$0xff]  ;;  %s20291_s0 = sld [smem:[#allocation55_spill]] }
0x1371   : > { %v19016_v31 = vadd.f32 %v6212_v29, %v18812_v4  ;;  %v19031_v4 = vpack.c.bf16 %v14191_v36, %v14190_v35  ;;  %v19151_v29 = vpack.c.bf16 %v6753_v27, %v6752_v57  ;;  %v19159_v35 = vld [vmem:[%s20289_s4 + $0x1] ss:$0 sm:$0xff]  ;;  %v19162_v36 = vpack.c.bf16 %v6755_v33, %v6754_v32  ;;  %v19226_v12 = vld [vmem:[%s20290_s6 + $0x3] ss:$0 sm:$0xff]  ;;  %v19261_v47 = vld [vmem:[%s20290_s6] ss:$0 sm:$0xff] }
0x1372   : > { %v19197_v0 = vld [vmem:[%s20290_s6 + $0x1] ss:$0 sm:$0xff] }
0x1373   : > { %15434 = vmatmul.mubr.msk.f32.vlgmr.msra.gmra.mrb[50].mxu1 %vm2482_vm3, %v19016_v31 }
0x1374   : > { %16484 = vmatpush3.bf16.msra.mxu1 %v19013_v30  ;;  %15463 = vmatprep.mubr.msk.f32.mxu1 %vm17869_vm2, %v17870_v45 }
0x1375   : > { %16485 = vmatprep.subr.bf16.mxu1 %v17867_v16  ;;  %v19243_v23 = vld [vmem:[%s20291_s0 + $0x1] ss:$0 sm:$0xff] }
0x1378   : > { %16487 = vmatpush3.bf16.msra.mxu1 %v19023_v34 }
0x1379   : > { %16488 = vmatprep.subr.bf16.mxu1 %v17867_v16 }
0x137b   : > { %15464 = vmatmul.mubr.msk.f32.vlgmr.msra.gmra.mrb[52].mxu1 %vm2482_vm3, %v18577_v52 }
0x137c   : > { %16490 = vmatpush3.bf16.msra.mxu1 %v19031_v4  ;;  %15474 = vmatprep.mubr.msk.f32.mxu1 %vm17869_vm2, %v17870_v45 }
0x137d   : > { %16491 = vmatprep.subr.bf16.mxu1 %v17867_v16 }
0x1380   : > { %16493 = vmatpush3.bf16.msra.mxu1 %v19039_v39 }
0x1381   : > { %16500 = vmatprep.subr.bf16.mxu1 %v17867_v16 }
0x1383   : > { %15475 = vmatmul.mubr.msk.f32.vlgmr.msra.gmra.mrb[54].mxu1 %vm2482_vm3, %v18577_v52 }
0x1384   : > { %16502 = vmatpush3.bf16.msra.mxu1 %v19047_v42  ;;  %15496 = vmatprep.mubr.msk.f32.mxu1 %vm17869_vm2, %v17870_v45 }
0x1385   : > { %16503 = vmatprep.subr.bf16.mxu1 %v17867_v16 }
0x1388   : > { %16505 = vmatpush3.bf16.msra.mxu1 %v19055_v46 }
0x1389   : > { %16512 = vmatprep.subr.bf16.mxu1 %v17867_v16 }
0x138b   : > { %15497 = vmatmul.mubr.msk.f32.vlgmr.msra.gmra.mrb[56].mxu1 %vm2482_vm3, %v18577_v52 }
0x138c   : > { %16514 = vmatpush3.bf16.msra.mxu1 %v19063_v49  ;;  %15518 = vmatprep.mubr.msk.f32.mxu1 %vm17869_vm2, %v17870_v45 }
0x138d   : > { %16515 = vmatprep.subr.bf16.mxu1 %v17867_v16 }
0x1390   : > { %16517 = vmatpush3.bf16.msra.mxu1 %v19071_v53 }
0x1391   : > { %16524 = vmatprep.subr.bf16.mxu1 %v17867_v16 }
0x1393   : > { %15519 = vmatmul.mubr.msk.f32.vlgmr.msra.gmra.mrb[58].mxu1 %vm2482_vm3, %v18577_v52 }
0x1394   : > { %16526 = vmatpush3.bf16.msra.mxu1 %v19079_v56  ;;  %15540 = vmatprep.mubr.msk.f32.mxu1 %vm17869_vm2, %v17870_v45 }
0x1395   : > { %16527 = vmatprep.subr.bf16.mxu1 %v17867_v16 }
0x1398   : > { %16529 = vmatpush3.bf16.msra.mxu1 %v19087_v60 }
0x1399   : > { %16536 = vmatprep.subr.bf16.mxu1 %v17867_v16 }
0x139b   : > { %15541 = vmatmul.mubr.msk.f32.vlgmr.msra.gmra.mrb[60].mxu1 %vm2482_vm3, %v18577_v52 }
0x139c   : > { %16538 = vmatpush3.bf16.msra.mxu1 %v19095_v63  ;;  %15562 = vmatprep.mubr.msk.f32.mxu1 %vm17869_vm2, %v17870_v45 }
0x139d   : > { %16539 = vmatprep.subr.bf16.mxu1 %v17867_v16 }
0x13a0   : > { %16541 = vmatpush3.bf16.msra.mxu1 %v19103_v2 }
0x13a1   : > { %16548 = vmatprep.subr.bf16.mxu1 %v17867_v16 }
0x13a3   : > { %15563 = vmatmul.mubr.msk.f32.vlgmr.msra.gmra.mrb[62].mxu1 %vm2482_vm3, %v18577_v52 }
0x13a4   : > { %16550 = vmatpush3.bf16.msra.mxu1 %v19111_v6  ;;  %15584 = vmatprep.mubr.msk.f32.mxu1 %vm17869_vm2, %v17870_v45 }
0x13a5   : > { %16551 = vmatprep.subr.bf16.mxu1 %v17867_v16 }
0x13a8   : > { %16553 = vmatpush3.bf16.msra.mxu1 %v19119_v9 }
0x13a9   : > { %15592 = vmatprep.subr.mxu1 %v17870_v45 }
0x13ab   : > { %15585 = vmatmul.mubr.msk.f32.vlgmr.msra.gmra.mrb[64].mxu1 %vm2482_vm3, %v18577_v52 }
0x13ac   : > { %15594 = vmatprep.mubr.msk.f32.mxu1 %vm17869_vm2, %v17870_v45 }
0x1446   : > { %v6294_v15 = vpop.f32.mrb[50].mxu1 }
0x1447   : > { %v6295_v18 = vadd.f32 %v14182_v14, %v6294_v15  ;;  %v15435_v19 = vpop.f32.mrb[51].mxu1  ;;  %v19214_v14 = vpack.c.bf16 %v14244_v8, %v14243_v7  ;;  %v14245_v15 = vld [vmem:[%s20288_s8 + $0x50] sm:$0xff]  ;;  %s20299_s8 = sld [smem:[#allocation48_spill]] }
0x1449   : > { %vm6298_vm9 = vcmp.ge.f32.partialorder %v6295_v18, 0.0  ;;  %v6299_v20 = vmul.f32 0.1, %v6295_v18 }
0x144b   : > { %v6300_v24 = vsel %vm6298_vm9, %v6295_v18, %v6299_v20  ;;  %v19229_v18 = vpack.c.bf16 %v14246_v17, %v14245_v15 }
0x144c   : > { %15453 = vmatmul.mubr.msk.f32.vlgmr.msra.gmra.mrb[40].mxu0 %vm4344_vm8, %v6300_v24  ;;  %v19246_v24 = vld [vmem:[%s20289_s4] ss:$0 sm:$0xff]  ;;  %s20292_s4 = sld [smem:[#allocation56_spill]] }
0x144d   : > { %16496 = vmatpush3.bf16.msra.mxu0 %v19135_v21  ;;  %15485 = vmatprep.mubr.msk.f32.mxu0 %vm17869_vm2, %v17870_v45 }
0x144e   : > { %v19145_v26 = vpop.f32.mrb[52].mxu1  ;;  %16497 = vmatprep.subr.bf16.mxu0 %v17867_v16 }
0x144f   : > { %v15465_v28 = vpop.f32.mrb[53].mxu1  ;;  %v6500_v32 = vadd.f32 %v19246_v24, %v19145_v26 }
0x1451   : > { %16499 = vmatpush3.bf16.msra.mxu0 %v19141_v25 }
0x1452   : > { %16506 = vmatprep.subr.bf16.mxu0 %v17867_v16 }
0x1454   : > { %15486 = vmatmul.mubr.msk.f32.vlgmr.msra.gmra.mrb[42].mxu0 %vm2482_vm3, %v18577_v52 }
0x1455   : > { %16508 = vmatpush3.bf16.msra.mxu0 %v19151_v29  ;;  %15507 = vmatprep.mubr.msk.f32.mxu0 %vm17869_vm2, %v17870_v45 }
0x1456   : > { %v6582_v37 = vpop.f32.mrb[54].mxu1  ;;  %16509 = vmatprep.subr.bf16.mxu0 %v17867_v16 }
0x1457   : > { %v6583_v41 = vadd.f32 %v19159_v35, %v6582_v37  ;;  %v15476_v43 = vpop.f32.mrb[55].mxu1 }
0x1459   : > { %16511 = vmatpush3.bf16.msra.mxu0 %v19162_v36  ;;  %15593 = vmatpush3.xpose.msk.msra.mxu1 %vm3465_vm4, %v6583_v41 }
0x145a   : > { %16518 = vmatprep.subr.bf16.mxu0 %v17867_v16  ;;  %15602 = vmatprep.subr.mxu1 %v17870_v45 }
0x145c   : > { %15508 = vmatmul.mubr.msk.f32.vlgmr.msra.gmra.mrb[44].mxu0 %vm2482_vm3, %v18577_v52 }
0x145d   : > { %16520 = vmatpush3.bf16.msra.mxu0 %v19172_v44  ;;  %15529 = vmatprep.mubr.msk.f32.mxu0 %vm17869_vm2, %v17870_v45 }
0x145e   : > { %v6748_v51 = vpop.f32.mrb[56].mxu1  ;;  %16521 = vmatprep.subr.bf16.mxu0 %v17867_v16 }
0x145f   : > { %v15498_v58 = vpop.f32.mrb[57].mxu1  ;;  %v6749_v13 = vadd.f32 %v19200_v1, %v6748_v51 }
0x1460   : > { %v19274_v58 = vld [vmem:[%s20290_s6 + $0x2] ss:$0 sm:$0xff]  ;;  %s20295_s6 = sld [smem:[#allocation46_spill]] }
0x1461   : > { %16523 = vmatpush3.bf16.msra.mxu0 %v19181_v50 }
0x1462   : > { %16530 = vmatprep.subr.bf16.mxu0 %v17867_v16 }
0x1464   : > { %15530 = vmatmul.mubr.msk.f32.vlgmr.msra.gmra.mrb[46].mxu0 %vm2482_vm3, %v18577_v52 }
0x1465   : > { %16532 = vmatpush3.bf16.msra.mxu0 %v19189_v59  ;;  %15551 = vmatprep.mubr.msk.f32.mxu0 %vm17869_vm2, %v17870_v45 }
0x1466   : > { %v6912_v5 = vpop.f32.mrb[58].mxu1  ;;  %16533 = vmatprep.subr.bf16.mxu0 %v17867_v16 }
0x1467   : > { %v6913_v10 = vadd.f32 %v19197_v0, %v6912_v5  ;;  %v15520_v11 = vpop.f32.mrb[59].mxu1 }
0x1469   : > { %16535 = vmatpush3.bf16.msra.mxu0 %v19203_v3  ;;  %15595 = vmatmul.mubr.msk.f32.vlgmr.msra.gmra.mrb[66].mxu1 %vm3465_vm4, %v6913_v10  ;;  %v19281_v10 = vld [vmem:[%s20291_s0] ss:$0 sm:$0xff] }
0x146a   : > { %15603 = vmatpush3.xpose.msk.msra.mxu1 %vm3465_vm4, %v6749_v13  ;;  %16542 = vmatprep.subr.bf16.mxu0 %v17867_v16 }
0x146b   : > { %15604 = vmatprep.mubr.msk.f32.mxu1 %vm17869_vm2, %v17870_v45  ;;  %15612 = vmatprep.subr.mxu1 %v17870_v45 }
0x146c   : > { %15552 = vmatmul.mubr.msk.f32.vlgmr.msra.gmra.mrb[48].mxu0 %vm2482_vm3, %v18577_v52 }
0x146d   : > { %16544 = vmatpush3.bf16.msra.mxu0 %v19214_v14  ;;  %15573 = vmatprep.mubr.msk.f32.mxu0 %vm17869_vm2, %v17870_v45 }
0x146e   : > { %v7078_v19 = vpop.f32.mrb[60].mxu1  ;;  %16545 = vmatprep.subr.bf16.mxu0 %v17867_v16 }
0x146f   : > { %v7079_v20 = vadd.f32 %v19226_v12, %v7078_v19  ;;  %v15542_v22 = vpop.f32.mrb[61].mxu1 }
0x1471   : > { %16547 = vmatpush3.bf16.msra.mxu0 %v19229_v18  ;;  %15605 = vmatmul.mubr.msk.f32.vlgmr.msra.gmra.mrb[68].mxu1 %vm3465_vm4, %v7079_v20 }
0x1472   : > { %15587 = vmatprep.subr.mxu0 %v17870_v45  ;;  %15614 = vmatprep.mubr.msk.f32.mxu1 %vm17869_vm2, %v17870_v45 }
0x1474   : > { %15574 = vmatmul.mubr.msk.f32.vlgmr.msra.gmra.mrb[50].mxu0 %vm2482_vm3, %v18577_v52 }
0x1475   : > { %15589 = vmatprep.mubr.msk.f32.mxu0 %vm17869_vm2, %v17870_v45 }
0x1476   : > { %v7242_v57 = vpop.f32.mrb[62].mxu1 }
0x1477   : > { %v7243_v27 = vadd.f32 %v19243_v23, %v7242_v57  ;;  %v15564_v28 = vpop.f32.mrb[63].mxu1 }
0x1479   : > { %15613 = vmatpush3.msra.mxu1 %v7243_v27 }
0x147a   : > { %15588 = vmatpush3.xpose.msk.msra.mxu0 %vm3465_vm4, %v6500_v32  ;;  %15622 = vmatprep.subr.mxu1 %v17870_v45 }
0x147b   : > { %15597 = vmatprep.subr.mxu0 %v17870_v45 }
0x147e   : > { %v19256_v33 = vpop.f32.mrb[64].mxu1 }
0x147f   : > { %v15586_v37 = vpop.f32.mrb[65].mxu1 }
0x151f   : > { %v19258_v38 = vpop.f32.mrb[40].mxu0 }
0x1520   : > { %v15454_v40 = vpop.f32.mrb[41].mxu0 }
0x1527   : > { %v6665_v41 = vpop.f32.mrb[42].mxu0 }
0x1528   : > { %v15487_v43 = vpop.f32.mrb[43].mxu0  ;;  %v6666_v55 = vadd.f32 %v19264_v48, %v6665_v41 }
0x152f   : > { %v6829_v26 = vpop.f32.mrb[44].mxu0 }
0x1530   : > { %v6830_v51 = vadd.f32 %v19261_v47, %v6829_v26  ;;  %v15509_v54 = vpop.f32.mrb[45].mxu0 }
0x1532   : > { %15590 = vmatmul.mubr.msk.f32.vlgmr.msra.gmra.mrb[52].mxu0 %vm3465_vm4, %v6830_v51 }
0x1533   : > { %15598 = vmatpush3.xpose.msk.msra.mxu0 %vm3465_vm4, %v6666_v55  ;;  %15599 = vmatprep.mubr.msk.f32.mxu0 %vm17869_vm2, %v17870_v45 }
0x1534   : > { %15607 = vmatprep.subr.mxu0 %v17870_v45 }
0x1537   : > { %v6995_v61 = vpop.f32.mrb[46].mxu0 }
0x1538   : > { %v6996_v62 = vadd.f32 %v19274_v58, %v6995_v61  ;;  %v15531_v5 = vpop.f32.mrb[47].mxu0 }
0x153a   : > { %15600 = vmatmul.mubr.msk.f32.vlgmr.msra.gmra.mrb[54].mxu0 %vm3465_vm4, %v6996_v62 }
0x153b   : > { %15609 = vmatprep.mubr.msk.f32.mxu0 %vm17869_vm2, %v17870_v45 }
0x153c   : > { %v7561_v7 = vpop.f32.mrb[66].mxu1 }
0x153d   : > { %v15596_v8 = vpop.f32.mrb[67].mxu1  ;;  %v7565_v32 = vmul.f32 0.35355338, %v7561_v7 }
0x153f   : > { %v7159_v11 = vpop.f32.mrb[48].mxu0  ;;  %v7723_v41 = vsel %vm3465_vm4, %v7565_v32, -inf }
0x1540   : > { %v7160_v13 = vadd.f32 %v19281_v10, %v7159_v11  ;;  %v15553_v15 = vpop.f32.mrb[49].mxu0 }
0x1542   : > { %15608 = vmatpush3.msra.mxu0 %v7160_v13 }
0x1543   : > { %15617 = vmatprep.subr.mxu0 %v17870_v45 }
0x1544   : > { %v7715_v17 = vpop.f32.mrb[68].mxu1 }
0x1545   : > { %v15606_v19 = vpop.f32.mrb[69].mxu1  ;;  %v7719_v40 = vmul.f32 0.35355338, %v7715_v17 }
0x1547   : > { %v7325_v20 = vpop.f32.mrb[50].mxu0  ;;  %v7729_v55 = vsel %vm3465_vm4, %v7719_v40, -inf }
0x1548   : > { %v15575_v22 = vpop.f32.mrb[51].mxu0 }
0x1605   : > { %v7484_v57 = vpop.f32.mrb[52].mxu0 }
0x1606   : > { %v7488_v27 = vmul.f32 0.35355338, %v7484_v57  ;;  %v15591_v28 = vpop.f32.mrb[53].mxu0 }
0x1608   : > { %v7720_v37 = vsel %vm3465_vm4, %v7488_v27, -inf }
0x1609   : > { %7721 = vmax.xlane.f32.xlu0 %v7720_v37 }
0x160d   : > { %v7638_v43 = vpop.f32.mrb[54].mxu0  ;;  %7724 = vmax.xlane.f32.xlu0 %v7723_v41 }
0x160e   : > { %v7642_v26 = vmul.f32 0.35355338, %v7638_v43  ;;  %v15601_v51 = vpop.f32.mrb[55].mxu0 }
0x1610   : > { %v7726_v54 = vsel %vm3465_vm4, %v7642_v26, -inf }
0x1611   : > { %7727 = vmax.xlane.f32.xlu1 %v7726_v54  ;;  %7730 = vmax.xlane.f32.xlu0 %v7729_v55 }
0x1696   : > { %v7722_v61 = vpop.xlane.xlu0 %7721 }
0x1697   : > { %v7732_v62 = vsub.f32 %v7488_v27, %v7722_v61 }
0x1699   : > { %v7736_v5 = vmul.f32 1.442695, %v7732_v62  ;;  %v19294_v62 = vld [vmem:[%s20291_s0 + $0x2] ss:$0 sm:$0xff] }
0x169a   : > { %v7725_v7 = vpop.xlane.xlu0 %7724 }
0x169b   : > { %17145 = vpow2.f32 %v7736_v5  ;;  %v7733_v8 = vsub.f32 %v7565_v32, %v7725_v7 }
0x169d   : > { %v7738_v11 = vmul.f32 1.442695, %v7733_v8  ;;  %v7326_v8 = vadd.f32 %v19294_v62, %v7325_v20 }
0x169e   : > { %v7728_v13 = vpop.xlane.xlu1 %7727  ;;  %v7731_v15 = vpop.xlane.xlu0 %7730 }
0x169f   : > { %17147 = vpow2.f32 %v7738_v11  ;;  %v7734_v17 = vsub.f32 %v7642_v26, %v7728_v13  ;;  %v7735_v19 = vsub.f32 %v7719_v40, %v7731_v15  ;;  %v19298_v11 = vld [vmem:[%s20291_s0 + $0x3] ss:$0 sm:$0xff]  ;;  %s20293_s0 = sld [smem:[#allocation52_spill]] }
0x16a1   : > { %v7740_v22 = vmul.f32 1.442695, %v7734_v17  ;;  %v7742_v57 = vmul.f32 1.442695, %v7735_v19  ;;  %v7409_v17 = vadd.f32 %v19298_v11, %v19256_v33  ;;  %v8071_v33 = vld [vmem:[%s20292_s4] sm:$0xff] }
0x16a3   : > { %17149 = vpow2.f32 %v7740_v22 }
0x16a4   : > { %17151 = vpow2.f32 %v7742_v57 }
0x16a5   : > { %v17146_v28 = vpop.eup %17145 }
0x16a6   : > { %v7744_v37 = vsel %vm3465_vm4, %v17146_v28, 0.0 }
0x16a7   : > { %7745 = vadd.xlane.f32.xlu1 %v7744_v37 }
0x16a9   : > { %v17148_v41 = vpop.eup %17147 }
0x16aa   : > { %v7747_v27 = vsel %vm3465_vm4, %v17148_v41, 0.0 }
0x16ab   : > { %7748 = vadd.xlane.f32.xlu0 %v7747_v27  ;;  %v8074_v27 = vld [vmem:[%s20292_s4 + $0x18] sm:$0xff] }
0x16ad   : > { %v17150_v32 = vpop.eup %17149 }
0x16ae   : > { %v17152_v43 = vpop.eup %17151  ;;  %v7750_v51 = vsel %vm3465_vm4, %v17150_v32, 0.0 }
0x16af   : > { %7751 = vadd.xlane.f32.xlu1 %v7750_v51  ;;  %v7753_v40 = vsel %vm3465_vm4, %v17152_v43, 0.0 }
0x16b0   : > { %7754 = vadd.xlane.f32.xlu0 %v7753_v40 }
0x1734   : > { %v7746_v26 = vpop.xlane.xlu1 %7745 }
0x1735   : > { %17153 = vrcp.f32 %v7746_v26 }
0x1738   : > { %v7749_v54 = vpop.xlane.xlu0 %7748 }
0x1739   : > { %17155 = vrcp.f32 %v7749_v54 }
0x173c   : > { %v7752_v55 = vpop.xlane.xlu1 %7751 }
0x173d   : > { %17157 = vrcp.f32 %v7752_v55  ;;  %v7755_v61 = vpop.xlane.xlu0 %7754 }
0x173e   : > { %17159 = vrcp.f32 %v7755_v61  ;;  %v14184_v61 = vld [vmem:[#allocation19] ss:$0 sm:$0xff] }
0x173f   : > { %v17154_v5 = vpop.eup %17153 }
0x1740   : > { %v7760_v7 = vmul.f32 %v17154_v5, %v17146_v28  ;;  %v8072_v28 = vld [vmem:[%s20292_s4 + $0x8] sm:$0xff]  ;;  %v6386_v5 = vadd.f32 %v14184_v61, %v19258_v38 }
0x1741   : > { %v19322_v37 = vpack.c.bf16 %v8072_v28, %v8071_v33 }
0x1742   : > { %15610 = vmatmul.mubr.msk.f32.vlgmr.msra.gmra.mrb[56].mxu0 %vm3465_vm4, %v7760_v7  ;;  %v6389_v7 = vsel %vm2482_vm3, %v6386_v5, 0.0 }
0x1743   : > { %v17156_v13 = vpop.eup %17155  ;;  %15618 = vmatpush3.msra.mxu0 %v7326_v8  ;;  %15619 = vmatprep.mubr.msk.f32.mxu0 %vm17869_vm2, %v17870_v45 }
0x1744   : > { %v7761_v15 = vmul.f32 %v17156_v13, %v17148_v41  ;;  %16554 = vmatprep.subr.bf16.mxu0 %v17867_v16  ;;  %v8073_v41 = vld [vmem:[%s20292_s4 + $0x10] sm:$0xff]  ;;  %s20294_s4 = sld [smem:[#allocation47_spill]] }
0x1746   : > { %15615 = vmatmul.mubr.msk.f32.vlgmr.msra.gmra.mrb[70].mxu1 %vm3465_vm4, %v7761_v15 }
0x1747   : > { %v17158_v19 = vpop.eup %17157  ;;  %15623 = vmatpush3.msra.mxu1 %v7409_v17  ;;  %15624 = vmatprep.mubr.msk.f32.mxu1 %vm17869_vm2, %v17870_v45 }
0x1748   : > { %v17160_v20 = vpop.eup %17159  ;;  %v7762_v22 = vmul.f32 %v17158_v19, %v17150_v32  ;;  %16560 = vmatprep.subr.bf16.mxu1 %v17867_v16 }
0x1749   : > { %v7763_v57 = vmul.f32 %v17160_v20, %v17152_v43 }
0x174a   : > { %15620 = vmatmul.mubr.msk.f32.vlgmr.msra.gmra.mrb[58].mxu0 %vm3465_vm4, %v7762_v22 }
0x174b   : > { %15625 = vmatmul.mubr.msk.f32.vlgmr.msra.gmra.mrb[72].mxu1 %vm3465_vm4, %v7763_v57  ;;  %15635 = vmatprep.mubr.msk.f32.mxu0 %vm17869_vm2, %v17870_v45  ;;  %v19348_v57 = vld [vmem:[%s20293_s0] ss:$0 sm:$0xff]  ;;  %s20298_s0 = sld [smem:[#allocation49_spill]] }
0x174c   : > { %16562 = vmatpush3.bf16.msra.mxu1 %v19013_v30  ;;  %15646 = vmatprep.mubr.msk.f32.mxu1 %vm17869_vm2, %v17870_v45  ;;  %v19328_v30 = vpack.c.bf16 %v8074_v27, %v8073_v41 }
0x174d   : > { %16563 = vmatprep.subr.bf16.mxu1 %v17867_v16  ;;  %16556 = vmatpush3.bf16.msra.mxu0 %v19322_v37 }
0x174e   : > { %16557 = vmatprep.subr.bf16.mxu0 %v17867_v16 }
0x1750   : > { %16565 = vmatpush3.bf16.msra.mxu1 %v19023_v34 }
0x1751   : > { %16572 = vmatprep.subr.bf16.mxu1 %v17867_v16  ;;  %16559 = vmatpush3.bf16.msra.mxu0 %v19328_v30 }
0x1752   : > { %16566 = vmatprep.subr.bf16.mxu0 %v17867_v16 }
0x1815   : > { %v7833_v32 = vpop.f32.mrb[56].mxu0 }
0x1816   : > { %v15611_v34 = vpop.f32.mrb[57].mxu0 }
0x1819   : > { %v7906_v43 = vpop.f32.mrb[70].mxu1 }
0x181a   : > { %8057 = vrot.lane.b32.xlu1 %v7906_v43, %s20282_s2  ;;  %v15616_v51 = vpop.f32.mrb[71].mxu1 }
0x181d   : > { %v7979_v40 = vpop.f32.mrb[58].mxu0 }
0x181e   : > { %v8052_v26 = vpop.f32.mrb[72].mxu1  ;;  %v15621_v54 = vpop.f32.mrb[59].mxu0  ;;  %8061 = vrot.lane.b32.xlu0 %v7979_v40, %s20281_s1 }
0x181f   : > { %8065 = vrot.lane.b32.xlu1 %v8052_v26, %s20283_s3  ;;  %v15626_v55 = vpop.f32.mrb[73].mxu1 }
0x183d   : > { %6390 = vadd.xlane.f32.xlu0 %v6389_v7 }
0x188c   : > { %v8058_v8 = vpop.permute.xlu1 %8057 }
0x188d   : > { %v8068_v13 = vsel %vm3465_vm4, %v7833_v32, %v8058_v8 }
0x1890   : > { %v8062_v15 = vpop.permute.xlu0 %8061 }
0x1891   : > { %v8069_v17 = vsel %vm4123_vm5, %v8068_v13, %v8062_v15  ;;  %v8066_v19 = vpop.permute.xlu1 %8065  ;;  %v14271_v15 = vld [vmem:[%s20294_s4] ss:$0 sm:$0xff]  ;;  %s20297_s4 = sld [smem:[#allocation45_spill]] }
0x1892   : > { %v8070_v20 = vsel %vm4125_vm6, %v8069_v17, %v8066_v19  ;;  %v14272_v19 = vld [vmem:[%s20295_s6] ss:$0 sm:$0xff]  ;;  %s20296_s6 = sld [smem:[#allocation43_spill]] }
0x1893   : > { %15636 = vmatmul.mubr.msk.f32.vlgmr.msra.gmra.mrb[60].mxu0 %vm2482_vm3, %v8070_v20 }
0x1894   : > { %16568 = vmatpush3.bf16.msra.mxu0 %v19031_v4  ;;  %15657 = vmatprep.mubr.msk.f32.mxu0 %vm17869_vm2, %v17870_v45 }
0x1895   : > { %16569 = vmatprep.subr.bf16.mxu0 %v17867_v16 }
0x1898   : > { %16571 = vmatpush3.bf16.msra.mxu0 %v19039_v39 }
0x1899   : > { %16578 = vmatprep.subr.bf16.mxu0 %v17867_v16 }
0x18ca   : > { %v6391_v38 = vpop.xlane.xlu0 %6390 }
0x18cb   : > { %v6392_v22 = vmul.f32 0.03125, %v6391_v38 }
0x18cd   : > { %v6393_v33 = vsub.f32 %v6386_v5, %v6392_v22 }
0x18cf   : > { %v6394_v32 = vmul.f32 %v6393_v33, %v6393_v33 }
0x18d1   : > { %v6395_v34 = vsel %vm2482_vm3, %v6394_v32, 0.0 }
0x1966   : > { %v8151_v28 = vpop.f32.mrb[60].mxu0 }
0x1967   : > { %v8152_v41 = vadd.f32 %v19348_v57, %v8151_v28  ;;  %v15637_v27 = vpop.f32.mrb[61].mxu0 }
0x1968   : > { %v14186_v27 = vld [vmem:[#allocation25] ss:$0 sm:$0xff] }
0x1969   : > { %v8155_v4 = vsel %vm2482_vm3, %v8152_v41, 0.0 }
0x196a   : > { %8156 = vadd.xlane.f32.xlu1 %v8155_v4 }
0x196e   : > { %6396 = vadd.xlane.f32.xlu1 %v6395_v34 }
0x19f7   : > { %v8157_v39 = vpop.xlane.xlu1 %8156 }
0x19f8   : > { %v8158_v43 = vmul.f32 0.03125, %v8157_v39 }
0x19fa   : > { %v8159_v51 = vsub.f32 %v8152_v41, %v8158_v43 }
0x19fb   : > { %v6397_v61 = vpop.xlane.xlu1 %6396 }
0x19fc   : > { %v8160_v40 = vmul.f32 %v8159_v51, %v8159_v51  ;;  %v6398_v7 = vmul.f32 0.03125, %v6397_v61 }
0x19fe   : > { %v8161_v26 = vsel %vm2482_vm3, %v8160_v40, 0.0  ;;  %v6399_v8 = vadd.f32 1e-05, %v6398_v7 }
0x19ff   : > { %8162 = vadd.xlane.f32.xlu0 %v8161_v26 }
0x1a8c   : > { %v8163_v54 = vpop.xlane.xlu0 %8162 }
0x1a8d   : > { %v8164_v55 = vmul.f32 0.03125, %v8163_v54 }
0x1a8f   : > { %v8165_v5 = vadd.f32 1e-05, %v8164_v55 }
0x1a91   : > { %17161 = vrsqrt.f32 %v8165_v5 }
0x1a92   : > { %17163 = vrsqrt.f32 %v6399_v8 }
0x1a9b   : > { %v17162_v13 = vpop.eup %17161 }
0x1a9c   : > { %v8167_v17 = vmul.f32 %v17162_v13, %v8159_v51  ;;  %v17164_v28 = vpop.eup %17163 }
0x1a9d   : > { %v6401_v41 = vmul.f32 %v17164_v28, %v6393_v33 }
0x1a9e   : > { %v8175_v20 = vmul.f32 %v14271_v15, %v8167_v17 }
0x1aa0   : > { %v8183_v38 = vadd.f32 %v14272_v19, %v8175_v20 }
0x1aa2   : > { %v19357_v22 = vadd.f32 %v8183_v38, %v18577_v52  ;;  %v6409_v52 = vmul.f32 %v14186_v27, %v6401_v41 }
0x1aa4   : > { %15647 = vmatmul.mubr.msk.f32.vlgmr.msra.gmra.mrb[74].mxu1 %vm2482_vm3, %v19357_v22  ;;  %15658 = vmatmul.mubr.msk.f32.vlgmr.msra.gmra.mrb[62].mxu0 %vm2482_vm3, %v19357_v22 }
0x1aa5   : > { %16574 = vmatpush3.bf16.msra.mxu1 %v19135_v21  ;;  %16580 = vmatpush3.bf16.msra.mxu0 %v19047_v42  ;;  %v14187_v42 = vld [vmem:[#allocation24] ss:$0 sm:$0xff] }
0x1aa6   : > { %16575 = vmatprep.subr.bf16.mxu1 %v17867_v16  ;;  %16581 = vmatprep.subr.bf16.mxu0 %v17867_v16  ;;  %v6417_v21 = vadd.f32 %v14187_v42, %v6409_v52 }
0x1aa7   : > { %15668 = vmatprep.mubr.msk.f32.mxu1 %vm17869_vm2, %v17870_v45  ;;  %15679 = vmatprep.mubr.msk.f32.mxu0 %vm17869_vm2, %v17870_v45 }
0x1aa9   : > { %16577 = vmatpush3.bf16.msra.mxu1 %v19141_v25  ;;  %16583 = vmatpush3.bf16.msra.mxu0 %v19055_v46  ;;  %v19390_v46 = vadd.f32 %v6417_v21, %v19016_v31 }
0x1aaa   : > { %16584 = vmatprep.subr.bf16.mxu1 %v17867_v16  ;;  %16590 = vmatprep.subr.bf16.mxu0 %v17867_v16 }
0x1aac   : > { %15669 = vmatmul.mubr.msk.f32.vlgmr.msra.gmra.mrb[76].mxu1 %vm2482_vm3, %v19357_v22  ;;  %15680 = vmatmul.mubr.msk.f32.vlgmr.msra.gmra.mrb[64].mxu0 %vm2482_vm3, %v19357_v22 }
0x1aad   : > { %16586 = vmatpush3.bf16.msra.mxu1 %v19151_v29  ;;  %16592 = vmatpush3.bf16.msra.mxu0 %v19063_v49 }
0x1aae   : > { %16587 = vmatprep.subr.bf16.mxu1 %v17867_v16  ;;  %16593 = vmatprep.subr.bf16.mxu0 %v17867_v16 }
0x1aaf   : > { %15690 = vmatprep.mubr.msk.f32.mxu1 %vm17869_vm2, %v17870_v45  ;;  %15701 = vmatprep.mubr.msk.f32.mxu0 %vm17869_vm2, %v17870_v45 }
0x1ab1   : > { %16589 = vmatpush3.bf16.msra.mxu1 %v19162_v36  ;;  %16595 = vmatpush3.bf16.msra.mxu0 %v19071_v53 }
0x1ab2   : > { %16596 = vmatprep.subr.bf16.mxu1 %v17867_v16  ;;  %16602 = vmatprep.subr.bf16.mxu0 %v17867_v16 }
0x1ab4   : > { %15691 = vmatmul.mubr.msk.f32.vlgmr.msra.gmra.mrb[78].mxu1 %vm2482_vm3, %v19390_v46  ;;  %15702 = vmatmul.mubr.msk.f32.vlgmr.msra.gmra.mrb[66].mxu0 %vm2482_vm3, %v19390_v46 }
0x1ab5   : > { %16598 = vmatpush3.bf16.msra.mxu1 %v19172_v44  ;;  %16604 = vmatpush3.bf16.msra.mxu0 %v19079_v56 }
0x1ab6   : > { %16599 = vmatprep.subr.bf16.mxu1 %v17867_v16  ;;  %16605 = vmatprep.subr.bf16.mxu0 %v17867_v16 }
0x1ab7   : > { %15712 = vmatprep.mubr.msk.f32.mxu1 %vm17869_vm2, %v17870_v45  ;;  %15723 = vmatprep.mubr.msk.f32.mxu0 %vm17869_vm2, %v17870_v45 }
0x1ab9   : > { %16601 = vmatpush3.bf16.msra.mxu1 %v19181_v50  ;;  %16607 = vmatpush3.bf16.msra.mxu0 %v19087_v60 }
0x1aba   : > { %16608 = vmatprep.subr.bf16.mxu1 %v17867_v16  ;;  %16614 = vmatprep.subr.bf16.mxu0 %v17867_v16 }
0x1abc   : > { %15713 = vmatmul.mubr.msk.f32.vlgmr.msra.gmra.mrb[80].mxu1 %vm2482_vm3, %v19390_v46  ;;  %15724 = vmatmul.mubr.msk.f32.vlgmr.msra.gmra.mrb[68].mxu0 %vm2482_vm3, %v19390_v46 }
0x1abd   : > { %16610 = vmatpush3.bf16.msra.mxu1 %v19189_v59  ;;  %16616 = vmatpush3.bf16.msra.mxu0 %v19095_v63 }
0x1abe   : > { %16611 = vmatprep.subr.bf16.mxu1 %v17867_v16  ;;  %16617 = vmatprep.subr.bf16.mxu0 %v17867_v16 }
0x1abf   : > { %15734 = vmatprep.mubr.msk.f32.mxu1 %vm17869_vm2, %v17870_v45  ;;  %15745 = vmatprep.mubr.msk.f32.mxu0 %vm17869_vm2, %v17870_v45 }
0x1ac1   : > { %16613 = vmatpush3.bf16.msra.mxu1 %v19203_v3  ;;  %16619 = vmatpush3.bf16.msra.mxu0 %v19103_v2 }
0x1ac2   : > { %16620 = vmatprep.subr.bf16.mxu1 %v17867_v16  ;;  %16626 = vmatprep.subr.bf16.mxu0 %v17867_v16 }
0x1ac4   : > { %15735 = vmatmul.mubr.msk.f32.vlgmr.msra.gmra.mrb[82].mxu1 %vm2482_vm3, %v19390_v46  ;;  %15746 = vmatmul.mubr.msk.f32.vlgmr.msra.gmra.mrb[70].mxu0 %vm2482_vm3, %v19390_v46 }
0x1ac5   : > { %16622 = vmatpush3.bf16.msra.mxu1 %v19214_v14  ;;  %16628 = vmatpush3.bf16.msra.mxu0 %v19111_v6 }
0x1ac6   : > { %16623 = vmatprep.subr.bf16.mxu1 %v17867_v16  ;;  %16629 = vmatprep.subr.bf16.mxu0 %v17867_v16 }
0x1ac7   : > { %15756 = vmatprep.mubr.msk.f32.mxu1 %vm17869_vm2, %v17870_v45  ;;  %15767 = vmatprep.mubr.msk.f32.mxu0 %vm17869_vm2, %v17870_v45 }
0x1ac9   : > { %16625 = vmatpush3.bf16.msra.mxu1 %v19229_v18  ;;  %16631 = vmatpush3.bf16.msra.mxu0 %v19119_v9 }
0x1aca   : > { %15770 = vmatprep.subr.mxu1 %v17870_v45  ;;  %15780 = vmatprep.subr.mxu0 %v17870_v45 }
0x1acc   : > { %15757 = vmatmul.mubr.msk.f32.vlgmr.msra.gmra.mrb[84].mxu1 %vm2482_vm3, %v19390_v46  ;;  %15768 = vmatmul.mubr.msk.f32.vlgmr.msra.gmra.mrb[72].mxu0 %vm2482_vm3, %v19390_v46 }
0x1acd   : > { %15772 = vmatprep.mubr.msk.f32.mxu1 %vm17869_vm2, %v17870_v45  ;;  %15782 = vmatprep.mubr.msk.f32.mxu0 %vm17869_vm2, %v17870_v45 }
0x1b77   : > { %v8254_v31 = vpop.f32.mrb[74].mxu1  ;;  %v8324_v49 = vpop.f32.mrb[62].mxu0 }
0x1b78   : > { %v8255_v53 = vadd.f32 %v19246_v24, %v8254_v31  ;;  %v15648_v56 = vpop.f32.mrb[75].mxu1  ;;  %v15659_v60 = vpop.f32.mrb[63].mxu0  ;;  %v8325_v3 = vadd.f32 %v19159_v35, %v8324_v49 }
0x1b7a   : > { %15771 = vmatpush3.xpose.msk.msra.mxu1 %vm3465_vm4, %v8255_v53 }
0x1b7b   : > { %15775 = vmatprep.subr.mxu1 %v17870_v45 }
0x1b7f   : > { %v8394_v63 = vpop.f32.mrb[76].mxu1  ;;  %v8464_v2 = vpop.f32.mrb[64].mxu0 }
0x1b80   : > { %v8395_v6 = vadd.f32 %v19264_v48, %v8394_v63  ;;  %v15670_v9 = vpop.f32.mrb[77].mxu1  ;;  %v15681_v25 = vpop.f32.mrb[65].mxu0  ;;  %v8465_v18 = vadd.f32 %v19200_v1, %v8464_v2 }
0x1b82   : > { %15781 = vmatpush3.xpose.msk.msra.mxu0 %vm3465_vm4, %v8395_v6 }
0x1b83   : > { %15790 = vmatprep.subr.mxu0 %v17870_v45 }
0x1b87   : > { %v8537_v29 = vpop.f32.mrb[78].mxu1  ;;  %v8607_v36 = vpop.f32.mrb[66].mxu0 }
0x1b88   : > { %v8538_v44 = vadd.f32 %v19261_v47, %v8537_v29  ;;  %v15692_v50 = vpop.f32.mrb[79].mxu1  ;;  %v15703_v59 = vpop.f32.mrb[67].mxu0  ;;  %v8608_v14 = vadd.f32 %v19197_v0, %v8607_v36 }
0x1b8a   : > { %15773 = vmatmul.mubr.msk.f32.vlgmr.msra.gmra.mrb[86].mxu1 %vm3465_vm4, %v8538_v44 }
0x1b8b   : > { %15776 = vmatpush3.xpose.msk.msra.mxu1 %vm3465_vm4, %v8325_v3  ;;  %15777 = vmatprep.mubr.msk.f32.mxu1 %vm17869_vm2, %v17870_v45 }
0x1b8c   : > { %15785 = vmatprep.subr.mxu1 %v17870_v45 }
0x1b8e   : > { %15778 = vmatmul.mubr.msk.f32.vlgmr.msra.gmra.mrb[88].mxu1 %vm3465_vm4, %v8608_v14 }
0x1b8f   : > { %15786 = vmatpush3.xpose.msk.msra.mxu1 %vm3465_vm4, %v8465_v18  ;;  %v8677_v24 = vpop.f32.mrb[80].mxu1  ;;  %v8747_v47 = vpop.f32.mrb[68].mxu0  ;;  %15787 = vmatprep.mubr.msk.f32.mxu1 %vm17869_vm2, %v17870_v45 }
0x1b90   : > { %v8678_v35 = vadd.f32 %v19274_v58, %v8677_v24  ;;  %v8748_v48 = vadd.f32 %v19226_v12, %v8747_v47  ;;  %v15714_v33 = vpop.f32.mrb[81].mxu1  ;;  %v15725_v4 = vpop.f32.mrb[69].mxu0  ;;  %15795 = vmatprep.subr.mxu1 %v17870_v45 }
0x1b92   : > { %15783 = vmatmul.mubr.msk.f32.vlgmr.msra.gmra.mrb[74].mxu0 %vm3465_vm4, %v8678_v35  ;;  %15788 = vmatmul.mubr.msk.f32.vlgmr.msra.gmra.mrb[90].mxu1 %vm3465_vm4, %v8748_v48 }
0x1b93   : > { %15792 = vmatprep.mubr.msk.f32.mxu0 %vm17869_vm2, %v17870_v45  ;;  %15797 = vmatprep.mubr.msk.f32.mxu1 %vm17869_vm2, %v17870_v45 }
0x1b97   : > { %v8817_v0 = vpop.f32.mrb[82].mxu1  ;;  %v8887_v1 = vpop.f32.mrb[70].mxu0 }
0x1b98   : > { %v8818_v58 = vadd.f32 %v19281_v10, %v8817_v0  ;;  %v8888_v12 = vadd.f32 %v19243_v23, %v8887_v1  ;;  %v15736_v32 = vpop.f32.mrb[83].mxu1  ;;  %v15747_v34 = vpop.f32.mrb[71].mxu0 }
0x1b9a   : > { %15791 = vmatpush3.msra.mxu0 %v8818_v58  ;;  %15796 = vmatpush3.msra.mxu1 %v8888_v12 }
0x1b9b   : > { %15800 = vmatprep.subr.mxu0 %v17870_v45  ;;  %15805 = vmatprep.subr.mxu1 %v17870_v45 }
0x1b9f   : > { %v8957_v39 = vpop.f32.mrb[84].mxu1  ;;  %v19482_v43 = vpop.f32.mrb[72].mxu0 }
0x1ba0   : > { %v15758_v51 = vpop.f32.mrb[85].mxu1  ;;  %v15769_v40 = vpop.f32.mrb[73].mxu0  ;;  %v8958_v48 = vadd.f32 %v19294_v62, %v8957_v39  ;;  %v9028_v0 = vadd.f32 %v19298_v11, %v19482_v43 }
0x1c5d   : > { %v9103_v26 = vpop.f32.mrb[86].mxu1 }
0x1c5e   : > { %v9107_v54 = vmul.f32 0.35355338, %v9103_v26  ;;  %v15774_v55 = vpop.f32.mrb[87].mxu1 }
0x1c60   : > { %v9339_v10 = vsel %vm3465_vm4, %v9107_v54, -inf }
0x1c61   : > { %9340 = vmax.xlane.f32.xlu0 %v9339_v10  ;;  %v9180_v23 = vpop.f32.mrb[88].mxu1 }
0x1c62   : > { %v9184_v61 = vmul.f32 0.35355338, %v9180_v23  ;;  %v15779_v5 = vpop.f32.mrb[89].mxu1 }
0x1c64   : > { %v9342_v7 = vsel %vm3465_vm4, %v9184_v61, -inf }
0x1c65   : > { %v9257_v8 = vpop.f32.mrb[74].mxu0  ;;  %9343 = vmax.xlane.f32.xlu1 %v9342_v7  ;;  %v9334_v13 = vpop.f32.mrb[90].mxu1 }
0x1c66   : > { %v9261_v15 = vmul.f32 0.35355338, %v9257_v8  ;;  %v9338_v17 = vmul.f32 0.35355338, %v9334_v13  ;;  %v15784_v19 = vpop.f32.mrb[75].mxu0  ;;  %v15789_v20 = vpop.f32.mrb[91].mxu1 }
0x1c68   : > { %v9345_v38 = vsel %vm3465_vm4, %v9261_v15, -inf  ;;  %v9348_v28 = vsel %vm3465_vm4, %v9338_v17, -inf }
0x1c69   : > { %9346 = vmax.xlane.f32.xlu0 %v9345_v38  ;;  %9349 = vmax.xlane.f32.xlu1 %v9348_v28  ;;  %v9793_v38 = vld [vmem:[%s20296_s6] sm:$0xff]  ;;  %v9794_v28 = vld [vmem:[%s20296_s6 + $0x8] sm:$0xff] }
0x1cee   : > { %v9341_v41 = vpop.xlane.xlu0 %9340 }
0x1cef   : > { %v9351_v27 = vsub.f32 %v9107_v54, %v9341_v41  ;;  %v16639_v41 = vpack.c.bf16 %v9794_v28, %v9793_v38 }
0x1cf1   : > { %v9355_v52 = vmul.f32 1.442695, %v9351_v27  ;;  %v9796_v27 = vld [vmem:[%s20296_s6 + $0x18] sm:$0xff] }
0x1cf2   : > { %v9344_v42 = vpop.xlane.xlu1 %9343 }
0x1cf3   : > { %17165 = vpow2.f32 %v9355_v52  ;;  %v9352_v21 = vsub.f32 %v9184_v61, %v9344_v42  ;;  %v9880_v42 = vld [vmem:[%s20297_s4] sm:$0xff] }
0x1cf5   : > { %v9357_v31 = vmul.f32 1.442695, %v9352_v21  ;;  %v9881_v21 = vld [vmem:[%s20297_s4 + $0x8] sm:$0xff] }
0x1cf6   : > { %v9347_v49 = vpop.xlane.xlu0 %9346  ;;  %v9350_v53 = vpop.xlane.xlu1 %9349 }
0x1cf7   : > { %17167 = vpow2.f32 %v9357_v31  ;;  %v9353_v56 = vsub.f32 %v9261_v15, %v9347_v49  ;;  %v9354_v60 = vsub.f32 %v9338_v17, %v9350_v53  ;;  %v9882_v31 = vld [vmem:[%s20297_s4 + $0x10] sm:$0xff]  ;;  %v16645_v49 = vpack.c.bf16 %v9881_v21, %v9880_v42  ;;  %v9883_v53 = vld [vmem:[%s20297_s4 + $0x18] sm:$0xff] }
0x1cf9   : > { %v9359_v63 = vmul.f32 1.442695, %v9353_v56  ;;  %v9361_v2 = vmul.f32 1.442695, %v9354_v60  ;;  %v16648_v56 = vpack.c.bf16 %v9883_v53, %v9882_v31  ;;  %v9884_v60 = vld [vmem:[%s20297_s4 + $0x20] sm:$0xff] }
0x1cfb   : > { %17169 = vpow2.f32 %v9359_v63  ;;  %v9885_v63 = vld [vmem:[%s20297_s4 + $0x28] sm:$0xff] }
0x1cfc   : > { %17171 = vpow2.f32 %v9361_v2  ;;  %v16651_v2 = vpack.c.bf16 %v9885_v63, %v9884_v60 }
0x1cfd   : > { %v17166_v6 = vpop.eup %17165 }
0x1cfe   : > { %v9363_v9 = vsel %vm3465_vm4, %v17166_v6, 0.0 }
0x1cff   : > { %9364 = vadd.xlane.f32.xlu0 %v9363_v9 }
0x1d01   : > { %v17168_v25 = vpop.eup %17167 }
0x1d02   : > { %v9366_v29 = vsel %vm3465_vm4, %v17168_v25, 0.0 }
0x1d03   : > { %9367 = vadd.xlane.f32.xlu1 %v9366_v29 }
0x1d05   : > { %v17170_v36 = vpop.eup %17169 }
0x1d06   : > { %v17172_v44 = vpop.eup %17171  ;;  %v9369_v50 = vsel %vm3465_vm4, %v17170_v36, 0.0 }
0x1d07   : > { %9370 = vadd.xlane.f32.xlu0 %v9369_v50  ;;  %v9372_v59 = vsel %vm3465_vm4, %v17172_v44, 0.0  ;;  %v14299_v50 = vld [vmem:[%s20299_s8] ss:$0 sm:$0xff]  ;;  %s20302_s8 = sld [smem:[#allocation74_spill]] }
0x1d08   : > { %9373 = vadd.xlane.f32.xlu1 %v9372_v59 }
0x1d0d   : > { %v14310_v53 = vld [vmem:[%s20302_s8 + $0x30] sm:$0xff]  ;;  %v14311_v60 = vld [vmem:[%s20302_s8 + $0x38] sm:$0xff] }
0x1d8c   : > { %v9365_v3 = vpop.xlane.xlu0 %9364 }
0x1d8d   : > { %17173 = vrcp.f32 %v9365_v3 }
0x1d90   : > { %v9368_v14 = vpop.xlane.xlu1 %9367 }
0x1d91   : > { %17175 = vrcp.f32 %v9368_v14 }
0x1d94   : > { %v9371_v18 = vpop.xlane.xlu0 %9370 }
0x1d95   : > { %17177 = vrcp.f32 %v9371_v18  ;;  %v9374_v24 = vpop.xlane.xlu1 %9373  ;;  %v9886_v18 = vld [vmem:[%s20297_s4 + $0x30] sm:$0xff] }
0x1d96   : > { %17179 = vrcp.f32 %v9374_v24  ;;  %v9887_v24 = vld [vmem:[%s20297_s4 + $0x38] sm:$0xff]  ;;  %s20309_s4 = sld [smem:[#allocation71_spill]] }
0x1d97   : > { %v17174_v47 = vpop.eup %17173 }
0x1d98   : > { %v9379_v35 = vmul.f32 %v17174_v47, %v17166_v6  ;;  %v16654_v47 = vpack.c.bf16 %v9887_v24, %v9886_v18 }
0x1d9a   : > { %15793 = vmatmul.mubr.msk.f32.vlgmr.msra.gmra.mrb[76].mxu0 %vm3465_vm4, %v9379_v35 }
0x1d9b   : > { %v17176_v33 = vpop.eup %17175  ;;  %15801 = vmatpush3.msra.mxu0 %v8958_v48  ;;  %15802 = vmatprep.mubr.msk.f32.mxu0 %vm17869_vm2, %v17870_v45 }
0x1d9c   : > { %v9380_v4 = vmul.f32 %v17176_v33, %v17168_v25  ;;  %16632 = vmatprep.subr.bf16.mxu0 %v17867_v16 }
0x1d9e   : > { %15798 = vmatmul.mubr.msk.f32.vlgmr.msra.gmra.mrb[92].mxu1 %vm3465_vm4, %v9380_v4 }
0x1d9f   : > { %v17178_v1 = vpop.eup %17177  ;;  %15806 = vmatpush3.msra.mxu1 %v9028_v0  ;;  %15807 = vmatprep.mubr.msk.f32.mxu1 %vm17869_vm2, %v17870_v45 }
0x1da0   : > { %v17180_v62 = vpop.eup %17179  ;;  %v9381_v58 = vmul.f32 %v17178_v1, %v17170_v36  ;;  %16638 = vmatprep.subr.bf16.mxu1 %v17867_v16  ;;  %v14298_v36 = vld [vmem:[%s20298_s0] ss:$0 sm:$0xff]  ;;  %s20305_s0 = sld [smem:[#allocation73_spill]] }
0x1da1   : > { %v9382_v12 = vmul.f32 %v17180_v62, %v17172_v44  ;;  %v14302_v1 = vld [vmem:[%s20301_s9] ss:$0 sm:$0xff]  ;;  %s20303_s9 = sld [smem:[#allocation51_spill]] }
0x1da2   : > { %15803 = vmatmul.mubr.msk.f32.vlgmr.msra.gmra.mrb[78].mxu0 %vm3465_vm4, %v9381_v58 }
0x1da3   : > { %15808 = vmatmul.mubr.msk.f32.vlgmr.msra.gmra.mrb[94].mxu1 %vm3465_vm4, %v9382_v12  ;;  %16634 = vmatpush3.bf16.msra.mxu0 %v19322_v37 }
0x1da4   : > { %16635 = vmatprep.subr.bf16.mxu0 %v17867_v16  ;;  %15818 = vmatprep.mubr.msk.f32.mxu0 %vm17869_vm2, %v17870_v45 }
0x1da5   : > { %15829 = vmatprep.mubr.msk.f32.mxu1 %vm17869_vm2, %v17870_v45  ;;  %16640 = vmatpush3.bf16.msra.mxu1 %v16639_v41  ;;  %v14308_v41 = vld [vmem:[%s20302_s8 + $0x20] sm:$0xff] }
0x1da6   : > { %16641 = vmatprep.subr.bf16.mxu1 %v17867_v16  ;;  %v10332_v42 = vld [vmem:[%s20305_s0 + $0x8] sm:$0xff]  ;;  %v10333_v63 = vld [vmem:[%s20305_s0 + $0x10] sm:$0xff]  ;;  %v14341_v24 = vld [vmem:[%s20305_s0 + $0x58] sm:$0xff] }
0x1da7   : > { %16637 = vmatpush3.bf16.msra.mxu0 %v19328_v30  ;;  %v14340_v18 = vld [vmem:[%s20305_s0 + $0x50] sm:$0xff] }
0x1da8   : > { %16644 = vmatprep.subr.bf16.mxu0 %v17867_v16 }
0x1e6d   : > { %v9452_v11 = vpop.f32.mrb[76].mxu0 }
0x1e6e   : > { %v15794_v32 = vpop.f32.mrb[77].mxu0 }
0x1e71   : > { %v9525_v34 = vpop.f32.mrb[92].mxu1 }
0x1e72   : > { %9676 = vrot.lane.b32.xlu0 %v9525_v34, %s20282_s2  ;;  %v15799_v39 = vpop.f32.mrb[93].mxu1 }
0x1e75   : > { %v9598_v43 = vpop.f32.mrb[78].mxu0 }
0x1e76   : > { %v9671_v37 = vpop.f32.mrb[94].mxu1  ;;  %v15804_v51 = vpop.f32.mrb[79].mxu0  ;;  %9680 = vrot.lane.b32.xlu1 %v9598_v43, %s20281_s1 }
0x1e77   : > { %v15809_v40 = vpop.f32.mrb[95].mxu1  ;;  %v9998_v51 = vld [vmem:[%s20302_s8] sm:$0xff] }
0x1e78   : > { %v9999_v40 = vld [vmem:[%s20302_s8 + $0x8] sm:$0xff] }
0x1e7a   : > { %9684 = vrot.lane.b32.xlu1 %v9671_v37, %s20283_s3 }
0x1ee4   : > { %v9677_v26 = vpop.permute.xlu0 %9676 }
0x1ee5   : > { %v9687_v30 = vsel %vm3465_vm4, %v9452_v11, %v9677_v26  ;;  %v14315_v26 = vld [vmem:[%s20302_s8 + $0x40] sm:$0xff] }
0x1ee8   : > { %v9681_v54 = vpop.permute.xlu1 %9680 }
0x1ee9   : > { %v9688_v55 = vsel %vm4123_vm5, %v9687_v30, %v9681_v54  ;;  %v19559_v54 = vpack.c.bf16 %v9999_v40, %v9998_v51  ;;  %v14316_v30 = vld [vmem:[%s20302_s8 + $0x48] sm:$0xff] }
0x1eec   : > { %v9685_v10 = vpop.permute.xlu1 %9684 }
0x1eed   : > { %v9689_v23 = vsel %vm4125_vm6, %v9688_v55, %v9685_v10  ;;  %v19562_v55 = vpack.c.bf16 %v14316_v30, %v14315_v26  ;;  %v10000_v10 = vld [vmem:[%s20302_s8 + $0x10] sm:$0xff] }
0x1eee   : > { %15819 = vmatmul.mubr.msk.f32.vlgmr.msra.gmra.mrb[80].mxu0 %vm2482_vm3, %v9689_v23  ;;  %v10001_v23 = vld [vmem:[%s20302_s8 + $0x18] sm:$0xff]  ;;  %v14347_v30 = vld [vmem:[%s20305_s0 + $0x70] sm:$0xff] }
0x1eef   : > { %15848 = vmatprep.mubr.msk.f32.mxu0 %vm17869_vm2, %v17870_v45  ;;  %16646 = vmatpush3.bf16.msra.mxu0 %v16645_v49 }
0x1ef0   : > { %16647 = vmatprep.subr.bf16.mxu0 %v17867_v16 }
0x1ef3   : > { %16649 = vmatpush3.bf16.msra.mxu0 %v16648_v56 }
0x1ef4   : > { %16650 = vmatprep.subr.bf16.mxu0 %v17867_v16 }
0x1ef7   : > { %16652 = vmatpush3.bf16.msra.mxu0 %v16651_v2  ;;  %v10334_v2 = vld [vmem:[%s20305_s0 + $0x18] sm:$0xff] }
0x1ef8   : > { %16653 = vmatprep.subr.bf16.mxu0 %v17867_v16 }
0x1efb   : > { %16655 = vmatpush3.bf16.msra.mxu0 %v16654_v47 }
0x1efc   : > { %16668 = vmatprep.subr.bf16.mxu0 %v17867_v16 }
0x1fc1   : > { %v9759_v61 = vpop.f32.mrb[80].mxu0 }
0x1fc2   : > { %v9760_v5 = vadd.f32 %v19348_v57, %v9759_v61  ;;  %v15820_v7 = vpop.f32.mrb[81].mxu0  ;;  %v9795_v57 = vld [vmem:[%s20296_s6 + $0x10] sm:$0xff]  ;;  %s20300_s6 = sld [smem:[#allocation42_spill]] }
0x1fc3   : > { %v16642_v52 = vpack.c.bf16 %v9796_v27, %v9795_v57  ;;  %v14317_v61 = vld [vmem:[%s20302_s8 + $0x50] sm:$0xff]  ;;  %v14318_v7 = vld [vmem:[%s20302_s8 + $0x58] sm:$0xff]  ;;  %v14309_v27 = vld [vmem:[%s20302_s8 + $0x28] sm:$0xff] }
0x1fc4   : > { %v9763_v8 = vsel %vm2482_vm3, %v9760_v5, 0.0  ;;  %v19586_v31 = vpack.c.bf16 %v14309_v27, %v14308_v41 }
0x1fc5   : > { %9764 = vadd.xlane.f32.xlu0 %v9763_v8  ;;  %16643 = vmatpush3.bf16.msra.mxu1 %v16642_v52  ;;  %v19574_v8 = vpack.c.bf16 %v14318_v7, %v14317_v61  ;;  %v10331_v52 = vld [vmem:[%s20305_s0] sm:$0xff] }
0x1fc6   : > { %16656 = vmatprep.subr.bf16.mxu1 %v17867_v16  ;;  %v19588_v49 = vpack.c.bf16 %v10332_v42, %v10331_v52 }
0x1fc8   : > { %v14300_v35 = vld [vmem:[%s20300_s6] ss:$0 sm:$0xff]  ;;  %s20304_s6 = sld [smem:[#allocation50_spill]] }
0x1fce   : > { %v14305_v28 = vld [vmem:[%s20304_s6] ss:$0 sm:$0xff]  ;;  %s20307_s6 = sld [smem:[#allocation70_spill]] }
0x2052   : > { %v9765_v13 = vpop.xlane.xlu0 %9764 }
0x2053   : > { %v9766_v15 = vmul.f32 0.03125, %v9765_v13 }
0x2055   : > { %v9767_v17 = vsub.f32 %v9760_v5, %v9766_v15  ;;  %v19571_v5 = vpack.c.bf16 %v10001_v23, %v10000_v10  ;;  %v14348_v10 = vld [vmem:[%s20305_s0 + $0x78] sm:$0xff] }
0x2056   : > { %v19698_v7 = vpack.c.bf16 %v14348_v10, %v14347_v30  ;;  %v19791_v30 = vld [vmem:[%s20307_s6 + $0x3] ss:$0 sm:$0xff] }
0x2057   : > { %v9768_v19 = vmul.f32 %v9767_v17, %v9767_v17 }
0x2059   : > { %v9769_v20 = vsel %vm2482_vm3, %v9768_v19, 0.0 }
0x205a   : > { %9770 = vadd.xlane.f32.xlu1 %v9769_v20  ;;  %v14304_v20 = vld [vmem:[%s20303_s9] ss:$0 sm:$0xff]  ;;  %s20306_s9 = sld [smem:[#allocation75_spill]] }
0x2060   : > { %v14362_v51 = vld [vmem:[%s20306_s9 + $0x48] sm:$0xff]  ;;  %v14363_v23 = vld [vmem:[%s20306_s9 + $0x50] sm:$0xff]  ;;  %v14364_v61 = vld [vmem:[%s20306_s9 + $0x58] sm:$0xff] }
0x2061   : > { %v14368_v41 = vld [vmem:[%s20306_s9 + $0x60] sm:$0xff]  ;;  %v14370_v52 = vld [vmem:[%s20306_s9 + $0x70] sm:$0xff]  ;;  %v14371_v42 = vld [vmem:[%s20306_s9 + $0x78] sm:$0xff] }
0x20e7   : > { %v9771_v6 = vpop.xlane.xlu1 %9770 }
0x20e8   : > { %v9772_v9 = vmul.f32 0.03125, %v9771_v6  ;;  %v19602_v6 = vpack.c.bf16 %v14311_v60, %v14310_v53  ;;  %v19753_v53 = vld [vmem:[%s20307_s6] ss:$0 sm:$0xff] }
0x20ea   : > { %v9773_v25 = vadd.f32 1e-05, %v9772_v9  ;;  %v19604_v9 = vpack.c.bf16 %v10334_v2, %v10333_v63 }
0x20ec   : > { %17181 = vrsqrt.f32 %v9773_v25  ;;  %v14322_v25 = vld [vmem:[%s20302_s8 + $0x60] sm:$0xff] }
0x20f6   : > { %v17182_v29 = vpop.eup %17181 }
0x20f7   : > { %v9775_v44 = vmul.f32 %v17182_v29, %v9767_v17  ;;  %v14323_v29 = vld [vmem:[%s20302_s8 + $0x68] sm:$0xff] }
0x20f9   : > { %v9783_v59 = vmul.f32 %v14298_v36, %v9775_v44  ;;  %v14338_v36 = vld [vmem:[%s20305_s0 + $0x40] sm:$0xff]  ;;  %v14339_v44 = vld [vmem:[%s20305_s0 + $0x48] sm:$0xff] }
0x20fb   : > { %v9791_v3 = vadd.f32 %v14299_v50, %v9783_v59  ;;  %v19618_v50 = vpack.c.bf16 %v14323_v29, %v14322_v25  ;;  %v19620_v59 = vpack.c.bf16 %v14339_v44, %v14338_v36  ;;  %v19759_v36 = vld [vmem:[%s20307_s6 + $0x1] ss:$0 sm:$0xff] }
0x20fd   : > { %v9792_v14 = vadd.f32 %v9791_v3, %v19357_v22  ;;  %v14324_v3 = vld [vmem:[%s20302_s8 + $0x70] sm:$0xff] }
0x20ff   : > { %15830 = vmatmul.mubr.msk.f32.vlgmr.msra.gmra.mrb[96].mxu1 %vm2482_vm3, %v9792_v14  ;;  %v14325_v14 = vld [vmem:[%s20302_s8 + $0x78] sm:$0xff] }
0x2100   : > { %15859 = vmatprep.mubr.msk.f32.mxu1 %vm17869_vm2, %v17870_v45  ;;  %16658 = vmatpush3.bf16.msra.mxu1 %v19559_v54  ;;  %v19634_v47 = vpack.c.bf16 %v14325_v14, %v14324_v3  ;;  %v19765_v3 = vld [vmem:[%s20307_s6 + $0x2] ss:$0 sm:$0xff] }
0x2101   : > { %16659 = vmatprep.subr.bf16.mxu1 %v17867_v16 }
0x2104   : > { %16661 = vmatpush3.bf16.msra.mxu1 %v19571_v5 }
0x2105   : > { %16662 = vmatprep.subr.bf16.mxu1 %v17867_v16 }
0x21d2   : > { %v9873_v48 = vpop.f32.mrb[96].mxu1 }
0x21d3   : > { %v9874_v33 = vadd.f32 %v14300_v35, %v9873_v48  ;;  %v15831_v4 = vpop.f32.mrb[97].mxu1  ;;  %v19636_v35 = vpack.c.bf16 %v14341_v24, %v14340_v18  ;;  %v14331_v48 = vld [vmem:[%s20305_s0 + $0x20] sm:$0xff] }
0x21d4   : > { %v10661_v4 = vld [vmem:[%s20306_s9] sm:$0xff] }
0x21d5   : > { %vm9877_vm10 = vcmp.ge.f32.partialorder %v9874_v33, 0.0  ;;  %v9878_v0 = vmul.f32 0.1, %v9874_v33 }
0x21d7   : > { %v9879_v22 = vsel %vm9877_vm10, %v9874_v33, %v9878_v0  ;;  %v14332_v33 = vld [vmem:[%s20305_s0 + $0x28] sm:$0xff] }
0x21d8   : > { %15849 = vmatmul.mubr.msk.f32.vlgmr.msra.gmra.mrb[82].mxu0 %vm4344_vm8, %v9879_v22  ;;  %v10662_v0 = vld [vmem:[%s20306_s9 + $0x8] sm:$0xff]  ;;  %v19650_v22 = vpack.c.bf16 %v14332_v33, %v14331_v48 }
0x21d9   : > { %15881 = vmatprep.mubr.msk.f32.mxu0 %vm17869_vm2, %v17870_v45  ;;  %16670 = vmatpush3.bf16.msra.mxu0 %v19562_v55 }
0x21da   : > { %16671 = vmatprep.subr.bf16.mxu0 %v17867_v16 }
0x21dd   : > { %16673 = vmatpush3.bf16.msra.mxu0 %v19574_v8 }
0x21de   : > { %16680 = vmatprep.subr.bf16.mxu0 %v17867_v16 }
0x22ab   : > { %v9964_v62 = vpop.f32.mrb[82].mxu0 }
0x22ac   : > { %v9965_v58 = vadd.f32 %v14302_v1, %v9964_v62  ;;  %v15850_v12 = vpop.f32.mrb[83].mxu0  ;;  %v19652_v1 = vpack.c.bf16 %v10662_v0, %v10661_v4  ;;  %v14333_v62 = vld [vmem:[%s20305_s0 + $0x30] sm:$0xff] }
0x22ad   : > { %v10663_v12 = vld [vmem:[%s20306_s9 + $0x10] sm:$0xff] }
0x22ae   : > { %v9968_v11 = vsel %vm2482_vm3, %v9965_v58, 0.0 }
0x22af   : > { %9969 = vadd.xlane.f32.xlu0 %v9968_v11  ;;  %v10664_v11 = vld [vmem:[%s20306_s9 + $0x18] sm:$0xff] }
0x233c   : > { %v9970_v32 = vpop.xlane.xlu0 %9969 }
0x233d   : > { %v9971_v34 = vmul.f32 0.03125, %v9970_v32 }
0x233f   : > { %v9972_v39 = vsub.f32 %v9965_v58, %v9971_v34  ;;  %v19668_v34 = vpack.c.bf16 %v10664_v11, %v10663_v12 }
0x2341   : > { %v9973_v43 = vmul.f32 %v9972_v39, %v9972_v39 }
0x2343   : > { %v9974_v37 = vsel %vm2482_vm3, %v9973_v43, 0.0  ;;  %v14346_v43 = vld [vmem:[%s20305_s0 + $0x68] sm:$0xff] }
0x2344   : > { %9975 = vadd.xlane.f32.xlu0 %v9974_v37  ;;  %v14361_v37 = vld [vmem:[%s20306_s9 + $0x40] sm:$0xff] }
0x2345   : > { %v19684_v26 = vpack.c.bf16 %v14362_v51, %v14361_v37  ;;  %v19788_v51 = vld [vmem:[%s20309_s4] ss:$0 sm:$0xff] }
0x23d1   : > { %v9976_v13 = vpop.xlane.xlu0 %9975 }
0x23d2   : > { %v9977_v15 = vmul.f32 0.03125, %v9976_v13  ;;  %v19700_v13 = vpack.c.bf16 %v14364_v61, %v14363_v23 }
0x23d4   : > { %v9978_v17 = vadd.f32 1e-05, %v9977_v15  ;;  %v14354_v15 = vld [vmem:[%s20306_s9 + $0x20] sm:$0xff] }
0x23d6   : > { %17183 = vrsqrt.f32 %v9978_v17  ;;  %v14355_v17 = vld [vmem:[%s20306_s9 + $0x28] sm:$0xff] }
0x23e0   : > { %v17184_v19 = vpop.eup %17183 }
0x23e1   : > { %v9980_v38 = vmul.f32 %v17184_v19, %v9972_v39  ;;  %v14345_v39 = vld [vmem:[%s20305_s0 + $0x60] sm:$0xff]  ;;  %v19712_v19 = vpack.c.bf16 %v14355_v17, %v14354_v15 }
0x23e2   : > { %v19682_v40 = vpack.c.bf16 %v14346_v43, %v14345_v39 }
0x23e3   : > { %v9988_v57 = vmul.f32 %v14304_v20, %v9980_v38  ;;  %v14356_v20 = vld [vmem:[%s20306_s9 + $0x30] sm:$0xff]  ;;  %v14357_v38 = vld [vmem:[%s20306_s9 + $0x38] sm:$0xff] }
0x23e5   : > { %v9996_v21 = vadd.f32 %v14305_v28, %v9988_v57  ;;  %v19723_v28 = vpack.c.bf16 %v14357_v38, %v14356_v20  ;;  %v14369_v57 = vld [vmem:[%s20306_s9 + $0x68] sm:$0xff] }
0x23e6   : > { %v19733_v27 = vpack.c.bf16 %v14369_v57, %v14368_v41 }
0x23e7   : > { %v19591_v56 = vadd.f32 %v9996_v21, %v9965_v58  ;;  %v14334_v58 = vld [vmem:[%s20305_s0 + $0x38] sm:$0xff]  ;;  %v19741_v21 = vpack.c.bf16 %v14371_v42, %v14370_v52  ;;  %s20308_s0 = sld [smem:[#allocation69_spill]] }
0x23e8   : > { %v19666_v32 = vpack.c.bf16 %v14334_v58, %v14333_v62 }
0x23e9   : > { %15860 = vmatmul.mubr.msk.f32.vlgmr.msra.gmra.mrb[98].mxu1 %vm2482_vm3, %v19591_v56  ;;  %15882 = vmatmul.mubr.msk.f32.vlgmr.msra.gmra.mrb[84].mxu0 %vm2482_vm3, %v19591_v56 }
0x23ea   : > { %16664 = vmatpush3.bf16.msra.mxu1 %v19586_v31  ;;  %16682 = vmatpush3.bf16.msra.mxu0 %v19588_v49 }
0x23eb   : > { %16665 = vmatprep.subr.bf16.mxu1 %v17867_v16  ;;  %16683 = vmatprep.subr.bf16.mxu0 %v17867_v16 }
0x23ec   : > { %15870 = vmatprep.mubr.msk.f32.mxu1 %vm17869_vm2, %v17870_v45  ;;  %15903 = vmatprep.mubr.msk.f32.mxu0 %vm17869_vm2, %v17870_v45 }
0x23ed   : > { %v19762_v44 = vld [vmem:[%s20308_s0] ss:$0 sm:$0xff]  ;;  %v19778_v62 = vld [vmem:[%s20308_s0 + $0x2] ss:$0 sm:$0xff]  ;;  %v19785_v37 = vld [vmem:[%s20308_s0 + $0x1] ss:$0 sm:$0xff] }
0x23ee   : > { %16667 = vmatpush3.bf16.msra.mxu1 %v19602_v6  ;;  %16685 = vmatpush3.bf16.msra.mxu0 %v19604_v9  ;;  %v19803_v41 = vld [vmem:[%s20308_s0 + $0x3] ss:$0 sm:$0xff]  ;;  %s20310_s0 = sld [smem:[#allocation72_spill]] }
0x23ef   : > { %16674 = vmatprep.subr.bf16.mxu1 %v17867_v16  ;;  %16692 = vmatprep.subr.bf16.mxu0 %v17867_v16 }
0x23f1   : > { %15871 = vmatmul.mubr.msk.f32.vlgmr.msra.gmra.mrb[100].mxu1 %vm2482_vm3, %v19591_v56  ;;  %15904 = vmatmul.mubr.msk.f32.vlgmr.msra.gmra.mrb[86].mxu0 %vm2482_vm3, %v19591_v56 }
0x23f2   : > { %16676 = vmatpush3.bf16.msra.mxu1 %v19618_v50  ;;  %16694 = vmatpush3.bf16.msra.mxu0 %v19620_v59 }
0x23f3   : > { %16677 = vmatprep.subr.bf16.mxu1 %v17867_v16  ;;  %16695 = vmatprep.subr.bf16.mxu0 %v17867_v16 }
0x23f4   : > { %15892 = vmatprep.mubr.msk.f32.mxu1 %vm17869_vm2, %v17870_v45  ;;  %15925 = vmatprep.mubr.msk.f32.mxu0 %vm17869_vm2, %v17870_v45 }
0x23f6   : > { %16679 = vmatpush3.bf16.msra.mxu1 %v19634_v47  ;;  %16697 = vmatpush3.bf16.msra.mxu0 %v19636_v35 }
0x23f7   : > { %16686 = vmatprep.subr.bf16.mxu1 %v17867_v16  ;;  %16704 = vmatprep.subr.bf16.mxu0 %v17867_v16 }
0x23f9   : > { %15893 = vmatmul.mubr.msk.f32.vlgmr.msra.gmra.mrb[102].mxu1 %vm2482_vm3, %v19591_v56  ;;  %15926 = vmatmul.mubr.msk.f32.vlgmr.msra.gmra.mrb[88].mxu0 %vm2482_vm3, %v19591_v56 }
0x23fa   : > { %16688 = vmatpush3.bf16.msra.mxu1 %v19650_v22  ;;  %16706 = vmatpush3.bf16.msra.mxu0 %v19652_v1 }
0x23fb   : > { %16689 = vmatprep.subr.bf16.mxu1 %v17867_v16  ;;  %16707 = vmatprep.subr.bf16.mxu0 %v17867_v16 }
0x23fc   : > { %15914 = vmatprep.mubr.msk.f32.mxu1 %vm17869_vm2, %v17870_v45  ;;  %15947 = vmatprep.mubr.msk.f32.mxu0 %vm17869_vm2, %v17870_v45 }
0x23fe   : > { %16691 = vmatpush3.bf16.msra.mxu1 %v19666_v32  ;;  %16709 = vmatpush3.bf16.msra.mxu0 %v19668_v34 }
0x23ff   : > { %16698 = vmatprep.subr.bf16.mxu1 %v17867_v16  ;;  %16716 = vmatprep.subr.bf16.mxu0 %v17867_v16 }
0x2401   : > { %15915 = vmatmul.mubr.msk.f32.vlgmr.msra.gmra.mrb[104].mxu1 %vm2482_vm3, %v19591_v56  ;;  %15948 = vmatmul.mubr.msk.f32.vlgmr.msra.gmra.mrb[90].mxu0 %vm2482_vm3, %v19591_v56 }
0x2402   : > { %16700 = vmatpush3.bf16.msra.mxu1 %v19682_v40  ;;  %16718 = vmatpush3.bf16.msra.mxu0 %v19684_v26 }
0x2403   : > { %16701 = vmatprep.subr.bf16.mxu1 %v17867_v16  ;;  %16719 = vmatprep.subr.bf16.mxu0 %v17867_v16 }
0x2404   : > { %15936 = vmatprep.mubr.msk.f32.mxu1 %vm17869_vm2, %v17870_v45  ;;  %15969 = vmatprep.mubr.msk.f32.mxu0 %vm17869_vm2, %v17870_v45 }
0x2406   : > { %16703 = vmatpush3.bf16.msra.mxu1 %v19698_v7  ;;  %16721 = vmatpush3.bf16.msra.mxu0 %v19700_v13 }
0x2407   : > { %16710 = vmatprep.subr.bf16.mxu1 %v17867_v16  ;;  %15983 = vmatprep.subr.mxu0 %v17870_v45 }
0x2409   : > { %15937 = vmatmul.mubr.msk.f32.vlgmr.msra.gmra.mrb[106].mxu1 %vm2482_vm3, %v19591_v56  ;;  %15970 = vmatmul.mubr.msk.f32.vlgmr.msra.gmra.mrb[92].mxu0 %vm2482_vm3, %v19591_v56 }
0x240a   : > { %16712 = vmatpush3.bf16.msra.mxu1 %v19712_v19  ;;  %15958 = vmatprep.mubr.msk.f32.mxu1 %vm17869_vm2, %v17870_v45 }
0x240b   : > { %16713 = vmatprep.subr.bf16.mxu1 %v17867_v16  ;;  %15985 = vmatprep.mubr.msk.f32.mxu0 %vm17869_vm2, %v17870_v45 }
0x240e   : > { %16715 = vmatpush3.bf16.msra.mxu1 %v19723_v28 }
0x240f   : > { %16722 = vmatprep.subr.bf16.mxu1 %v17867_v16 }
0x2411   : > { %15959 = vmatmul.mubr.msk.f32.vlgmr.msra.gmra.mrb[108].mxu1 %vm2482_vm3, %v19591_v56 }
0x2412   : > { %16724 = vmatpush3.bf16.msra.mxu1 %v19733_v27  ;;  %15980 = vmatprep.mubr.msk.f32.mxu1 %vm17869_vm2, %v17870_v45 }
0x2413   : > { %16725 = vmatprep.subr.bf16.mxu1 %v17867_v16 }
0x2416   : > { %16727 = vmatpush3.bf16.msra.mxu1 %v19741_v21 }
0x2417   : > { %15988 = vmatprep.subr.mxu1 %v17870_v45 }
0x2419   : > { %15981 = vmatmul.mubr.msk.f32.vlgmr.msra.gmra.mrb[110].mxu1 %vm2482_vm3, %v19591_v56 }
0x241a   : > { %15990 = vmatprep.mubr.msk.f32.mxu1 %vm17869_vm2, %v17870_v45 }
0x24bc   : > { %v10078_v60 = vpop.f32.mrb[98].mxu1  ;;  %v10244_v63 = vpop.f32.mrb[84].mxu0 }
0x24bd   : > { %v10079_v2 = vadd.f32 %v19753_v53, %v10078_v60  ;;  %v15861_v25 = vpop.f32.mrb[99].mxu1  ;;  %v15883_v29 = vpop.f32.mrb[85].mxu0  ;;  %v10245_v0 = vadd.f32 %v19765_v3, %v10244_v63 }
0x24bf   : > { %15984 = vmatpush3.xpose.msk.msra.mxu0 %vm3465_vm4, %v10079_v2  ;;  %v19812_v2 = vld [vmem:[%s20309_s4 + $0x1] ss:$0 sm:$0xff] }
0x24c0   : > { %15993 = vmatprep.subr.mxu0 %v17870_v45 }
0x24c4   : > { %v10161_v14 = vpop.f32.mrb[100].mxu1  ;;  %v10408_v18 = vpop.f32.mrb[86].mxu0 }
0x24c5   : > { %v10162_v24 = vadd.f32 %v19759_v36, %v10161_v14  ;;  %v10409_v48 = vadd.f32 %v19762_v44, %v10408_v18  ;;  %v15872_v33 = vpop.f32.mrb[101].mxu1  ;;  %v15905_v4 = vpop.f32.mrb[87].mxu0 }
0x24c7   : > { %15986 = vmatmul.mubr.msk.f32.vlgmr.msra.gmra.mrb[94].mxu0 %vm3465_vm4, %v10409_v48  ;;  %15989 = vmatpush3.xpose.msk.msra.mxu1 %vm3465_vm4, %v10162_v24 }
0x24c8   : > { %15994 = vmatpush3.xpose.msk.msra.mxu0 %vm3465_vm4, %v10245_v0  ;;  %15995 = vmatprep.mubr.msk.f32.mxu0 %vm17869_vm2, %v17870_v45 }
0x24c9   : > { %15998 = vmatprep.subr.mxu1 %v17870_v45  ;;  %16003 = vmatprep.subr.mxu0 %v17870_v45 }
0x24cc   : > { %v10327_v58 = vpop.f32.mrb[102].mxu1  ;;  %v10574_v12 = vpop.f32.mrb[88].mxu0 }
0x24cd   : > { %v10575_v11 = vadd.f32 %v19778_v62, %v10574_v12  ;;  %v15894_v39 = vpop.f32.mrb[103].mxu1  ;;  %v15927_v43 = vpop.f32.mrb[89].mxu0  ;;  %v10328_v38 = vadd.f32 %v19791_v30, %v10327_v58 }
0x24cf   : > { %15996 = vmatmul.mubr.msk.f32.vlgmr.msra.gmra.mrb[96].mxu0 %vm3465_vm4, %v10575_v11 }
0x24d0   : > { %16005 = vmatprep.mubr.msk.f32.mxu0 %vm17869_vm2, %v17870_v45 }
0x24d4   : > { %v10491_v10 = vpop.f32.mrb[104].mxu1  ;;  %v10738_v23 = vpop.f32.mrb[90].mxu0 }
0x24d5   : > { %v10492_v61 = vadd.f32 %v19785_v37, %v10491_v10  ;;  %v10739_v15 = vadd.f32 %v19788_v51, %v10738_v23  ;;  %v15916_v17 = vpop.f32.mrb[105].mxu1  ;;  %v15949_v20 = vpop.f32.mrb[91].mxu0 }
0x24d7   : > { %15991 = vmatmul.mubr.msk.f32.vlgmr.msra.gmra.mrb[112].mxu1 %vm3465_vm4, %v10492_v61  ;;  %16004 = vmatpush3.msra.mxu0 %v10739_v15 }
0x24d8   : > { %15999 = vmatpush3.xpose.msk.msra.mxu1 %vm3465_vm4, %v10328_v38  ;;  %16000 = vmatprep.mubr.msk.f32.mxu1 %vm17869_vm2, %v17870_v45 }
0x24d9   : > { %16008 = vmatprep.subr.mxu1 %v17870_v45  ;;  %16013 = vmatprep.subr.mxu0 %v17870_v45 }
0x24dc   : > { %v10657_v57 = vpop.f32.mrb[106].mxu1  ;;  %v19805_v52 = vpop.f32.mrb[92].mxu0 }
0x24dd   : > { %v10658_v42 = vadd.f32 %v19803_v41, %v10657_v57  ;;  %v15938_v60 = vpop.f32.mrb[107].mxu1  ;;  %v15971_v63 = vpop.f32.mrb[93].mxu0 }
0x24df   : > { %16001 = vmatmul.mubr.msk.f32.vlgmr.msra.gmra.mrb[114].mxu1 %vm3465_vm4, %v10658_v42 }
0x24e0   : > { %16010 = vmatprep.mubr.msk.f32.mxu1 %vm17869_vm2, %v17870_v45 }
0x24e4   : > { %v10821_v25 = vpop.f32.mrb[108].mxu1 }
0x24e5   : > { %v10822_v29 = vadd.f32 %v19812_v2, %v10821_v25  ;;  %v15960_v14 = vpop.f32.mrb[109].mxu1 }
0x24e7   : > { %16009 = vmatpush3.msra.mxu1 %v10822_v29 }
0x24e8   : > { %16018 = vmatprep.subr.mxu1 %v17870_v45 }
0x24ec   : > { %v19816_v18 = vpop.f32.mrb[110].mxu1 }
0x24ed   : > { %v15982_v24 = vpop.f32.mrb[111].mxu1 }
0x259a   : > { %v11063_v48 = vpop.f32.mrb[94].mxu0 }
0x259b   : > { %v11067_v33 = vmul.f32 0.35355338, %v11063_v48  ;;  %v15987_v4 = vpop.f32.mrb[95].mxu0 }
0x259d   : > { %v11299_v0 = vsel %vm3465_vm4, %v11067_v33, -inf }
0x259e   : > { %11300 = vmax.xlane.f32.xlu1 %v11299_v0 }
0x25a2   : > { %v11217_v58 = vpop.f32.mrb[96].mxu0 }
0x25a3   : > { %v11221_v12 = vmul.f32 0.35355338, %v11217_v58  ;;  %v15997_v11 = vpop.f32.mrb[97].mxu0 }
0x25a5   : > { %v11305_v39 = vsel %vm3465_vm4, %v11221_v12, -inf }
0x25a6   : > { %11306 = vmax.xlane.f32.xlu1 %v11305_v39 }
0x25aa   : > { %v11140_v43 = vpop.f32.mrb[112].mxu1 }
0x25ab   : > { %v11144_v10 = vmul.f32 0.35355338, %v11140_v43  ;;  %v15992_v23 = vpop.f32.mrb[113].mxu1 }
0x25ad   : > { %v11302_v61 = vsel %vm3465_vm4, %v11144_v10, -inf }
0x25ae   : > { %11303 = vmax.xlane.f32.xlu0 %v11302_v61 }
0x25b2   : > { %v11294_v15 = vpop.f32.mrb[114].mxu1 }
0x25b3   : > { %v11298_v17 = vmul.f32 0.35355338, %v11294_v15  ;;  %v16002_v20 = vpop.f32.mrb[115].mxu1 }
0x25b5   : > { %v11308_v38 = vsel %vm3465_vm4, %v11298_v17, -inf }
0x25b6   : > { %11309 = vmax.xlane.f32.xlu0 %v11308_v38  ;;  %v19827_v38 = vld [vmem:[%s20309_s4 + $0x2] ss:$0 sm:$0xff] }
0x262b   : > { %v11301_v57 = vpop.xlane.xlu1 %11300 }
0x262c   : > { %v11311_v42 = vsub.f32 %v11067_v33, %v11301_v57 }
0x262e   : > { %v11315_v60 = vmul.f32 1.442695, %v11311_v42  ;;  %v10905_v42 = vadd.f32 %v19827_v38, %v19805_v52  ;;  %v19839_v52 = vld [vmem:[%s20309_s4 + $0x3] ss:$0 sm:$0xff]  ;;  %s20312_s4 = sld [smem:[#allocation64_spill]] }
0x2630   : > { %17185 = vpow2.f32 %v11315_v60 }
0x2633   : > { %v11307_v63 = vpop.xlane.xlu1 %11306 }
0x2634   : > { %v11313_v25 = vsub.f32 %v11221_v12, %v11307_v63 }
0x2636   : > { %v11319_v29 = vmul.f32 1.442695, %v11313_v25 }
0x2638   : > { %17187 = vpow2.f32 %v11319_v29 }
0x263a   : > { %v17186_v14 = vpop.eup %17185 }
0x263b   : > { %v11304_v24 = vpop.xlane.xlu0 %11303  ;;  %v11323_v48 = vsel %vm3465_vm4, %v17186_v14, 0.0 }
0x263c   : > { %v11312_v4 = vsub.f32 %v11144_v10, %v11304_v24  ;;  %11324 = vadd.xlane.f32.xlu1 %v11323_v48  ;;  %v10988_v48 = vadd.f32 %v19839_v52, %v19816_v18 }
0x263e   : > { %v11317_v0 = vmul.f32 1.442695, %v11312_v4 }
0x2640   : > { %17189 = vpow2.f32 %v11317_v0 }
0x2642   : > { %v17188_v58 = vpop.eup %17187 }
0x2643   : > { %v11310_v11 = vpop.xlane.xlu0 %11309  ;;  %v11329_v39 = vsel %vm3465_vm4, %v17188_v58, 0.0 }
0x2644   : > { %v11314_v33 = vsub.f32 %v11298_v17, %v11310_v11  ;;  %11330 = vadd.xlane.f32.xlu1 %v11329_v39  ;;  %v11650_v11 = vld [vmem:[%s20310_s0] sm:$0xff]  ;;  %v11651_v39 = vld [vmem:[%s20310_s0 + $0x8] sm:$0xff] }
0x2646   : > { %v11321_v43 = vmul.f32 1.442695, %v11314_v33  ;;  %v11652_v33 = vld [vmem:[%s20310_s0 + $0x10] sm:$0xff] }
0x2648   : > { %17191 = vpow2.f32 %v11321_v43  ;;  %v19857_v43 = vpack.c.bf16 %v11651_v39, %v11650_v11 }
0x264a   : > { %v17190_v12 = vpop.eup %17189 }
0x264b   : > { %v11326_v23 = vsel %vm3465_vm4, %v17190_v12, 0.0 }
0x264c   : > { %11327 = vadd.xlane.f32.xlu0 %v11326_v23 }
0x2652   : > { %v17192_v61 = vpop.eup %17191 }
0x2653   : > { %v11332_v15 = vsel %vm3465_vm4, %v17192_v61, 0.0 }
0x2654   : > { %11333 = vadd.xlane.f32.xlu0 %v11332_v15 }
0x26c9   : > { %v11325_v10 = vpop.xlane.xlu1 %11324 }
0x26ca   : > { %17193 = vrcp.f32 %v11325_v10 }
0x26d1   : > { %v11331_v20 = vpop.xlane.xlu1 %11330 }
0x26d2   : > { %17195 = vrcp.f32 %v11331_v20 }
0x26d4   : > { %v17194_v57 = vpop.eup %17193 }
0x26d5   : > { %v11339_v17 = vmul.f32 %v17194_v57, %v17186_v14 }
0x26d7   : > { %16006 = vmatmul.mubr.msk.f32.vlgmr.msra.gmra.mrb[98].mxu0 %vm3465_vm4, %v11339_v17 }
0x26d8   : > { %16014 = vmatpush3.msra.mxu0 %v10905_v42  ;;  %16015 = vmatprep.mubr.msk.f32.mxu0 %vm17869_vm2, %v17870_v45 }
0x26d9   : > { %v11328_v60 = vpop.xlane.xlu0 %11327  ;;  %16728 = vmatprep.subr.bf16.mxu0 %v17867_v16 }
0x26da   : > { %17197 = vrcp.f32 %v11328_v60 }
0x26dc   : > { %v17196_v63 = vpop.eup %17195 }
0x26dd   : > { %v11341_v25 = vmul.f32 %v17196_v63, %v17188_v58 }
0x26df   : > { %16016 = vmatmul.mubr.msk.f32.vlgmr.msra.gmra.mrb[100].mxu0 %vm3465_vm4, %v11341_v25 }
0x26e0   : > { %16031 = vmatprep.mubr.msk.f32.mxu0 %vm17869_vm2, %v17870_v45  ;;  %16730 = vmatpush3.bf16.msra.mxu0 %v19857_v43 }
0x26e1   : > { %v11334_v29 = vpop.xlane.xlu0 %11333  ;;  %16731 = vmatprep.subr.bf16.mxu0 %v17867_v16 }
0x26e2   : > { %17199 = vrcp.f32 %v11334_v29  ;;  %v19879_v29 = vld [vmem:[#allocation6] ss:$0 sm:$0xff] }
0x26e4   : > { %v17198_v14 = vpop.eup %17197 }
0x26e5   : > { %v11340_v24 = vmul.f32 %v17198_v14, %v17190_v12  ;;  %v11653_v12 = vld [vmem:[%s20310_s0 + $0x18] sm:$0xff]  ;;  %s20311_s0 = sld [smem:[#allocation65_spill]] }
0x26e7   : > { %16011 = vmatmul.mubr.msk.f32.vlgmr.msra.gmra.mrb[116].mxu1 %vm3465_vm4, %v11340_v24 }
0x26e8   : > { %16019 = vmatpush3.msra.mxu1 %v10988_v48  ;;  %16020 = vmatprep.mubr.msk.f32.mxu1 %vm17869_vm2, %v17870_v45 }
0x26e9   : > { %16734 = vmatprep.subr.bf16.mxu1 %v17867_v16 }
0x26ec   : > { %v17200_v4 = vpop.eup %17199 }
0x26ed   : > { %v11342_v0 = vmul.f32 %v17200_v4, %v17192_v61 }
0x26ef   : > { %16021 = vmatmul.mubr.msk.f32.vlgmr.msra.gmra.mrb[118].mxu1 %vm3465_vm4, %v11342_v0 }
0x26f0   : > { %16736 = vmatpush3.bf16.msra.mxu1 %v19559_v54  ;;  %16042 = vmatprep.mubr.msk.f32.mxu1 %vm17869_vm2, %v17870_v45  ;;  %v19861_v54 = vpack.c.bf16 %v11653_v12, %v11652_v33 }
0x26f1   : > { %16737 = vmatprep.subr.bf16.mxu1 %v17867_v16 }
0x26f2   : > { %16733 = vmatpush3.bf16.msra.mxu0 %v19861_v54 }
0x26f3   : > { %16740 = vmatprep.subr.bf16.mxu0 %v17867_v16 }
0x26f4   : > { %16739 = vmatpush3.bf16.msra.mxu1 %v19571_v5 }
0x26f5   : > { %16746 = vmatprep.subr.bf16.mxu1 %v17867_v16 }
0x27aa   : > { %v11412_v18 = vpop.f32.mrb[98].mxu0 }
0x27ab   : > { %v16007_v58 = vpop.f32.mrb[99].mxu0 }
0x27b2   : > { %v11558_v23 = vpop.f32.mrb[100].mxu0 }
0x27b3   : > { %v16017_v61 = vpop.f32.mrb[101].mxu0  ;;  %11640 = vrot.lane.b32.xlu0 %v11558_v23, %s20281_s1  ;;  %v14389_v23 = vld [vmem:[%s20311_s0] ss:$0 sm:$0xff]  ;;  %s20317_s0 = sld [smem:[#allocation60_spill]] }
0x27ba   : > { %v11485_v5 = vpop.f32.mrb[116].mxu1 }
0x27bb   : > { %11636 = vrot.lane.b32.xlu1 %v11485_v5, %s20282_s2  ;;  %v16012_v15 = vpop.f32.mrb[117].mxu1  ;;  %v14390_v5 = vld [vmem:[%s20312_s4] ss:$0 sm:$0xff]  ;;  %s20313_s4 = sld [smem:[#allocation61_spill]] }
0x27c2   : > { %v11631_v10 = vpop.f32.mrb[118].mxu1 }
0x27c3   : > { %11644 = vrot.lane.b32.xlu1 %v11631_v10, %s20283_s3  ;;  %v16022_v20 = vpop.f32.mrb[119].mxu1 }
0x2825   : > { %v11641_v42 = vpop.permute.xlu0 %11640 }
0x282d   : > { %v11637_v57 = vpop.permute.xlu1 %11636 }
0x282e   : > { %v11647_v17 = vsel %vm3465_vm4, %v11412_v18, %v11637_v57 }
0x282f   : > { %v11648_v60 = vsel %vm4123_vm5, %v11647_v17, %v11641_v42 }
0x2835   : > { %v11645_v63 = vpop.permute.xlu1 %11644 }
0x2836   : > { %v11649_v25 = vsel %vm4125_vm6, %v11648_v60, %v11645_v63 }
0x2837   : > { %16032 = vmatmul.mubr.msk.f32.vlgmr.msra.gmra.mrb[102].mxu0 %vm2482_vm3, %v11649_v25 }
0x2838   : > { %16742 = vmatpush3.bf16.msra.mxu0 %v19586_v31  ;;  %16053 = vmatprep.mubr.msk.f32.mxu0 %vm17869_vm2, %v17870_v45 }
0x2839   : > { %16743 = vmatprep.subr.bf16.mxu0 %v17867_v16 }
0x283c   : > { %16745 = vmatpush3.bf16.msra.mxu0 %v19602_v6 }
0x283d   : > { %16752 = vmatprep.subr.bf16.mxu0 %v17867_v16 }
0x290a   : > { %v11730_v14 = vpop.f32.mrb[102].mxu0 }
0x290b   : > { %v11731_v24 = vadd.f32 %v19879_v29, %v11730_v14  ;;  %v16033_v48 = vpop.f32.mrb[103].mxu0 }
0x290d   : > { %v11734_v4 = vsel %vm2482_vm3, %v11731_v24, 0.0 }
0x290e   : > { %11735 = vadd.xlane.f32.xlu1 %v11734_v4 }
0x299b   : > { %v11736_v31 = vpop.xlane.xlu1 %11735 }
0x299c   : > { %v11737_v0 = vmul.f32 0.03125, %v11736_v31 }
0x299e   : > { %v11738_v18 = vsub.f32 %v11731_v24, %v11737_v0 }
0x29a0   : > { %v11739_v58 = vmul.f32 %v11738_v18, %v11738_v18 }
0x29a2   : > { %v11740_v11 = vsel %vm2482_vm3, %v11739_v58, 0.0 }
0x29a3   : > { %11741 = vadd.xlane.f32.xlu0 %v11740_v11 }
0x2a30   : > { %v11742_v6 = vpop.xlane.xlu0 %11741 }
0x2a31   : > { %v11743_v39 = vmul.f32 0.03125, %v11742_v6 }
0x2a33   : > { %v11744_v33 = vadd.f32 1e-05, %v11743_v39 }
0x2a35   : > { %17201 = vrsqrt.f32 %v11744_v33 }
0x2a3f   : > { %v17202_v12 = vpop.eup %17201 }
0x2a40   : > { %v11746_v61 = vmul.f32 %v17202_v12, %v11738_v18 }
0x2a42   : > { %v11754_v15 = vmul.f32 %v14389_v23, %v11746_v61 }
0x2a44   : > { %v11762_v10 = vadd.f32 %v14390_v5, %v11754_v15 }
0x2a46   : > { %v19887_v20 = vadd.f32 %v11762_v10, %v19591_v56 }
0x2a48   : > { %16043 = vmatmul.mubr.msk.f32.vlgmr.msra.gmra.mrb[120].mxu1 %vm2482_vm3, %v19887_v20  ;;  %16054 = vmatmul.mubr.msk.f32.vlgmr.msra.gmra.mrb[104].mxu0 %vm2482_vm3, %v19887_v20 }
0x2a49   : > { %16748 = vmatpush3.bf16.msra.mxu1 %v19562_v55  ;;  %16754 = vmatpush3.bf16.msra.mxu0 %v19618_v50 }
0x2a4a   : > { %16749 = vmatprep.subr.bf16.mxu1 %v17867_v16  ;;  %16755 = vmatprep.subr.bf16.mxu0 %v17867_v16 }
0x2a4b   : > { %16064 = vmatprep.mubr.msk.f32.mxu1 %vm17869_vm2, %v17870_v45  ;;  %16075 = vmatprep.mubr.msk.f32.mxu0 %vm17869_vm2, %v17870_v45 }
0x2a4d   : > { %16751 = vmatpush3.bf16.msra.mxu1 %v19574_v8  ;;  %16757 = vmatpush3.bf16.msra.mxu0 %v19634_v47 }
0x2a4e   : > { %16758 = vmatprep.subr.bf16.mxu1 %v17867_v16  ;;  %16764 = vmatprep.subr.bf16.mxu0 %v17867_v16 }
0x2a50   : > { %16065 = vmatmul.mubr.msk.f32.vlgmr.msra.gmra.mrb[122].mxu1 %vm2482_vm3, %v19887_v20  ;;  %16076 = vmatmul.mubr.msk.f32.vlgmr.msra.gmra.mrb[106].mxu0 %vm2482_vm3, %v19887_v20 }
0x2a51   : > { %16760 = vmatpush3.bf16.msra.mxu1 %v19588_v49  ;;  %16766 = vmatpush3.bf16.msra.mxu0 %v19650_v22 }
0x2a52   : > { %16761 = vmatprep.subr.bf16.mxu1 %v17867_v16  ;;  %16767 = vmatprep.subr.bf16.mxu0 %v17867_v16 }
0x2a53   : > { %16086 = vmatprep.mubr.msk.f32.mxu1 %vm17869_vm2, %v17870_v45  ;;  %16097 = vmatprep.mubr.msk.f32.mxu0 %vm17869_vm2, %v17870_v45 }
0x2a55   : > { %16763 = vmatpush3.bf16.msra.mxu1 %v19604_v9  ;;  %16769 = vmatpush3.bf16.msra.mxu0 %v19666_v32 }
0x2a56   : > { %16770 = vmatprep.subr.bf16.mxu1 %v17867_v16  ;;  %16776 = vmatprep.subr.bf16.mxu0 %v17867_v16 }
0x2a58   : > { %16087 = vmatmul.mubr.msk.f32.vlgmr.msra.gmra.mrb[124].mxu1 %vm2482_vm3, %v19390_v46  ;;  %16098 = vmatmul.mubr.msk.f32.vlgmr.msra.gmra.mrb[108].mxu0 %vm2482_vm3, %v19390_v46 }
0x2a59   : > { %16772 = vmatpush3.bf16.msra.mxu1 %v19620_v59  ;;  %16778 = vmatpush3.bf16.msra.mxu0 %v19682_v40 }
0x2a5a   : > { %16773 = vmatprep.subr.bf16.mxu1 %v17867_v16  ;;  %16779 = vmatprep.subr.bf16.mxu0 %v17867_v16 }
0x2a5b   : > { %16108 = vmatprep.mubr.msk.f32.mxu1 %vm17869_vm2, %v17870_v45  ;;  %16119 = vmatprep.mubr.msk.f32.mxu0 %vm17869_vm2, %v17870_v45 }
0x2a5d   : > { %16775 = vmatpush3.bf16.msra.mxu1 %v19636_v35  ;;  %16781 = vmatpush3.bf16.msra.mxu0 %v19698_v7 }
0x2a5e   : > { %16782 = vmatprep.subr.bf16.mxu1 %v17867_v16  ;;  %16788 = vmatprep.subr.bf16.mxu0 %v17867_v16 }
0x2a60   : > { %16109 = vmatmul.mubr.msk.f32.vlgmr.msra.gmra.mrb[126].mxu1 %vm2482_vm3, %v19390_v46  ;;  %16120 = vmatmul.mubr.msk.f32.vlgmr.msra.gmra.mrb[110].mxu0 %vm2482_vm3, %v19390_v46 }
0x2a61   : > { %16784 = vmatpush3.bf16.msra.mxu1 %v19652_v1  ;;  %16790 = vmatpush3.bf16.msra.mxu0 %v19712_v19 }
0x2a62   : > { %16785 = vmatprep.subr.bf16.mxu1 %v17867_v16  ;;  %16791 = vmatprep.subr.bf16.mxu0 %v17867_v16 }
0x2a63   : > { %16130 = vmatprep.mubr.msk.f32.mxu1 %vm17869_vm2, %v17870_v45  ;;  %16141 = vmatprep.mubr.msk.f32.mxu0 %vm17869_vm2, %v17870_v45 }
0x2a65   : > { %16787 = vmatpush3.bf16.msra.mxu1 %v19668_v34  ;;  %16793 = vmatpush3.bf16.msra.mxu0 %v19723_v28 }
0x2a66   : > { %16794 = vmatprep.subr.bf16.mxu1 %v17867_v16  ;;  %16800 = vmatprep.subr.bf16.mxu0 %v17867_v16 }
0x2a68   : > { %16131 = vmatmul.mubr.msk.f32.vlgmr.msra.gmra.mrb[128].mxu1 %vm2482_vm3, %v19390_v46  ;;  %16142 = vmatmul.mubr.msk.f32.vlgmr.msra.gmra.mrb[112].mxu0 %vm2482_vm3, %v19390_v46 }
0x2a69   : > { %16796 = vmatpush3.bf16.msra.mxu1 %v19684_v26  ;;  %16802 = vmatpush3.bf16.msra.mxu0 %v19733_v27 }
0x2a6a   : > { %16797 = vmatprep.subr.bf16.mxu1 %v17867_v16  ;;  %16803 = vmatprep.subr.bf16.mxu0 %v17867_v16 }
0x2a6b   : > { %16152 = vmatprep.mubr.msk.f32.mxu1 %vm17869_vm2, %v17870_v45  ;;  %16163 = vmatprep.mubr.msk.f32.mxu0 %vm17869_vm2, %v17870_v45 }
0x2a6d   : > { %16799 = vmatpush3.bf16.msra.mxu1 %v19700_v13  ;;  %16805 = vmatpush3.bf16.msra.mxu0 %v19741_v21 }
0x2a6e   : > { %16166 = vmatprep.subr.mxu1 %v17870_v45  ;;  %16176 = vmatprep.subr.mxu0 %v17870_v45 }
0x2a70   : > { %16153 = vmatmul.mubr.msk.f32.vlgmr.msra.gmra.mrb[130].mxu1 %vm2482_vm3, %v19390_v46  ;;  %16164 = vmatmul.mubr.msk.f32.vlgmr.msra.gmra.mrb[114].mxu0 %vm2482_vm3, %v19390_v46 }
0x2a71   : > { %16168 = vmatprep.mubr.msk.f32.mxu1 %vm17869_vm2, %v17870_v45  ;;  %16178 = vmatprep.mubr.msk.f32.mxu0 %vm17869_vm2, %v17870_v45 }
0x2b1b   : > { %v11833_v55 = vpop.f32.mrb[120].mxu1  ;;  %v11903_v8 = vpop.f32.mrb[104].mxu0 }
0x2b1c   : > { %v11834_v49 = vadd.f32 %v19753_v53, %v11833_v55  ;;  %v16044_v56 = vpop.f32.mrb[121].mxu1  ;;  %v16055_v9 = vpop.f32.mrb[105].mxu0  ;;  %v11904_v26 = vadd.f32 %v19759_v36, %v11903_v8 }
0x2b1e   : > { %16167 = vmatpush3.xpose.msk.msra.mxu1 %vm3465_vm4, %v11834_v49 }
0x2b1f   : > { %16171 = vmatprep.subr.mxu1 %v17870_v45 }
0x2b23   : > { %v11973_v50 = vpop.f32.mrb[122].mxu1  ;;  %v12043_v59 = vpop.f32.mrb[106].mxu0 }
0x2b24   : > { %v11974_v46 = vadd.f32 %v19765_v3, %v11973_v50  ;;  %v16066_v47 = vpop.f32.mrb[123].mxu1  ;;  %v16077_v35 = vpop.f32.mrb[107].mxu0  ;;  %v12044_v13 = vadd.f32 %v19791_v30, %v12043_v59 }
0x2b26   : > { %16177 = vmatpush3.xpose.msk.msra.mxu0 %vm3465_vm4, %v11974_v46 }
0x2b27   : > { %16186 = vmatprep.subr.mxu0 %v17870_v45 }
0x2b2b   : > { %v12113_v22 = vpop.f32.mrb[124].mxu1  ;;  %v12183_v1 = vpop.f32.mrb[108].mxu0 }
0x2b2c   : > { %v12114_v32 = vadd.f32 %v19762_v44, %v12113_v22  ;;  %v16088_v34 = vpop.f32.mrb[125].mxu1  ;;  %v16099_v40 = vpop.f32.mrb[109].mxu0  ;;  %v12184_v7 = vadd.f32 %v19785_v37, %v12183_v1 }
0x2b2e   : > { %16169 = vmatmul.mubr.msk.f32.vlgmr.msra.gmra.mrb[132].mxu1 %vm3465_vm4, %v12114_v32 }
0x2b2f   : > { %16172 = vmatpush3.xpose.msk.msra.mxu1 %vm3465_vm4, %v11904_v26  ;;  %16173 = vmatprep.mubr.msk.f32.mxu1 %vm17869_vm2, %v17870_v45 }
0x2b30   : > { %16181 = vmatprep.subr.mxu1 %v17870_v45 }
0x2b32   : > { %16174 = vmatmul.mubr.msk.f32.vlgmr.msra.gmra.mrb[134].mxu1 %vm3465_vm4, %v12184_v7 }
0x2b33   : > { %16182 = vmatpush3.xpose.msk.msra.mxu1 %vm3465_vm4, %v12044_v13  ;;  %v12253_v19 = vpop.f32.mrb[126].mxu1  ;;  %v12323_v28 = vpop.f32.mrb[110].mxu0  ;;  %16183 = vmatprep.mubr.msk.f32.mxu1 %vm17869_vm2, %v17870_v45 }
0x2b34   : > { %v12254_v27 = vadd.f32 %v19778_v62, %v12253_v19  ;;  %v12324_v21 = vadd.f32 %v19803_v41, %v12323_v28  ;;  %v16110_v53 = vpop.f32.mrb[127].mxu1  ;;  %v16121_v36 = vpop.f32.mrb[111].mxu0  ;;  %16191 = vmatprep.subr.mxu1 %v17870_v45 }
0x2b36   : > { %16179 = vmatmul.mubr.msk.f32.vlgmr.msra.gmra.mrb[116].mxu0 %vm3465_vm4, %v12254_v27  ;;  %16184 = vmatmul.mubr.msk.f32.vlgmr.msra.gmra.mrb[136].mxu1 %vm3465_vm4, %v12324_v21 }
0x2b37   : > { %16188 = vmatprep.mubr.msk.f32.mxu0 %vm17869_vm2, %v17870_v45  ;;  %16193 = vmatprep.mubr.msk.f32.mxu1 %vm17869_vm2, %v17870_v45 }
0x2b3b   : > { %v12393_v44 = vpop.f32.mrb[128].mxu1  ;;  %v12463_v3 = vpop.f32.mrb[112].mxu0 }
0x2b3c   : > { %v12394_v62 = vadd.f32 %v19788_v51, %v12393_v44  ;;  %v12464_v37 = vadd.f32 %v19812_v2, %v12463_v3  ;;  %v16132_v30 = vpop.f32.mrb[129].mxu1  ;;  %v16143_v41 = vpop.f32.mrb[113].mxu0 }
0x2b3e   : > { %16187 = vmatpush3.msra.mxu0 %v12394_v62  ;;  %16192 = vmatpush3.msra.mxu1 %v12464_v37 }
0x2b3f   : > { %16196 = vmatprep.subr.mxu0 %v17870_v45  ;;  %16201 = vmatprep.subr.mxu1 %v17870_v45 }
0x2b43   : > { %v12533_v57 = vpop.f32.mrb[130].mxu1  ;;  %v20009_v17 = vpop.f32.mrb[114].mxu0 }
0x2b44   : > { %v16154_v42 = vpop.f32.mrb[131].mxu1  ;;  %v16165_v60 = vpop.f32.mrb[115].mxu0  ;;  %v12534_v27 = vadd.f32 %v19827_v38, %v12533_v57  ;;  %v12604_v36 = vadd.f32 %v19839_v52, %v20009_v17 }
0x2c01   : > { %v12679_v63 = vpop.f32.mrb[132].mxu1 }
0x2c02   : > { %v12683_v25 = vmul.f32 0.35355338, %v12679_v63  ;;  %v16170_v14 = vpop.f32.mrb[133].mxu1 }
0x2c04   : > { %v12915_v51 = vsel %vm3465_vm4, %v12683_v25, -inf }
0x2c05   : > { %12916 = vmax.xlane.f32.xlu0 %v12915_v51  ;;  %v12756_v2 = vpop.f32.mrb[134].mxu1 }
0x2c06   : > { %v12760_v24 = vmul.f32 0.35355338, %v12756_v2  ;;  %v16175_v48 = vpop.f32.mrb[135].mxu1 }
0x2c08   : > { %v12918_v4 = vsel %vm3465_vm4, %v12760_v24, -inf }
0x2c09   : > { %v12833_v31 = vpop.f32.mrb[116].mxu0  ;;  %12919 = vmax.xlane.f32.xlu1 %v12918_v4  ;;  %v12910_v0 = vpop.f32.mrb[136].mxu1 }
0x2c0a   : > { %v12837_v18 = vmul.f32 0.35355338, %v12833_v31  ;;  %v12914_v58 = vmul.f32 0.35355338, %v12910_v0  ;;  %v16180_v11 = vpop.f32.mrb[117].mxu0  ;;  %v16185_v6 = vpop.f32.mrb[137].mxu1 }
0x2c0b   : > { %v13369_v6 = vld [vmem:[%s20313_s4] sm:$0xff] }
0x2c0c   : > { %v12921_v39 = vsel %vm3465_vm4, %v12837_v18, -inf  ;;  %v12924_v33 = vsel %vm3465_vm4, %v12914_v58, -inf }
0x2c0d   : > { %12922 = vmax.xlane.f32.xlu0 %v12921_v39  ;;  %12925 = vmax.xlane.f32.xlu1 %v12924_v33  ;;  %v13370_v39 = vld [vmem:[%s20313_s4 + $0x8] sm:$0xff] }
0x2c0e   : > { %v16813_v33 = vpack.c.bf16 %v13370_v39, %v13369_v6 }
0x2c92   : > { %v12917_v12 = vpop.xlane.xlu0 %12916 }
0x2c93   : > { %v12927_v23 = vsub.f32 %v12683_v25, %v12917_v12  ;;  %v13372_v12 = vld [vmem:[%s20313_s4 + $0x18] sm:$0xff] }
0x2c95   : > { %v12931_v61 = vmul.f32 1.442695, %v12927_v23 }
0x2c96   : > { %v12920_v5 = vpop.xlane.xlu1 %12919 }
0x2c97   : > { %17203 = vpow2.f32 %v12931_v61  ;;  %v12928_v15 = vsub.f32 %v12760_v24, %v12920_v5 }
0x2c99   : > { %v12933_v10 = vmul.f32 1.442695, %v12928_v15 }
0x2c9a   : > { %v12923_v55 = vpop.xlane.xlu0 %12922  ;;  %v12926_v8 = vpop.xlane.xlu1 %12925 }
0x2c9b   : > { %17205 = vpow2.f32 %v12933_v10  ;;  %v12929_v49 = vsub.f32 %v12837_v18, %v12923_v55  ;;  %v12930_v56 = vsub.f32 %v12914_v58, %v12926_v8 }
0x2c9d   : > { %v12935_v9 = vmul.f32 1.442695, %v12929_v49  ;;  %v12937_v50 = vmul.f32 1.442695, %v12930_v56 }
0x2c9f   : > { %17207 = vpow2.f32 %v12935_v9 }
0x2ca0   : > { %17209 = vpow2.f32 %v12937_v50 }
0x2ca1   : > { %v17204_v59 = vpop.eup %17203 }
0x2ca2   : > { %v12939_v46 = vsel %vm3465_vm4, %v17204_v59, 0.0 }
0x2ca3   : > { %12940 = vadd.xlane.f32.xlu0 %v12939_v46 }
0x2ca5   : > { %v17206_v47 = vpop.eup %17205 }
0x2ca6   : > { %v12942_v35 = vsel %vm3465_vm4, %v17206_v47, 0.0 }
0x2ca7   : > { %12943 = vadd.xlane.f32.xlu1 %v12942_v35 }
0x2ca9   : > { %v17208_v22 = vpop.eup %17207 }
0x2caa   : > { %v17210_v1 = vpop.eup %17209  ;;  %v12945_v32 = vsel %vm3465_vm4, %v17208_v22, 0.0 }
0x2cab   : > { %12946 = vadd.xlane.f32.xlu0 %v12945_v32  ;;  %v12948_v34 = vsel %vm3465_vm4, %v17210_v1, 0.0 }
0x2cac   : > { %12949 = vadd.xlane.f32.xlu1 %v12948_v34 }
0x2d30   : > { %v12941_v40 = vpop.xlane.xlu0 %12940 }
0x2d31   : > { %17211 = vrcp.f32 %v12941_v40 }
0x2d34   : > { %v12944_v26 = vpop.xlane.xlu1 %12943 }
0x2d35   : > { %17213 = vrcp.f32 %v12944_v26 }
0x2d38   : > { %v12947_v7 = vpop.xlane.xlu0 %12946 }
0x2d39   : > { %17215 = vrcp.f32 %v12947_v7  ;;  %v12950_v13 = vpop.xlane.xlu1 %12949 }
0x2d3a   : > { %17217 = vrcp.f32 %v12950_v13 }
0x2d3b   : > { %v17212_v19 = vpop.eup %17211 }
0x2d3c   : > { %v12955_v28 = vmul.f32 %v17212_v19, %v17204_v59  ;;  %v14418_v19 = vld [vmem:[%s20317_s0] ss:$0 sm:$0xff] }
0x2d3e   : > { %16189 = vmatmul.mubr.msk.f32.vlgmr.msra.gmra.mrb[118].mxu0 %vm3465_vm4, %v12955_v28 }
0x2d3f   : > { %v17214_v21 = vpop.eup %17213  ;;  %16197 = vmatpush3.msra.mxu0 %v12534_v27  ;;  %16198 = vmatprep.mubr.msk.f32.mxu0 %vm17869_vm2, %v17870_v45 }
0x2d40   : > { %v12956_v53 = vmul.f32 %v17214_v21, %v17206_v47  ;;  %16806 = vmatprep.subr.bf16.mxu0 %v17867_v16 }
0x2d42   : > { %16194 = vmatmul.mubr.msk.f32.vlgmr.msra.gmra.mrb[138].mxu1 %vm3465_vm4, %v12956_v53 }
0x2d43   : > { %v17216_v44 = vpop.eup %17215  ;;  %16202 = vmatpush3.msra.mxu1 %v12604_v36  ;;  %16203 = vmatprep.mubr.msk.f32.mxu1 %vm17869_vm2, %v17870_v45 }
0x2d44   : > { %v17218_v38 = vpop.eup %17217  ;;  %v12957_v3 = vmul.f32 %v17216_v44, %v17208_v22  ;;  %16812 = vmatprep.subr.bf16.mxu1 %v17867_v16 }
0x2d45   : > { %v12958_v62 = vmul.f32 %v17218_v38, %v17210_v1 }
0x2d46   : > { %16199 = vmatmul.mubr.msk.f32.vlgmr.msra.gmra.mrb[120].mxu0 %vm3465_vm4, %v12957_v3 }
0x2d47   : > { %16204 = vmatmul.mubr.msk.f32.vlgmr.msra.gmra.mrb[140].mxu1 %vm3465_vm4, %v12958_v62  ;;  %16808 = vmatpush3.bf16.msra.mxu0 %v19857_v43 }
0x2d48   : > { %16809 = vmatprep.subr.bf16.mxu0 %v17867_v16  ;;  %16214 = vmatprep.mubr.msk.f32.mxu0 %vm17869_vm2, %v17870_v45 }
0x2d49   : > { %16225 = vmatprep.mubr.msk.f32.mxu1 %vm17869_vm2, %v17870_v45  ;;  %16814 = vmatpush3.bf16.msra.mxu1 %v16813_v33 }
0x2d4a   : > { %16815 = vmatprep.subr.bf16.mxu1 %v17867_v16 }
0x2d4b   : > { %16811 = vmatpush3.bf16.msra.mxu0 %v19861_v54 }
0x2d4c   : > { %16818 = vmatprep.subr.bf16.mxu0 %v17867_v16 }
0x2e11   : > { %v13028_v52 = vpop.f32.mrb[118].mxu0 }
0x2e12   : > { %v16190_v37 = vpop.f32.mrb[119].mxu0 }
0x2e15   : > { %v13101_v30 = vpop.f32.mrb[138].mxu1 }
0x2e16   : > { %13252 = vrot.lane.b32.xlu0 %v13101_v30, %s20282_s2  ;;  %v16195_v41 = vpop.f32.mrb[139].mxu1  ;;  %s20316_s2 = sld [smem:[#allocation66_spill]] }
0x2e19   : > { %v13174_v57 = vpop.f32.mrb[120].mxu0 }
0x2e1a   : > { %v13247_v43 = vpop.f32.mrb[140].mxu1  ;;  %v16200_v17 = vpop.f32.mrb[121].mxu0  ;;  %13256 = vrot.lane.b32.xlu1 %v13174_v57, %s20281_s1  ;;  %s20315_s1 = sld [smem:[#allocation67_spill]]  ;;  %v13574_v57 = vld [vmem:[%s18242_s5] sm:$0xff] }
0x2e1b   : > { %v16205_v42 = vpop.f32.mrb[141].mxu1 }
0x2e1c   : > { %v14417_v1 = vld [vmem:[%s20316_s2] ss:$0 sm:$0xff]  ;;  %v13576_v42 = vld [vmem:[%s18242_s5 + $0x10] sm:$0xff] }
0x2e1e   : > { %13260 = vrot.lane.b32.xlu1 %v13247_v43, %s20283_s3  ;;  %s20314_s3 = sld [smem:[#allocation63_spill]]  ;;  %v13575_v43 = vld [vmem:[%s18242_s5 + $0x8] sm:$0xff] }
0x2e1f   : > { %v16831_v17 = vpack.c.bf16 %v13575_v43, %v13574_v57 }
0x2e20   : > { %v14416_v35 = vld [vmem:[%s20315_s1] ss:$0 sm:$0xff] }
0x2e24   : > { %v13456_v61 = vld [vmem:[%s20314_s3] sm:$0xff]  ;;  %v13457_v5 = vld [vmem:[%s20314_s3 + $0x8] sm:$0xff]  ;;  %v13458_v15 = vld [vmem:[%s20314_s3 + $0x10] sm:$0xff] }
0x2e25   : > { %v16819_v10 = vpack.c.bf16 %v13457_v5, %v13456_v61  ;;  %v13459_v55 = vld [vmem:[%s20314_s3 + $0x18] sm:$0xff]  ;;  %v13460_v49 = vld [vmem:[%s20314_s3 + $0x20] sm:$0xff]  ;;  %v13461_v56 = vld [vmem:[%s20314_s3 + $0x28] sm:$0xff] }
0x2e26   : > { %v16822_v8 = vpack.c.bf16 %v13459_v55, %v13458_v15  ;;  %v16825_v9 = vpack.c.bf16 %v13461_v56, %v13460_v49  ;;  %v13462_v26 = vld [vmem:[%s20314_s3 + $0x30] sm:$0xff]  ;;  %v13463_v7 = vld [vmem:[%s20314_s3 + $0x38] sm:$0xff] }
0x2e27   : > { %v16828_v13 = vpack.c.bf16 %v13463_v7, %v13462_v26 }
0x2e88   : > { %v13253_v60 = vpop.permute.xlu0 %13252 }
0x2e89   : > { %v13263_v54 = vsel %vm3465_vm4, %v13028_v52, %v13253_v60  ;;  %v13577_v60 = vld [vmem:[%s18242_s5 + $0x18] sm:$0xff] }
0x2e8c   : > { %v13257_v63 = vpop.permute.xlu1 %13256 }
0x2e8d   : > { %v13264_v25 = vsel %vm4123_vm5, %v13263_v54, %v13257_v63  ;;  %v16834_v63 = vpack.c.bf16 %v13577_v60, %v13576_v42 }
0x2e90   : > { %v13261_v14 = vpop.permute.xlu1 %13260 }
0x2e91   : > { %v13265_v51 = vsel %vm4125_vm6, %v13264_v25, %v13261_v14 }
0x2e92   : > { %16215 = vmatmul.mubr.msk.f32.vlgmr.msra.gmra.mrb[122].mxu0 %vm2482_vm3, %v13265_v51 }
0x2e93   : > { %16244 = vmatprep.mubr.msk.f32.mxu0 %vm17869_vm2, %v17870_v45  ;;  %16820 = vmatpush3.bf16.msra.mxu0 %v16819_v10 }
0x2e94   : > { %16821 = vmatprep.subr.bf16.mxu0 %v17867_v16 }
0x2e97   : > { %16823 = vmatpush3.bf16.msra.mxu0 %v16822_v8 }
0x2e98   : > { %16824 = vmatprep.subr.bf16.mxu0 %v17867_v16 }
0x2e9b   : > { %16826 = vmatpush3.bf16.msra.mxu0 %v16825_v9 }
0x2e9c   : > { %16827 = vmatprep.subr.bf16.mxu0 %v17867_v16 }
0x2e9f   : > { %16829 = vmatpush3.bf16.msra.mxu0 %v16828_v13 }
0x2f65   : > { %v13335_v2 = vpop.f32.mrb[122].mxu0 }
0x2f66   : > { %v13336_v24 = vadd.f32 %v19879_v29, %v13335_v2  ;;  %v16216_v48 = vpop.f32.mrb[123].mxu0  ;;  %v13371_v29 = vld [vmem:[%s20313_s4 + $0x10] sm:$0xff]  ;;  %s20318_s4 = sld [smem:[#allocation62_spill]]  ;;  %v14422_v2 = vld [vmem:[#allocation4] ss:$0 sm:$0xff] }
0x2f67   : > { %v16816_v23 = vpack.c.bf16 %v13372_v12, %v13371_v29  ;;  %v14423_v48 = vld [vmem:[#allocation2] ss:$0 sm:$0xff] }
0x2f68   : > { %v13339_v4 = vsel %vm2482_vm3, %v13336_v24, 0.0 }
0x2f69   : > { %13340 = vadd.xlane.f32.xlu0 %v13339_v4  ;;  %16817 = vmatpush3.bf16.msra.mxu1 %v16816_v23 }
0x2f6a   : > { %16830 = vmatprep.subr.bf16.mxu1 %v17867_v16 }
0x2ff6   : > { %v13341_v31 = vpop.xlane.xlu0 %13340 }
0x2ff7   : > { %v13342_v0 = vmul.f32 0.03125, %v13341_v31 }
0x2ff9   : > { %v13343_v18 = vsub.f32 %v13336_v24, %v13342_v0 }
0x2ffb   : > { %v13344_v58 = vmul.f32 %v13343_v18, %v13343_v18 }
0x2ffd   : > { %v13345_v11 = vsel %vm2482_vm3, %v13344_v58, 0.0 }
0x2ffe   : > { %13346 = vadd.xlane.f32.xlu1 %v13345_v11 }
0x308b   : > { %v13347_v50 = vpop.xlane.xlu1 %13346 }
0x308c   : > { %v13348_v59 = vmul.f32 0.03125, %v13347_v50 }
0x308e   : > { %v13349_v46 = vadd.f32 1e-05, %v13348_v59 }
0x3090   : > { %17219 = vrsqrt.f32 %v13349_v46 }
0x309a   : > { %v17220_v47 = vpop.eup %17219 }
0x309b   : > { %v13351_v22 = vmul.f32 %v17220_v47, %v13343_v18  ;;  %v14424_v18 = vld [vmem:[#allocation28] ss:$0 sm:$0xff] }
0x309d   : > { %v13359_v32 = vmul.f32 %v14416_v35, %v13351_v22 }
0x309f   : > { %v13367_v34 = vadd.f32 %v14417_v1, %v13359_v32 }
0x30a1   : > { %v13368_v40 = vadd.f32 %v13367_v34, %v19887_v20  ;;  %v14420_v20 = vld [vmem:[%s20318_s4] ss:$0 sm:$0xff]  ;;  %s14002_s4 = sshll.u32 %s20320_s11, 3 }
0x30a2   : > { %s2358_s1 = scalar_lea.vmem %s18247_s24, %s14002_s4 }
0x30a3   : > { %16226 = vmatmul.mubr.msk.f32.vlgmr.msra.gmra.mrb[142].mxu1 %vm2482_vm3, %v13368_v40 }
0x30a4   : > { %16255 = vmatprep.mubr.msk.f32.mxu1 %vm17869_vm2, %v17870_v45  ;;  %16832 = vmatpush3.bf16.msra.mxu1 %v16831_v17 }
0x30a5   : > { %16833 = vmatprep.subr.bf16.mxu1 %v17867_v16 }
0x30a8   : > { %16835 = vmatpush3.bf16.msra.mxu1 %v16834_v63 }
0x3176   : > { %v13449_v28 = vpop.f32.mrb[142].mxu1 }
0x3177   : > { %v13450_v27 = vadd.f32 %v14418_v19, %v13449_v28  ;;  %v16227_v21 = vpop.f32.mrb[143].mxu1 }
0x3179   : > { %vm13453_vm11 = vcmp.ge.f32.partialorder %v13450_v27, 0.0  ;;  %v13454_v53 = vmul.f32 0.1, %v13450_v27 }
0x317b   : > { %v13455_v36 = vsel %vm13453_vm11, %v13450_v27, %v13454_v53 }
0x317c   : > { %16245 = vmatmul.mubr.msk.f32.vlgmr.msra.gmra.mrb[124].mxu0 %vm4344_vm8, %v13455_v36 }
0x324f   : > { %v13540_v44 = vpop.f32.mrb[124].mxu0 }
0x3250   : > { %v13541_v45 = vadd.f32 %v14420_v20, %v13540_v44  ;;  %v16246_v38 = vpop.f32.mrb[125].mxu0 }
0x3252   : > { %v13544_v3 = vsel %vm2482_vm3, %v13541_v45, 0.0 }
0x3253   : > { %13545 = vadd.xlane.f32.xlu0 %v13544_v3 }
0x32e0   : > { %v13546_v62 = vpop.xlane.xlu0 %13545 }
0x32e1   : > { %v13547_v52 = vmul.f32 0.03125, %v13546_v62 }
0x32e3   : > { %v13548_v37 = vsub.f32 %v13541_v45, %v13547_v52 }
0x32e5   : > { %v13549_v30 = vmul.f32 %v13548_v37, %v13548_v37 }
0x32e7   : > { %v13550_v41 = vsel %vm2482_vm3, %v13549_v30, 0.0 }
0x32e8   : > { %13551 = vadd.xlane.f32.xlu0 %v13550_v41 }
0x3375   : > { %v13552_v54 = vpop.xlane.xlu0 %13551 }
0x3376   : > { %v13553_v25 = vmul.f32 0.03125, %v13552_v54 }
0x3378   : > { %v13554_v14 = vadd.f32 1e-05, %v13553_v25 }
0x337a   : > { %17221 = vrsqrt.f32 %v13554_v14 }
0x3384   : > { %v17222_v51 = vpop.eup %17221 }
0x3385   : > { %v13556_v24 = vmul.f32 %v17222_v51, %v13548_v37 }
0x3387   : > { %v13564_v4 = vmul.f32 %v14422_v2, %v13556_v24 }
0x3389   : > { %v13572_v31 = vadd.f32 %v14423_v48, %v13564_v4 }
0x338b   : > { %v13573_v0 = vadd.f32 %v13572_v31, %v13541_v45 }
0x338d   : > { %16256 = vmatmul.mubr.msk.f32.vlgmr.msra.gmra.mrb[144].mxu1 %vm2482_vm3, %v13573_v0 }
0x3460   : > { %v13654_v16 = vpop.f32.mrb[144].mxu1 }
0x3461   : > { %v13655_v58 = vadd.f32 %v14424_v18, %v13654_v16  ;;  %v16257_v11 = vpop.f32.mrb[145].mxu1 }
0x3463   : > { %13658 = vst [vmem:[%s2358_s1] sm:$0xff] %v13655_v58 }
0x3464 PF: > { %s167_s7 = sadd.s32 1, %s17773_s7  }
0x3465   : > { %p164_p1 = scmp.ge.s32.totalorder %s167_s7, 4  }
0x3467   :  { %166 = sbr.rel (!%p164_p1) target bundleno = 154 (0x9a), region = 560 }
0x346e   :  { %13678 = vsyncpa [#allocation3], 1 }
0x346f   :  { %13680 = vsyncpa [#allocation3 + $0x1], 1 }
0x3470   :  { %13681 = vsyncpa [#allocation5], 1 }
0x3471   :  { %13682 = vsyncpa [#allocation8], 1 }
0x3472   :  { %13683 = vsyncpa [#allocation11], 1 }
0x3473   :  { %13684 = vsyncpa [#allocation14], 1 }
0x3474   :  { %13685 = vsyncpa [#allocation17], 1 }
0x3475   :  { %13686 = vsyncpa [#allocation20], 1 }
0x3476   :  { %13687 = vsyncpa [#allocation23], 1 }
0x3477   :  { %13688 = vsyncpa [#allocation26], 1 }
0x3478   :  { %13689 = vsyncpa [#allocation29], 1 }

</bundles_post_ra>
